<compile_context>
chip_gen: v7x
topology: tpu7x:2x2x1
jax: 0.10.0
libtpu: 0.0.40
codegen_flags: <defaults>
</compile_context>

<pallas_src>
import functools

import jax
import jax.numpy as jnp
from jax.experimental import pallas as pl
from jax.experimental.pallas import tpu as pltpu

# ----------------------------- small config ---------------------------------
EMB_IN = 1       # emb_in (single input channel)
SEQ_LEN = 8      # seq_len (small)
PRED_LEN = 8     # pred_len
EMB_LEN = 128    # emb_len
D_MODEL = 128    # LSTM hidden (small vs default 512)
N_LAYERS = 2
BATCH = 2
BP = 8           # batch rows padded to a full sublane tile inside the kernel
OUT_PAD = 128    # lane-dense padded width of the out_layer


# ----------------------------- fused Pallas kernel ---------------------------
def fused_forward_kernel(
    mark_ref,   # SMEM (B*L, 4) int32  temporal marks, row = b*L + t
    x_ref,      # VMEM (BP, L)   f32   raw series, batch-major (padded rows = 0)
    cw_ref,     # VMEM (3, 4H)   f32   conv_w @ W_ih1   (k=3 circular taps)
    pos_ref,    # VMEM (L, 4H)   f32   pos_emb @ W_ih1
    mon_ref,    # VMEM (13, 4H)  f32   month_emb @ W_ih1
    day_ref,    # VMEM (32, 4H)  f32   day_emb @ W_ih1
    wdy_ref,    # VMEM (7, 4H)   f32   weekday_emb @ W_ih1
    hr_ref,     # VMEM (24, 4H)  f32   hour_emb @ W_ih1
    b1_ref,     # VMEM (1, 4H)   f32   b_ih1 + b_hh1 folded
    whh1_ref,   # VMEM (H, 4H)   bf16
    wih2_ref,   # VMEM (H, 4H)   bf16
    whh2_ref,   # VMEM (H, 4H)   bf16
    b2_ref,     # VMEM (1, 4H)   f32   b_ih2 + b_hh2 folded
    outw_ref,   # VMEM (L*H, OUT_PAD) bf16 (zero-padded past PRED_LEN)
    outb_ref,   # VMEM (1, OUT_PAD)   f32
    o_ref,      # VMEM (BP, OUT_PAD)  f32
    gx_scr,     # VMEM (L*BP, 4H) f32  hoisted layer-1 input projections
    h2_scr,     # VMEM (BP, L*H)  f32  layer-2 hidden sequence (time along lanes)
    *, L, B, BP, H,
):
    f32 = jnp.float32
    bf16 = jnp.bfloat16

    # ---- Phase A (prologue, off the recurrent path): layer-1 input proj ----
    # DataEmbedding + x @ W_ih1 collapsed into gx-space (all f32):
    #   gx1[t,b] = x_taps(t,b) @ (conv_w @ W_ih1) + pos_emb[t] @ W_ih1
    #            + sum_f temporal_f[mark(t,b,f)] @ W_ih1 + (b_ih1 + b_hh1)
    for t in range(L):                                    # static, fully unrolled
        tm1 = (t - 1) % L
        tp1 = (t + 1) % L
        conv_t = (x_ref[:, tm1:tm1 + 1] * cw_ref[0:1, :]
                  + x_ref[:, t:t + 1] * cw_ref[1:2, :]
                  + x_ref[:, tp1:tp1 + 1] * cw_ref[2:3, :])          # (BP, 4H)
        gx_scr[t * BP:(t + 1) * BP, :] = conv_t + pos_ref[t:t + 1, :] + b1_ref[...]
    for t in range(L):                                    # temporal gathers
        for b in range(B):                                # real batch rows only
            s = b * L + t
            r = t * BP + b
            tem = (mon_ref[pl.ds(mark_ref[s, 0], 1), :]
                   + day_ref[pl.ds(mark_ref[s, 1], 1), :]
                   + wdy_ref[pl.ds(mark_ref[s, 2], 1), :]
                   + hr_ref[pl.ds(mark_ref[s, 3], 1), :])            # (1, 4H)
            gx_scr[r:r + 1, :] = gx_scr[r:r + 1, :] + tem

    # ---- LSTM cell (PyTorch gate order i,f,g,o; f32 gate math / state) -----
    def lstm_cell(gx_t, h, c, whh_ref):
        # gx_t already holds x_t @ W_ih + (b_ih + b_hh); only h @ W_hh sits on
        # the serial chain (bf16 MXU inputs, f32 accumulate).
        gates = gx_t + jnp.dot(h.astype(bf16), whh_ref[...],
                               preferred_element_type=f32)
        i = jax.nn.sigmoid(gates[:, 0:H])
        f = jax.nn.sigmoid(gates[:, H:2 * H])
        g = jnp.tanh(gates[:, 2 * H:3 * H])
        o = jax.nn.sigmoid(gates[:, 3 * H:4 * H])
        c = f * c + i * g
        h = o * jnp.tanh(c)
        return h, c

    # ---- Phase B: wavefront-interleaved layer-1 / layer-2 recurrence -------
    # Layer 2 runs one step behind layer 1 so the two serial chains overlap;
    # gx2_t only depends on h1_t, never on the layer-2 carry.
    h1 = jnp.zeros((BP, H), f32)
    c1 = jnp.zeros((BP, H), f32)
    h2 = jnp.zeros((BP, H), f32)
    c2 = jnp.zeros((BP, H), f32)
    b2 = b2_ref[...]
    gx2_prev = None
    for t in range(L):                                    # fully unrolled (L=8)
        h1, c1 = lstm_cell(gx_scr[t * BP:(t + 1) * BP, :], h1, c1, whh1_ref)
        gx2_t = jnp.dot(h1.astype(bf16), wih2_ref[...],
                        preferred_element_type=f32) + b2
        if t > 0:
            h2, c2 = lstm_cell(gx2_prev, h2, c2, whh2_ref)
            h2_scr[:, (t - 1) * H:t * H] = h2             # lane offset, aligned
        gx2_prev = gx2_t
    h2, c2 = lstm_cell(gx2_prev, h2, c2, whh2_ref)        # drain last layer-2 step
    h2_scr[:, (L - 1) * H:L * H] = h2

    # ---- Phase C: deferred out_layer: one (BP, L*H) @ (L*H, 128) matmul ----
    o_ref[...] = (jnp.dot(h2_scr[...].astype(bf16), outw_ref[...],
                          preferred_element_type=f32) + outb_ref[...])


def fused_forward_pallas(mark, x_bl, kw, *, batch):
    kernel = functools.partial(fused_forward_kernel,
                               L=SEQ_LEN, B=batch, BP=BP, H=D_MODEL)
    vmem = pl.BlockSpec(memory_space=pltpu.MemorySpace.VMEM)
    smem = pl.BlockSpec(memory_space=pltpu.MemorySpace.SMEM)
    return pl.pallas_call(
        kernel,
        out_shape=jax.ShapeDtypeStruct((BP, OUT_PAD), jnp.float32),
        in_specs=[smem] + [vmem] * 14,
        out_specs=vmem,
        scratch_shapes=[
            pltpu.VMEM((SEQ_LEN * BP, 4 * D_MODEL), jnp.float32),   # gx1 hoist
            pltpu.VMEM((BP, SEQ_LEN * D_MODEL), jnp.float32),       # h2 sequence
        ],
    )(mark, x_bl,
      kw["cw_gih"], kw["pos_gih"], kw["month_gih"], kw["day_gih"],
      kw["weekday_gih"], kw["hour_gih"], kw["b1"],
      kw["whh1"], kw["wih2"], kw["whh2"], kw["b2"],
      kw["out_w"], kw["out_b"])


# ----------------------------- params ----------------------------------------
def positional_embedding(L, d):
    pos = jnp.arange(L, dtype=jnp.float32)[:, None]
    i = jnp.arange(0, d, 2, dtype=jnp.float32)[None, :]
    div = jnp.exp(-jnp.log(10000.0) * i / d)
    pe = jnp.zeros((L, d), jnp.float32)
    pe = pe.at[:, 0::2].set(jnp.sin(pos * div))
    pe = pe.at[:, 1::2].set(jnp.cos(pos * div))
    return pe


def init_params(key):
    ks = jax.random.split(key, 12)
    p = {}
    # TokenEmbedding: Conv1d(EMB_IN, EMB_LEN, k=3, circular, bias=False),
    # stored tap-major (3*EMB_IN, EMB_LEN) so conv == x_taps @ conv_w.
    p["conv_w"] = 0.1 * jax.random.normal(ks[0], (3 * EMB_IN, EMB_LEN), jnp.float32)
    # temporal embedding tables (nn.Embedding equivalents)
    p["month_emb"] = 0.1 * jax.random.normal(ks[1], (13, EMB_LEN), jnp.float32)
    p["day_emb"] = 0.1 * jax.random.normal(ks[2], (32, EMB_LEN), jnp.float32)
    p["weekday_emb"] = 0.1 * jax.random.normal(ks[3], (7, EMB_LEN), jnp.float32)
    p["hour_emb"] = 0.1 * jax.random.normal(ks[4], (24, EMB_LEN), jnp.float32)  # has_hour
    # has_minute=False -> no minute table
    p["pos_emb"] = positional_embedding(SEQ_LEN, EMB_LEN)
    # LSTM layers (gate order i,f,g,o). Weights stored transposed vs PyTorch:
    # (Din, 4H) / (H, 4H); biases b_ih + b_hh folded into one (1, 4H).
    scale = 1.0 / jnp.sqrt(jnp.float32(D_MODEL))
    lstm = []
    for l in range(N_LAYERS):
        din = EMB_LEN if l == 0 else D_MODEL
        k1, k2, k3 = jax.random.split(ks[5 + l], 3)
        lstm.append(dict(
            w_ih=jax.random.uniform(k1, (din, 4 * D_MODEL), jnp.float32, -scale, scale),
            w_hh=jax.random.uniform(k2, (D_MODEL, 4 * D_MODEL), jnp.float32, -scale, scale),
            b=jax.random.uniform(k3, (1, 4 * D_MODEL), jnp.float32, -scale, scale),
        ))
    p["lstm"] = lstm
    # out_layer: Linear(D_MODEL*SEQ_LEN, PRED_LEN), bias=True
    fan_in = D_MODEL * SEQ_LEN
    s = 1.0 / jnp.sqrt(jnp.float32(fan_in))
    p["out_w"] = jax.random.uniform(ks[10], (fan_in, PRED_LEN), jnp.float32, -s, s)
    p["out_b"] = jax.random.uniform(ks[11], (1, PRED_LEN), jnp.float32, -s, s)
    return p


def make_kernel_weights(p):
    """One-time, offline conversion to the fused kernel's weight formats.

    The entire DataEmbedding + layer-1 input projection is folded into
    gx-space in f32 (conv/pos/temporal tables pre-multiplied by W_ih1), MXU
    matmul weights are cast to bf16, and the out_layer is zero-padded to 128
    output lanes so the final store is lane-dense.
    """
    w_ih1 = p["lstm"][0]["w_ih"]                       # (E, 4H) f32
    kw = {
        "cw_gih": p["conv_w"] @ w_ih1,                 # (3,  4H)
        "pos_gih": p["pos_emb"] @ w_ih1,               # (L,  4H)
        "month_gih": p["month_emb"] @ w_ih1,           # (13, 4H)
        "day_gih": p["day_emb"] @ w_ih1,               # (32, 4H)
        "weekday_gih": p["weekday_emb"] @ w_ih1,       # (7,  4H)
        "hour_gih": p["hour_emb"] @ w_ih1,             # (24, 4H)
        "b1": p["lstm"][0]["b"],
        "whh1": p["lstm"][0]["w_hh"].astype(jnp.bfloat16),
        "wih2": p["lstm"][1]["w_ih"].astype(jnp.bfloat16),
        "whh2": p["lstm"][1]["w_hh"].astype(jnp.bfloat16),
        "b2": p["lstm"][1]["b"],
    }
    out_w = jnp.zeros((p["out_w"].shape[0], OUT_PAD), jnp.float32)
    out_w = out_w.at[:, :PRED_LEN].set(p["out_w"])
    out_b = jnp.zeros((1, OUT_PAD), jnp.float32)
    out_b = out_b.at[:, :PRED_LEN].set(p["out_b"])
    kw["out_w"] = out_w.astype(jnp.bfloat16)
    kw["out_b"] = out_b
    return kw


# ----------------------------- forward paths ---------------------------------
def forward_pallas(kw, inputs, input_mark):
    B, L, C = inputs.shape
    assert C == EMB_IN == 1 and L == SEQ_LEN and B <= BP
    # Only trivial glue remains host-side: (B,L,1)->(BP,L) batch-major series
    # (padded rows are zero and never read back) and the int32 mark table that
    # the kernel reads from SMEM.  Circular conv taps, positional + temporal
    # embedding gathers and all projections happen inside the one pallas_call.
    x_bl = jnp.pad(inputs[:, :, 0], ((0, BP - B), (0, 0)))        # (BP, L)
    mark = input_mark.reshape(B * L, 4).astype(jnp.int32)         # row = b*L + t
    # TODO(synk): DataEmbedding dropout(p=0.1) and the pre-out_layer dropout
    # are inference-mode identity here.
    out_pad = fused_forward_pallas(mark, x_bl, kw, batch=B)
    return out_pad[:B, :PRED_LEN]


def lstm_layer_ref(x_seq, w_ih, w_hh, b):
    L, B, _ = x_seq.shape
    H = w_hh.shape[0]

    def step(carry, xt):
        h, c = carry
        gates = xt @ w_ih + h @ w_hh + b
        i = jax.nn.sigmoid(gates[:, :H])
        f = jax.nn.sigmoid(gates[:, H:2 * H])
        g = jnp.tanh(gates[:, 2 * H:3 * H])
        o = jax.nn.sigmoid(gates[:, 3 * H:])
        c = f * c + i * g
        h = o * jnp.tanh(c)
        return (h, c), h

    init = (jnp.zeros((B, H), jnp.float32), jnp.zeros((B, H), jnp.float32))
    _, hs = jax.lax.scan(step, init, x_seq)
    return hs


def forward_ref(params, inputs, input_mark):
    B, L, C = inputs.shape
    x_taps = jnp.concatenate(
        [jnp.roll(inputs, 1, axis=1), inputs, jnp.roll(inputs, -1, axis=1)], axis=-1
    ).reshape(B * L, 3 * C)
    temporal = (params["month_emb"][input_mark[..., 0]]
                + params["day_emb"][input_mark[..., 1]]
                + params["weekday_emb"][input_mark[..., 2]]
                + params["hour_emb"][input_mark[..., 3]])          # (B, L, E)
    add = (temporal + params["pos_emb"][None]).reshape(B * L, EMB_LEN)
    emb = (x_taps @ params["conv_w"] + add).reshape(B, L, EMB_LEN)
    x = jnp.transpose(emb, (1, 0, 2))
    for lp in params["lstm"]:
        x = lstm_layer_ref(x, lp["w_ih"], lp["w_hh"], lp["b"])
    x = jnp.transpose(x, (1, 0, 2)).reshape(B, L * D_MODEL)
    return x @ params["out_w"] + params["out_b"]


# ----------------------------- main -------------------------------------------
if __name__ == "__main__":
    key = jax.random.PRNGKey(0)
    kp, kx, km = jax.random.split(key, 3)
    params = init_params(kp)
    kw = make_kernel_weights(params)

    inputs = jax.random.normal(kx, (BATCH, SEQ_LEN, EMB_IN), jnp.float32)
    mk = jax.random.split(km, 4)
    input_mark = jnp.stack(
        [
            jax.random.randint(mk[0], (BATCH, SEQ_LEN), 0, 13),
            jax.random.randint(mk[1], (BATCH, SEQ_LEN), 0, 32),
            jax.random.randint(mk[2], (BATCH, SEQ_LEN), 0, 7),
            jax.random.randint(mk[3], (BATCH, SEQ_LEN), 0, 24),
        ],
        axis=-1,
    ).astype(jnp.int32)

    fwd_pallas = jax.jit(forward_pallas)
    fwd_ref = jax.jit(forward_ref)

    out = fwd_pallas(kw, inputs, input_mark)
    jax.block_until_ready(out)
    ref = fwd_ref(params, inputs, input_mark)
    jax.block_until_ready(ref)

    assert out.shape == (BATCH, PRED_LEN), out.shape
    # Kernel uses bf16 MXU inputs with f32 accumulation for the recurrent and
    # output matmuls; reference is all-f32, so allow bf16-level tolerance.
    assert jnp.allclose(out, ref, rtol=2e-2, atol=2e-2), float(jnp.max(jnp.abs(out - ref)))
    print("KERNEL_OK")
</pallas_src>

<mosaic_0001>
module attributes {stable_mosaic.version = 11 : i64} {
  func.func @fused_forward_kernel(%arg0: memref<16x4xi32, #tpu.memory_space<smem>>, %arg1: memref<8x8xf32, #tpu.memory_space<vmem>>, %arg2: memref<3x512xf32, #tpu.memory_space<vmem>>, %arg3: memref<8x512xf32, #tpu.memory_space<vmem>>, %arg4: memref<13x512xf32, #tpu.memory_space<vmem>>, %arg5: memref<32x512xf32, #tpu.memory_space<vmem>>, %arg6: memref<7x512xf32, #tpu.memory_space<vmem>>, %arg7: memref<24x512xf32, #tpu.memory_space<vmem>>, %arg8: memref<1x512xf32, #tpu.memory_space<vmem>>, %arg9: memref<128x512xbf16, #tpu.memory_space<vmem>>, %arg10: memref<128x512xbf16, #tpu.memory_space<vmem>>, %arg11: memref<128x512xbf16, #tpu.memory_space<vmem>>, %arg12: memref<1x512xf32, #tpu.memory_space<vmem>>, %arg13: memref<1024x128xbf16, #tpu.memory_space<vmem>>, %arg14: memref<1x128xf32, #tpu.memory_space<vmem>>, %arg15: memref<8x128xf32, #tpu.memory_space<vmem>>, %arg16: memref<64x512xf32, #tpu.memory_space<vmem>>, %arg17: memref<8x1024xf32, #tpu.memory_space<vmem>>) attributes {dimension_semantics = [], scalar_prefetch = 0 : i64, scratch_operands = 2 : i64, tpu.core_type = #tpu.core_type<tc>} {
    %c0 = arith.constant 0 : index
    %c7 = arith.constant 7 : index
    %0 = vector.load %arg1[%c0, %c7] : memref<8x8xf32, #tpu.memory_space<vmem>>, vector<8x1xf32>
    %c0_0 = arith.constant 0 : index
    %c0_1 = arith.constant 0 : index
    %1 = vector.load %arg2[%c0_0, %c0_1] : memref<3x512xf32, #tpu.memory_space<vmem>>, vector<1x512xf32>
    %2 = vector.broadcast %0 : vector<8x1xf32> to vector<8x512xf32>
    %3 = vector.broadcast %1 : vector<1x512xf32> to vector<8x512xf32>
    %4 = arith.mulf %2, %3 : vector<8x512xf32>
    %c0_2 = arith.constant 0 : index
    %c0_3 = arith.constant 0 : index
    %5 = vector.load %arg1[%c0_2, %c0_3] : memref<8x8xf32, #tpu.memory_space<vmem>>, vector<8x1xf32>
    %c1 = arith.constant 1 : index
    %c0_4 = arith.constant 0 : index
    %6 = vector.load %arg2[%c1, %c0_4] : memref<3x512xf32, #tpu.memory_space<vmem>>, vector<1x512xf32>
    %7 = vector.broadcast %5 : vector<8x1xf32> to vector<8x512xf32>
    %8 = vector.broadcast %6 : vector<1x512xf32> to vector<8x512xf32>
    %9 = arith.mulf %7, %8 : vector<8x512xf32>
    %10 = arith.addf %4, %9 : vector<8x512xf32>
    %c0_5 = arith.constant 0 : index
    %c1_6 = arith.constant 1 : index
    %11 = vector.load %arg1[%c0_5, %c1_6] : memref<8x8xf32, #tpu.memory_space<vmem>>, vector<8x1xf32>
    %c2 = arith.constant 2 : index
    %c0_7 = arith.constant 0 : index
    %12 = vector.load %arg2[%c2, %c0_7] : memref<3x512xf32, #tpu.memory_space<vmem>>, vector<1x512xf32>
    %13 = vector.broadcast %11 : vector<8x1xf32> to vector<8x512xf32>
    %14 = vector.broadcast %12 : vector<1x512xf32> to vector<8x512xf32>
    %15 = arith.mulf %13, %14 : vector<8x512xf32>
    %16 = arith.addf %10, %15 : vector<8x512xf32>
    %c0_8 = arith.constant 0 : index
    %c0_9 = arith.constant 0 : index
    %17 = vector.load %arg3[%c0_8, %c0_9] : memref<8x512xf32, #tpu.memory_space<vmem>>, vector<1x512xf32>
    %18 = vector.broadcast %17 : vector<1x512xf32> to vector<8x512xf32>
    %19 = arith.addf %16, %18 : vector<8x512xf32>
    %c0_10 = arith.constant 0 : index
    %c0_11 = arith.constant 0 : index
    %20 = vector.load %arg8[%c0_10, %c0_11] : memref<1x512xf32, #tpu.memory_space<vmem>>, vector<1x512xf32>
    %21 = vector.broadcast %20 : vector<1x512xf32> to vector<8x512xf32>
    %22 = arith.addf %19, %21 : vector<8x512xf32>
    %c0_12 = arith.constant 0 : index
    %c0_13 = arith.constant 0 : index
    %23 = vector.load %arg16[%c0_12, %c0_13] : memref<64x512xf32, #tpu.memory_space<vmem>>, vector<8x512xf32>
    tpu.vector_store %arg16[%c0_12, %c0_13], %22 {strides = array<i32>} : memref<64x512xf32, #tpu.memory_space<vmem>>, vector<8x512xf32>,
    %c0_14 = arith.constant 0 : index
    %c0_15 = arith.constant 0 : index
    %24 = vector.load %arg1[%c0_14, %c0_15] : memref<8x8xf32, #tpu.memory_space<vmem>>, vector<8x1xf32>
    %c0_16 = arith.constant 0 : index
    %c0_17 = arith.constant 0 : index
    %25 = vector.load %arg2[%c0_16, %c0_17] : memref<3x512xf32, #tpu.memory_space<vmem>>, vector<1x512xf32>
    %26 = vector.broadcast %24 : vector<8x1xf32> to vector<8x512xf32>
    %27 = vector.broadcast %25 : vector<1x512xf32> to vector<8x512xf32>
    %28 = arith.mulf %26, %27 : vector<8x512xf32>
    %c0_18 = arith.constant 0 : index
    %c1_19 = arith.constant 1 : index
    %29 = vector.load %arg1[%c0_18, %c1_19] : memref<8x8xf32, #tpu.memory_space<vmem>>, vector<8x1xf32>
    %c1_20 = arith.constant 1 : index
    %c0_21 = arith.constant 0 : index
    %30 = vector.load %arg2[%c1_20, %c0_21] : memref<3x512xf32, #tpu.memory_space<vmem>>, vector<1x512xf32>
    %31 = vector.broadcast %29 : vector<8x1xf32> to vector<8x512xf32>
    %32 = vector.broadcast %30 : vector<1x512xf32> to vector<8x512xf32>
    %33 = arith.mulf %31, %32 : vector<8x512xf32>
    %34 = arith.addf %28, %33 : vector<8x512xf32>
    %c0_22 = arith.constant 0 : index
    %c2_23 = arith.constant 2 : index
    %35 = vector.load %arg1[%c0_22, %c2_23] : memref<8x8xf32, #tpu.memory_space<vmem>>, vector<8x1xf32>
    %c2_24 = arith.constant 2 : index
    %c0_25 = arith.constant 0 : index
    %36 = vector.load %arg2[%c2_24, %c0_25] : memref<3x512xf32, #tpu.memory_space<vmem>>, vector<1x512xf32>
    %37 = vector.broadcast %35 : vector<8x1xf32> to vector<8x512xf32>
    %38 = vector.broadcast %36 : vector<1x512xf32> to vector<8x512xf32>
    %39 = arith.mulf %37, %38 : vector<8x512xf32>
    %40 = arith.addf %34, %39 : vector<8x512xf32>
    %c1_26 = arith.constant 1 : index
    %c0_27 = arith.constant 0 : index
    %41 = vector.load %arg3[%c1_26, %c0_27] : memref<8x512xf32, #tpu.memory_space<vmem>>, vector<1x512xf32>
    %42 = vector.broadcast %41 : vector<1x512xf32> to vector<8x512xf32>
    %43 = arith.addf %40, %42 : vector<8x512xf32>
    %c0_28 = arith.constant 0 : index
    %c0_29 = arith.constant 0 : index
    %44 = vector.load %arg8[%c0_28, %c0_29] : memref<1x512xf32, #tpu.memory_space<vmem>>, vector<1x512xf32>
    %45 = vector.broadcast %44 : vector<1x512xf32> to vector<8x512xf32>
    %46 = arith.addf %43, %45 : vector<8x512xf32>
    %c8 = arith.constant 8 : index
    %c0_30 = arith.constant 0 : index
    %47 = vector.load %arg16[%c8, %c0_30] : memref<64x512xf32, #tpu.memory_space<vmem>>, vector<8x512xf32>
    tpu.vector_store %arg16[%c8, %c0_30], %46 {strides = array<i32>} : memref<64x512xf32, #tpu.memory_space<vmem>>, vector<8x512xf32>,
    %c0_31 = arith.constant 0 : index
    %c1_32 = arith.constant 1 : index
    %48 = vector.load %arg1[%c0_31, %c1_32] : memref<8x8xf32, #tpu.memory_space<vmem>>, vector<8x1xf32>
    %c0_33 = arith.constant 0 : index
    %c0_34 = arith.constant 0 : index
    %49 = vector.load %arg2[%c0_33, %c0_34] : memref<3x512xf32, #tpu.memory_space<vmem>>, vector<1x512xf32>
    %50 = vector.broadcast %48 : vector<8x1xf32> to vector<8x512xf32>
    %51 = vector.broadcast %49 : vector<1x512xf32> to vector<8x512xf32>
    %52 = arith.mulf %50, %51 : vector<8x512xf32>
    %c0_35 = arith.constant 0 : index
    %c2_36 = arith.constant 2 : index
    %53 = vector.load %arg1[%c0_35, %c2_36] : memref<8x8xf32, #tpu.memory_space<vmem>>, vector<8x1xf32>
    %c1_37 = arith.constant 1 : index
    %c0_38 = arith.constant 0 : index
    %54 = vector.load %arg2[%c1_37, %c0_38] : memref<3x512xf32, #tpu.memory_space<vmem>>, vector<1x512xf32>
    %55 = vector.broadcast %53 : vector<8x1xf32> to vector<8x512xf32>
    %56 = vector.broadcast %54 : vector<1x512xf32> to vector<8x512xf32>
    %57 = arith.mulf %55, %56 : vector<8x512xf32>
    %58 = arith.addf %52, %57 : vector<8x512xf32>
    %c0_39 = arith.constant 0 : index
    %c3 = arith.constant 3 : index
    %59 = vector.load %arg1[%c0_39, %c3] : memref<8x8xf32, #tpu.memory_space<vmem>>, vector<8x1xf32>
    %c2_40 = arith.constant 2 : index
    %c0_41 = arith.constant 0 : index
    %60 = vector.load %arg2[%c2_40, %c0_41] : memref<3x512xf32, #tpu.memory_space<vmem>>, vector<1x512xf32>
    %61 = vector.broadcast %59 : vector<8x1xf32> to vector<8x512xf32>
    %62 = vector.broadcast %60 : vector<1x512xf32> to vector<8x512xf32>
    %63 = arith.mulf %61, %62 : vector<8x512xf32>
    %64 = arith.addf %58, %63 : vector<8x512xf32>
    %c2_42 = arith.constant 2 : index
    %c0_43 = arith.constant 0 : index
    %65 = vector.load %arg3[%c2_42, %c0_43] : memref<8x512xf32, #tpu.memory_space<vmem>>, vector<1x512xf32>
    %66 = vector.broadcast %65 : vector<1x512xf32> to vector<8x512xf32>
    %67 = arith.addf %64, %66 : vector<8x512xf32>
    %c0_44 = arith.constant 0 : index
    %c0_45 = arith.constant 0 : index
    %68 = vector.load %arg8[%c0_44, %c0_45] : memref<1x512xf32, #tpu.memory_space<vmem>>, vector<1x512xf32>
    %69 = vector.broadcast %68 : vector<1x512xf32> to vector<8x512xf32>
    %70 = arith.addf %67, %69 : vector<8x512xf32>
    %c16 = arith.constant 16 : index
    %c0_46 = arith.constant 0 : index
    %71 = vector.load %arg16[%c16, %c0_46] : memref<64x512xf32, #tpu.memory_space<vmem>>, vector<8x512xf32>
    tpu.vector_store %arg16[%c16, %c0_46], %70 {strides = array<i32>} : memref<64x512xf32, #tpu.memory_space<vmem>>, vector<8x512xf32>,
    %c0_47 = arith.constant 0 : index
    %c2_48 = arith.constant 2 : index
    %72 = vector.load %arg1[%c0_47, %c2_48] : memref<8x8xf32, #tpu.memory_space<vmem>>, vector<8x1xf32>
    %c0_49 = arith.constant 0 : index
    %c0_50 = arith.constant 0 : index
    %73 = vector.load %arg2[%c0_49, %c0_50] : memref<3x512xf32, #tpu.memory_space<vmem>>, vector<1x512xf32>
    %74 = vector.broadcast %72 : vector<8x1xf32> to vector<8x512xf32>
    %75 = vector.broadcast %73 : vector<1x512xf32> to vector<8x512xf32>
    %76 = arith.mulf %74, %75 : vector<8x512xf32>
    %c0_51 = arith.constant 0 : index
    %c3_52 = arith.constant 3 : index
    %77 = vector.load %arg1[%c0_51, %c3_52] : memref<8x8xf32, #tpu.memory_space<vmem>>, vector<8x1xf32>
    %c1_53 = arith.constant 1 : index
    %c0_54 = arith.constant 0 : index
    %78 = vector.load %arg2[%c1_53, %c0_54] : memref<3x512xf32, #tpu.memory_space<vmem>>, vector<1x512xf32>
    %79 = vector.broadcast %77 : vector<8x1xf32> to vector<8x512xf32>
    %80 = vector.broadcast %78 : vector<1x512xf32> to vector<8x512xf32>
    %81 = arith.mulf %79, %80 : vector<8x512xf32>
    %82 = arith.addf %76, %81 : vector<8x512xf32>
    %c0_55 = arith.constant 0 : index
    %c4 = arith.constant 4 : index
    %83 = vector.load %arg1[%c0_55, %c4] : memref<8x8xf32, #tpu.memory_space<vmem>>, vector<8x1xf32>
    %c2_56 = arith.constant 2 : index
    %c0_57 = arith.constant 0 : index
    %84 = vector.load %arg2[%c2_56, %c0_57] : memref<3x512xf32, #tpu.memory_space<vmem>>, vector<1x512xf32>
    %85 = vector.broadcast %83 : vector<8x1xf32> to vector<8x512xf32>
    %86 = vector.broadcast %84 : vector<1x512xf32> to vector<8x512xf32>
    %87 = arith.mulf %85, %86 : vector<8x512xf32>
    %88 = arith.addf %82, %87 : vector<8x512xf32>
    %c3_58 = arith.constant 3 : index
    %c0_59 = arith.constant 0 : index
    %89 = vector.load %arg3[%c3_58, %c0_59] : memref<8x512xf32, #tpu.memory_space<vmem>>, vector<1x512xf32>
    %90 = vector.broadcast %89 : vector<1x512xf32> to vector<8x512xf32>
    %91 = arith.addf %88, %90 : vector<8x512xf32>
    %c0_60 = arith.constant 0 : index
    %c0_61 = arith.constant 0 : index
    %92 = vector.load %arg8[%c0_60, %c0_61] : memref<1x512xf32, #tpu.memory_space<vmem>>, vector<1x512xf32>
    %93 = vector.broadcast %92 : vector<1x512xf32> to vector<8x512xf32>
    %94 = arith.addf %91, %93 : vector<8x512xf32>
    %c24 = arith.constant 24 : index
    %c0_62 = arith.constant 0 : index
    %95 = vector.load %arg16[%c24, %c0_62] : memref<64x512xf32, #tpu.memory_space<vmem>>, vector<8x512xf32>
    tpu.vector_store %arg16[%c24, %c0_62], %94 {strides = array<i32>} : memref<64x512xf32, #tpu.memory_space<vmem>>, vector<8x512xf32>,
    %c0_63 = arith.constant 0 : index
    %c3_64 = arith.constant 3 : index
    %96 = vector.load %arg1[%c0_63, %c3_64] : memref<8x8xf32, #tpu.memory_space<vmem>>, vector<8x1xf32>
    %c0_65 = arith.constant 0 : index
    %c0_66 = arith.constant 0 : index
    %97 = vector.load %arg2[%c0_65, %c0_66] : memref<3x512xf32, #tpu.memory_space<vmem>>, vector<1x512xf32>
    %98 = vector.broadcast %96 : vector<8x1xf32> to vector<8x512xf32>
    %99 = vector.broadcast %97 : vector<1x512xf32> to vector<8x512xf32>
    %100 = arith.mulf %98, %99 : vector<8x512xf32>
    %c0_67 = arith.constant 0 : index
    %c4_68 = arith.constant 4 : index
    %101 = vector.load %arg1[%c0_67, %c4_68] : memref<8x8xf32, #tpu.memory_space<vmem>>, vector<8x1xf32>
    %c1_69 = arith.constant 1 : index
    %c0_70 = arith.constant 0 : index
    %102 = vector.load %arg2[%c1_69, %c0_70] : memref<3x512xf32, #tpu.memory_space<vmem>>, vector<1x512xf32>
    %103 = vector.broadcast %101 : vector<8x1xf32> to vector<8x512xf32>
    %104 = vector.broadcast %102 : vector<1x512xf32> to vector<8x512xf32>
    %105 = arith.mulf %103, %104 : vector<8x512xf32>
    %106 = arith.addf %100, %105 : vector<8x512xf32>
    %c0_71 = arith.constant 0 : index
    %c5 = arith.constant 5 : index
    %107 = vector.load %arg1[%c0_71, %c5] : memref<8x8xf32, #tpu.memory_space<vmem>>, vector<8x1xf32>
    %c2_72 = arith.constant 2 : index
    %c0_73 = arith.constant 0 : index
    %108 = vector.load %arg2[%c2_72, %c0_73] : memref<3x512xf32, #tpu.memory_space<vmem>>, vector<1x512xf32>
    %109 = vector.broadcast %107 : vector<8x1xf32> to vector<8x512xf32>
    %110 = vector.broadcast %108 : vector<1x512xf32> to vector<8x512xf32>
    %111 = arith.mulf %109, %110 : vector<8x512xf32>
    %112 = arith.addf %106, %111 : vector<8x512xf32>
    %c4_74 = arith.constant 4 : index
    %c0_75 = arith.constant 0 : index
    %113 = vector.load %arg3[%c4_74, %c0_75] : memref<8x512xf32, #tpu.memory_space<vmem>>, vector<1x512xf32>
    %114 = vector.broadcast %113 : vector<1x512xf32> to vector<8x512xf32>
    %115 = arith.addf %112, %114 : vector<8x512xf32>
    %c0_76 = arith.constant 0 : index
    %c0_77 = arith.constant 0 : index
    %116 = vector.load %arg8[%c0_76, %c0_77] : memref<1x512xf32, #tpu.memory_space<vmem>>, vector<1x512xf32>
    %117 = vector.broadcast %116 : vector<1x512xf32> to vector<8x512xf32>
    %118 = arith.addf %115, %117 : vector<8x512xf32>
    %c32 = arith.constant 32 : index
    %c0_78 = arith.constant 0 : index
    %119 = vector.load %arg16[%c32, %c0_78] : memref<64x512xf32, #tpu.memory_space<vmem>>, vector<8x512xf32>
    tpu.vector_store %arg16[%c32, %c0_78], %118 {strides = array<i32>} : memref<64x512xf32, #tpu.memory_space<vmem>>, vector<8x512xf32>,
    %c0_79 = arith.constant 0 : index
    %c4_80 = arith.constant 4 : index
    %120 = vector.load %arg1[%c0_79, %c4_80] : memref<8x8xf32, #tpu.memory_space<vmem>>, vector<8x1xf32>
    %c0_81 = arith.constant 0 : index
    %c0_82 = arith.constant 0 : index
    %121 = vector.load %arg2[%c0_81, %c0_82] : memref<3x512xf32, #tpu.memory_space<vmem>>, vector<1x512xf32>
    %122 = vector.broadcast %120 : vector<8x1xf32> to vector<8x512xf32>
    %123 = vector.broadcast %121 : vector<1x512xf32> to vector<8x512xf32>
    %124 = arith.mulf %122, %123 : vector<8x512xf32>
    %c0_83 = arith.constant 0 : index
    %c5_84 = arith.constant 5 : index
    %125 = vector.load %arg1[%c0_83, %c5_84] : memref<8x8xf32, #tpu.memory_space<vmem>>, vector<8x1xf32>
    %c1_85 = arith.constant 1 : index
    %c0_86 = arith.constant 0 : index
    %126 = vector.load %arg2[%c1_85, %c0_86] : memref<3x512xf32, #tpu.memory_space<vmem>>, vector<1x512xf32>
    %127 = vector.broadcast %125 : vector<8x1xf32> to vector<8x512xf32>
    %128 = vector.broadcast %126 : vector<1x512xf32> to vector<8x512xf32>
    %129 = arith.mulf %127, %128 : vector<8x512xf32>
    %130 = arith.addf %124, %129 : vector<8x512xf32>
    %c0_87 = arith.constant 0 : index
    %c6 = arith.constant 6 : index
    %131 = vector.load %arg1[%c0_87, %c6] : memref<8x8xf32, #tpu.memory_space<vmem>>, vector<8x1xf32>
    %c2_88 = arith.constant 2 : index
    %c0_89 = arith.constant 0 : index
    %132 = vector.load %arg2[%c2_88, %c0_89] : memref<3x512xf32, #tpu.memory_space<vmem>>, vector<1x512xf32>
    %133 = vector.broadcast %131 : vector<8x1xf32> to vector<8x512xf32>
    %134 = vector.broadcast %132 : vector<1x512xf32> to vector<8x512xf32>
    %135 = arith.mulf %133, %134 : vector<8x512xf32>
    %136 = arith.addf %130, %135 : vector<8x512xf32>
    %c5_90 = arith.constant 5 : index
    %c0_91 = arith.constant 0 : index
    %137 = vector.load %arg3[%c5_90, %c0_91] : memref<8x512xf32, #tpu.memory_space<vmem>>, vector<1x512xf32>
    %138 = vector.broadcast %137 : vector<1x512xf32> to vector<8x512xf32>
    %139 = arith.addf %136, %138 : vector<8x512xf32>
    %c0_92 = arith.constant 0 : index
    %c0_93 = arith.constant 0 : index
    %140 = vector.load %arg8[%c0_92, %c0_93] : memref<1x512xf32, #tpu.memory_space<vmem>>, vector<1x512xf32>
    %141 = vector.broadcast %140 : vector<1x512xf32> to vector<8x512xf32>
    %142 = arith.addf %139, %141 : vector<8x512xf32>
    %c40 = arith.constant 40 : index
    %c0_94 = arith.constant 0 : index
    %143 = vector.load %arg16[%c40, %c0_94] : memref<64x512xf32, #tpu.memory_space<vmem>>, vector<8x512xf32>
    tpu.vector_store %arg16[%c40, %c0_94], %142 {strides = array<i32>} : memref<64x512xf32, #tpu.memory_space<vmem>>, vector<8x512xf32>,
    %c0_95 = arith.constant 0 : index
    %c5_96 = arith.constant 5 : index
    %144 = vector.load %arg1[%c0_95, %c5_96] : memref<8x8xf32, #tpu.memory_space<vmem>>, vector<8x1xf32>
    %c0_97 = arith.constant 0 : index
    %c0_98 = arith.constant 0 : index
    %145 = vector.load %arg2[%c0_97, %c0_98] : memref<3x512xf32, #tpu.memory_space<vmem>>, vector<1x512xf32>
    %146 = vector.broadcast %144 : vector<8x1xf32> to vector<8x512xf32>
    %147 = vector.broadcast %145 : vector<1x512xf32> to vector<8x512xf32>
    %148 = arith.mulf %146, %147 : vector<8x512xf32>
    %c0_99 = arith.constant 0 : index
    %c6_100 = arith.constant 6 : index
    %149 = vector.load %arg1[%c0_99, %c6_100] : memref<8x8xf32, #tpu.memory_space<vmem>>, vector<8x1xf32>
    %c1_101 = arith.constant 1 : index
    %c0_102 = arith.constant 0 : index
    %150 = vector.load %arg2[%c1_101, %c0_102] : memref<3x512xf32, #tpu.memory_space<vmem>>, vector<1x512xf32>
    %151 = vector.broadcast %149 : vector<8x1xf32> to vector<8x512xf32>
    %152 = vector.broadcast %150 : vector<1x512xf32> to vector<8x512xf32>
    %153 = arith.mulf %151, %152 : vector<8x512xf32>
    %154 = arith.addf %148, %153 : vector<8x512xf32>
    %c0_103 = arith.constant 0 : index
    %c7_104 = arith.constant 7 : index
    %155 = vector.load %arg1[%c0_103, %c7_104] : memref<8x8xf32, #tpu.memory_space<vmem>>, vector<8x1xf32>
    %c2_105 = arith.constant 2 : index
    %c0_106 = arith.constant 0 : index
    %156 = vector.load %arg2[%c2_105, %c0_106] : memref<3x512xf32, #tpu.memory_space<vmem>>, vector<1x512xf32>
    %157 = vector.broadcast %155 : vector<8x1xf32> to vector<8x512xf32>
    %158 = vector.broadcast %156 : vector<1x512xf32> to vector<8x512xf32>
    %159 = arith.mulf %157, %158 : vector<8x512xf32>
    %160 = arith.addf %154, %159 : vector<8x512xf32>
    %c6_107 = arith.constant 6 : index
    %c0_108 = arith.constant 0 : index
    %161 = vector.load %arg3[%c6_107, %c0_108] : memref<8x512xf32, #tpu.memory_space<vmem>>, vector<1x512xf32>
    %162 = vector.broadcast %161 : vector<1x512xf32> to vector<8x512xf32>
    %163 = arith.addf %160, %162 : vector<8x512xf32>
    %c0_109 = arith.constant 0 : index
    %c0_110 = arith.constant 0 : index
    %164 = vector.load %arg8[%c0_109, %c0_110] : memref<1x512xf32, #tpu.memory_space<vmem>>, vector<1x512xf32>
    %165 = vector.broadcast %164 : vector<1x512xf32> to vector<8x512xf32>
    %166 = arith.addf %163, %165 : vector<8x512xf32>
    %c48 = arith.constant 48 : index
    %c0_111 = arith.constant 0 : index
    %167 = vector.load %arg16[%c48, %c0_111] : memref<64x512xf32, #tpu.memory_space<vmem>>, vector<8x512xf32>
    tpu.vector_store %arg16[%c48, %c0_111], %166 {strides = array<i32>} : memref<64x512xf32, #tpu.memory_space<vmem>>, vector<8x512xf32>,
    %c0_112 = arith.constant 0 : index
    %c6_113 = arith.constant 6 : index
    %168 = vector.load %arg1[%c0_112, %c6_113] : memref<8x8xf32, #tpu.memory_space<vmem>>, vector<8x1xf32>
    %c0_114 = arith.constant 0 : index
    %c0_115 = arith.constant 0 : index
    %169 = vector.load %arg2[%c0_114, %c0_115] : memref<3x512xf32, #tpu.memory_space<vmem>>, vector<1x512xf32>
    %170 = vector.broadcast %168 : vector<8x1xf32> to vector<8x512xf32>
    %171 = vector.broadcast %169 : vector<1x512xf32> to vector<8x512xf32>
    %172 = arith.mulf %170, %171 : vector<8x512xf32>
    %c0_116 = arith.constant 0 : index
    %c7_117 = arith.constant 7 : index
    %173 = vector.load %arg1[%c0_116, %c7_117] : memref<8x8xf32, #tpu.memory_space<vmem>>, vector<8x1xf32>
    %c1_118 = arith.constant 1 : index
    %c0_119 = arith.constant 0 : index
    %174 = vector.load %arg2[%c1_118, %c0_119] : memref<3x512xf32, #tpu.memory_space<vmem>>, vector<1x512xf32>
    %175 = vector.broadcast %173 : vector<8x1xf32> to vector<8x512xf32>
    %176 = vector.broadcast %174 : vector<1x512xf32> to vector<8x512xf32>
    %177 = arith.mulf %175, %176 : vector<8x512xf32>
    %178 = arith.addf %172, %177 : vector<8x512xf32>
    %c0_120 = arith.constant 0 : index
    %c0_121 = arith.constant 0 : index
    %179 = vector.load %arg1[%c0_120, %c0_121] : memref<8x8xf32, #tpu.memory_space<vmem>>, vector<8x1xf32>
    %c2_122 = arith.constant 2 : index
    %c0_123 = arith.constant 0 : index
    %180 = vector.load %arg2[%c2_122, %c0_123] : memref<3x512xf32, #tpu.memory_space<vmem>>, vector<1x512xf32>
    %181 = vector.broadcast %179 : vector<8x1xf32> to vector<8x512xf32>
    %182 = vector.broadcast %180 : vector<1x512xf32> to vector<8x512xf32>
    %183 = arith.mulf %181, %182 : vector<8x512xf32>
    %184 = arith.addf %178, %183 : vector<8x512xf32>
    %c7_124 = arith.constant 7 : index
    %c0_125 = arith.constant 0 : index
    %185 = vector.load %arg3[%c7_124, %c0_125] : memref<8x512xf32, #tpu.memory_space<vmem>>, vector<1x512xf32>
    %186 = vector.broadcast %185 : vector<1x512xf32> to vector<8x512xf32>
    %187 = arith.addf %184, %186 : vector<8x512xf32>
    %c0_126 = arith.constant 0 : index
    %c0_127 = arith.constant 0 : index
    %188 = vector.load %arg8[%c0_126, %c0_127] : memref<1x512xf32, #tpu.memory_space<vmem>>, vector<1x512xf32>
    %189 = vector.broadcast %188 : vector<1x512xf32> to vector<8x512xf32>
    %190 = arith.addf %187, %189 : vector<8x512xf32>
    %c56 = arith.constant 56 : index
    %c0_128 = arith.constant 0 : index
    %191 = vector.load %arg16[%c56, %c0_128] : memref<64x512xf32, #tpu.memory_space<vmem>>, vector<8x512xf32>
    tpu.vector_store %arg16[%c56, %c0_128], %190 {strides = array<i32>} : memref<64x512xf32, #tpu.memory_space<vmem>>, vector<8x512xf32>,
    %c0_129 = arith.constant 0 : index
    %c0_130 = arith.constant 0 : index
    %192 = memref.load %arg0[%c0_129, %c0_130] : memref<16x4xi32, #tpu.memory_space<smem>>
    %193 = arith.index_cast %192 : i32 to index
    %c0_131 = arith.constant 0 : index
    %194 = vector.load %arg4[%193, %c0_131] : memref<13x512xf32, #tpu.memory_space<vmem>>, vector<1x512xf32>
    %c0_132 = arith.constant 0 : index
    %c1_133 = arith.constant 1 : index
    %195 = memref.load %arg0[%c0_132, %c1_133] : memref<16x4xi32, #tpu.memory_space<smem>>
    %196 = arith.index_cast %195 : i32 to index
    %c0_134 = arith.constant 0 : index
    %197 = vector.load %arg5[%196, %c0_134] : memref<32x512xf32, #tpu.memory_space<vmem>>, vector<1x512xf32>
    %198 = arith.addf %194, %197 : vector<1x512xf32>
    %c0_135 = arith.constant 0 : index
    %c2_136 = arith.constant 2 : index
    %199 = memref.load %arg0[%c0_135, %c2_136] : memref<16x4xi32, #tpu.memory_space<smem>>
    %200 = arith.index_cast %199 : i32 to index
    %c0_137 = arith.constant 0 : index
    %201 = vector.load %arg6[%200, %c0_137] : memref<7x512xf32, #tpu.memory_space<vmem>>, vector<1x512xf32>
    %202 = arith.addf %198, %201 : vector<1x512xf32>
    %c0_138 = arith.constant 0 : index
    %c3_139 = arith.constant 3 : index
    %203 = memref.load %arg0[%c0_138, %c3_139] : memref<16x4xi32, #tpu.memory_space<smem>>
    %204 = arith.index_cast %203 : i32 to index
    %c0_140 = arith.constant 0 : index
    %205 = vector.load %arg7[%204, %c0_140] : memref<24x512xf32, #tpu.memory_space<vmem>>, vector<1x512xf32>
    %206 = arith.addf %202, %205 : vector<1x512xf32>
    %c0_141 = arith.constant 0 : index
    %c0_142 = arith.constant 0 : index
    %207 = vector.load %arg16[%c0_141, %c0_142] : memref<64x512xf32, #tpu.memory_space<vmem>>, vector<1x512xf32>
    %208 = arith.addf %207, %206 : vector<1x512xf32>
    %c0_143 = arith.constant 0 : index
    %c0_144 = arith.constant 0 : index
    %209 = vector.load %arg16[%c0_143, %c0_144] : memref<64x512xf32, #tpu.memory_space<vmem>>, vector<1x512xf32>
    tpu.vector_store %arg16[%c0_143, %c0_144], %208 {strides = array<i32>} : memref<64x512xf32, #tpu.memory_space<vmem>>, vector<1x512xf32>,
    %c8_145 = arith.constant 8 : index
    %c0_146 = arith.constant 0 : index
    %210 = memref.load %arg0[%c8_145, %c0_146] : memref<16x4xi32, #tpu.memory_space<smem>>
    %211 = arith.index_cast %210 : i32 to index
    %c0_147 = arith.constant 0 : index
    %212 = vector.load %arg4[%211, %c0_147] : memref<13x512xf32, #tpu.memory_space<vmem>>, vector<1x512xf32>
    %c8_148 = arith.constant 8 : index
    %c1_149 = arith.constant 1 : index
    %213 = memref.load %arg0[%c8_148, %c1_149] : memref<16x4xi32, #tpu.memory_space<smem>>
    %214 = arith.index_cast %213 : i32 to index
    %c0_150 = arith.constant 0 : index
    %215 = vector.load %arg5[%214, %c0_150] : memref<32x512xf32, #tpu.memory_space<vmem>>, vector<1x512xf32>
    %216 = arith.addf %212, %215 : vector<1x512xf32>
    %c8_151 = arith.constant 8 : index
    %c2_152 = arith.constant 2 : index
    %217 = memref.load %arg0[%c8_151, %c2_152] : memref<16x4xi32, #tpu.memory_space<smem>>
    %218 = arith.index_cast %217 : i32 to index
    %c0_153 = arith.constant 0 : index
    %219 = vector.load %arg6[%218, %c0_153] : memref<7x512xf32, #tpu.memory_space<vmem>>, vector<1x512xf32>
    %220 = arith.addf %216, %219 : vector<1x512xf32>
    %c8_154 = arith.constant 8 : index
    %c3_155 = arith.constant 3 : index
    %221 = memref.load %arg0[%c8_154, %c3_155] : memref<16x4xi32, #tpu.memory_space<smem>>
    %222 = arith.index_cast %221 : i32 to index
    %c0_156 = arith.constant 0 : index
    %223 = vector.load %arg7[%222, %c0_156] : memref<24x512xf32, #tpu.memory_space<vmem>>, vector<1x512xf32>
    %224 = arith.addf %220, %223 : vector<1x512xf32>
    %c1_157 = arith.constant 1 : index
    %c0_158 = arith.constant 0 : index
    %225 = vector.load %arg16[%c1_157, %c0_158] : memref<64x512xf32, #tpu.memory_space<vmem>>, vector<1x512xf32>
    %226 = arith.addf %225, %224 : vector<1x512xf32>
    %c1_159 = arith.constant 1 : index
    %c0_160 = arith.constant 0 : index
    %227 = vector.load %arg16[%c1_159, %c0_160] : memref<64x512xf32, #tpu.memory_space<vmem>>, vector<1x512xf32>
    tpu.vector_store %arg16[%c1_159, %c0_160], %226 {strides = array<i32>} : memref<64x512xf32, #tpu.memory_space<vmem>>, vector<1x512xf32>,
    %c1_161 = arith.constant 1 : index
    %c0_162 = arith.constant 0 : index
    %228 = memref.load %arg0[%c1_161, %c0_162] : memref<16x4xi32, #tpu.memory_space<smem>>
    %229 = arith.index_cast %228 : i32 to index
    %c0_163 = arith.constant 0 : index
    %230 = vector.load %arg4[%229, %c0_163] : memref<13x512xf32, #tpu.memory_space<vmem>>, vector<1x512xf32>
    %c1_164 = arith.constant 1 : index
    %c1_165 = arith.constant 1 : index
    %231 = memref.load %arg0[%c1_164, %c1_165] : memref<16x4xi32, #tpu.memory_space<smem>>
    %232 = arith.index_cast %231 : i32 to index
    %c0_166 = arith.constant 0 : index
    %233 = vector.load %arg5[%232, %c0_166] : memref<32x512xf32, #tpu.memory_space<vmem>>, vector<1x512xf32>
    %234 = arith.addf %230, %233 : vector<1x512xf32>
    %c1_167 = arith.constant 1 : index
    %c2_168 = arith.constant 2 : index
    %235 = memref.load %arg0[%c1_167, %c2_168] : memref<16x4xi32, #tpu.memory_space<smem>>
    %236 = arith.index_cast %235 : i32 to index
    %c0_169 = arith.constant 0 : index
    %237 = vector.load %arg6[%236, %c0_169] : memref<7x512xf32, #tpu.memory_space<vmem>>, vector<1x512xf32>
    %238 = arith.addf %234, %237 : vector<1x512xf32>
    %c1_170 = arith.constant 1 : index
    %c3_171 = arith.constant 3 : index
    %239 = memref.load %arg0[%c1_170, %c3_171] : memref<16x4xi32, #tpu.memory_space<smem>>
    %240 = arith.index_cast %239 : i32 to index
    %c0_172 = arith.constant 0 : index
    %241 = vector.load %arg7[%240, %c0_172] : memref<24x512xf32, #tpu.memory_space<vmem>>, vector<1x512xf32>
    %242 = arith.addf %238, %241 : vector<1x512xf32>
    %c8_173 = arith.constant 8 : index
    %c0_174 = arith.constant 0 : index
    %243 = vector.load %arg16[%c8_173, %c0_174] : memref<64x512xf32, #tpu.memory_space<vmem>>, vector<1x512xf32>
    %244 = arith.addf %243, %242 : vector<1x512xf32>
    %c8_175 = arith.constant 8 : index
    %c0_176 = arith.constant 0 : index
    %245 = vector.load %arg16[%c8_175, %c0_176] : memref<64x512xf32, #tpu.memory_space<vmem>>, vector<1x512xf32>
    tpu.vector_store %arg16[%c8_175, %c0_176], %244 {strides = array<i32>} : memref<64x512xf32, #tpu.memory_space<vmem>>, vector<1x512xf32>,
    %c9 = arith.constant 9 : index
    %c0_177 = arith.constant 0 : index
    %246 = memref.load %arg0[%c9, %c0_177] : memref<16x4xi32, #tpu.memory_space<smem>>
    %247 = arith.index_cast %246 : i32 to index
    %c0_178 = arith.constant 0 : index
    %248 = vector.load %arg4[%247, %c0_178] : memref<13x512xf32, #tpu.memory_space<vmem>>, vector<1x512xf32>
    %c9_179 = arith.constant 9 : index
    %c1_180 = arith.constant 1 : index
    %249 = memref.load %arg0[%c9_179, %c1_180] : memref<16x4xi32, #tpu.memory_space<smem>>
    %250 = arith.index_cast %249 : i32 to index
    %c0_181 = arith.constant 0 : index
    %251 = vector.load %arg5[%250, %c0_181] : memref<32x512xf32, #tpu.memory_space<vmem>>, vector<1x512xf32>
    %252 = arith.addf %248, %251 : vector<1x512xf32>
    %c9_182 = arith.constant 9 : index
    %c2_183 = arith.constant 2 : index
    %253 = memref.load %arg0[%c9_182, %c2_183] : memref<16x4xi32, #tpu.memory_space<smem>>
    %254 = arith.index_cast %253 : i32 to index
    %c0_184 = arith.constant 0 : index
    %255 = vector.load %arg6[%254, %c0_184] : memref<7x512xf32, #tpu.memory_space<vmem>>, vector<1x512xf32>
    %256 = arith.addf %252, %255 : vector<1x512xf32>
    %c9_185 = arith.constant 9 : index
    %c3_186 = arith.constant 3 : index
    %257 = memref.load %arg0[%c9_185, %c3_186] : memref<16x4xi32, #tpu.memory_space<smem>>
    %258 = arith.index_cast %257 : i32 to index
    %c0_187 = arith.constant 0 : index
    %259 = vector.load %arg7[%258, %c0_187] : memref<24x512xf32, #tpu.memory_space<vmem>>, vector<1x512xf32>
    %260 = arith.addf %256, %259 : vector<1x512xf32>
    %c9_188 = arith.constant 9 : index
    %c0_189 = arith.constant 0 : index
    %261 = vector.load %arg16[%c9_188, %c0_189] : memref<64x512xf32, #tpu.memory_space<vmem>>, vector<1x512xf32>
    %262 = arith.addf %261, %260 : vector<1x512xf32>
    %c9_190 = arith.constant 9 : index
    %c0_191 = arith.constant 0 : index
    %263 = vector.load %arg16[%c9_190, %c0_191] : memref<64x512xf32, #tpu.memory_space<vmem>>, vector<1x512xf32>
    tpu.vector_store %arg16[%c9_190, %c0_191], %262 {strides = array<i32>} : memref<64x512xf32, #tpu.memory_space<vmem>>, vector<1x512xf32>,
    %c2_192 = arith.constant 2 : index
    %c0_193 = arith.constant 0 : index
    %264 = memref.load %arg0[%c2_192, %c0_193] : memref<16x4xi32, #tpu.memory_space<smem>>
    %265 = arith.index_cast %264 : i32 to index
    %c0_194 = arith.constant 0 : index
    %266 = vector.load %arg4[%265, %c0_194] : memref<13x512xf32, #tpu.memory_space<vmem>>, vector<1x512xf32>
    %c2_195 = arith.constant 2 : index
    %c1_196 = arith.constant 1 : index
    %267 = memref.load %arg0[%c2_195, %c1_196] : memref<16x4xi32, #tpu.memory_space<smem>>
    %268 = arith.index_cast %267 : i32 to index
    %c0_197 = arith.constant 0 : index
    %269 = vector.load %arg5[%268, %c0_197] : memref<32x512xf32, #tpu.memory_space<vmem>>, vector<1x512xf32>
    %270 = arith.addf %266, %269 : vector<1x512xf32>
    %c2_198 = arith.constant 2 : index
    %c2_199 = arith.constant 2 : index
    %271 = memref.load %arg0[%c2_198, %c2_199] : memref<16x4xi32, #tpu.memory_space<smem>>
    %272 = arith.index_cast %271 : i32 to index
    %c0_200 = arith.constant 0 : index
    %273 = vector.load %arg6[%272, %c0_200] : memref<7x512xf32, #tpu.memory_space<vmem>>, vector<1x512xf32>
    %274 = arith.addf %270, %273 : vector<1x512xf32>
    %c2_201 = arith.constant 2 : index
    %c3_202 = arith.constant 3 : index
    %275 = memref.load %arg0[%c2_201, %c3_202] : memref<16x4xi32, #tpu.memory_space<smem>>
    %276 = arith.index_cast %275 : i32 to index
    %c0_203 = arith.constant 0 : index
    %277 = vector.load %arg7[%276, %c0_203] : memref<24x512xf32, #tpu.memory_space<vmem>>, vector<1x512xf32>
    %278 = arith.addf %274, %277 : vector<1x512xf32>
    %c16_204 = arith.constant 16 : index
    %c0_205 = arith.constant 0 : index
    %279 = vector.load %arg16[%c16_204, %c0_205] : memref<64x512xf32, #tpu.memory_space<vmem>>, vector<1x512xf32>
    %280 = arith.addf %279, %278 : vector<1x512xf32>
    %c16_206 = arith.constant 16 : index
    %c0_207 = arith.constant 0 : index
    %281 = vector.load %arg16[%c16_206, %c0_207] : memref<64x512xf32, #tpu.memory_space<vmem>>, vector<1x512xf32>
    tpu.vector_store %arg16[%c16_206, %c0_207], %280 {strides = array<i32>} : memref<64x512xf32, #tpu.memory_space<vmem>>, vector<1x512xf32>,
    %c10 = arith.constant 10 : index
    %c0_208 = arith.constant 0 : index
    %282 = memref.load %arg0[%c10, %c0_208] : memref<16x4xi32, #tpu.memory_space<smem>>
    %283 = arith.index_cast %282 : i32 to index
    %c0_209 = arith.constant 0 : index
    %284 = vector.load %arg4[%283, %c0_209] : memref<13x512xf32, #tpu.memory_space<vmem>>, vector<1x512xf32>
    %c10_210 = arith.constant 10 : index
    %c1_211 = arith.constant 1 : index
    %285 = memref.load %arg0[%c10_210, %c1_211] : memref<16x4xi32, #tpu.memory_space<smem>>
    %286 = arith.index_cast %285 : i32 to index
    %c0_212 = arith.constant 0 : index
    %287 = vector.load %arg5[%286, %c0_212] : memref<32x512xf32, #tpu.memory_space<vmem>>, vector<1x512xf32>
    %288 = arith.addf %284, %287 : vector<1x512xf32>
    %c10_213 = arith.constant 10 : index
    %c2_214 = arith.constant 2 : index
    %289 = memref.load %arg0[%c10_213, %c2_214] : memref<16x4xi32, #tpu.memory_space<smem>>
    %290 = arith.index_cast %289 : i32 to index
    %c0_215 = arith.constant 0 : index
    %291 = vector.load %arg6[%290, %c0_215] : memref<7x512xf32, #tpu.memory_space<vmem>>, vector<1x512xf32>
    %292 = arith.addf %288, %291 : vector<1x512xf32>
    %c10_216 = arith.constant 10 : index
    %c3_217 = arith.constant 3 : index
    %293 = memref.load %arg0[%c10_216, %c3_217] : memref<16x4xi32, #tpu.memory_space<smem>>
    %294 = arith.index_cast %293 : i32 to index
    %c0_218 = arith.constant 0 : index
    %295 = vector.load %arg7[%294, %c0_218] : memref<24x512xf32, #tpu.memory_space<vmem>>, vector<1x512xf32>
    %296 = arith.addf %292, %295 : vector<1x512xf32>
    %c17 = arith.constant 17 : index
    %c0_219 = arith.constant 0 : index
    %297 = vector.load %arg16[%c17, %c0_219] : memref<64x512xf32, #tpu.memory_space<vmem>>, vector<1x512xf32>
    %298 = arith.addf %297, %296 : vector<1x512xf32>
    %c17_220 = arith.constant 17 : index
    %c0_221 = arith.constant 0 : index
    %299 = vector.load %arg16[%c17_220, %c0_221] : memref<64x512xf32, #tpu.memory_space<vmem>>, vector<1x512xf32>
    tpu.vector_store %arg16[%c17_220, %c0_221], %298 {strides = array<i32>} : memref<64x512xf32, #tpu.memory_space<vmem>>, vector<1x512xf32>,
    %c3_222 = arith.constant 3 : index
    %c0_223 = arith.constant 0 : index
    %300 = memref.load %arg0[%c3_222, %c0_223] : memref<16x4xi32, #tpu.memory_space<smem>>
    %301 = arith.index_cast %300 : i32 to index
    %c0_224 = arith.constant 0 : index
    %302 = vector.load %arg4[%301, %c0_224] : memref<13x512xf32, #tpu.memory_space<vmem>>, vector<1x512xf32>
    %c3_225 = arith.constant 3 : index
    %c1_226 = arith.constant 1 : index
    %303 = memref.load %arg0[%c3_225, %c1_226] : memref<16x4xi32, #tpu.memory_space<smem>>
    %304 = arith.index_cast %303 : i32 to index
    %c0_227 = arith.constant 0 : index
    %305 = vector.load %arg5[%304, %c0_227] : memref<32x512xf32, #tpu.memory_space<vmem>>, vector<1x512xf32>
    %306 = arith.addf %302, %305 : vector<1x512xf32>
    %c3_228 = arith.constant 3 : index
    %c2_229 = arith.constant 2 : index
    %307 = memref.load %arg0[%c3_228, %c2_229] : memref<16x4xi32, #tpu.memory_space<smem>>
    %308 = arith.index_cast %307 : i32 to index
    %c0_230 = arith.constant 0 : index
    %309 = vector.load %arg6[%308, %c0_230] : memref<7x512xf32, #tpu.memory_space<vmem>>, vector<1x512xf32>
    %310 = arith.addf %306, %309 : vector<1x512xf32>
    %c3_231 = arith.constant 3 : index
    %c3_232 = arith.constant 3 : index
    %311 = memref.load %arg0[%c3_231, %c3_232] : memref<16x4xi32, #tpu.memory_space<smem>>
    %312 = arith.index_cast %311 : i32 to index
    %c0_233 = arith.constant 0 : index
    %313 = vector.load %arg7[%312, %c0_233] : memref<24x512xf32, #tpu.memory_space<vmem>>, vector<1x512xf32>
    %314 = arith.addf %310, %313 : vector<1x512xf32>
    %c24_234 = arith.constant 24 : index
    %c0_235 = arith.constant 0 : index
    %315 = vector.load %arg16[%c24_234, %c0_235] : memref<64x512xf32, #tpu.memory_space<vmem>>, vector<1x512xf32>
    %316 = arith.addf %315, %314 : vector<1x512xf32>
    %c24_236 = arith.constant 24 : index
    %c0_237 = arith.constant 0 : index
    %317 = vector.load %arg16[%c24_236, %c0_237] : memref<64x512xf32, #tpu.memory_space<vmem>>, vector<1x512xf32>
    tpu.vector_store %arg16[%c24_236, %c0_237], %316 {strides = array<i32>} : memref<64x512xf32, #tpu.memory_space<vmem>>, vector<1x512xf32>,
    %c11 = arith.constant 11 : index
    %c0_238 = arith.constant 0 : index
    %318 = memref.load %arg0[%c11, %c0_238] : memref<16x4xi32, #tpu.memory_space<smem>>
    %319 = arith.index_cast %318 : i32 to index
    %c0_239 = arith.constant 0 : index
    %320 = vector.load %arg4[%319, %c0_239] : memref<13x512xf32, #tpu.memory_space<vmem>>, vector<1x512xf32>
    %c11_240 = arith.constant 11 : index
    %c1_241 = arith.constant 1 : index
    %321 = memref.load %arg0[%c11_240, %c1_241] : memref<16x4xi32, #tpu.memory_space<smem>>
    %322 = arith.index_cast %321 : i32 to index
    %c0_242 = arith.constant 0 : index
    %323 = vector.load %arg5[%322, %c0_242] : memref<32x512xf32, #tpu.memory_space<vmem>>, vector<1x512xf32>
    %324 = arith.addf %320, %323 : vector<1x512xf32>
    %c11_243 = arith.constant 11 : index
    %c2_244 = arith.constant 2 : index
    %325 = memref.load %arg0[%c11_243, %c2_244] : memref<16x4xi32, #tpu.memory_space<smem>>
    %326 = arith.index_cast %325 : i32 to index
    %c0_245 = arith.constant 0 : index
    %327 = vector.load %arg6[%326, %c0_245] : memref<7x512xf32, #tpu.memory_space<vmem>>, vector<1x512xf32>
    %328 = arith.addf %324, %327 : vector<1x512xf32>
    %c11_246 = arith.constant 11 : index
    %c3_247 = arith.constant 3 : index
    %329 = memref.load %arg0[%c11_246, %c3_247] : memref<16x4xi32, #tpu.memory_space<smem>>
    %330 = arith.index_cast %329 : i32 to index
    %c0_248 = arith.constant 0 : index
    %331 = vector.load %arg7[%330, %c0_248] : memref<24x512xf32, #tpu.memory_space<vmem>>, vector<1x512xf32>
    %332 = arith.addf %328, %331 : vector<1x512xf32>
    %c25 = arith.constant 25 : index
    %c0_249 = arith.constant 0 : index
    %333 = vector.load %arg16[%c25, %c0_249] : memref<64x512xf32, #tpu.memory_space<vmem>>, vector<1x512xf32>
    %334 = arith.addf %333, %332 : vector<1x512xf32>
    %c25_250 = arith.constant 25 : index
    %c0_251 = arith.constant 0 : index
    %335 = vector.load %arg16[%c25_250, %c0_251] : memref<64x512xf32, #tpu.memory_space<vmem>>, vector<1x512xf32>
    tpu.vector_store %arg16[%c25_250, %c0_251], %334 {strides = array<i32>} : memref<64x512xf32, #tpu.memory_space<vmem>>, vector<1x512xf32>,
    %c4_252 = arith.constant 4 : index
    %c0_253 = arith.constant 0 : index
    %336 = memref.load %arg0[%c4_252, %c0_253] : memref<16x4xi32, #tpu.memory_space<smem>>
    %337 = arith.index_cast %336 : i32 to index
    %c0_254 = arith.constant 0 : index
    %338 = vector.load %arg4[%337, %c0_254] : memref<13x512xf32, #tpu.memory_space<vmem>>, vector<1x512xf32>
    %c4_255 = arith.constant 4 : index
    %c1_256 = arith.constant 1 : index
    %339 = memref.load %arg0[%c4_255, %c1_256] : memref<16x4xi32, #tpu.memory_space<smem>>
    %340 = arith.index_cast %339 : i32 to index
    %c0_257 = arith.constant 0 : index
    %341 = vector.load %arg5[%340, %c0_257] : memref<32x512xf32, #tpu.memory_space<vmem>>, vector<1x512xf32>
    %342 = arith.addf %338, %341 : vector<1x512xf32>
    %c4_258 = arith.constant 4 : index
    %c2_259 = arith.constant 2 : index
    %343 = memref.load %arg0[%c4_258, %c2_259] : memref<16x4xi32, #tpu.memory_space<smem>>
    %344 = arith.index_cast %343 : i32 to index
    %c0_260 = arith.constant 0 : index
    %345 = vector.load %arg6[%344, %c0_260] : memref<7x512xf32, #tpu.memory_space<vmem>>, vector<1x512xf32>
    %346 = arith.addf %342, %345 : vector<1x512xf32>
    %c4_261 = arith.constant 4 : index
    %c3_262 = arith.constant 3 : index
    %347 = memref.load %arg0[%c4_261, %c3_262] : memref<16x4xi32, #tpu.memory_space<smem>>
    %348 = arith.index_cast %347 : i32 to index
    %c0_263 = arith.constant 0 : index
    %349 = vector.load %arg7[%348, %c0_263] : memref<24x512xf32, #tpu.memory_space<vmem>>, vector<1x512xf32>
    %350 = arith.addf %346, %349 : vector<1x512xf32>
    %c32_264 = arith.constant 32 : index
    %c0_265 = arith.constant 0 : index
    %351 = vector.load %arg16[%c32_264, %c0_265] : memref<64x512xf32, #tpu.memory_space<vmem>>, vector<1x512xf32>
    %352 = arith.addf %351, %350 : vector<1x512xf32>
    %c32_266 = arith.constant 32 : index
    %c0_267 = arith.constant 0 : index
    %353 = vector.load %arg16[%c32_266, %c0_267] : memref<64x512xf32, #tpu.memory_space<vmem>>, vector<1x512xf32>
    tpu.vector_store %arg16[%c32_266, %c0_267], %352 {strides = array<i32>} : memref<64x512xf32, #tpu.memory_space<vmem>>, vector<1x512xf32>,
    %c12 = arith.constant 12 : index
    %c0_268 = arith.constant 0 : index
    %354 = memref.load %arg0[%c12, %c0_268] : memref<16x4xi32, #tpu.memory_space<smem>>
    %355 = arith.index_cast %354 : i32 to index
    %c0_269 = arith.constant 0 : index
    %356 = vector.load %arg4[%355, %c0_269] : memref<13x512xf32, #tpu.memory_space<vmem>>, vector<1x512xf32>
    %c12_270 = arith.constant 12 : index
    %c1_271 = arith.constant 1 : index
    %357 = memref.load %arg0[%c12_270, %c1_271] : memref<16x4xi32, #tpu.memory_space<smem>>
    %358 = arith.index_cast %357 : i32 to index
    %c0_272 = arith.constant 0 : index
    %359 = vector.load %arg5[%358, %c0_272] : memref<32x512xf32, #tpu.memory_space<vmem>>, vector<1x512xf32>
    %360 = arith.addf %356, %359 : vector<1x512xf32>
    %c12_273 = arith.constant 12 : index
    %c2_274 = arith.constant 2 : index
    %361 = memref.load %arg0[%c12_273, %c2_274] : memref<16x4xi32, #tpu.memory_space<smem>>
    %362 = arith.index_cast %361 : i32 to index
    %c0_275 = arith.constant 0 : index
    %363 = vector.load %arg6[%362, %c0_275] : memref<7x512xf32, #tpu.memory_space<vmem>>, vector<1x512xf32>
    %364 = arith.addf %360, %363 : vector<1x512xf32>
    %c12_276 = arith.constant 12 : index
    %c3_277 = arith.constant 3 : index
    %365 = memref.load %arg0[%c12_276, %c3_277] : memref<16x4xi32, #tpu.memory_space<smem>>
    %366 = arith.index_cast %365 : i32 to index
    %c0_278 = arith.constant 0 : index
    %367 = vector.load %arg7[%366, %c0_278] : memref<24x512xf32, #tpu.memory_space<vmem>>, vector<1x512xf32>
    %368 = arith.addf %364, %367 : vector<1x512xf32>
    %c33 = arith.constant 33 : index
    %c0_279 = arith.constant 0 : index
    %369 = vector.load %arg16[%c33, %c0_279] : memref<64x512xf32, #tpu.memory_space<vmem>>, vector<1x512xf32>
    %370 = arith.addf %369, %368 : vector<1x512xf32>
    %c33_280 = arith.constant 33 : index
    %c0_281 = arith.constant 0 : index
    %371 = vector.load %arg16[%c33_280, %c0_281] : memref<64x512xf32, #tpu.memory_space<vmem>>, vector<1x512xf32>
    tpu.vector_store %arg16[%c33_280, %c0_281], %370 {strides = array<i32>} : memref<64x512xf32, #tpu.memory_space<vmem>>, vector<1x512xf32>,
    %c5_282 = arith.constant 5 : index
    %c0_283 = arith.constant 0 : index
    %372 = memref.load %arg0[%c5_282, %c0_283] : memref<16x4xi32, #tpu.memory_space<smem>>
    %373 = arith.index_cast %372 : i32 to index
    %c0_284 = arith.constant 0 : index
    %374 = vector.load %arg4[%373, %c0_284] : memref<13x512xf32, #tpu.memory_space<vmem>>, vector<1x512xf32>
    %c5_285 = arith.constant 5 : index
    %c1_286 = arith.constant 1 : index
    %375 = memref.load %arg0[%c5_285, %c1_286] : memref<16x4xi32, #tpu.memory_space<smem>>
    %376 = arith.index_cast %375 : i32 to index
    %c0_287 = arith.constant 0 : index
    %377 = vector.load %arg5[%376, %c0_287] : memref<32x512xf32, #tpu.memory_space<vmem>>, vector<1x512xf32>
    %378 = arith.addf %374, %377 : vector<1x512xf32>
    %c5_288 = arith.constant 5 : index
    %c2_289 = arith.constant 2 : index
    %379 = memref.load %arg0[%c5_288, %c2_289] : memref<16x4xi32, #tpu.memory_space<smem>>
    %380 = arith.index_cast %379 : i32 to index
    %c0_290 = arith.constant 0 : index
    %381 = vector.load %arg6[%380, %c0_290] : memref<7x512xf32, #tpu.memory_space<vmem>>, vector<1x512xf32>
    %382 = arith.addf %378, %381 : vector<1x512xf32>
    %c5_291 = arith.constant 5 : index
    %c3_292 = arith.constant 3 : index
    %383 = memref.load %arg0[%c5_291, %c3_292] : memref<16x4xi32, #tpu.memory_space<smem>>
    %384 = arith.index_cast %383 : i32 to index
    %c0_293 = arith.constant 0 : index
    %385 = vector.load %arg7[%384, %c0_293] : memref<24x512xf32, #tpu.memory_space<vmem>>, vector<1x512xf32>
    %386 = arith.addf %382, %385 : vector<1x512xf32>
    %c40_294 = arith.constant 40 : index
    %c0_295 = arith.constant 0 : index
    %387 = vector.load %arg16[%c40_294, %c0_295] : memref<64x512xf32, #tpu.memory_space<vmem>>, vector<1x512xf32>
    %388 = arith.addf %387, %386 : vector<1x512xf32>
    %c40_296 = arith.constant 40 : index
    %c0_297 = arith.constant 0 : index
    %389 = vector.load %arg16[%c40_296, %c0_297] : memref<64x512xf32, #tpu.memory_space<vmem>>, vector<1x512xf32>
    tpu.vector_store %arg16[%c40_296, %c0_297], %388 {strides = array<i32>} : memref<64x512xf32, #tpu.memory_space<vmem>>, vector<1x512xf32>,
    %c13 = arith.constant 13 : index
    %c0_298 = arith.constant 0 : index
    %390 = memref.load %arg0[%c13, %c0_298] : memref<16x4xi32, #tpu.memory_space<smem>>
    %391 = arith.index_cast %390 : i32 to index
    %c0_299 = arith.constant 0 : index
    %392 = vector.load %arg4[%391, %c0_299] : memref<13x512xf32, #tpu.memory_space<vmem>>, vector<1x512xf32>
    %c13_300 = arith.constant 13 : index
    %c1_301 = arith.constant 1 : index
    %393 = memref.load %arg0[%c13_300, %c1_301] : memref<16x4xi32, #tpu.memory_space<smem>>
    %394 = arith.index_cast %393 : i32 to index
    %c0_302 = arith.constant 0 : index
    %395 = vector.load %arg5[%394, %c0_302] : memref<32x512xf32, #tpu.memory_space<vmem>>, vector<1x512xf32>
    %396 = arith.addf %392, %395 : vector<1x512xf32>
    %c13_303 = arith.constant 13 : index
    %c2_304 = arith.constant 2 : index
    %397 = memref.load %arg0[%c13_303, %c2_304] : memref<16x4xi32, #tpu.memory_space<smem>>
    %398 = arith.index_cast %397 : i32 to index
    %c0_305 = arith.constant 0 : index
    %399 = vector.load %arg6[%398, %c0_305] : memref<7x512xf32, #tpu.memory_space<vmem>>, vector<1x512xf32>
    %400 = arith.addf %396, %399 : vector<1x512xf32>
    %c13_306 = arith.constant 13 : index
    %c3_307 = arith.constant 3 : index
    %401 = memref.load %arg0[%c13_306, %c3_307] : memref<16x4xi32, #tpu.memory_space<smem>>
    %402 = arith.index_cast %401 : i32 to index
    %c0_308 = arith.constant 0 : index
    %403 = vector.load %arg7[%402, %c0_308] : memref<24x512xf32, #tpu.memory_space<vmem>>, vector<1x512xf32>
    %404 = arith.addf %400, %403 : vector<1x512xf32>
    %c41 = arith.constant 41 : index
    %c0_309 = arith.constant 0 : index
    %405 = vector.load %arg16[%c41, %c0_309] : memref<64x512xf32, #tpu.memory_space<vmem>>, vector<1x512xf32>
    %406 = arith.addf %405, %404 : vector<1x512xf32>
    %c41_310 = arith.constant 41 : index
    %c0_311 = arith.constant 0 : index
    %407 = vector.load %arg16[%c41_310, %c0_311] : memref<64x512xf32, #tpu.memory_space<vmem>>, vector<1x512xf32>
    tpu.vector_store %arg16[%c41_310, %c0_311], %406 {strides = array<i32>} : memref<64x512xf32, #tpu.memory_space<vmem>>, vector<1x512xf32>,
    %c6_312 = arith.constant 6 : index
    %c0_313 = arith.constant 0 : index
    %408 = memref.load %arg0[%c6_312, %c0_313] : memref<16x4xi32, #tpu.memory_space<smem>>
    %409 = arith.index_cast %408 : i32 to index
    %c0_314 = arith.constant 0 : index
    %410 = vector.load %arg4[%409, %c0_314] : memref<13x512xf32, #tpu.memory_space<vmem>>, vector<1x512xf32>
    %c6_315 = arith.constant 6 : index
    %c1_316 = arith.constant 1 : index
    %411 = memref.load %arg0[%c6_315, %c1_316] : memref<16x4xi32, #tpu.memory_space<smem>>
    %412 = arith.index_cast %411 : i32 to index
    %c0_317 = arith.constant 0 : index
    %413 = vector.load %arg5[%412, %c0_317] : memref<32x512xf32, #tpu.memory_space<vmem>>, vector<1x512xf32>
    %414 = arith.addf %410, %413 : vector<1x512xf32>
    %c6_318 = arith.constant 6 : index
    %c2_319 = arith.constant 2 : index
    %415 = memref.load %arg0[%c6_318, %c2_319] : memref<16x4xi32, #tpu.memory_space<smem>>
    %416 = arith.index_cast %415 : i32 to index
    %c0_320 = arith.constant 0 : index
    %417 = vector.load %arg6[%416, %c0_320] : memref<7x512xf32, #tpu.memory_space<vmem>>, vector<1x512xf32>
    %418 = arith.addf %414, %417 : vector<1x512xf32>
    %c6_321 = arith.constant 6 : index
    %c3_322 = arith.constant 3 : index
    %419 = memref.load %arg0[%c6_321, %c3_322] : memref<16x4xi32, #tpu.memory_space<smem>>
    %420 = arith.index_cast %419 : i32 to index
    %c0_323 = arith.constant 0 : index
    %421 = vector.load %arg7[%420, %c0_323] : memref<24x512xf32, #tpu.memory_space<vmem>>, vector<1x512xf32>
    %422 = arith.addf %418, %421 : vector<1x512xf32>
    %c48_324 = arith.constant 48 : index
    %c0_325 = arith.constant 0 : index
    %423 = vector.load %arg16[%c48_324, %c0_325] : memref<64x512xf32, #tpu.memory_space<vmem>>, vector<1x512xf32>
    %424 = arith.addf %423, %422 : vector<1x512xf32>
    %c48_326 = arith.constant 48 : index
    %c0_327 = arith.constant 0 : index
    %425 = vector.load %arg16[%c48_326, %c0_327] : memref<64x512xf32, #tpu.memory_space<vmem>>, vector<1x512xf32>
    tpu.vector_store %arg16[%c48_326, %c0_327], %424 {strides = array<i32>} : memref<64x512xf32, #tpu.memory_space<vmem>>, vector<1x512xf32>,
    %c14 = arith.constant 14 : index
    %c0_328 = arith.constant 0 : index
    %426 = memref.load %arg0[%c14, %c0_328] : memref<16x4xi32, #tpu.memory_space<smem>>
    %427 = arith.index_cast %426 : i32 to index
    %c0_329 = arith.constant 0 : index
    %428 = vector.load %arg4[%427, %c0_329] : memref<13x512xf32, #tpu.memory_space<vmem>>, vector<1x512xf32>
    %c14_330 = arith.constant 14 : index
    %c1_331 = arith.constant 1 : index
    %429 = memref.load %arg0[%c14_330, %c1_331] : memref<16x4xi32, #tpu.memory_space<smem>>
    %430 = arith.index_cast %429 : i32 to index
    %c0_332 = arith.constant 0 : index
    %431 = vector.load %arg5[%430, %c0_332] : memref<32x512xf32, #tpu.memory_space<vmem>>, vector<1x512xf32>
    %432 = arith.addf %428, %431 : vector<1x512xf32>
    %c14_333 = arith.constant 14 : index
    %c2_334 = arith.constant 2 : index
    %433 = memref.load %arg0[%c14_333, %c2_334] : memref<16x4xi32, #tpu.memory_space<smem>>
    %434 = arith.index_cast %433 : i32 to index
    %c0_335 = arith.constant 0 : index
    %435 = vector.load %arg6[%434, %c0_335] : memref<7x512xf32, #tpu.memory_space<vmem>>, vector<1x512xf32>
    %436 = arith.addf %432, %435 : vector<1x512xf32>
    %c14_336 = arith.constant 14 : index
    %c3_337 = arith.constant 3 : index
    %437 = memref.load %arg0[%c14_336, %c3_337] : memref<16x4xi32, #tpu.memory_space<smem>>
    %438 = arith.index_cast %437 : i32 to index
    %c0_338 = arith.constant 0 : index
    %439 = vector.load %arg7[%438, %c0_338] : memref<24x512xf32, #tpu.memory_space<vmem>>, vector<1x512xf32>
    %440 = arith.addf %436, %439 : vector<1x512xf32>
    %c49 = arith.constant 49 : index
    %c0_339 = arith.constant 0 : index
    %441 = vector.load %arg16[%c49, %c0_339] : memref<64x512xf32, #tpu.memory_space<vmem>>, vector<1x512xf32>
    %442 = arith.addf %441, %440 : vector<1x512xf32>
    %c49_340 = arith.constant 49 : index
    %c0_341 = arith.constant 0 : index
    %443 = vector.load %arg16[%c49_340, %c0_341] : memref<64x512xf32, #tpu.memory_space<vmem>>, vector<1x512xf32>
    tpu.vector_store %arg16[%c49_340, %c0_341], %442 {strides = array<i32>} : memref<64x512xf32, #tpu.memory_space<vmem>>, vector<1x512xf32>,
    %c7_342 = arith.constant 7 : index
    %c0_343 = arith.constant 0 : index
    %444 = memref.load %arg0[%c7_342, %c0_343] : memref<16x4xi32, #tpu.memory_space<smem>>
    %445 = arith.index_cast %444 : i32 to index
    %c0_344 = arith.constant 0 : index
    %446 = vector.load %arg4[%445, %c0_344] : memref<13x512xf32, #tpu.memory_space<vmem>>, vector<1x512xf32>
    %c7_345 = arith.constant 7 : index
    %c1_346 = arith.constant 1 : index
    %447 = memref.load %arg0[%c7_345, %c1_346] : memref<16x4xi32, #tpu.memory_space<smem>>
    %448 = arith.index_cast %447 : i32 to index
    %c0_347 = arith.constant 0 : index
    %449 = vector.load %arg5[%448, %c0_347] : memref<32x512xf32, #tpu.memory_space<vmem>>, vector<1x512xf32>
    %450 = arith.addf %446, %449 : vector<1x512xf32>
    %c7_348 = arith.constant 7 : index
    %c2_349 = arith.constant 2 : index
    %451 = memref.load %arg0[%c7_348, %c2_349] : memref<16x4xi32, #tpu.memory_space<smem>>
    %452 = arith.index_cast %451 : i32 to index
    %c0_350 = arith.constant 0 : index
    %453 = vector.load %arg6[%452, %c0_350] : memref<7x512xf32, #tpu.memory_space<vmem>>, vector<1x512xf32>
    %454 = arith.addf %450, %453 : vector<1x512xf32>
    %c7_351 = arith.constant 7 : index
    %c3_352 = arith.constant 3 : index
    %455 = memref.load %arg0[%c7_351, %c3_352] : memref<16x4xi32, #tpu.memory_space<smem>>
    %456 = arith.index_cast %455 : i32 to index
    %c0_353 = arith.constant 0 : index
    %457 = vector.load %arg7[%456, %c0_353] : memref<24x512xf32, #tpu.memory_space<vmem>>, vector<1x512xf32>
    %458 = arith.addf %454, %457 : vector<1x512xf32>
    %c56_354 = arith.constant 56 : index
    %c0_355 = arith.constant 0 : index
    %459 = vector.load %arg16[%c56_354, %c0_355] : memref<64x512xf32, #tpu.memory_space<vmem>>, vector<1x512xf32>
    %460 = arith.addf %459, %458 : vector<1x512xf32>
    %c56_356 = arith.constant 56 : index
    %c0_357 = arith.constant 0 : index
    %461 = vector.load %arg16[%c56_356, %c0_357] : memref<64x512xf32, #tpu.memory_space<vmem>>, vector<1x512xf32>
    tpu.vector_store %arg16[%c56_356, %c0_357], %460 {strides = array<i32>} : memref<64x512xf32, #tpu.memory_space<vmem>>, vector<1x512xf32>,
    %c15 = arith.constant 15 : index
    %c0_358 = arith.constant 0 : index
    %462 = memref.load %arg0[%c15, %c0_358] : memref<16x4xi32, #tpu.memory_space<smem>>
    %463 = arith.index_cast %462 : i32 to index
    %c0_359 = arith.constant 0 : index
    %464 = vector.load %arg4[%463, %c0_359] : memref<13x512xf32, #tpu.memory_space<vmem>>, vector<1x512xf32>
    %c15_360 = arith.constant 15 : index
    %c1_361 = arith.constant 1 : index
    %465 = memref.load %arg0[%c15_360, %c1_361] : memref<16x4xi32, #tpu.memory_space<smem>>
    %466 = arith.index_cast %465 : i32 to index
    %c0_362 = arith.constant 0 : index
    %467 = vector.load %arg5[%466, %c0_362] : memref<32x512xf32, #tpu.memory_space<vmem>>, vector<1x512xf32>
    %468 = arith.addf %464, %467 : vector<1x512xf32>
    %c15_363 = arith.constant 15 : index
    %c2_364 = arith.constant 2 : index
    %469 = memref.load %arg0[%c15_363, %c2_364] : memref<16x4xi32, #tpu.memory_space<smem>>
    %470 = arith.index_cast %469 : i32 to index
    %c0_365 = arith.constant 0 : index
    %471 = vector.load %arg6[%470, %c0_365] : memref<7x512xf32, #tpu.memory_space<vmem>>, vector<1x512xf32>
    %472 = arith.addf %468, %471 : vector<1x512xf32>
    %c15_366 = arith.constant 15 : index
    %c3_367 = arith.constant 3 : index
    %473 = memref.load %arg0[%c15_366, %c3_367] : memref<16x4xi32, #tpu.memory_space<smem>>
    %474 = arith.index_cast %473 : i32 to index
    %c0_368 = arith.constant 0 : index
    %475 = vector.load %arg7[%474, %c0_368] : memref<24x512xf32, #tpu.memory_space<vmem>>, vector<1x512xf32>
    %476 = arith.addf %472, %475 : vector<1x512xf32>
    %c57 = arith.constant 57 : index
    %c0_369 = arith.constant 0 : index
    %477 = vector.load %arg16[%c57, %c0_369] : memref<64x512xf32, #tpu.memory_space<vmem>>, vector<1x512xf32>
    %478 = arith.addf %477, %476 : vector<1x512xf32>
    %c57_370 = arith.constant 57 : index
    %c0_371 = arith.constant 0 : index
    %479 = vector.load %arg16[%c57_370, %c0_371] : memref<64x512xf32, #tpu.memory_space<vmem>>, vector<1x512xf32>
    tpu.vector_store %arg16[%c57_370, %c0_371], %478 {strides = array<i32>} : memref<64x512xf32, #tpu.memory_space<vmem>>, vector<1x512xf32>,
    %cst = arith.constant 0.000000e+00 : f32
    %480 = vector.broadcast %cst : f32 to vector<8x128xf32>
    %cst_372 = arith.constant 0.000000e+00 : f32
    %481 = vector.broadcast %cst_372 : f32 to vector<8x128xf32>
    %cst_373 = arith.constant 0.000000e+00 : f32
    %482 = vector.broadcast %cst_373 : f32 to vector<8x128xf32>
    %cst_374 = arith.constant 0.000000e+00 : f32
    %483 = vector.broadcast %cst_374 : f32 to vector<8x128xf32>
    %c0_375 = arith.constant 0 : index
    %c0_376 = arith.constant 0 : index
    %484 = vector.load %arg12[%c0_375, %c0_376] : memref<1x512xf32, #tpu.memory_space<vmem>>, vector<1x512xf32>
    %c0_377 = arith.constant 0 : index
    %c0_378 = arith.constant 0 : index
    %485 = vector.load %arg16[%c0_377, %c0_378] : memref<64x512xf32, #tpu.memory_space<vmem>>, vector<8x512xf32>
    %486 = arith.truncf %480 : vector<8x128xf32> to vector<8x128xbf16>
    %c0_379 = arith.constant 0 : index
    %c0_380 = arith.constant 0 : index
    %487 = vector.load %arg9[%c0_379, %c0_380] : memref<128x512xbf16, #tpu.memory_space<vmem>>, vector<128x512xbf16>
    %cst_381 = arith.constant dense<0.000000e+00> : vector<8x512xf32>
    %488 = tpu.matmul %486, %487, %cst_381 {dimension_numbers = #tpu.dot_dimension_numbers<[1], [0], [0], [1], [0, 0, 1, 1], [], []>} : vector<8x128xbf16>, vector<128x512xbf16>, vector<8x512xf32> -> vector<8x512xf32>
    %489 = arith.addf %485, %488 : vector<8x512xf32>
    %490 = vector.extract_strided_slice %489 {offsets = [0, 0], sizes = [8, 128], strides = [1, 1]} : vector<8x512xf32> to vector<8x128xf32>
    %491 = arith.negf %490 : vector<8x128xf32>
    %492 = math.exp %491 : vector<8x128xf32>
    %cst_382 = arith.constant 1.000000e+00 : f32
    %493 = vector.broadcast %cst_382 : f32 to vector<8x128xf32>
    %494 = arith.addf %493, %492 : vector<8x128xf32>
    %495 = arith.divf %493, %494 : vector<8x128xf32>
    %496 = vector.extract_strided_slice %489 {offsets = [0, 128], sizes = [8, 128], strides = [1, 1]} : vector<8x512xf32> to vector<8x128xf32>
    %497 = arith.negf %496 : vector<8x128xf32>
    %498 = math.exp %497 : vector<8x128xf32>
    %cst_383 = arith.constant 1.000000e+00 : f32
    %499 = vector.broadcast %cst_383 : f32 to vector<8x128xf32>
    %500 = arith.addf %499, %498 : vector<8x128xf32>
    %501 = arith.divf %499, %500 : vector<8x128xf32>
    %502 = vector.extract_strided_slice %489 {offsets = [0, 256], sizes = [8, 128], strides = [1, 1]} : vector<8x512xf32> to vector<8x128xf32>
    %503 = math.tanh %502 : vector<8x128xf32>
    %504 = vector.extract_strided_slice %489 {offsets = [0, 384], sizes = [8, 128], strides = [1, 1]} : vector<8x512xf32> to vector<8x128xf32>
    %505 = arith.negf %504 : vector<8x128xf32>
    %506 = math.exp %505 : vector<8x128xf32>
    %cst_384 = arith.constant 1.000000e+00 : f32
    %507 = vector.broadcast %cst_384 : f32 to vector<8x128xf32>
    %508 = arith.addf %507, %506 : vector<8x128xf32>
    %509 = arith.divf %507, %508 : vector<8x128xf32>
    %510 = arith.mulf %501, %481 : vector<8x128xf32>
    %511 = arith.mulf %495, %503 : vector<8x128xf32>
    %512 = arith.addf %510, %511 : vector<8x128xf32>
    %513 = math.tanh %512 : vector<8x128xf32>
    %514 = arith.mulf %509, %513 : vector<8x128xf32>
    %515 = arith.truncf %514 : vector<8x128xf32> to vector<8x128xbf16>
    %c0_385 = arith.constant 0 : index
    %c0_386 = arith.constant 0 : index
    %516 = vector.load %arg10[%c0_385, %c0_386] : memref<128x512xbf16, #tpu.memory_space<vmem>>, vector<128x512xbf16>
    %cst_387 = arith.constant dense<0.000000e+00> : vector<8x512xf32>
    %517 = tpu.matmul %515, %516, %cst_387 {dimension_numbers = #tpu.dot_dimension_numbers<[1], [0], [0], [1], [0, 0, 1, 1], [], []>} : vector<8x128xbf16>, vector<128x512xbf16>, vector<8x512xf32> -> vector<8x512xf32>
    %518 = vector.broadcast %484 : vector<1x512xf32> to vector<8x512xf32>
    %519 = arith.addf %517, %518 : vector<8x512xf32>
    %c8_388 = arith.constant 8 : index
    %c0_389 = arith.constant 0 : index
    %520 = vector.load %arg16[%c8_388, %c0_389] : memref<64x512xf32, #tpu.memory_space<vmem>>, vector<8x512xf32>
    %521 = arith.truncf %514 : vector<8x128xf32> to vector<8x128xbf16>
    %c0_390 = arith.constant 0 : index
    %c0_391 = arith.constant 0 : index
    %522 = vector.load %arg9[%c0_390, %c0_391] : memref<128x512xbf16, #tpu.memory_space<vmem>>, vector<128x512xbf16>
    %cst_392 = arith.constant dense<0.000000e+00> : vector<8x512xf32>
    %523 = tpu.matmul %521, %522, %cst_392 {dimension_numbers = #tpu.dot_dimension_numbers<[1], [0], [0], [1], [0, 0, 1, 1], [], []>} : vector<8x128xbf16>, vector<128x512xbf16>, vector<8x512xf32> -> vector<8x512xf32>
    %524 = arith.addf %520, %523 : vector<8x512xf32>
    %525 = vector.extract_strided_slice %524 {offsets = [0, 0], sizes = [8, 128], strides = [1, 1]} : vector<8x512xf32> to vector<8x128xf32>
    %526 = arith.negf %525 : vector<8x128xf32>
    %527 = math.exp %526 : vector<8x128xf32>
    %cst_393 = arith.constant 1.000000e+00 : f32
    %528 = vector.broadcast %cst_393 : f32 to vector<8x128xf32>
    %529 = arith.addf %528, %527 : vector<8x128xf32>
    %530 = arith.divf %528, %529 : vector<8x128xf32>
    %531 = vector.extract_strided_slice %524 {offsets = [0, 128], sizes = [8, 128], strides = [1, 1]} : vector<8x512xf32> to vector<8x128xf32>
    %532 = arith.negf %531 : vector<8x128xf32>
    %533 = math.exp %532 : vector<8x128xf32>
    %cst_394 = arith.constant 1.000000e+00 : f32
    %534 = vector.broadcast %cst_394 : f32 to vector<8x128xf32>
    %535 = arith.addf %534, %533 : vector<8x128xf32>
    %536 = arith.divf %534, %535 : vector<8x128xf32>
    %537 = vector.extract_strided_slice %524 {offsets = [0, 256], sizes = [8, 128], strides = [1, 1]} : vector<8x512xf32> to vector<8x128xf32>
    %538 = math.tanh %537 : vector<8x128xf32>
    %539 = vector.extract_strided_slice %524 {offsets = [0, 384], sizes = [8, 128], strides = [1, 1]} : vector<8x512xf32> to vector<8x128xf32>
    %540 = arith.negf %539 : vector<8x128xf32>
    %541 = math.exp %540 : vector<8x128xf32>
    %cst_395 = arith.constant 1.000000e+00 : f32
    %542 = vector.broadcast %cst_395 : f32 to vector<8x128xf32>
    %543 = arith.addf %542, %541 : vector<8x128xf32>
    %544 = arith.divf %542, %543 : vector<8x128xf32>
    %545 = arith.mulf %536, %512 : vector<8x128xf32>
    %546 = arith.mulf %530, %538 : vector<8x128xf32>
    %547 = arith.addf %545, %546 : vector<8x128xf32>
    %548 = math.tanh %547 : vector<8x128xf32>
    %549 = arith.mulf %544, %548 : vector<8x128xf32>
    %550 = arith.truncf %549 : vector<8x128xf32> to vector<8x128xbf16>
    %c0_396 = arith.constant 0 : index
    %c0_397 = arith.constant 0 : index
    %551 = vector.load %arg10[%c0_396, %c0_397] : memref<128x512xbf16, #tpu.memory_space<vmem>>, vector<128x512xbf16>
    %cst_398 = arith.constant dense<0.000000e+00> : vector<8x512xf32>
    %552 = tpu.matmul %550, %551, %cst_398 {dimension_numbers = #tpu.dot_dimension_numbers<[1], [0], [0], [1], [0, 0, 1, 1], [], []>} : vector<8x128xbf16>, vector<128x512xbf16>, vector<8x512xf32> -> vector<8x512xf32>
    %553 = vector.broadcast %484 : vector<1x512xf32> to vector<8x512xf32>
    %554 = arith.addf %552, %553 : vector<8x512xf32>
    %555 = arith.truncf %482 : vector<8x128xf32> to vector<8x128xbf16>
    %c0_399 = arith.constant 0 : index
    %c0_400 = arith.constant 0 : index
    %556 = vector.load %arg11[%c0_399, %c0_400] : memref<128x512xbf16, #tpu.memory_space<vmem>>, vector<128x512xbf16>
    %cst_401 = arith.constant dense<0.000000e+00> : vector<8x512xf32>
    %557 = tpu.matmul %555, %556, %cst_401 {dimension_numbers = #tpu.dot_dimension_numbers<[1], [0], [0], [1], [0, 0, 1, 1], [], []>} : vector<8x128xbf16>, vector<128x512xbf16>, vector<8x512xf32> -> vector<8x512xf32>
    %558 = arith.addf %519, %557 : vector<8x512xf32>
    %559 = vector.extract_strided_slice %558 {offsets = [0, 0], sizes = [8, 128], strides = [1, 1]} : vector<8x512xf32> to vector<8x128xf32>
    %560 = arith.negf %559 : vector<8x128xf32>
    %561 = math.exp %560 : vector<8x128xf32>
    %cst_402 = arith.constant 1.000000e+00 : f32
    %562 = vector.broadcast %cst_402 : f32 to vector<8x128xf32>
    %563 = arith.addf %562, %561 : vector<8x128xf32>
    %564 = arith.divf %562, %563 : vector<8x128xf32>
    %565 = vector.extract_strided_slice %558 {offsets = [0, 128], sizes = [8, 128], strides = [1, 1]} : vector<8x512xf32> to vector<8x128xf32>
    %566 = arith.negf %565 : vector<8x128xf32>
    %567 = math.exp %566 : vector<8x128xf32>
    %cst_403 = arith.constant 1.000000e+00 : f32
    %568 = vector.broadcast %cst_403 : f32 to vector<8x128xf32>
    %569 = arith.addf %568, %567 : vector<8x128xf32>
    %570 = arith.divf %568, %569 : vector<8x128xf32>
    %571 = vector.extract_strided_slice %558 {offsets = [0, 256], sizes = [8, 128], strides = [1, 1]} : vector<8x512xf32> to vector<8x128xf32>
    %572 = math.tanh %571 : vector<8x128xf32>
    %573 = vector.extract_strided_slice %558 {offsets = [0, 384], sizes = [8, 128], strides = [1, 1]} : vector<8x512xf32> to vector<8x128xf32>
    %574 = arith.negf %573 : vector<8x128xf32>
    %575 = math.exp %574 : vector<8x128xf32>
    %cst_404 = arith.constant 1.000000e+00 : f32
    %576 = vector.broadcast %cst_404 : f32 to vector<8x128xf32>
    %577 = arith.addf %576, %575 : vector<8x128xf32>
    %578 = arith.divf %576, %577 : vector<8x128xf32>
    %579 = arith.mulf %570, %483 : vector<8x128xf32>
    %580 = arith.mulf %564, %572 : vector<8x128xf32>
    %581 = arith.addf %579, %580 : vector<8x128xf32>
    %582 = math.tanh %581 : vector<8x128xf32>
    %583 = arith.mulf %578, %582 : vector<8x128xf32>
    %c0_405 = arith.constant 0 : index
    %c0_406 = arith.constant 0 : index
    %584 = vector.load %arg17[%c0_405, %c0_406] : memref<8x1024xf32, #tpu.memory_space<vmem>>, vector<8x128xf32>
    tpu.vector_store %arg17[%c0_405, %c0_406], %583 {strides = array<i32>} : memref<8x1024xf32, #tpu.memory_space<vmem>>, vector<8x128xf32>,
    %c16_407 = arith.constant 16 : index
    %c0_408 = arith.constant 0 : index
    %585 = vector.load %arg16[%c16_407, %c0_408] : memref<64x512xf32, #tpu.memory_space<vmem>>, vector<8x512xf32>
    %586 = arith.truncf %549 : vector<8x128xf32> to vector<8x128xbf16>
    %c0_409 = arith.constant 0 : index
    %c0_410 = arith.constant 0 : index
    %587 = vector.load %arg9[%c0_409, %c0_410] : memref<128x512xbf16, #tpu.memory_space<vmem>>, vector<128x512xbf16>
    %cst_411 = arith.constant dense<0.000000e+00> : vector<8x512xf32>
    %588 = tpu.matmul %586, %587, %cst_411 {dimension_numbers = #tpu.dot_dimension_numbers<[1], [0], [0], [1], [0, 0, 1, 1], [], []>} : vector<8x128xbf16>, vector<128x512xbf16>, vector<8x512xf32> -> vector<8x512xf32>
    %589 = arith.addf %585, %588 : vector<8x512xf32>
    %590 = vector.extract_strided_slice %589 {offsets = [0, 0], sizes = [8, 128], strides = [1, 1]} : vector<8x512xf32> to vector<8x128xf32>
    %591 = arith.negf %590 : vector<8x128xf32>
    %592 = math.exp %591 : vector<8x128xf32>
    %cst_412 = arith.constant 1.000000e+00 : f32
    %593 = vector.broadcast %cst_412 : f32 to vector<8x128xf32>
    %594 = arith.addf %593, %592 : vector<8x128xf32>
    %595 = arith.divf %593, %594 : vector<8x128xf32>
    %596 = vector.extract_strided_slice %589 {offsets = [0, 128], sizes = [8, 128], strides = [1, 1]} : vector<8x512xf32> to vector<8x128xf32>
    %597 = arith.negf %596 : vector<8x128xf32>
    %598 = math.exp %597 : vector<8x128xf32>
    %cst_413 = arith.constant 1.000000e+00 : f32
    %599 = vector.broadcast %cst_413 : f32 to vector<8x128xf32>
    %600 = arith.addf %599, %598 : vector<8x128xf32>
    %601 = arith.divf %599, %600 : vector<8x128xf32>
    %602 = vector.extract_strided_slice %589 {offsets = [0, 256], sizes = [8, 128], strides = [1, 1]} : vector<8x512xf32> to vector<8x128xf32>
    %603 = math.tanh %602 : vector<8x128xf32>
    %604 = vector.extract_strided_slice %589 {offsets = [0, 384], sizes = [8, 128], strides = [1, 1]} : vector<8x512xf32> to vector<8x128xf32>
    %605 = arith.negf %604 : vector<8x128xf32>
    %606 = math.exp %605 : vector<8x128xf32>
    %cst_414 = arith.constant 1.000000e+00 : f32
    %607 = vector.broadcast %cst_414 : f32 to vector<8x128xf32>
    %608 = arith.addf %607, %606 : vector<8x128xf32>
    %609 = arith.divf %607, %608 : vector<8x128xf32>
    %610 = arith.mulf %601, %547 : vector<8x128xf32>
    %611 = arith.mulf %595, %603 : vector<8x128xf32>
    %612 = arith.addf %610, %611 : vector<8x128xf32>
    %613 = math.tanh %612 : vector<8x128xf32>
    %614 = arith.mulf %609, %613 : vector<8x128xf32>
    %615 = arith.truncf %614 : vector<8x128xf32> to vector<8x128xbf16>
    %c0_415 = arith.constant 0 : index
    %c0_416 = arith.constant 0 : index
    %616 = vector.load %arg10[%c0_415, %c0_416] : memref<128x512xbf16, #tpu.memory_space<vmem>>, vector<128x512xbf16>
    %cst_417 = arith.constant dense<0.000000e+00> : vector<8x512xf32>
    %617 = tpu.matmul %615, %616, %cst_417 {dimension_numbers = #tpu.dot_dimension_numbers<[1], [0], [0], [1], [0, 0, 1, 1], [], []>} : vector<8x128xbf16>, vector<128x512xbf16>, vector<8x512xf32> -> vector<8x512xf32>
    %618 = vector.broadcast %484 : vector<1x512xf32> to vector<8x512xf32>
    %619 = arith.addf %617, %618 : vector<8x512xf32>
    %620 = arith.truncf %583 : vector<8x128xf32> to vector<8x128xbf16>
    %c0_418 = arith.constant 0 : index
    %c0_419 = arith.constant 0 : index
    %621 = vector.load %arg11[%c0_418, %c0_419] : memref<128x512xbf16, #tpu.memory_space<vmem>>, vector<128x512xbf16>
    %cst_420 = arith.constant dense<0.000000e+00> : vector<8x512xf32>
    %622 = tpu.matmul %620, %621, %cst_420 {dimension_numbers = #tpu.dot_dimension_numbers<[1], [0], [0], [1], [0, 0, 1, 1], [], []>} : vector<8x128xbf16>, vector<128x512xbf16>, vector<8x512xf32> -> vector<8x512xf32>
    %623 = arith.addf %554, %622 : vector<8x512xf32>
    %624 = vector.extract_strided_slice %623 {offsets = [0, 0], sizes = [8, 128], strides = [1, 1]} : vector<8x512xf32> to vector<8x128xf32>
    %625 = arith.negf %624 : vector<8x128xf32>
    %626 = math.exp %625 : vector<8x128xf32>
    %cst_421 = arith.constant 1.000000e+00 : f32
    %627 = vector.broadcast %cst_421 : f32 to vector<8x128xf32>
    %628 = arith.addf %627, %626 : vector<8x128xf32>
    %629 = arith.divf %627, %628 : vector<8x128xf32>
    %630 = vector.extract_strided_slice %623 {offsets = [0, 128], sizes = [8, 128], strides = [1, 1]} : vector<8x512xf32> to vector<8x128xf32>
    %631 = arith.negf %630 : vector<8x128xf32>
    %632 = math.exp %631 : vector<8x128xf32>
    %cst_422 = arith.constant 1.000000e+00 : f32
    %633 = vector.broadcast %cst_422 : f32 to vector<8x128xf32>
    %634 = arith.addf %633, %632 : vector<8x128xf32>
    %635 = arith.divf %633, %634 : vector<8x128xf32>
    %636 = vector.extract_strided_slice %623 {offsets = [0, 256], sizes = [8, 128], strides = [1, 1]} : vector<8x512xf32> to vector<8x128xf32>
    %637 = math.tanh %636 : vector<8x128xf32>
    %638 = vector.extract_strided_slice %623 {offsets = [0, 384], sizes = [8, 128], strides = [1, 1]} : vector<8x512xf32> to vector<8x128xf32>
    %639 = arith.negf %638 : vector<8x128xf32>
    %640 = math.exp %639 : vector<8x128xf32>
    %cst_423 = arith.constant 1.000000e+00 : f32
    %641 = vector.broadcast %cst_423 : f32 to vector<8x128xf32>
    %642 = arith.addf %641, %640 : vector<8x128xf32>
    %643 = arith.divf %641, %642 : vector<8x128xf32>
    %644 = arith.mulf %635, %581 : vector<8x128xf32>
    %645 = arith.mulf %629, %637 : vector<8x128xf32>
    %646 = arith.addf %644, %645 : vector<8x128xf32>
    %647 = math.tanh %646 : vector<8x128xf32>
    %648 = arith.mulf %643, %647 : vector<8x128xf32>
    %c0_424 = arith.constant 0 : index
    %c128 = arith.constant 128 : index
    %649 = vector.load %arg17[%c0_424, %c128] : memref<8x1024xf32, #tpu.memory_space<vmem>>, vector<8x128xf32>
    tpu.vector_store %arg17[%c0_424, %c128], %648 {strides = array<i32>} : memref<8x1024xf32, #tpu.memory_space<vmem>>, vector<8x128xf32>,
    %c24_425 = arith.constant 24 : index
    %c0_426 = arith.constant 0 : index
    %650 = vector.load %arg16[%c24_425, %c0_426] : memref<64x512xf32, #tpu.memory_space<vmem>>, vector<8x512xf32>
    %651 = arith.truncf %614 : vector<8x128xf32> to vector<8x128xbf16>
    %c0_427 = arith.constant 0 : index
    %c0_428 = arith.constant 0 : index
    %652 = vector.load %arg9[%c0_427, %c0_428] : memref<128x512xbf16, #tpu.memory_space<vmem>>, vector<128x512xbf16>
    %cst_429 = arith.constant dense<0.000000e+00> : vector<8x512xf32>
    %653 = tpu.matmul %651, %652, %cst_429 {dimension_numbers = #tpu.dot_dimension_numbers<[1], [0], [0], [1], [0, 0, 1, 1], [], []>} : vector<8x128xbf16>, vector<128x512xbf16>, vector<8x512xf32> -> vector<8x512xf32>
    %654 = arith.addf %650, %653 : vector<8x512xf32>
    %655 = vector.extract_strided_slice %654 {offsets = [0, 0], sizes = [8, 128], strides = [1, 1]} : vector<8x512xf32> to vector<8x128xf32>
    %656 = arith.negf %655 : vector<8x128xf32>
    %657 = math.exp %656 : vector<8x128xf32>
    %cst_430 = arith.constant 1.000000e+00 : f32
    %658 = vector.broadcast %cst_430 : f32 to vector<8x128xf32>
    %659 = arith.addf %658, %657 : vector<8x128xf32>
    %660 = arith.divf %658, %659 : vector<8x128xf32>
    %661 = vector.extract_strided_slice %654 {offsets = [0, 128], sizes = [8, 128], strides = [1, 1]} : vector<8x512xf32> to vector<8x128xf32>
    %662 = arith.negf %661 : vector<8x128xf32>
    %663 = math.exp %662 : vector<8x128xf32>
    %cst_431 = arith.constant 1.000000e+00 : f32
    %664 = vector.broadcast %cst_431 : f32 to vector<8x128xf32>
    %665 = arith.addf %664, %663 : vector<8x128xf32>
    %666 = arith.divf %664, %665 : vector<8x128xf32>
    %667 = vector.extract_strided_slice %654 {offsets = [0, 256], sizes = [8, 128], strides = [1, 1]} : vector<8x512xf32> to vector<8x128xf32>
    %668 = math.tanh %667 : vector<8x128xf32>
    %669 = vector.extract_strided_slice %654 {offsets = [0, 384], sizes = [8, 128], strides = [1, 1]} : vector<8x512xf32> to vector<8x128xf32>
    %670 = arith.negf %669 : vector<8x128xf32>
    %671 = math.exp %670 : vector<8x128xf32>
    %cst_432 = arith.constant 1.000000e+00 : f32
    %672 = vector.broadcast %cst_432 : f32 to vector<8x128xf32>
    %673 = arith.addf %672, %671 : vector<8x128xf32>
    %674 = arith.divf %672, %673 : vector<8x128xf32>
    %675 = arith.mulf %666, %612 : vector<8x128xf32>
    %676 = arith.mulf %660, %668 : vector<8x128xf32>
    %677 = arith.addf %675, %676 : vector<8x128xf32>
    %678 = math.tanh %677 : vector<8x128xf32>
    %679 = arith.mulf %674, %678 : vector<8x128xf32>
    %680 = arith.truncf %679 : vector<8x128xf32> to vector<8x128xbf16>
    %c0_433 = arith.constant 0 : index
    %c0_434 = arith.constant 0 : index
    %681 = vector.load %arg10[%c0_433, %c0_434] : memref<128x512xbf16, #tpu.memory_space<vmem>>, vector<128x512xbf16>
    %cst_435 = arith.constant dense<0.000000e+00> : vector<8x512xf32>
    %682 = tpu.matmul %680, %681, %cst_435 {dimension_numbers = #tpu.dot_dimension_numbers<[1], [0], [0], [1], [0, 0, 1, 1], [], []>} : vector<8x128xbf16>, vector<128x512xbf16>, vector<8x512xf32> -> vector<8x512xf32>
    %683 = vector.broadcast %484 : vector<1x512xf32> to vector<8x512xf32>
    %684 = arith.addf %682, %683 : vector<8x512xf32>
    %685 = arith.truncf %648 : vector<8x128xf32> to vector<8x128xbf16>
    %c0_436 = arith.constant 0 : index
    %c0_437 = arith.constant 0 : index
    %686 = vector.load %arg11[%c0_436, %c0_437] : memref<128x512xbf16, #tpu.memory_space<vmem>>, vector<128x512xbf16>
    %cst_438 = arith.constant dense<0.000000e+00> : vector<8x512xf32>
    %687 = tpu.matmul %685, %686, %cst_438 {dimension_numbers = #tpu.dot_dimension_numbers<[1], [0], [0], [1], [0, 0, 1, 1], [], []>} : vector<8x128xbf16>, vector<128x512xbf16>, vector<8x512xf32> -> vector<8x512xf32>
    %688 = arith.addf %619, %687 : vector<8x512xf32>
    %689 = vector.extract_strided_slice %688 {offsets = [0, 0], sizes = [8, 128], strides = [1, 1]} : vector<8x512xf32> to vector<8x128xf32>
    %690 = arith.negf %689 : vector<8x128xf32>
    %691 = math.exp %690 : vector<8x128xf32>
    %cst_439 = arith.constant 1.000000e+00 : f32
    %692 = vector.broadcast %cst_439 : f32 to vector<8x128xf32>
    %693 = arith.addf %692, %691 : vector<8x128xf32>
    %694 = arith.divf %692, %693 : vector<8x128xf32>
    %695 = vector.extract_strided_slice %688 {offsets = [0, 128], sizes = [8, 128], strides = [1, 1]} : vector<8x512xf32> to vector<8x128xf32>
    %696 = arith.negf %695 : vector<8x128xf32>
    %697 = math.exp %696 : vector<8x128xf32>
    %cst_440 = arith.constant 1.000000e+00 : f32
    %698 = vector.broadcast %cst_440 : f32 to vector<8x128xf32>
    %699 = arith.addf %698, %697 : vector<8x128xf32>
    %700 = arith.divf %698, %699 : vector<8x128xf32>
    %701 = vector.extract_strided_slice %688 {offsets = [0, 256], sizes = [8, 128], strides = [1, 1]} : vector<8x512xf32> to vector<8x128xf32>
    %702 = math.tanh %701 : vector<8x128xf32>
    %703 = vector.extract_strided_slice %688 {offsets = [0, 384], sizes = [8, 128], strides = [1, 1]} : vector<8x512xf32> to vector<8x128xf32>
    %704 = arith.negf %703 : vector<8x128xf32>
    %705 = math.exp %704 : vector<8x128xf32>
    %cst_441 = arith.constant 1.000000e+00 : f32
    %706 = vector.broadcast %cst_441 : f32 to vector<8x128xf32>
    %707 = arith.addf %706, %705 : vector<8x128xf32>
    %708 = arith.divf %706, %707 : vector<8x128xf32>
    %709 = arith.mulf %700, %646 : vector<8x128xf32>
    %710 = arith.mulf %694, %702 : vector<8x128xf32>
    %711 = arith.addf %709, %710 : vector<8x128xf32>
    %712 = math.tanh %711 : vector<8x128xf32>
    %713 = arith.mulf %708, %712 : vector<8x128xf32>
    %c0_442 = arith.constant 0 : index
    %c256 = arith.constant 256 : index
    %714 = vector.load %arg17[%c0_442, %c256] : memref<8x1024xf32, #tpu.memory_space<vmem>>, vector<8x128xf32>
    tpu.vector_store %arg17[%c0_442, %c256], %713 {strides = array<i32>} : memref<8x1024xf32, #tpu.memory_space<vmem>>, vector<8x128xf32>,
    %c32_443 = arith.constant 32 : index
    %c0_444 = arith.constant 0 : index
    %715 = vector.load %arg16[%c32_443, %c0_444] : memref<64x512xf32, #tpu.memory_space<vmem>>, vector<8x512xf32>
    %716 = arith.truncf %679 : vector<8x128xf32> to vector<8x128xbf16>
    %c0_445 = arith.constant 0 : index
    %c0_446 = arith.constant 0 : index
    %717 = vector.load %arg9[%c0_445, %c0_446] : memref<128x512xbf16, #tpu.memory_space<vmem>>, vector<128x512xbf16>
    %cst_447 = arith.constant dense<0.000000e+00> : vector<8x512xf32>
    %718 = tpu.matmul %716, %717, %cst_447 {dimension_numbers = #tpu.dot_dimension_numbers<[1], [0], [0], [1], [0, 0, 1, 1], [], []>} : vector<8x128xbf16>, vector<128x512xbf16>, vector<8x512xf32> -> vector<8x512xf32>
    %719 = arith.addf %715, %718 : vector<8x512xf32>
    %720 = vector.extract_strided_slice %719 {offsets = [0, 0], sizes = [8, 128], strides = [1, 1]} : vector<8x512xf32> to vector<8x128xf32>
    %721 = arith.negf %720 : vector<8x128xf32>
    %722 = math.exp %721 : vector<8x128xf32>
    %cst_448 = arith.constant 1.000000e+00 : f32
    %723 = vector.broadcast %cst_448 : f32 to vector<8x128xf32>
    %724 = arith.addf %723, %722 : vector<8x128xf32>
    %725 = arith.divf %723, %724 : vector<8x128xf32>
    %726 = vector.extract_strided_slice %719 {offsets = [0, 128], sizes = [8, 128], strides = [1, 1]} : vector<8x512xf32> to vector<8x128xf32>
    %727 = arith.negf %726 : vector<8x128xf32>
    %728 = math.exp %727 : vector<8x128xf32>
    %cst_449 = arith.constant 1.000000e+00 : f32
    %729 = vector.broadcast %cst_449 : f32 to vector<8x128xf32>
    %730 = arith.addf %729, %728 : vector<8x128xf32>
    %731 = arith.divf %729, %730 : vector<8x128xf32>
    %732 = vector.extract_strided_slice %719 {offsets = [0, 256], sizes = [8, 128], strides = [1, 1]} : vector<8x512xf32> to vector<8x128xf32>
    %733 = math.tanh %732 : vector<8x128xf32>
    %734 = vector.extract_strided_slice %719 {offsets = [0, 384], sizes = [8, 128], strides = [1, 1]} : vector<8x512xf32> to vector<8x128xf32>
    %735 = arith.negf %734 : vector<8x128xf32>
    %736 = math.exp %735 : vector<8x128xf32>
    %cst_450 = arith.constant 1.000000e+00 : f32
    %737 = vector.broadcast %cst_450 : f32 to vector<8x128xf32>
    %738 = arith.addf %737, %736 : vector<8x128xf32>
    %739 = arith.divf %737, %738 : vector<8x128xf32>
    %740 = arith.mulf %731, %677 : vector<8x128xf32>
    %741 = arith.mulf %725, %733 : vector<8x128xf32>
    %742 = arith.addf %740, %741 : vector<8x128xf32>
    %743 = math.tanh %742 : vector<8x128xf32>
    %744 = arith.mulf %739, %743 : vector<8x128xf32>
    %745 = arith.truncf %744 : vector<8x128xf32> to vector<8x128xbf16>
    %c0_451 = arith.constant 0 : index
    %c0_452 = arith.constant 0 : index
    %746 = vector.load %arg10[%c0_451, %c0_452] : memref<128x512xbf16, #tpu.memory_space<vmem>>, vector<128x512xbf16>
    %cst_453 = arith.constant dense<0.000000e+00> : vector<8x512xf32>
    %747 = tpu.matmul %745, %746, %cst_453 {dimension_numbers = #tpu.dot_dimension_numbers<[1], [0], [0], [1], [0, 0, 1, 1], [], []>} : vector<8x128xbf16>, vector<128x512xbf16>, vector<8x512xf32> -> vector<8x512xf32>
    %748 = vector.broadcast %484 : vector<1x512xf32> to vector<8x512xf32>
    %749 = arith.addf %747, %748 : vector<8x512xf32>
    %750 = arith.truncf %713 : vector<8x128xf32> to vector<8x128xbf16>
    %c0_454 = arith.constant 0 : index
    %c0_455 = arith.constant 0 : index
    %751 = vector.load %arg11[%c0_454, %c0_455] : memref<128x512xbf16, #tpu.memory_space<vmem>>, vector<128x512xbf16>
    %cst_456 = arith.constant dense<0.000000e+00> : vector<8x512xf32>
    %752 = tpu.matmul %750, %751, %cst_456 {dimension_numbers = #tpu.dot_dimension_numbers<[1], [0], [0], [1], [0, 0, 1, 1], [], []>} : vector<8x128xbf16>, vector<128x512xbf16>, vector<8x512xf32> -> vector<8x512xf32>
    %753 = arith.addf %684, %752 : vector<8x512xf32>
    %754 = vector.extract_strided_slice %753 {offsets = [0, 0], sizes = [8, 128], strides = [1, 1]} : vector<8x512xf32> to vector<8x128xf32>
    %755 = arith.negf %754 : vector<8x128xf32>
    %756 = math.exp %755 : vector<8x128xf32>
    %cst_457 = arith.constant 1.000000e+00 : f32
    %757 = vector.broadcast %cst_457 : f32 to vector<8x128xf32>
    %758 = arith.addf %757, %756 : vector<8x128xf32>
    %759 = arith.divf %757, %758 : vector<8x128xf32>
    %760 = vector.extract_strided_slice %753 {offsets = [0, 128], sizes = [8, 128], strides = [1, 1]} : vector<8x512xf32> to vector<8x128xf32>
    %761 = arith.negf %760 : vector<8x128xf32>
    %762 = math.exp %761 : vector<8x128xf32>
    %cst_458 = arith.constant 1.000000e+00 : f32
    %763 = vector.broadcast %cst_458 : f32 to vector<8x128xf32>
    %764 = arith.addf %763, %762 : vector<8x128xf32>
    %765 = arith.divf %763, %764 : vector<8x128xf32>
    %766 = vector.extract_strided_slice %753 {offsets = [0, 256], sizes = [8, 128], strides = [1, 1]} : vector<8x512xf32> to vector<8x128xf32>
    %767 = math.tanh %766 : vector<8x128xf32>
    %768 = vector.extract_strided_slice %753 {offsets = [0, 384], sizes = [8, 128], strides = [1, 1]} : vector<8x512xf32> to vector<8x128xf32>
    %769 = arith.negf %768 : vector<8x128xf32>
    %770 = math.exp %769 : vector<8x128xf32>
    %cst_459 = arith.constant 1.000000e+00 : f32
    %771 = vector.broadcast %cst_459 : f32 to vector<8x128xf32>
    %772 = arith.addf %771, %770 : vector<8x128xf32>
    %773 = arith.divf %771, %772 : vector<8x128xf32>
    %774 = arith.mulf %765, %711 : vector<8x128xf32>
    %775 = arith.mulf %759, %767 : vector<8x128xf32>
    %776 = arith.addf %774, %775 : vector<8x128xf32>
    %777 = math.tanh %776 : vector<8x128xf32>
    %778 = arith.mulf %773, %777 : vector<8x128xf32>
    %c0_460 = arith.constant 0 : index
    %c384 = arith.constant 384 : index
    %779 = vector.load %arg17[%c0_460, %c384] : memref<8x1024xf32, #tpu.memory_space<vmem>>, vector<8x128xf32>
    tpu.vector_store %arg17[%c0_460, %c384], %778 {strides = array<i32>} : memref<8x1024xf32, #tpu.memory_space<vmem>>, vector<8x128xf32>,
    %c40_461 = arith.constant 40 : index
    %c0_462 = arith.constant 0 : index
    %780 = vector.load %arg16[%c40_461, %c0_462] : memref<64x512xf32, #tpu.memory_space<vmem>>, vector<8x512xf32>
    %781 = arith.truncf %744 : vector<8x128xf32> to vector<8x128xbf16>
    %c0_463 = arith.constant 0 : index
    %c0_464 = arith.constant 0 : index
    %782 = vector.load %arg9[%c0_463, %c0_464] : memref<128x512xbf16, #tpu.memory_space<vmem>>, vector<128x512xbf16>
    %cst_465 = arith.constant dense<0.000000e+00> : vector<8x512xf32>
    %783 = tpu.matmul %781, %782, %cst_465 {dimension_numbers = #tpu.dot_dimension_numbers<[1], [0], [0], [1], [0, 0, 1, 1], [], []>} : vector<8x128xbf16>, vector<128x512xbf16>, vector<8x512xf32> -> vector<8x512xf32>
    %784 = arith.addf %780, %783 : vector<8x512xf32>
    %785 = vector.extract_strided_slice %784 {offsets = [0, 0], sizes = [8, 128], strides = [1, 1]} : vector<8x512xf32> to vector<8x128xf32>
    %786 = arith.negf %785 : vector<8x128xf32>
    %787 = math.exp %786 : vector<8x128xf32>
    %cst_466 = arith.constant 1.000000e+00 : f32
    %788 = vector.broadcast %cst_466 : f32 to vector<8x128xf32>
    %789 = arith.addf %788, %787 : vector<8x128xf32>
    %790 = arith.divf %788, %789 : vector<8x128xf32>
    %791 = vector.extract_strided_slice %784 {offsets = [0, 128], sizes = [8, 128], strides = [1, 1]} : vector<8x512xf32> to vector<8x128xf32>
    %792 = arith.negf %791 : vector<8x128xf32>
    %793 = math.exp %792 : vector<8x128xf32>
    %cst_467 = arith.constant 1.000000e+00 : f32
    %794 = vector.broadcast %cst_467 : f32 to vector<8x128xf32>
    %795 = arith.addf %794, %793 : vector<8x128xf32>
    %796 = arith.divf %794, %795 : vector<8x128xf32>
    %797 = vector.extract_strided_slice %784 {offsets = [0, 256], sizes = [8, 128], strides = [1, 1]} : vector<8x512xf32> to vector<8x128xf32>
    %798 = math.tanh %797 : vector<8x128xf32>
    %799 = vector.extract_strided_slice %784 {offsets = [0, 384], sizes = [8, 128], strides = [1, 1]} : vector<8x512xf32> to vector<8x128xf32>
    %800 = arith.negf %799 : vector<8x128xf32>
    %801 = math.exp %800 : vector<8x128xf32>
    %cst_468 = arith.constant 1.000000e+00 : f32
    %802 = vector.broadcast %cst_468 : f32 to vector<8x128xf32>
    %803 = arith.addf %802, %801 : vector<8x128xf32>
    %804 = arith.divf %802, %803 : vector<8x128xf32>
    %805 = arith.mulf %796, %742 : vector<8x128xf32>
    %806 = arith.mulf %790, %798 : vector<8x128xf32>
    %807 = arith.addf %805, %806 : vector<8x128xf32>
    %808 = math.tanh %807 : vector<8x128xf32>
    %809 = arith.mulf %804, %808 : vector<8x128xf32>
    %810 = arith.truncf %809 : vector<8x128xf32> to vector<8x128xbf16>
    %c0_469 = arith.constant 0 : index
    %c0_470 = arith.constant 0 : index
    %811 = vector.load %arg10[%c0_469, %c0_470] : memref<128x512xbf16, #tpu.memory_space<vmem>>, vector<128x512xbf16>
    %cst_471 = arith.constant dense<0.000000e+00> : vector<8x512xf32>
    %812 = tpu.matmul %810, %811, %cst_471 {dimension_numbers = #tpu.dot_dimension_numbers<[1], [0], [0], [1], [0, 0, 1, 1], [], []>} : vector<8x128xbf16>, vector<128x512xbf16>, vector<8x512xf32> -> vector<8x512xf32>
    %813 = vector.broadcast %484 : vector<1x512xf32> to vector<8x512xf32>
    %814 = arith.addf %812, %813 : vector<8x512xf32>
    %815 = arith.truncf %778 : vector<8x128xf32> to vector<8x128xbf16>
    %c0_472 = arith.constant 0 : index
    %c0_473 = arith.constant 0 : index
    %816 = vector.load %arg11[%c0_472, %c0_473] : memref<128x512xbf16, #tpu.memory_space<vmem>>, vector<128x512xbf16>
    %cst_474 = arith.constant dense<0.000000e+00> : vector<8x512xf32>
    %817 = tpu.matmul %815, %816, %cst_474 {dimension_numbers = #tpu.dot_dimension_numbers<[1], [0], [0], [1], [0, 0, 1, 1], [], []>} : vector<8x128xbf16>, vector<128x512xbf16>, vector<8x512xf32> -> vector<8x512xf32>
    %818 = arith.addf %749, %817 : vector<8x512xf32>
    %819 = vector.extract_strided_slice %818 {offsets = [0, 0], sizes = [8, 128], strides = [1, 1]} : vector<8x512xf32> to vector<8x128xf32>
    %820 = arith.negf %819 : vector<8x128xf32>
    %821 = math.exp %820 : vector<8x128xf32>
    %cst_475 = arith.constant 1.000000e+00 : f32
    %822 = vector.broadcast %cst_475 : f32 to vector<8x128xf32>
    %823 = arith.addf %822, %821 : vector<8x128xf32>
    %824 = arith.divf %822, %823 : vector<8x128xf32>
    %825 = vector.extract_strided_slice %818 {offsets = [0, 128], sizes = [8, 128], strides = [1, 1]} : vector<8x512xf32> to vector<8x128xf32>
    %826 = arith.negf %825 : vector<8x128xf32>
    %827 = math.exp %826 : vector<8x128xf32>
    %cst_476 = arith.constant 1.000000e+00 : f32
    %828 = vector.broadcast %cst_476 : f32 to vector<8x128xf32>
    %829 = arith.addf %828, %827 : vector<8x128xf32>
    %830 = arith.divf %828, %829 : vector<8x128xf32>
    %831 = vector.extract_strided_slice %818 {offsets = [0, 256], sizes = [8, 128], strides = [1, 1]} : vector<8x512xf32> to vector<8x128xf32>
    %832 = math.tanh %831 : vector<8x128xf32>
    %833 = vector.extract_strided_slice %818 {offsets = [0, 384], sizes = [8, 128], strides = [1, 1]} : vector<8x512xf32> to vector<8x128xf32>
    %834 = arith.negf %833 : vector<8x128xf32>
    %835 = math.exp %834 : vector<8x128xf32>
    %cst_477 = arith.constant 1.000000e+00 : f32
    %836 = vector.broadcast %cst_477 : f32 to vector<8x128xf32>
    %837 = arith.addf %836, %835 : vector<8x128xf32>
    %838 = arith.divf %836, %837 : vector<8x128xf32>
    %839 = arith.mulf %830, %776 : vector<8x128xf32>
    %840 = arith.mulf %824, %832 : vector<8x128xf32>
    %841 = arith.addf %839, %840 : vector<8x128xf32>
    %842 = math.tanh %841 : vector<8x128xf32>
    %843 = arith.mulf %838, %842 : vector<8x128xf32>
    %c0_478 = arith.constant 0 : index
    %c512 = arith.constant 512 : index
    %844 = vector.load %arg17[%c0_478, %c512] : memref<8x1024xf32, #tpu.memory_space<vmem>>, vector<8x128xf32>
    tpu.vector_store %arg17[%c0_478, %c512], %843 {strides = array<i32>} : memref<8x1024xf32, #tpu.memory_space<vmem>>, vector<8x128xf32>,
    %c48_479 = arith.constant 48 : index
    %c0_480 = arith.constant 0 : index
    %845 = vector.load %arg16[%c48_479, %c0_480] : memref<64x512xf32, #tpu.memory_space<vmem>>, vector<8x512xf32>
    %846 = arith.truncf %809 : vector<8x128xf32> to vector<8x128xbf16>
    %c0_481 = arith.constant 0 : index
    %c0_482 = arith.constant 0 : index
    %847 = vector.load %arg9[%c0_481, %c0_482] : memref<128x512xbf16, #tpu.memory_space<vmem>>, vector<128x512xbf16>
    %cst_483 = arith.constant dense<0.000000e+00> : vector<8x512xf32>
    %848 = tpu.matmul %846, %847, %cst_483 {dimension_numbers = #tpu.dot_dimension_numbers<[1], [0], [0], [1], [0, 0, 1, 1], [], []>} : vector<8x128xbf16>, vector<128x512xbf16>, vector<8x512xf32> -> vector<8x512xf32>
    %849 = arith.addf %845, %848 : vector<8x512xf32>
    %850 = vector.extract_strided_slice %849 {offsets = [0, 0], sizes = [8, 128], strides = [1, 1]} : vector<8x512xf32> to vector<8x128xf32>
    %851 = arith.negf %850 : vector<8x128xf32>
    %852 = math.exp %851 : vector<8x128xf32>
    %cst_484 = arith.constant 1.000000e+00 : f32
    %853 = vector.broadcast %cst_484 : f32 to vector<8x128xf32>
    %854 = arith.addf %853, %852 : vector<8x128xf32>
    %855 = arith.divf %853, %854 : vector<8x128xf32>
    %856 = vector.extract_strided_slice %849 {offsets = [0, 128], sizes = [8, 128], strides = [1, 1]} : vector<8x512xf32> to vector<8x128xf32>
    %857 = arith.negf %856 : vector<8x128xf32>
    %858 = math.exp %857 : vector<8x128xf32>
    %cst_485 = arith.constant 1.000000e+00 : f32
    %859 = vector.broadcast %cst_485 : f32 to vector<8x128xf32>
    %860 = arith.addf %859, %858 : vector<8x128xf32>
    %861 = arith.divf %859, %860 : vector<8x128xf32>
    %862 = vector.extract_strided_slice %849 {offsets = [0, 256], sizes = [8, 128], strides = [1, 1]} : vector<8x512xf32> to vector<8x128xf32>
    %863 = math.tanh %862 : vector<8x128xf32>
    %864 = vector.extract_strided_slice %849 {offsets = [0, 384], sizes = [8, 128], strides = [1, 1]} : vector<8x512xf32> to vector<8x128xf32>
    %865 = arith.negf %864 : vector<8x128xf32>
    %866 = math.exp %865 : vector<8x128xf32>
    %cst_486 = arith.constant 1.000000e+00 : f32
    %867 = vector.broadcast %cst_486 : f32 to vector<8x128xf32>
    %868 = arith.addf %867, %866 : vector<8x128xf32>
    %869 = arith.divf %867, %868 : vector<8x128xf32>
    %870 = arith.mulf %861, %807 : vector<8x128xf32>
    %871 = arith.mulf %855, %863 : vector<8x128xf32>
    %872 = arith.addf %870, %871 : vector<8x128xf32>
    %873 = math.tanh %872 : vector<8x128xf32>
    %874 = arith.mulf %869, %873 : vector<8x128xf32>
    %875 = arith.truncf %874 : vector<8x128xf32> to vector<8x128xbf16>
    %c0_487 = arith.constant 0 : index
    %c0_488 = arith.constant 0 : index
    %876 = vector.load %arg10[%c0_487, %c0_488] : memref<128x512xbf16, #tpu.memory_space<vmem>>, vector<128x512xbf16>
    %cst_489 = arith.constant dense<0.000000e+00> : vector<8x512xf32>
    %877 = tpu.matmul %875, %876, %cst_489 {dimension_numbers = #tpu.dot_dimension_numbers<[1], [0], [0], [1], [0, 0, 1, 1], [], []>} : vector<8x128xbf16>, vector<128x512xbf16>, vector<8x512xf32> -> vector<8x512xf32>
    %878 = vector.broadcast %484 : vector<1x512xf32> to vector<8x512xf32>
    %879 = arith.addf %877, %878 : vector<8x512xf32>
    %880 = arith.truncf %843 : vector<8x128xf32> to vector<8x128xbf16>
    %c0_490 = arith.constant 0 : index
    %c0_491 = arith.constant 0 : index
    %881 = vector.load %arg11[%c0_490, %c0_491] : memref<128x512xbf16, #tpu.memory_space<vmem>>, vector<128x512xbf16>
    %cst_492 = arith.constant dense<0.000000e+00> : vector<8x512xf32>
    %882 = tpu.matmul %880, %881, %cst_492 {dimension_numbers = #tpu.dot_dimension_numbers<[1], [0], [0], [1], [0, 0, 1, 1], [], []>} : vector<8x128xbf16>, vector<128x512xbf16>, vector<8x512xf32> -> vector<8x512xf32>
    %883 = arith.addf %814, %882 : vector<8x512xf32>
    %884 = vector.extract_strided_slice %883 {offsets = [0, 0], sizes = [8, 128], strides = [1, 1]} : vector<8x512xf32> to vector<8x128xf32>
    %885 = arith.negf %884 : vector<8x128xf32>
    %886 = math.exp %885 : vector<8x128xf32>
    %cst_493 = arith.constant 1.000000e+00 : f32
    %887 = vector.broadcast %cst_493 : f32 to vector<8x128xf32>
    %888 = arith.addf %887, %886 : vector<8x128xf32>
    %889 = arith.divf %887, %888 : vector<8x128xf32>
    %890 = vector.extract_strided_slice %883 {offsets = [0, 128], sizes = [8, 128], strides = [1, 1]} : vector<8x512xf32> to vector<8x128xf32>
    %891 = arith.negf %890 : vector<8x128xf32>
    %892 = math.exp %891 : vector<8x128xf32>
    %cst_494 = arith.constant 1.000000e+00 : f32
    %893 = vector.broadcast %cst_494 : f32 to vector<8x128xf32>
    %894 = arith.addf %893, %892 : vector<8x128xf32>
    %895 = arith.divf %893, %894 : vector<8x128xf32>
    %896 = vector.extract_strided_slice %883 {offsets = [0, 256], sizes = [8, 128], strides = [1, 1]} : vector<8x512xf32> to vector<8x128xf32>
    %897 = math.tanh %896 : vector<8x128xf32>
    %898 = vector.extract_strided_slice %883 {offsets = [0, 384], sizes = [8, 128], strides = [1, 1]} : vector<8x512xf32> to vector<8x128xf32>
    %899 = arith.negf %898 : vector<8x128xf32>
    %900 = math.exp %899 : vector<8x128xf32>
    %cst_495 = arith.constant 1.000000e+00 : f32
    %901 = vector.broadcast %cst_495 : f32 to vector<8x128xf32>
    %902 = arith.addf %901, %900 : vector<8x128xf32>
    %903 = arith.divf %901, %902 : vector<8x128xf32>
    %904 = arith.mulf %895, %841 : vector<8x128xf32>
    %905 = arith.mulf %889, %897 : vector<8x128xf32>
    %906 = arith.addf %904, %905 : vector<8x128xf32>
    %907 = math.tanh %906 : vector<8x128xf32>
    %908 = arith.mulf %903, %907 : vector<8x128xf32>
    %c0_496 = arith.constant 0 : index
    %c640 = arith.constant 640 : index
    %909 = vector.load %arg17[%c0_496, %c640] : memref<8x1024xf32, #tpu.memory_space<vmem>>, vector<8x128xf32>
    tpu.vector_store %arg17[%c0_496, %c640], %908 {strides = array<i32>} : memref<8x1024xf32, #tpu.memory_space<vmem>>, vector<8x128xf32>,
    %c56_497 = arith.constant 56 : index
    %c0_498 = arith.constant 0 : index
    %910 = vector.load %arg16[%c56_497, %c0_498] : memref<64x512xf32, #tpu.memory_space<vmem>>, vector<8x512xf32>
    %911 = arith.truncf %874 : vector<8x128xf32> to vector<8x128xbf16>
    %c0_499 = arith.constant 0 : index
    %c0_500 = arith.constant 0 : index
    %912 = vector.load %arg9[%c0_499, %c0_500] : memref<128x512xbf16, #tpu.memory_space<vmem>>, vector<128x512xbf16>
    %cst_501 = arith.constant dense<0.000000e+00> : vector<8x512xf32>
    %913 = tpu.matmul %911, %912, %cst_501 {dimension_numbers = #tpu.dot_dimension_numbers<[1], [0], [0], [1], [0, 0, 1, 1], [], []>} : vector<8x128xbf16>, vector<128x512xbf16>, vector<8x512xf32> -> vector<8x512xf32>
    %914 = arith.addf %910, %913 : vector<8x512xf32>
    %915 = vector.extract_strided_slice %914 {offsets = [0, 0], sizes = [8, 128], strides = [1, 1]} : vector<8x512xf32> to vector<8x128xf32>
    %916 = arith.negf %915 : vector<8x128xf32>
    %917 = math.exp %916 : vector<8x128xf32>
    %cst_502 = arith.constant 1.000000e+00 : f32
    %918 = vector.broadcast %cst_502 : f32 to vector<8x128xf32>
    %919 = arith.addf %918, %917 : vector<8x128xf32>
    %920 = arith.divf %918, %919 : vector<8x128xf32>
    %921 = vector.extract_strided_slice %914 {offsets = [0, 128], sizes = [8, 128], strides = [1, 1]} : vector<8x512xf32> to vector<8x128xf32>
    %922 = arith.negf %921 : vector<8x128xf32>
    %923 = math.exp %922 : vector<8x128xf32>
    %cst_503 = arith.constant 1.000000e+00 : f32
    %924 = vector.broadcast %cst_503 : f32 to vector<8x128xf32>
    %925 = arith.addf %924, %923 : vector<8x128xf32>
    %926 = arith.divf %924, %925 : vector<8x128xf32>
    %927 = vector.extract_strided_slice %914 {offsets = [0, 256], sizes = [8, 128], strides = [1, 1]} : vector<8x512xf32> to vector<8x128xf32>
    %928 = math.tanh %927 : vector<8x128xf32>
    %929 = vector.extract_strided_slice %914 {offsets = [0, 384], sizes = [8, 128], strides = [1, 1]} : vector<8x512xf32> to vector<8x128xf32>
    %930 = arith.negf %929 : vector<8x128xf32>
    %931 = math.exp %930 : vector<8x128xf32>
    %cst_504 = arith.constant 1.000000e+00 : f32
    %932 = vector.broadcast %cst_504 : f32 to vector<8x128xf32>
    %933 = arith.addf %932, %931 : vector<8x128xf32>
    %934 = arith.divf %932, %933 : vector<8x128xf32>
    %935 = arith.mulf %926, %872 : vector<8x128xf32>
    %936 = arith.mulf %920, %928 : vector<8x128xf32>
    %937 = arith.addf %935, %936 : vector<8x128xf32>
    %938 = math.tanh %937 : vector<8x128xf32>
    %939 = arith.mulf %934, %938 : vector<8x128xf32>
    %940 = arith.truncf %939 : vector<8x128xf32> to vector<8x128xbf16>
    %c0_505 = arith.constant 0 : index
    %c0_506 = arith.constant 0 : index
    %941 = vector.load %arg10[%c0_505, %c0_506] : memref<128x512xbf16, #tpu.memory_space<vmem>>, vector<128x512xbf16>
    %cst_507 = arith.constant dense<0.000000e+00> : vector<8x512xf32>
    %942 = tpu.matmul %940, %941, %cst_507 {dimension_numbers = #tpu.dot_dimension_numbers<[1], [0], [0], [1], [0, 0, 1, 1], [], []>} : vector<8x128xbf16>, vector<128x512xbf16>, vector<8x512xf32> -> vector<8x512xf32>
    %943 = vector.broadcast %484 : vector<1x512xf32> to vector<8x512xf32>
    %944 = arith.addf %942, %943 : vector<8x512xf32>
    %945 = arith.truncf %908 : vector<8x128xf32> to vector<8x128xbf16>
    %c0_508 = arith.constant 0 : index
    %c0_509 = arith.constant 0 : index
    %946 = vector.load %arg11[%c0_508, %c0_509] : memref<128x512xbf16, #tpu.memory_space<vmem>>, vector<128x512xbf16>
    %cst_510 = arith.constant dense<0.000000e+00> : vector<8x512xf32>
    %947 = tpu.matmul %945, %946, %cst_510 {dimension_numbers = #tpu.dot_dimension_numbers<[1], [0], [0], [1], [0, 0, 1, 1], [], []>} : vector<8x128xbf16>, vector<128x512xbf16>, vector<8x512xf32> -> vector<8x512xf32>
    %948 = arith.addf %879, %947 : vector<8x512xf32>
    %949 = vector.extract_strided_slice %948 {offsets = [0, 0], sizes = [8, 128], strides = [1, 1]} : vector<8x512xf32> to vector<8x128xf32>
    %950 = arith.negf %949 : vector<8x128xf32>
    %951 = math.exp %950 : vector<8x128xf32>
    %cst_511 = arith.constant 1.000000e+00 : f32
    %952 = vector.broadcast %cst_511 : f32 to vector<8x128xf32>
    %953 = arith.addf %952, %951 : vector<8x128xf32>
    %954 = arith.divf %952, %953 : vector<8x128xf32>
    %955 = vector.extract_strided_slice %948 {offsets = [0, 128], sizes = [8, 128], strides = [1, 1]} : vector<8x512xf32> to vector<8x128xf32>
    %956 = arith.negf %955 : vector<8x128xf32>
    %957 = math.exp %956 : vector<8x128xf32>
    %cst_512 = arith.constant 1.000000e+00 : f32
    %958 = vector.broadcast %cst_512 : f32 to vector<8x128xf32>
    %959 = arith.addf %958, %957 : vector<8x128xf32>
    %960 = arith.divf %958, %959 : vector<8x128xf32>
    %961 = vector.extract_strided_slice %948 {offsets = [0, 256], sizes = [8, 128], strides = [1, 1]} : vector<8x512xf32> to vector<8x128xf32>
    %962 = math.tanh %961 : vector<8x128xf32>
    %963 = vector.extract_strided_slice %948 {offsets = [0, 384], sizes = [8, 128], strides = [1, 1]} : vector<8x512xf32> to vector<8x128xf32>
    %964 = arith.negf %963 : vector<8x128xf32>
    %965 = math.exp %964 : vector<8x128xf32>
    %cst_513 = arith.constant 1.000000e+00 : f32
    %966 = vector.broadcast %cst_513 : f32 to vector<8x128xf32>
    %967 = arith.addf %966, %965 : vector<8x128xf32>
    %968 = arith.divf %966, %967 : vector<8x128xf32>
    %969 = arith.mulf %960, %906 : vector<8x128xf32>
    %970 = arith.mulf %954, %962 : vector<8x128xf32>
    %971 = arith.addf %969, %970 : vector<8x128xf32>
    %972 = math.tanh %971 : vector<8x128xf32>
    %973 = arith.mulf %968, %972 : vector<8x128xf32>
    %c0_514 = arith.constant 0 : index
    %c768 = arith.constant 768 : index
    %974 = vector.load %arg17[%c0_514, %c768] : memref<8x1024xf32, #tpu.memory_space<vmem>>, vector<8x128xf32>
    tpu.vector_store %arg17[%c0_514, %c768], %973 {strides = array<i32>} : memref<8x1024xf32, #tpu.memory_space<vmem>>, vector<8x128xf32>,
    %975 = arith.truncf %973 : vector<8x128xf32> to vector<8x128xbf16>
    %c0_515 = arith.constant 0 : index
    %c0_516 = arith.constant 0 : index
    %976 = vector.load %arg11[%c0_515, %c0_516] : memref<128x512xbf16, #tpu.memory_space<vmem>>, vector<128x512xbf16>
    %cst_517 = arith.constant dense<0.000000e+00> : vector<8x512xf32>
    %977 = tpu.matmul %975, %976, %cst_517 {dimension_numbers = #tpu.dot_dimension_numbers<[1], [0], [0], [1], [0, 0, 1, 1], [], []>} : vector<8x128xbf16>, vector<128x512xbf16>, vector<8x512xf32> -> vector<8x512xf32>
    %978 = arith.addf %944, %977 : vector<8x512xf32>
    %979 = vector.extract_strided_slice %978 {offsets = [0, 0], sizes = [8, 128], strides = [1, 1]} : vector<8x512xf32> to vector<8x128xf32>
    %980 = arith.negf %979 : vector<8x128xf32>
    %981 = math.exp %980 : vector<8x128xf32>
    %cst_518 = arith.constant 1.000000e+00 : f32
    %982 = vector.broadcast %cst_518 : f32 to vector<8x128xf32>
    %983 = arith.addf %982, %981 : vector<8x128xf32>
    %984 = arith.divf %982, %983 : vector<8x128xf32>
    %985 = vector.extract_strided_slice %978 {offsets = [0, 128], sizes = [8, 128], strides = [1, 1]} : vector<8x512xf32> to vector<8x128xf32>
    %986 = arith.negf %985 : vector<8x128xf32>
    %987 = math.exp %986 : vector<8x128xf32>
    %cst_519 = arith.constant 1.000000e+00 : f32
    %988 = vector.broadcast %cst_519 : f32 to vector<8x128xf32>
    %989 = arith.addf %988, %987 : vector<8x128xf32>
    %990 = arith.divf %988, %989 : vector<8x128xf32>
    %991 = vector.extract_strided_slice %978 {offsets = [0, 256], sizes = [8, 128], strides = [1, 1]} : vector<8x512xf32> to vector<8x128xf32>
    %992 = math.tanh %991 : vector<8x128xf32>
    %993 = vector.extract_strided_slice %978 {offsets = [0, 384], sizes = [8, 128], strides = [1, 1]} : vector<8x512xf32> to vector<8x128xf32>
    %994 = arith.negf %993 : vector<8x128xf32>
    %995 = math.exp %994 : vector<8x128xf32>
    %cst_520 = arith.constant 1.000000e+00 : f32
    %996 = vector.broadcast %cst_520 : f32 to vector<8x128xf32>
    %997 = arith.addf %996, %995 : vector<8x128xf32>
    %998 = arith.divf %996, %997 : vector<8x128xf32>
    %999 = arith.mulf %990, %971 : vector<8x128xf32>
    %1000 = arith.mulf %984, %992 : vector<8x128xf32>
    %1001 = arith.addf %999, %1000 : vector<8x128xf32>
    %1002 = math.tanh %1001 : vector<8x128xf32>
    %1003 = arith.mulf %998, %1002 : vector<8x128xf32>
    %c0_521 = arith.constant 0 : index
    %c896 = arith.constant 896 : index
    %1004 = vector.load %arg17[%c0_521, %c896] : memref<8x1024xf32, #tpu.memory_space<vmem>>, vector<8x128xf32>
    tpu.vector_store %arg17[%c0_521, %c896], %1003 {strides = array<i32>} : memref<8x1024xf32, #tpu.memory_space<vmem>>, vector<8x128xf32>,
    %c0_522 = arith.constant 0 : index
    %c0_523 = arith.constant 0 : index
    %1005 = vector.load %arg17[%c0_522, %c0_523] : memref<8x1024xf32, #tpu.memory_space<vmem>>, vector<8x1024xf32>
    %1006 = arith.truncf %1005 : vector<8x1024xf32> to vector<8x1024xbf16>
    %c0_524 = arith.constant 0 : index
    %c0_525 = arith.constant 0 : index
    %1007 = vector.load %arg13[%c0_524, %c0_525] : memref<1024x128xbf16, #tpu.memory_space<vmem>>, vector<1024x128xbf16>
    %cst_526 = arith.constant dense<0.000000e+00> : vector<8x128xf32>
    %1008 = tpu.matmul %1006, %1007, %cst_526 {dimension_numbers = #tpu.dot_dimension_numbers<[1], [0], [0], [1], [0, 0, 1, 1], [], []>} : vector<8x1024xbf16>, vector<1024x128xbf16>, vector<8x128xf32> -> vector<8x128xf32>
    %c0_527 = arith.constant 0 : index
    %c0_528 = arith.constant 0 : index
    %1009 = vector.load %arg14[%c0_527, %c0_528] : memref<1x128xf32, #tpu.memory_space<vmem>>, vector<1x128xf32>
    %1010 = vector.broadcast %1009 : vector<1x128xf32> to vector<8x128xf32>
    %1011 = arith.addf %1008, %1010 : vector<8x128xf32>
    %c0_529 = arith.constant 0 : index
    %c0_530 = arith.constant 0 : index
    %1012 = vector.load %arg15[%c0_529, %c0_530] : memref<8x128xf32, #tpu.memory_space<vmem>>, vector<8x128xf32>
    tpu.vector_store %arg15[%c0_529, %c0_530], %1011 {strides = array<i32>} : memref<8x128xf32, #tpu.memory_space<vmem>>, vector<8x128xf32>,
    return
  }
}

</mosaic_0001>

<bundles_post_ra>
// kernel: forward_pallas.1
= control target key start
LH: loop header
LB: loop body
LE: loop exit
PB: predicated region body
PF: predicated region fallthrough
CT: control target
= control target key end

     0   :  { %s15003_s0 = inlined_call_operand.vmem [shape: s32[16,4], index: 0, kind: input, shape index: {}]   ;;  %s15004_s1 = inlined_call_operand.vmem [shape: f32[8,8], index: 1, kind: input, shape index: {}]   ;;  %s15005_s2 = inlined_call_operand.hbm [shape: f32[3,512], index: 2, kind: input, shape index: {}]   ;;  %s15006_s3 = inlined_call_operand.vmem [shape: f32[8,512], index: 3, kind: input, shape index: {}]   ;;  %s15007_s4 = inlined_call_operand.hbm [shape: f32[13,512], index: 4, kind: input, shape index: {}]   ;;  %s15008_s5 = inlined_call_operand.hbm [shape: f32[32,512], index: 5, kind: input, shape index: {}]   ;;  %s15009_s6 = inlined_call_operand.vmem [shape: f32[7,512], index: 6, kind: input, shape index: {}]   ;;  %s15010_s7 = inlined_call_operand.hbm [shape: f32[24,512], index: 7, kind: input, shape index: {}]   ;;  %s15011_s8 = inlined_call_operand.hbm [shape: f32[1,512], index: 8, kind: input, shape index: {}]   ;;  %s15012_s9 = inlined_call_operand.hbm [shape: bf16[128,512], index: 9, kind: input, shape index: {}]   ;;  %s15013_s10 = inlined_call_operand.hbm [shape: bf16[128,512], index: 10, kind: input, shape index: {}]   ;;  %s15014_s11 = inlined_call_operand.hbm [shape: bf16[128,512], index: 11, kind: input, shape index: {}]   ;;  %s15015_s12 = inlined_call_operand.hbm [shape: f32[1,512], index: 12, kind: input, shape index: {}]   ;;  %s15016_s13 = inlined_call_operand.hbm [shape: bf16[1024,128], index: 13, kind: input, shape index: {}]   ;;  %s15017_s14 = inlined_call_operand.hbm [shape: f32[1,128], index: 14, kind: input, shape index: {}]   ;;  %s15018_s15 = inlined_call_operand.vmem [shape: f32[8,128], index: 15, kind: output, shape index: {}]  }
   0x1   :  { %15193 = sst [smem:[#allocation96_spill]] %s15018_s15 }
   0x2   :  { %20 = vsyncpa [#allocation6], 0 }
   0x3   :  { %21 = vsyncpa [#allocation5], 0 }
   0x4   :  { %22 = vsyncpa [#allocation9], 0 }
   0x5   :  { %23 = vsyncpa [#allocation12], 0 }
   0x6   :  { %24 = vsyncpa [#allocation15], 0 }
   0x7   :  { %25 = vsyncpa [#allocation18], 0 }
   0x8   :  { %26 = vsyncpa [#allocation21], 0  ;;  %s12423_s18 = smov [#allocation8]   ;;  %s12155_s22 = scalar_lea.hbm %s15007_s4, 1024 }
   0x9   :  { %s58_s19 = sshll.u32 %s12423_s18, 4  ;;  %p12156_p0 = scmp.ne.s32.totalorder %s15007_s4, %s12155_s22  ;;  %s59_s19 = int_to_ptr.vmem [resolvable:$true] %s58_s19 }
   0xa   :  { %p12159_p1 = scmp.lt.u32.totalorder %s12155_s22, %s15007_s4 }
   0xc   :  { %p12161_p2 = pnand %p12159_p1, %p12156_p0 }
   0xe   :  { %12164 = shalt.err (!%p12161_p2)
}
   0xf   :  { %s12165_s27 = scalar_lea.vmem %s59_s19, 1024  ;;  %p12170_p4 = scmp.lt.s32.totalorder %s59_s19, %s59_s19 }
  0x10   :  { %p12166_p3 = scmp.ne.s32.totalorder %s59_s19, %s12165_s27  ;;  %p12171_p5 = scmp.lt.s32.totalorder %s12165_s27, %s12165_s27 }
  0x12   :  { %p12172_p6 = por %p12171_p5, %p12170_p4 }
  0x14   :  { %p12173_p7 = pnand %p12172_p6, %p12166_p3 }
  0x16   :  { %12176 = shalt.err (!%p12173_p7)
}
  0x17   :  { %s12424_s28 = smov 512   ;;  %s12425_s29 = smov 32  }
  0x18   :  { %64 = dma.hbm_to_vmem [thread:$0]  %s15007_s4, 1024, %s59_s19, [#allocation9], %s12424_s28, %s12424_s28, %s12425_s29  }
  0x19   :  { %s12426_s17 = smov [#allocation11]   ;;  %s12427_s20 = smov [#allocation14]  }
  0x1a   :  { %s84_s18 = sshll.u32 %s12426_s17, 4  ;;  %s106_s21 = sshll.u32 %s12427_s20, 4  ;;  %s85_s18 = int_to_ptr.vmem [resolvable:$true] %s84_s18  ;;  %s107_s21 = int_to_ptr.vmem [resolvable:$true] %s106_s21 }
  0x1b   :  { %s12177_s24 = scalar_lea.hbm %s15010_s7, 1536 }
  0x1c   :  { %p12178_p8 = scmp.ne.s32.totalorder %s15010_s7, %s12177_s24  ;;  %p12181_p9 = scmp.lt.u32.totalorder %s12177_s24, %s15010_s7 }
  0x1e   :  { %p12183_p10 = pnand %p12181_p9, %p12178_p8 }
  0x20   :  { %12186 = shalt.err (!%p12183_p10)
}
  0x21   :  { %s12187_s4 = scalar_lea.vmem %s85_s18, 1536  ;;  %p12192_p12 = scmp.lt.s32.totalorder %s85_s18, %s85_s18 }
  0x22   :  { %p12188_p11 = scmp.ne.s32.totalorder %s85_s18, %s12187_s4  ;;  %p12193_p13 = scmp.lt.s32.totalorder %s12187_s4, %s12187_s4 }
  0x24   :  { %p12194_p0 = por %p12193_p13, %p12192_p12 }
  0x26   :  { %p12195_p1 = pnand %p12194_p0, %p12188_p11 }
  0x28   :  { %12198 = shalt.err (!%p12195_p1)
}
  0x29   :  { %90 = dma.hbm_to_vmem [thread:$0]  %s15010_s7, 1536, %s85_s18, [#allocation12], %s12424_s28, %s12424_s28, %s12425_s29  }
  0x2a   :  { %s12199_s17 = scalar_lea.hbm %s15012_s9, 4096 }
  0x2b   :  { %p12200_p2 = scmp.ne.s32.totalorder %s15012_s9, %s12199_s17  ;;  %p12203_p3 = scmp.lt.u32.totalorder %s12199_s17, %s15012_s9 }
  0x2d   :  { %p12205_p4 = pnand %p12203_p3, %p12200_p2 }
  0x2f   :  { %12208 = shalt.err (!%p12205_p4)
}
  0x30   :  { %s12209_s25 = scalar_lea.vmem %s107_s21, 4096  ;;  %p12214_p6 = scmp.lt.s32.totalorder %s107_s21, %s107_s21 }
  0x31   :  { %p12210_p5 = scmp.ne.s32.totalorder %s107_s21, %s12209_s25  ;;  %p12215_p7 = scmp.lt.s32.totalorder %s12209_s25, %s12209_s25 }
  0x33   :  { %p12216_p8 = por %p12215_p7, %p12214_p6 }
  0x35   :  { %p12217_p9 = pnand %p12216_p8, %p12210_p5 }
  0x37   :  { %12220 = shalt.err (!%p12217_p9)
}
  0x38   :  { %s12428_s7 = smov 256   ;;  %s12429_s18 = smov 16  }
  0x39   :  { %112 = dma.hbm_to_vmem [thread:$0]  %s15012_s9, 4096, %s107_s21, [#allocation15], %s12428_s7, %s12428_s7, %s12429_s18  }
  0x3a   :  { %s12430_s4 = smov [#allocation17]   ;;  %s12431_s30 = smov [#allocation20]  }
  0x3b   :  { %s130_s19 = sshll.u32 %s12430_s4, 4  ;;  %s152_s16 = sshll.u32 %s12431_s30, 4  ;;  %s131_s19 = int_to_ptr.vmem [resolvable:$true] %s130_s19  ;;  %s153_s16 = int_to_ptr.vmem [resolvable:$true] %s152_s16 }
  0x3c   :  { %s12221_s20 = scalar_lea.hbm %s15014_s11, 4096 }
  0x3d   :  { %p12222_p10 = scmp.ne.s32.totalorder %s15014_s11, %s12221_s20  ;;  %p12225_p11 = scmp.lt.u32.totalorder %s12221_s20, %s15014_s11 }
  0x3f   :  { %p12227_p12 = pnand %p12225_p11, %p12222_p10 }
  0x41   :  { %12230 = shalt.err (!%p12227_p12)
}
  0x42   :  { %s12231_s9 = scalar_lea.vmem %s131_s19, 4096  ;;  %p12236_p0 = scmp.lt.s32.totalorder %s131_s19, %s131_s19 }
  0x43   :  { %p12232_p13 = scmp.ne.s32.totalorder %s131_s19, %s12231_s9  ;;  %p12237_p1 = scmp.lt.s32.totalorder %s12231_s9, %s12231_s9 }
  0x45   :  { %p12238_p2 = por %p12237_p1, %p12236_p0 }
  0x47   :  { %p12239_p3 = pnand %p12238_p2, %p12232_p13 }
  0x49   :  { %12242 = shalt.err (!%p12239_p3)
}
  0x4a   :  { %136 = dma.hbm_to_vmem [thread:$0]  %s15014_s11, 4096, %s131_s19, [#allocation18], %s12428_s7, %s12428_s7, %s12429_s18  }
  0x4b   :  { %s32_s30 = sshll.u32 %s15003_s0, 4  ;;  %s12243_s20 = scalar_lea.hbm %s15016_s13, 8192  ;;  %s33_s30 = int_to_ptr.vmem [resolvable:$true] %s32_s30 }
  0x4c   :  { %p12244_p4 = scmp.ne.s32.totalorder %s15016_s13, %s12243_s20  ;;  %p12247_p5 = scmp.lt.u32.totalorder %s12243_s20, %s15016_s13 }
  0x4e   :  { %p12249_p6 = pnand %p12247_p5, %p12244_p4 }
  0x50   :  { %12252 = shalt.err (!%p12249_p6)
}
  0x51   :  { %s12253_s11 = scalar_lea.vmem %s153_s16, 8192  ;;  %p12258_p8 = scmp.lt.s32.totalorder %s153_s16, %s153_s16 }
  0x52   :  { %p12254_p7 = scmp.ne.s32.totalorder %s153_s16, %s12253_s11  ;;  %p12259_p9 = scmp.lt.s32.totalorder %s12253_s11, %s12253_s11 }
  0x54   :  { %p12260_p10 = por %p12259_p9, %p12258_p8 }
  0x56   :  { %p12261_p11 = pnand %p12260_p10, %p12254_p7 }
  0x58   :  { %12264 = shalt.err (!%p12261_p11)
}
  0x59   :  { %s12432_s0 = smov 64   ;;  %s12433_s19 = smov 4  }
  0x5a   :  { %158 = dma.hbm_to_vmem [thread:$0]  %s15016_s13, 8192, %s153_s16, [#allocation21], %s12432_s0, %s12432_s0, %s12433_s19  }
  0x5b   :  { %s12265_s26 = scalar_lea.vmem %s33_s30, 256  ;;  %p12270_p13 = scmp.lt.s32.totalorder %s33_s30, %s33_s30 }
  0x5c   :  { %p12266_p12 = scmp.ne.s32.totalorder %s33_s30, %s12265_s26  ;;  %p12271_p0 = scmp.lt.s32.totalorder %s12265_s26, %s12265_s26 }
  0x5e   :  { %p12272_p1 = por %p12271_p0, %p12270_p13 }
  0x60   :  { %p12273_p2 = pnand %p12272_p1, %p12266_p12 }
  0x62   :  { %12276 = shalt.err (!%p12273_p2)
}
  0x63   :  { %s12434_s27 = smov [#allocation4]   ;;  %s12435_s4 = smov 128  }
  0x64   :  { %s12436_s15 = smov 8   ;;  %s12437_s17 = smov [#allocation7]  }
  0x65   :  { %38 = dma.vmem_to_smem %s33_s30, 256, %s12434_s27, [#allocation6], %s12435_s4, %s12435_s4, %s12436_s15  }
  0x66   :  { %s47_s20 = sshll.u32 %s12437_s17, 4  ;;  %s12438_s22 = smov [#allocation10]   ;;  %s48_s20 = int_to_ptr.vmem [resolvable:$true] %s47_s20 }
  0x67   :  { %s70_s23 = sshll.u32 %s12438_s22, 4  ;;  %s12277_s24 = scalar_lea.hbm %s15005_s2, 256  ;;  %s12606_s23 = int_to_ptr.vmem [resolvable:$true] %s70_s23 }
  0x68   :  { %p12278_p3 = scmp.ne.s32.totalorder %s15005_s2, %s12277_s24  ;;  %p12281_p4 = scmp.lt.u32.totalorder %s12277_s24, %s15005_s2 }
  0x6a   :  { %p12283_p5 = pnand %p12281_p4, %p12278_p3 }
  0x6c   :  { %12286 = shalt.err (!%p12283_p5)
}
  0x6d   :  { %s12287_s30 = scalar_lea.vmem %s48_s20, 256  ;;  %p12292_p7 = scmp.lt.s32.totalorder %s48_s20, %s48_s20 }
  0x6e   :  { %p12288_p6 = scmp.ne.s32.totalorder %s48_s20, %s12287_s30  ;;  %p12293_p8 = scmp.lt.s32.totalorder %s12287_s30, %s12287_s30 }
  0x70   :  { %p12294_p9 = por %p12293_p8, %p12292_p7 }
  0x72   :  { %p12295_p10 = pnand %p12294_p9, %p12288_p6 }
  0x74   :  { %12298 = shalt.err (!%p12295_p10)
}
  0x75   :  { %50 = dma.hbm_to_vmem [thread:$0]  %s15005_s2, 256, %s48_s20, [#allocation5]  }
  0x76   :  { %s12299_s4 = scalar_lea.hbm %s15008_s5, 2048 }
  0x77   :  { %p12300_p11 = scmp.ne.s32.totalorder %s15008_s5, %s12299_s4  ;;  %p12303_p12 = scmp.lt.u32.totalorder %s12299_s4, %s15008_s5 }
  0x79   :  { %p12305_p13 = pnand %p12303_p12, %p12300_p11 }
  0x7b   :  { %12308 = shalt.err (!%p12305_p13)
}
  0x7c   :  { %s12309_s16 = scalar_lea.vmem %s12606_s23, 2048  ;;  %p12314_p1 = scmp.lt.s32.totalorder %s12606_s23, %s12606_s23 }
  0x7d   :  { %p12310_p0 = scmp.ne.s32.totalorder %s12606_s23, %s12309_s16  ;;  %p12315_p2 = scmp.lt.s32.totalorder %s12309_s16, %s12309_s16 }
  0x7f   :  { %p12316_p3 = por %p12315_p2, %p12314_p1 }
  0x81   :  { %p12317_p4 = pnand %p12316_p3, %p12310_p0 }
  0x83   :  { %12320 = shalt.err (!%p12317_p4)
}
  0x84   :  { %76 = dma.hbm_to_vmem [thread:$0]  %s15008_s5, 2048, %s12606_s23, [#allocation9], %s12424_s28, %s12424_s28, %s12425_s29  }
  0x85   :  { %s12439_s24 = smov [#allocation13]   ;;  %s12440_s11 = smov [#allocation16]  }
  0x86   :  { %s97_s25 = sshll.u32 %s12439_s24, 4  ;;  %s118_s0 = sshll.u32 %s12440_s11, 4  ;;  %s98_s25 = int_to_ptr.vmem [resolvable:$true] %s97_s25  ;;  %s12640_s0 = int_to_ptr.vmem [resolvable:$true] %s118_s0 }
  0x87   :  { %s12321_s9 = scalar_lea.hbm %s15011_s8, 64 }
  0x88   :  { %p12322_p5 = scmp.ne.s32.totalorder %s15011_s8, %s12321_s9  ;;  %p12325_p6 = scmp.lt.u32.totalorder %s12321_s9, %s15011_s8 }
  0x8a   :  { %p12327_p7 = pnand %p12325_p6, %p12322_p5 }
  0x8c   :  { %12330 = shalt.err (!%p12327_p7)
}
  0x8d   :  { %s12331_s5 = scalar_lea.vmem %s98_s25, 64  ;;  %p12336_p9 = scmp.lt.s32.totalorder %s98_s25, %s98_s25 }
  0x8e   :  { %p12332_p8 = scmp.ne.s32.totalorder %s98_s25, %s12331_s5  ;;  %p12337_p10 = scmp.lt.s32.totalorder %s12331_s5, %s12331_s5 }
  0x90   :  { %p12338_p11 = por %p12337_p10, %p12336_p9 }
  0x92   :  { %p12339_p12 = pnand %p12338_p11, %p12332_p8 }
  0x94   :  { %12342 = shalt.err (!%p12339_p12)
}
  0x95   :  { %100 = dma.hbm_to_vmem [thread:$0]  %s15011_s8, 64, %s98_s25, [#allocation12]  }
  0x96   :  { %s12343_s17 = scalar_lea.hbm %s15013_s10, 4096 }
  0x97   :  { %p12344_p13 = scmp.ne.s32.totalorder %s15013_s10, %s12343_s17  ;;  %p12347_p0 = scmp.lt.u32.totalorder %s12343_s17, %s15013_s10 }
  0x99   :  { %p12349_p1 = pnand %p12347_p0, %p12344_p13 }
  0x9b   :  { %12352 = shalt.err (!%p12349_p1)
}
  0x9c   :  { %s12353_s20 = scalar_lea.vmem %s12640_s0, 4096  ;;  %p12358_p3 = scmp.lt.s32.totalorder %s12640_s0, %s12640_s0 }
  0x9d   :  { %p12354_p2 = scmp.ne.s32.totalorder %s12640_s0, %s12353_s20  ;;  %p12359_p4 = scmp.lt.s32.totalorder %s12353_s20, %s12353_s20 }
  0x9f   :  { %p12360_p5 = por %p12359_p4, %p12358_p3 }
  0xa1   :  { %p12361_p6 = pnand %p12360_p5, %p12354_p2 }
  0xa3   :  { %12364 = shalt.err (!%p12361_p6)
}
  0xa4   :  { %124 = dma.hbm_to_vmem [thread:$0]  %s15013_s10, 4096, %s12640_s0, [#allocation15], %s12428_s7, %s12428_s7, %s12429_s18  }
  0xa5   :  { %s12441_s25 = smov [#allocation19]   ;;  %s12442_s19 = smov [#allocation22]  }
  0xa6   :  { %s143_s11 = sshll.u32 %s12441_s25, 4  ;;  %s165_s30 = sshll.u32 %s12442_s19, 4  ;;  %s144_s11 = int_to_ptr.vmem [resolvable:$true] %s143_s11  ;;  %s166_s30 = int_to_ptr.vmem [resolvable:$true] %s165_s30 }
  0xa7   :  { %s12365_s26 = scalar_lea.hbm %s15015_s12, 64 }
  0xa8   :  { %p12366_p7 = scmp.ne.s32.totalorder %s15015_s12, %s12365_s26  ;;  %p12369_p8 = scmp.lt.u32.totalorder %s12365_s26, %s15015_s12 }
  0xaa   :  { %p12371_p9 = pnand %p12369_p8, %p12366_p7 }
  0xac   :  { %12374 = shalt.err (!%p12371_p9)
}
  0xad   :  { %s12375_s10 = scalar_lea.vmem %s144_s11, 64  ;;  %p12380_p11 = scmp.lt.s32.totalorder %s144_s11, %s144_s11 }
  0xae   :  { %p12376_p10 = scmp.ne.s32.totalorder %s144_s11, %s12375_s10  ;;  %p12381_p12 = scmp.lt.s32.totalorder %s12375_s10, %s12375_s10 }
  0xb0   :  { %p12382_p13 = por %p12381_p12, %p12380_p11 }
  0xb2   :  { %p12383_p0 = pnand %p12382_p13, %p12376_p10 }
  0xb4   :  { %12386 = shalt.err (!%p12383_p0)
}
  0xb5   :  { %146 = dma.hbm_to_vmem [thread:$0]  %s15015_s12, 64, %s144_s11, [#allocation18]  }
  0xb6   :  { %s12387_s23 = scalar_lea.hbm %s15017_s14, 16 }
  0xb7   :  { %p12388_p1 = scmp.ne.s32.totalorder %s15017_s14, %s12387_s23  ;;  %p12391_p2 = scmp.lt.u32.totalorder %s12387_s23, %s15017_s14 }
  0xb9   :  { %p12393_p3 = pnand %p12391_p2, %p12388_p1 }
  0xbb   :  { %12396 = shalt.err (!%p12393_p3)
}
  0xbc   :  { %s12397_s16 = scalar_lea.vmem %s166_s30, 16  ;;  %s12401_s2 = scalar_lea.vmem %s166_s30, 32 }
  0xbd   :  { %p12398_p4 = scmp.ne.s32.totalorder %s166_s30, %s12397_s16  ;;  %p12402_p5 = scmp.lt.s32.totalorder %s166_s30, %s166_s30 }
  0xbe   :  { %p12403_p6 = scmp.lt.s32.totalorder %s12401_s2, %s12397_s16 }
  0xc0   :  { %p12404_p7 = por %p12403_p6, %p12402_p5 }
  0xc2   :  { %p12405_p8 = pnand %p12404_p7, %p12398_p4 }
  0xc4   :  { %12408 = shalt.err (!%p12405_p8)
}
  0xc5   :  { %168 = dma.hbm_to_vmem [thread:$0]  %s15017_s14, 16, %s166_s30, [#allocation21]  }
  0xc6   :  { %12409 = dma.done.wait [#allocation6], 256  }
  0xc7   :  { %12410 = vsyncadd [#allocation6], 4294967040 }
  0xc8   :  { %12411 = dma.done.wait [#allocation5], 256  }
  0xc9   :  { %12412 = vsyncadd [#allocation5], 4294967040 }
  0xca   :  { %12413 = dma.done.wait [#allocation9], 3072  }
  0xcb   :  { %12414 = vsyncadd [#allocation9], 4294964224 }
  0xcc   :  { %12415 = dma.done.wait [#allocation12], 1600  }
  0xcd   :  { %12416 = vsyncadd [#allocation12], 4294965696 }
  0xce   :  { %12417 = dma.done.wait [#allocation15], 8192  }
  0xcf   :  { %12418 = vsyncadd [#allocation15], 4294959104 }
  0xd0   :  { %12419 = dma.done.wait [#allocation18], 4160  }
  0xd1   :  { %12420 = vsyncadd [#allocation18], 4294963136 }
  0xd2   :  { %12421 = dma.done.wait [#allocation21], 8208  }
  0xd3   :  { %12422 = vsyncadd [#allocation21], 4294959088 }
  0xd4   :  { %205 = sfence }
  0xd5   :  { %v11160_v0 = vld [vmem:[#allocation14 + $0x4] ss:$16 sps:$4 sm:$0xff]   ;;  %v11162_v1 = vld [vmem:[#allocation14 + $0xc] ss:$16 sps:$4 sm:$0xff]   ;;  %v15021_v2 = vmov 0   ;;  %v15019_v5 = vmov 7   ;;  %v215_v36 = vlaneseq }
  0xd6   :  { %2464 = vmatprep.mubr.bf16.mxu0 %v15021_v2  ;;  %2505 = vmatprep.mubr.bf16.mxu1 %v15021_v2  ;;  %v11164_v3 = vld [vmem:[#allocation14] ss:$16 sps:$4 sm:$0xff]   ;;  %v11165_v4 = vld [vmem:[#allocation14 + $0x8] ss:$16 sps:$4 sm:$0xff]   ;;  %v11166_v6 = vld [vmem:[#allocation14 + $0x24] ss:$16 sps:$4 sm:$0xff]  }
  0xd7   :  { %2432 = vmatprep.subr.bf16.mxu0 %v11160_v0  ;;  %11142 = vset.pattern.permute.xlu0 %v15019_v5  ;;  %v12445_v7 = vmov 1   ;;  %v11168_v8 = vld [vmem:[#allocation14 + $0x2c] ss:$16 sps:$4 sm:$0xff]   ;;  %v11170_v9 = vld [vmem:[#allocation14 + $0x20] ss:$16 sps:$4 sm:$0xff]   ;;  %s1464_s24 = sld [smem:[#allocation4]] }
  0xd8   :  { %2473 = vmatprep.subr.bf16.mxu1 %v11162_v1  ;;  %11144 = vset.pattern.permute.xlu1 %v12445_v7  ;;  %v11171_v10 = vld [vmem:[#allocation14 + $0x28] ss:$16 sps:$4 sm:$0xff]   ;;  %v11172_v11 = vld [vmem:[#allocation14 + $0x44] ss:$16 sps:$4 sm:$0xff]   ;;  %v11174_v12 = vld [vmem:[#allocation14 + $0x4c] ss:$16 sps:$4 sm:$0xff]  }
  0xd9   :  { %2433 = vmatpush1.bf16.msra.mxu0 %v11164_v3  ;;  %2474 = vmatpush1.bf16.msra.mxu1 %v11165_v4  ;;  %v11176_v13 = vld [vmem:[#allocation14 + $0x40] ss:$16 sps:$4 sm:$0xff]   ;;  %v11177_v14 = vld [vmem:[#allocation14 + $0x48] ss:$16 sps:$4 sm:$0xff]   ;;  %v11178_v15 = vld [vmem:[#allocation14 + $0x64] ss:$16 sps:$4 sm:$0xff]  }
  0xda   :  { %2434 = vmatprep.subr.bf16.mxu0 %v11166_v6  ;;  %2475 = vmatprep.subr.bf16.mxu1 %v11168_v8  ;;  %v11180_v16 = vld [vmem:[#allocation14 + $0x6c] ss:$16 sps:$4 sm:$0xff]   ;;  %v11182_v17 = vld [vmem:[#allocation14 + $0x60] ss:$16 sps:$4 sm:$0xff]   ;;  %v11183_v18 = vld [vmem:[#allocation14 + $0x68] ss:$16 sps:$4 sm:$0xff]  }
  0xdb   :  { %v11184_v19 = vld [vmem:[#allocation14 + $0x84] ss:$16 sps:$4 sm:$0xff]   ;;  %v11186_v20 = vld [vmem:[#allocation14 + $0x8c] ss:$16 sps:$4 sm:$0xff]   ;;  %v11188_v21 = vld [vmem:[#allocation14 + $0x80] ss:$16 sps:$4 sm:$0xff]  }
  0xdc   :  { %v11189_v22 = vld [vmem:[#allocation14 + $0x88] ss:$16 sps:$4 sm:$0xff]   ;;  %v11190_v23 = vld [vmem:[#allocation14 + $0xa4] ss:$16 sps:$4 sm:$0xff]   ;;  %v11192_v24 = vld [vmem:[#allocation14 + $0xac] ss:$16 sps:$4 sm:$0xff]  }
  0xdd   :  { %2435 = vmatpush1.bf16.msra.mxu0 %v11170_v9  ;;  %2476 = vmatpush1.bf16.msra.mxu1 %v11171_v10  ;;  %v11194_v25 = vld [vmem:[#allocation14 + $0xa0] ss:$16 sps:$4 sm:$0xff]   ;;  %v11195_v26 = vld [vmem:[#allocation14 + $0xa8] ss:$16 sps:$4 sm:$0xff]   ;;  %v11196_v27 = vld [vmem:[#allocation14 + $0xc4] ss:$16 sps:$4 sm:$0xff]  }
  0xde   :  { %2436 = vmatprep.subr.bf16.mxu0 %v11172_v11  ;;  %2477 = vmatprep.subr.bf16.mxu1 %v11174_v12  ;;  %v11198_v28 = vld [vmem:[#allocation14 + $0xcc] ss:$16 sps:$4 sm:$0xff]   ;;  %v11200_v30 = vld [vmem:[#allocation14 + $0xc0] ss:$16 sps:$4 sm:$0xff]   ;;  %v11201_v31 = vld [vmem:[#allocation14 + $0xc8] ss:$16 sps:$4 sm:$0xff]  }
  0xdf   :  { %v207_v29 = vld [vmem:[%s15004_s1] sm:$0xff]  ;;  %v11202_v32 = vld [vmem:[#allocation14 + $0xe4] ss:$16 sps:$4 sm:$0xff]   ;;  %v11207_v35 = vld [vmem:[#allocation14 + $0xe8] ss:$16 sps:$4 sm:$0xff]   ;;  %s9860_s25 = sld [smem:[#allocation4 + $0x1]] }
  0xe0   :  { %211 = vperm.xlu0 %11142, %v207_v29   ;;  %277 = vperm.xlu1 %11144, %v207_v29   ;;  %v11204_v33 = vld [vmem:[#allocation14 + $0xec] ss:$16 sps:$4 sm:$0xff]   ;;  %v11206_v34 = vld [vmem:[#allocation14 + $0xe0] ss:$16 sps:$4 sm:$0xff]   ;;  %s12712_s11 = sld [smem:[#allocation4 + $0x2]]  ;;  %s12714_s19 = sld [smem:[#allocation4 + $0x3]] }
  0xe1   :  { %2437 = vmatpush1.bf16.msra.mxu0 %v11176_v13  ;;  %2478 = vmatpush1.bf16.msra.mxu1 %v11177_v14  ;;  %s1465_s30 = sshra.s32 %s1464_s24, 3  ;;  %s12716_s9 = sld [smem:[#allocation4 + $0x400]]  ;;  %v11210_v37 = vld [vmem:[#allocation16 + $0x4] ss:$16 sps:$4 sm:$0xff]   ;;  %v11213_v38 = vld [vmem:[#allocation16 + $0xc] ss:$16 sps:$4 sm:$0xff]  }
  0xe2   :  { %2438 = vmatprep.subr.bf16.mxu0 %v11178_v15  ;;  %2479 = vmatprep.subr.bf16.mxu1 %v11180_v16  ;;  %s12718_s26 = sld [smem:[#allocation4 + $0x401]]  ;;  %s1468_s27 = sand.u32 7, %s1464_s24  ;;  %v11208_v39 = vld [vmem:[#allocation16] ss:$16 sps:$4 sm:$0xff]   ;;  %v11211_v40 = vld [vmem:[#allocation16 + $0x8] ss:$16 sps:$4 sm:$0xff]  }
  0xe3   :  { %s12720_s4 = sld [smem:[#allocation4 + $0x402]]  ;;  %s10866_s5 = sshll.u32 %s1465_s30, 5  ;;  %v216_v41 = vshrl.u32 %v215_v36, 7  ;;  %v11216_v42 = vld [vmem:[#allocation16 + $0x24] ss:$16 sps:$4 sm:$0xff]   ;;  %vm12837_vm0 = vcmp.lt.s32.totalorder %v215_v36, 512 }
  0xe4   :  { %11143 = vset.pattern.permute.xlu0 %v15021_v2  ;;  %11145 = vset.pattern.permute.xlu1 %v15021_v2  ;;  %s12723_s7 = sld [smem:[#allocation4 + $0x403]]  ;;  %s12725_s18 = sadd.s32 %s10866_s5, %s1468_s27  ;;  %v11219_v43 = vld [vmem:[#allocation16 + $0x2c] ss:$16 sps:$4 sm:$0xff]   ;;  %v11214_v44 = vld [vmem:[#allocation16 + $0x20] ss:$16 sps:$4 sm:$0xff]  }
  0xe5   :  { %2439 = vmatpush1.bf16.msra.mxu0 %v11182_v17  ;;  %2480 = vmatpush1.bf16.msra.mxu1 %v11183_v18  ;;  %s1475_s21 = sshra.s32 %s9860_s25, 3  ;;  %s1478_s28 = sand.u32 7, %s9860_s25  ;;  %v11217_v45 = vld [vmem:[#allocation16 + $0x28] ss:$16 sps:$4 sm:$0xff]   ;;  %v12730_v46 = vsub.s32 0, %v216_v41  ;;  %v12732_v47 = vsub.s32 1, %v216_v41 }
  0xe6   :  { %2440 = vmatprep.subr.bf16.mxu0 %v11184_v19  ;;  %2481 = vmatprep.subr.bf16.mxu1 %v11186_v20  ;;  %s10867_s10 = sshll.u32 %s1475_s21, 5  ;;  %s1486_s29 = sshra.s32 %s12712_s11, 3  ;;  %v11222_v48 = vld [vmem:[#allocation16 + $0x44] ss:$16 sps:$4 sm:$0xff]   ;;  %v11225_v49 = vld [vmem:[#allocation16 + $0x4c] ss:$16 sps:$4 sm:$0xff]  }
  0xe7   :  { %242 = vperm.xlu0 %11143, %v207_v29   ;;  %369 = vperm.xlu1 %11145, %v207_v29   ;;  %s12727_s0 = sadd.s32 %s10867_s10, %s1478_s28  ;;  %15194 = vst [vmem:[#allocation30_spill] sm:$0xff] %v12730_v46  ;;  %15195 = vst [vmem:[#allocation31_spill] sm:$0xff] %v12732_v47  ;;  %s1489_s23 = sand.u32 7, %s12712_s11  ;;  %v11220_v50 = vld [vmem:[#allocation16 + $0x40] ss:$16 sps:$4 sm:$0xff]   ;;  %v12739_v52 = vsub.s32 2, %v216_v41 }
  0xe8   :  { %s12735_s15 = sshll.u32 %s1486_s29, 5  ;;  %s1516_s17 = sshra.s32 %s12716_s9, 3  ;;  %v11223_v51 = vld [vmem:[#allocation16 + $0x48] ss:$16 sps:$4 sm:$0xff]   ;;  %v12743_v54 = vsub.s32 3, %v216_v41 }
  0xe9   :  { %2441 = vmatpush1.bf16.msra.mxu0 %v11188_v21  ;;  %2482 = vmatpush1.bf16.msra.mxu1 %v11189_v22  ;;  %s1497_s22 = sshra.s32 %s12714_s19, 3  ;;  %s1500_s13 = sand.u32 7, %s12714_s19  ;;  %v208_v53 = vld [vmem:[#allocation7] ss:$4 sm:$0xf] }
  0xea   :  { %2442 = vmatprep.subr.bf16.mxu0 %v11190_v23  ;;  %2483 = vmatprep.subr.bf16.mxu1 %v11192_v24  ;;  %s1526_s16 = sshra.s32 %s12718_s26, 3  ;;  %s1519_s2 = sand.u32 7, %s12716_s9  ;;  %v12746_v55 = vld [vmem:[#allocation7 + $0x2] ss:$4 sm:$0xf]  ;;  %v218_v62 = vrot.slane %v208_v53, %v12730_v46  ;;  %v222_v63 = vrot.slane %v208_v53, %v12732_v47  ;;  %v226_v0 = vrot.slane %v208_v53, %v12739_v52 }
  0xeb   :  { %11146 = vset.pattern.permute.xlu1 %v12445_v7  ;;  %s10870_s12 = sshll.u32 %s1516_s17, 5  ;;  %s1529_s20 = sand.u32 7, %s12718_s26  ;;  %v11228_v56 = vld [vmem:[#allocation16 + $0x64] ss:$16 sps:$4 sm:$0xff]   ;;  %v11231_v57 = vld [vmem:[#allocation16 + $0x6c] ss:$16 sps:$4 sm:$0xff]   ;;  %v230_v1 = vrot.slane %v208_v53, %v12743_v54  ;;  %v284_v7 = vrot.slane %v12746_v55, %v12730_v46  ;;  %v288_v8 = vrot.slane %v12746_v55, %v12732_v47  ;;  %v292_v9 = vrot.slane %v12746_v55, %v12739_v52 }
  0xec   :  { %399 = vperm.xlu1 %11146, %v207_v29   ;;  %v12749_v58 = vld [vmem:[#allocation7 + $0x1] ss:$4 sm:$0xf]  ;;  %s10871_s14 = sshll.u32 %s1526_s16, 5  ;;  %s12756_s25 = sshll.u32 %s1497_s22, 5  ;;  %v296_v10 = vrot.slane %v12746_v55, %v12743_v54 }
  0xed   :  { %2443 = vmatpush1.bf16.msra.mxu0 %v11194_v25  ;;  %2484 = vmatpush1.bf16.msra.mxu1 %v11195_v26  ;;  %v11226_v59 = vld [vmem:[#allocation16 + $0x60] ss:$16 sps:$4 sm:$0xff]   ;;  %v11229_v60 = vld [vmem:[#allocation16 + $0x68] ss:$16 sps:$4 sm:$0xff]   ;;  %s1537_s30 = sshra.s32 %s12720_s4, 3  ;;  %s12759_s9 = sadd.s32 %s10870_s12, %s1519_s2  ;;  %v249_v13 = vrot.slane %v12749_v58, %v12730_v46  ;;  %v253_v14 = vrot.slane %v12749_v58, %v12732_v47  ;;  %v257_v15 = vrot.slane %v12749_v58, %v12739_v52 }
  0xee   :  { %2444 = vmatprep.subr.bf16.mxu0 %v11196_v27  ;;  %2485 = vmatprep.subr.bf16.mxu1 %v11198_v28  ;;  %v12754_v61 = vld [vmem:[%s15006_s3] ss:$8 sm:$0xf]  ;;  %s1548_s21 = sshra.s32 %s12723_s7, 3  ;;  %s12766_s26 = sadd.s32 %s10871_s14, %s1529_s20  ;;  %v11232_v11 = vld [vmem:[#allocation16 + $0x80] ss:$16 sps:$4 sm:$0xff]   ;;  %v261_v16 = vrot.slane %v12749_v58, %v12743_v54 }
  0xef   :  { %s1540_s27 = sand.u32 7, %s12720_s4  ;;  %v11234_v4 = vld [vmem:[#allocation16 + $0x84] ss:$16 sps:$4 sm:$0xff]   ;;  %v11237_v6 = vld [vmem:[#allocation16 + $0x8c] ss:$16 sps:$4 sm:$0xff]   ;;  %s10872_s5 = sshll.u32 %s1537_s30, 5  ;;  %v314_v18 = vrot.slane %v12754_v61, %v12730_v46 }
  0xf0   :  { %526 = vperm.xlu1 %11146, %v207_v29   ;;  %v11235_v12 = vld [vmem:[#allocation16 + $0x88] ss:$16 sps:$4 sm:$0xff]   ;;  %s1551_s28 = sand.u32 7, %s12723_s7  ;;  %s10873_s10 = sshll.u32 %s1548_s21, 5  ;;  %v11238_v19 = vld [vmem:[#allocation16 + $0xa0] ss:$16 sps:$4 sm:$0xff]  }
  0xf1   :  { %2445 = vmatpush1.bf16.msra.mxu0 %v11200_v30  ;;  %2486 = vmatpush1.bf16.msra.mxu1 %v11201_v31  ;;  %v11240_v20 = vld [vmem:[#allocation16 + $0xa4] ss:$16 sps:$4 sm:$0xff]   ;;  %v12788_v25 = vld [vmem:[#allocation13] sm:$0xf]  ;;  %s12793_s29 = sadd.s32 %s12735_s15, %s1489_s23  ;;  %s12798_s7 = sadd.s32 %s12756_s25, %s1500_s13  ;;  %v11241_v26 = vld [vmem:[#allocation16 + $0xa8] ss:$16 sps:$4 sm:$0xff]  }
  0xf2   :  { %2446 = vmatprep.subr.bf16.mxu0 %v11202_v32  ;;  %2487 = vmatprep.subr.bf16.mxu1 %v11204_v33  ;;  %v11243_v27 = vld [vmem:[#allocation16 + $0xac] ss:$16 sps:$4 sm:$0xff]   ;;  %s12802_s17 = sadd.s32 %s10872_s5, %s1540_s27  ;;  %s12804_s22 = sadd.s32 %s10873_s10, %s1551_s28  ;;  %v11246_v33 = vld [vmem:[#allocation16 + $0xc4] ss:$16 sps:$4 sm:$0xff]   ;;  %v13429_v5 = vld [vmem:[#allocation14 + $0xa0] ss:$16 sps:$4 sm:$0xff]  }
  0xf3   :  { %s1472_s11 = scalar_lea.vmem [#allocation8], %s12725_s18  ;;  %s1482_s19 = scalar_lea.vmem [#allocation10], %s12727_s0  ;;  %v11252_v53 = vld [vmem:[#allocation16 + $0xe4] ss:$16 sps:$4 sm:$0xff]   ;;  %v11255_v55 = vld [vmem:[#allocation16 + $0xec] ss:$16 sps:$4 sm:$0xff]  }
  0xf4   :  { %v1483_v41 = vld [vmem:[%s1482_s19] ss:$8 sm:$0xf]  ;;  %s1523_s4 = scalar_lea.vmem [#allocation8], %s12759_s9  ;;  %s1533_s23 = scalar_lea.vmem [#allocation10], %s12766_s26  ;;  %15235 = vst [vmem:[#allocation69_spill] sm:$0xff] %v13429_v5 }
  0xf5   :  { %2447 = vmatpush1.bf16.msra.mxu0 %v11206_v34  ;;  %2488 = vmatpush1.bf16.msra.mxu1 %v11207_v35  ;;  %v11249_v34 = vld [vmem:[#allocation16 + $0xcc] ss:$16 sps:$4 sm:$0xff]   ;;  %s1493_s15 = scalar_lea.vmem %s15009_s6, %s12793_s29  ;;  %s1544_s2 = scalar_lea.vmem %s15009_s6, %s12802_s17 }
  0xf6   :  { %2756 = vmatprep.subr.bf16.mxu0 %v11210_v37  ;;  %2797 = vmatprep.subr.bf16.mxu1 %v11213_v38  ;;  %s1504_s12 = scalar_lea.vmem [#allocation11], %s12798_s7  ;;  %s1555_s20 = scalar_lea.vmem [#allocation11], %s12804_s22 }
  0xf7   :  { %s12853_s24 = sld [smem:[#allocation4 + $0x80]]  ;;  %s12855_s25 = sld [smem:[#allocation4 + $0x81]] }
  0xf8   :  { %2465 = vmatmul.mubr.bf16.vlgmr.msra.gmra.mrb[0].mxu0 %v15021_v2  ;;  %2506 = vmatmul.mubr.bf16.vlgmr.msra.gmra.mrb[0].mxu1 %v15021_v2  ;;  %s12857_s30 = sld [smem:[#allocation4 + $0x82]]  ;;  %s12860_s21 = sld [smem:[#allocation4 + $0x83]] }
  0xf9   :  { %2788 = vmatprep.mubr.bf16.mxu0 %v15021_v2  ;;  %2829 = vmatprep.mubr.bf16.mxu1 %v15021_v2  ;;  %s12865_s27 = sld [smem:[#allocation4 + $0x480]]  ;;  %s12868_s28 = sld [smem:[#allocation4 + $0x481]] }
  0xfa   :  { %2757 = vmatpush1.bf16.msra.mxu0 %v11208_v39  ;;  %2798 = vmatpush1.bf16.msra.mxu1 %v11211_v40  ;;  %v1473_v40 = vld [vmem:[%s1472_s11] ss:$8 sm:$0xf]  ;;  %s12885_s0 = sld [smem:[#allocation4 + $0x483]] }
  0xfb   :  { %2758 = vmatprep.subr.bf16.mxu0 %v11216_v42  ;;  %2799 = vmatprep.subr.bf16.mxu1 %v11219_v43  ;;  %v1524_v42 = vld [vmem:[%s1523_s4] ss:$8 sm:$0xf]  ;;  %s12879_s4 = sld [smem:[#allocation4 + $0x482]] }
  0xfc   :  { %v1534_v43 = vld [vmem:[%s1533_s23] ss:$8 sm:$0xf] }
  0xfd   :  { %s1564_s9 = sshra.s32 %s12853_s24, 3  ;;  %s1574_s26 = sshra.s32 %s12855_s25, 3 }
  0xfe   :  { %2759 = vmatpush1.bf16.msra.mxu0 %v11214_v44  ;;  %2800 = vmatpush1.bf16.msra.mxu1 %v11217_v45  ;;  %v11244_v44 = vld [vmem:[#allocation16 + $0xc0] ss:$16 sps:$4 sm:$0xff]   ;;  %v11247_v45 = vld [vmem:[#allocation16 + $0xc8] ss:$16 sps:$4 sm:$0xff]   ;;  %s1585_s5 = sshra.s32 %s12857_s30, 3  ;;  %s1567_s10 = sand.u32 7, %s12853_s24 }
  0xff   :  { %2760 = vmatprep.subr.bf16.mxu0 %v11222_v48  ;;  %2801 = vmatprep.subr.bf16.mxu1 %v11225_v49  ;;  %v318_v48 = vrot.slane %v12754_v61, %v12732_v47  ;;  %v322_v49 = vrot.slane %v12754_v61, %v12739_v52  ;;  %s10874_s29 = sshll.u32 %s1564_s9, 5  ;;  %s1577_s7 = sand.u32 7, %s12855_s25 }
 0x100   :  { %s10875_s17 = sshll.u32 %s1574_s26, 5  ;;  %s1588_s22 = sand.u32 7, %s12857_s30 }
 0x101   :  { %s10876_s11 = sshll.u32 %s1585_s5, 5  ;;  %s12877_s19 = sadd.s32 %s10874_s29, %s1567_s10 }
 0x102   :  { %2761 = vmatpush1.bf16.msra.mxu0 %v11220_v50  ;;  %2802 = vmatpush1.bf16.msra.mxu1 %v11223_v51  ;;  %v326_v50 = vrot.slane %v12754_v61, %v12743_v54  ;;  %v340_v51 = vrot.slane %v12788_v25, %v12730_v46  ;;  %v1556_v61 = vld [vmem:[%s1555_s20] ss:$8 sm:$0xf]  ;;  %s12881_s23 = sadd.s32 %s10875_s17, %s1577_s7  ;;  %s12883_s18 = sadd.s32 %s10876_s11, %s1588_s22 }
 0x103   :  { %2762 = vmatprep.subr.bf16.mxu0 %v11228_v56  ;;  %2803 = vmatprep.subr.bf16.mxu1 %v11231_v57  ;;  %s1612_s13 = sshra.s32 %s12865_s27, 3  ;;  %s1599_s20 = sand.u32 7, %s12860_s21 }
 0x104   :  { %s1622_s8 = sshra.s32 %s12868_s28, 3  ;;  %s1615_s24 = sand.u32 7, %s12865_s27 }
 0x105   :  { %s10878_s25 = sshll.u32 %s1612_s13, 5  ;;  %s1625_s30 = sand.u32 7, %s12868_s28 }
 0x106   :  { %2763 = vmatpush1.bf16.msra.mxu0 %v11226_v59  ;;  %2804 = vmatpush1.bf16.msra.mxu1 %v11229_v60  ;;  %v344_v60 = vrot.slane %v12788_v25, %v12732_v47  ;;  %s1633_s9 = sshra.s32 %s12879_s4, 3  ;;  %s10879_s26 = sshll.u32 %s1622_s8, 5 }
 0x107   :  { %2764 = vmatprep.subr.bf16.mxu0 %v11234_v4  ;;  %2805 = vmatprep.subr.bf16.mxu1 %v11237_v6  ;;  %s12900_s5 = sld [smem:[#allocation4 + $0x100]]  ;;  %s12902_s10 = sadd.s32 %s10878_s25, %s1615_s24 }
 0x108   :  { %s12904_s29 = sld [smem:[#allocation4 + $0x101]]  ;;  %s1636_s27 = sand.u32 7, %s12879_s4 }
 0x109   :  { %s10880_s28 = sshll.u32 %s1633_s9, 5  ;;  %s12918_s17 = sadd.s32 %s10879_s26, %s1625_s30 }
 0x10a   :  { %2765 = vmatpush1.bf16.msra.mxu0 %v11232_v11  ;;  %2806 = vmatpush1.bf16.msra.mxu1 %v11235_v12  ;;  %v1545_v11 = vld [vmem:[%s1544_s2] ss:$8 sm:$0xf]  ;;  %s1644_s22 = sshra.s32 %s12885_s0, 3  ;;  %s12923_s11 = sadd.s32 %s10880_s28, %s1636_s27 }
 0x10b   :  { %2766 = vmatprep.subr.bf16.mxu0 %v11240_v20  ;;  %2807 = vmatprep.subr.bf16.mxu1 %v11243_v27  ;;  %s12925_s4 = sld [smem:[#allocation4 + $0x500]]  ;;  %s12932_s13 = sld [smem:[#allocation4 + $0x501]] }
 0x10c   :  { %s1571_s16 = scalar_lea.vmem [#allocation8], %s12877_s19  ;;  %s1581_s24 = scalar_lea.vmem [#allocation10], %s12881_s23 }
 0x10d   :  { %s1660_s8 = sshra.s32 %s12900_s5, 3  ;;  %s12946_s25 = sld [smem:[#allocation4 + $0x102]] }
 0x10e   :  { %2767 = vmatpush1.bf16.msra.mxu0 %v11238_v19  ;;  %2808 = vmatpush1.bf16.msra.mxu1 %v11241_v26  ;;  %s1670_s19 = sshra.s32 %s12904_s29, 3  ;;  %s12963_s26 = sld [smem:[#allocation4 + $0x502]] }
 0x10f   :  { %2768 = vmatprep.subr.bf16.mxu0 %v11246_v33  ;;  %2809 = vmatprep.subr.bf16.mxu1 %v11249_v34  ;;  %v12447_v33 = vmov 3   ;;  %s1663_s27 = sand.u32 7, %s12900_s5  ;;  %s10882_s28 = sshll.u32 %s1660_s8, 5 }
 0x110   :  { %s12996_s5 = sld [smem:[#allocation4 + $0x103]]  ;;  %s1629_s30 = scalar_lea.vmem [#allocation10], %s12918_s17 }
 0x111   :  { %s1718_s2 = sshra.s32 %s12932_s13, 3  ;;  %s1711_s8 = sand.u32 7, %s12925_s4 }
 0x112   :  { %2769 = vmatpush1.bf16.msra.mxu0 %v11244_v44  ;;  %2810 = vmatpush1.bf16.msra.mxu1 %v11247_v45  ;;  %s1721_s23 = sand.u32 7, %s12932_s13 }
 0x113   :  { %2770 = vmatprep.subr.bf16.mxu0 %v11252_v53  ;;  %2811 = vmatprep.subr.bf16.mxu1 %v11255_v55  ;;  %s1684_s13 = sand.u32 7, %s12946_s25 }
 0x15f   :  { %v212_v3 = vpop.permute.xlu0 %211  ;;  %v278_v17 = vpop.permute.xlu1 %277 }
 0x160   :  { %v235_v21 = vmul.f32 %v218_v62, %v212_v3  ;;  %v236_v22 = vmul.f32 %v222_v63, %v212_v3  ;;  %v237_v23 = vmul.f32 %v226_v0, %v212_v3  ;;  %v238_v24 = vmul.f32 %v230_v1, %v212_v3  ;;  %v11250_v0 = vld [vmem:[#allocation16 + $0xe0] ss:$16 sps:$4 sm:$0xff]  }
 0x161   :  { %v301_v29 = vmul.f32 %v284_v7, %v278_v17  ;;  %v302_v30 = vmul.f32 %v288_v8, %v278_v17  ;;  %v303_v31 = vmul.f32 %v292_v9, %v278_v17  ;;  %v304_v32 = vmul.f32 %v296_v10, %v278_v17  ;;  %v11253_v7 = vld [vmem:[#allocation16 + $0xe8] ss:$16 sps:$4 sm:$0xff]   ;;  %v1494_v9 = vld [vmem:[%s1493_s15] ss:$8 sm:$0xf]  ;;  %2771 = vmatpush1.bf16.msra.mxu0 %v11250_v0  ;;  %s1596_s15 = sshra.s32 %s12860_s21, 3 }
 0x162   :  { %v348_v62 = vrot.slane %v12788_v25, %v12739_v52  ;;  %v352_v63 = vrot.slane %v12788_v25, %v12743_v54  ;;  %v1484_v8 = vadd.f32 %v1483_v41, %v1473_v40  ;;  %v1535_v10 = vadd.f32 %v1534_v43, %v1524_v42  ;;  %2812 = vmatpush1.bf16.msra.mxu1 %v11253_v7  ;;  %v12057_v25 = vld [vmem:[#allocation14 + $0xc] ss:$16 sps:$4 sm:$0xff]   ;;  %s12894_s14 = sshll.u32 %s1596_s15, 5  ;;  %s1647_s21 = sand.u32 7, %s12885_s0 }
 0x163   :  { %2883 = vmatprep.subr.bf16.mxu1 %v12057_v25  ;;  %v366_v25 = vld [vmem:[#allocation7] ss:$4 sm:$0xf]  ;;  %s12916_s7 = sadd.s32 %s12894_s14, %s1599_s20  ;;  %s10881_s15 = sshll.u32 %s1644_s22, 5 }
 0x164   :  { %s1640_s14 = scalar_lea.vmem %s15009_s6, %s12923_s11  ;;  %s12961_s9 = sadd.s32 %s10881_s15, %s1647_s21 }
 0x165   :  { %s1673_s21 = sand.u32 7, %s12904_s29  ;;  %s10883_s15 = sshll.u32 %s1670_s19, 5 }
 0x166   :  { %v243_v28 = vpop.permute.xlu0 %242  ;;  %s13007_s29 = sld [smem:[#allocation4 + $0x503]]  ;;  %s1619_s20 = scalar_lea.vmem [#allocation8], %s12902_s10 }
 0x167   :  { %v266_v35 = vmul.f32 %v249_v13, %v243_v28  ;;  %v267_v37 = vmul.f32 %v253_v14, %v243_v28  ;;  %v268_v38 = vmul.f32 %v257_v15, %v243_v28  ;;  %v269_v39 = vmul.f32 %v261_v16, %v243_v28 }
 0x169   :  { %v270_v56 = vadd.f32 %v266_v35, %v235_v21  ;;  %v271_v57 = vadd.f32 %v267_v37, %v236_v22  ;;  %v272_v58 = vadd.f32 %v268_v38, %v237_v23  ;;  %v273_v59 = vadd.f32 %v269_v39, %v238_v24  ;;  %v1505_v21 = vld [vmem:[%s1504_s12] ss:$8 sm:$0xf]  ;;  %s1592_s12 = scalar_lea.vmem %s15009_s6, %s12883_s18  ;;  %s1708_s18 = sshra.s32 %s12925_s4, 3 }
 0x16a   :  { %v15196_v22 = vmov 0  ;;  %v1546_v23 = vadd.f32 %v1545_v11, %v1535_v10  ;;  %v12056_v24 = vld [vmem:[#allocation14 + $0x4] ss:$16 sps:$4 sm:$0xff]   ;;  %s1681_s4 = sshra.s32 %s12946_s25, 3 }
 0x16b   :  { %v305_v1 = vadd.f32 %v301_v29, %v270_v56  ;;  %v306_v3 = vadd.f32 %v302_v30, %v271_v57  ;;  %v307_v4 = vadd.f32 %v303_v31, %v272_v58  ;;  %v308_v6 = vadd.f32 %v304_v32, %v273_v59  ;;  %2842 = vmatprep.subr.bf16.mxu0 %v12056_v24  ;;  %v12058_v32 = vld [vmem:[%s15004_s1] sm:$0xff]  ;;  %s13080_s0 = sshll.u32 %s1681_s4, 5 }
 0x16c   :  { %v15197_v22 = vsel %vm12837_vm0, 4294967295, %v15196_v22  ;;  %v1557_v27 = vadd.f32 %v1556_v61, %v1546_v23  ;;  %v12446_v31 = vmov 2   ;;  %v12067_v61 = vld [vmem:[#allocation14 + $0x40] ss:$16 sps:$4 sm:$0xff]   ;;  %v12069_v23 = vld [vmem:[#allocation14 + $0x64] ss:$16 sps:$4 sm:$0xff]   ;;  %s13120_s11 = sadd.s32 %s13080_s0, %s1684_s13 }
 0x16d   :  { %v331_v12 = vadd.f32 %v314_v18, %v305_v1  ;;  %v332_v13 = vadd.f32 %v318_v48, %v306_v3  ;;  %v333_v14 = vadd.f32 %v322_v49, %v307_v4  ;;  %v334_v15 = vadd.f32 %v326_v50, %v308_v6  ;;  %15198 = vst [vmem:[#allocation32_spill] sm:$0xff] %v15197_v22  ;;  %v12070_v24 = vld [vmem:[#allocation14 + $0x6c] ss:$16 sps:$4 sm:$0xff]   ;;  %s1743_s4 = sand.u32 7, %s13007_s29 }
 0x16e   :  { %v1495_v18 = vadd.f32 %v1494_v9, %v1484_v8  ;;  %11147 = vset.pattern.permute.xlu0 %v12446_v31  ;;  %11148 = vset.pattern.permute.xlu1 %v12446_v31  ;;  %v376_v31 = vrot.slane %v366_v25, %v12730_v46 }
 0x16f   :  { %v357_v16 = vadd.f32 %v340_v51, %v331_v12  ;;  %v358_v17 = vadd.f32 %v344_v60, %v332_v13  ;;  %v359_v19 = vadd.f32 %v348_v62, %v333_v14  ;;  %v360_v20 = vadd.f32 %v352_v63, %v334_v15  ;;  %433 = vperm.xlu0 %11147, %v12058_v32   ;;  %v12059_v13 = vld [vmem:[#allocation14] ss:$16 sps:$4 sm:$0xff]   ;;  %v12060_v14 = vld [vmem:[#allocation14 + $0x8] ss:$16 sps:$4 sm:$0xff]   ;;  %v12061_v15 = vld [vmem:[#allocation14 + $0x24] ss:$16 sps:$4 sm:$0xff]  }
 0x170   :  { %v1506_v26 = vadd.f32 %v1505_v21, %v1495_v18  ;;  %556 = vperm.xlu1 %11148, %v12058_v32   ;;  %v12066_v21 = vld [vmem:[#allocation14 + $0x4c] ss:$16 sps:$4 sm:$0xff]   ;;  %v12068_v18 = vld [vmem:[#allocation14 + $0x48] ss:$16 sps:$4 sm:$0xff]  }
 0x171   :  { %361 = vst [vmem:[#allocation2] sm:$0xff] %v357_v16  ;;  %362 = vst [vmem:[#allocation2 + $0x8] sm:$0xff] %v358_v17  ;;  %v12062_v16 = vld [vmem:[#allocation14 + $0x2c] ss:$16 sps:$4 sm:$0xff]   ;;  %v12063_v17 = vld [vmem:[#allocation14 + $0x20] ss:$16 sps:$4 sm:$0xff]  }
 0x172   :  { %363 = vst [vmem:[#allocation2 + $0x10] sm:$0xff] %v359_v19  ;;  %364 = vst [vmem:[#allocation2 + $0x18] sm:$0xff] %v360_v20  ;;  %v12064_v19 = vld [vmem:[#allocation14 + $0x28] ss:$16 sps:$4 sm:$0xff]   ;;  %v12065_v20 = vld [vmem:[#allocation14 + $0x44] ss:$16 sps:$4 sm:$0xff]  }
 0x173   :  { %11149 = vset.pattern.permute.xlu0 %v12447_v33 }
 0x174   :  { %590 = vperm.xlu0 %11149, %v12058_v32   ;;  %v380_v32 = vrot.slane %v366_v25, %v12732_v47 }
 0x179   :  { %v1507_v36 = vld [vmem:[#allocation2] ss:$8 sm:$0xf]  ;;  %v1559_v28 = vld [vmem:[#allocation2 + $0x1] ss:$8 sm:$0xf] }
 0x17a   :  { %v1508_v29 = vadd.f32 %v1507_v36, %v1506_v26  ;;  %v1560_v30 = vadd.f32 %v1559_v28, %v1557_v27  ;;  %v370_v26 = vpop.permute.xlu1 %369  ;;  %v397_v27 = vld [vmem:[#allocation7 + $0x1] ss:$4 sm:$0xf] }
 0x17b   :  { %v12071_v36 = vld [vmem:[#allocation14 + $0x60] ss:$16 sps:$4 sm:$0xff]   ;;  %v12072_v28 = vld [vmem:[#allocation14 + $0x68] ss:$16 sps:$4 sm:$0xff]  }
 0x17c   :  { %1513 = vst.msk [vmem:[#allocation2] ss:$8 sm:$0xf] %vm12837_vm0, %v1508_v29  ;;  %1561 = vst.msk [vmem:[#allocation2 + $0x1] ss:$8 sm:$0xf] %vm12837_vm0, %v1560_v30 }
 0x17d   :  { %v12073_v29 = vld [vmem:[#allocation14 + $0x84] ss:$16 sps:$4 sm:$0xff]   ;;  %v12074_v30 = vld [vmem:[#allocation14 + $0x8c] ss:$16 sps:$4 sm:$0xff]  }
 0x183   :  { %v2236_v34 = vld [vmem:[#allocation2] sm:$0xff]  ;;  %v2237_v39 = vld [vmem:[#allocation2 + $0x8] sm:$0xff]  ;;  %v2239_v51 = vld [vmem:[#allocation2 + $0x18] sm:$0xff] }
 0x184   :  { %v2238_v55 = vld [vmem:[#allocation2 + $0x10] sm:$0xff] }
 0x1cb   :  { %v2466_v35 = vpop.f32.mrb[0].mxu0  ;;  %v2507_v37 = vpop.f32.mrb[0].mxu1 }
 0x1cc   :  { %v2514_v38 = vadd.f32 %v2466_v35, %v2236_v34  ;;  %v2468_v40 = vpop.f32.mrb[1].mxu0  ;;  %v2509_v41 = vpop.f32.mrb[1].mxu1  ;;  %v2516_v57 = vadd.f32 %v2507_v37, %v2238_v55  ;;  %v384_v34 = vrot.slane %v366_v25, %v12739_v52  ;;  %v406_v35 = vrot.slane %v397_v27, %v12730_v46 }
 0x1cd   :  { %v2515_v42 = vadd.f32 %v2468_v40, %v2237_v39  ;;  %v2470_v43 = vpop.f32.mrb[2].mxu0  ;;  %v2511_v44 = vpop.f32.mrb[2].mxu1  ;;  %v2517_v53 = vadd.f32 %v2509_v41, %v2239_v51  ;;  %v410_v37 = vrot.slane %v397_v27, %v12732_v47  ;;  %v388_v39 = vrot.slane %v366_v25, %v12743_v54  ;;  %v12075_v41 = vld [vmem:[#allocation14 + $0x80] ss:$16 sps:$4 sm:$0xff]   ;;  %v12084_v25 = vld [vmem:[#allocation14 + $0xc8] ss:$16 sps:$4 sm:$0xff]  }
 0x1ce   :  { %v10081_v45 = vmul.f32 -1.442695, %v2514_v38  ;;  %v2471_v48 = vpop.f32.mrb[3].mxu0  ;;  %v2512_v49 = vpop.f32.mrb[3].mxu1  ;;  %v414_v38 = vrot.slane %v397_v27, %v12739_v52  ;;  %v418_v40 = vrot.slane %v397_v27, %v12743_v54  ;;  %v12077_v43 = vld [vmem:[#allocation14 + $0xa4] ss:$16 sps:$4 sm:$0xff]   ;;  %v395_v51 = vmul.f32 %v384_v34, %v370_v26 }
 0x1cf   :  { %v10082_v50 = vmul.f32 -1.442695, %v2515_v42  ;;  %v10083_v56 = vmul.f32 -1.442695, %v2517_v53  ;;  %v12076_v42 = vld [vmem:[#allocation14 + $0x88] ss:$16 sps:$4 sm:$0xff]   ;;  %v394_v48 = vmul.f32 %v380_v32, %v370_v26  ;;  %v400_v49 = vpop.permute.xlu1 %399 }
 0x1d0   :  { %11800 = vpow2.f32 %v10081_v45  ;;  %v12078_v44 = vld [vmem:[#allocation14 + $0xac] ss:$16 sps:$4 sm:$0xff]   ;;  %v393_v45 = vmul.f32 %v376_v31, %v370_v26  ;;  %v423_v53 = vmul.f32 %v406_v35, %v400_v49  ;;  %v424_v55 = vmul.f32 %v410_v37, %v400_v49 }
 0x1d1   :  { %11802 = vpow2.f32 %v10082_v50  ;;  %v12927_v50 = vld [vmem:[#allocation7] ss:$4 sm:$0xf] }
 0x1d2   :  { %11804 = vpow2.f32 %v10083_v56  ;;  %v425_v56 = vmul.f32 %v414_v38, %v400_v49 }
 0x1d3   :  { %11806 = vtanh.f32 %v2516_v57  ;;  %v12930_v57 = vld [vmem:[#allocation7 + $0x2] ss:$4 sm:$0xf] }
 0x1da   :  { %v11801_v58 = vpop.eup %11800 }
 0x1db   :  { %v11803_v59 = vpop.eup %11802  ;;  %v2521_v60 = vadd.f32 1.0, %v11801_v58  ;;  %v396_v58 = vmul.f32 %v388_v39, %v370_v26 }
 0x1dc   :  { %v2527_v62 = vadd.f32 1.0, %v11803_v59  ;;  %v11805_v63 = vpop.eup %11804  ;;  %v426_v59 = vmul.f32 %v418_v40, %v400_v49  ;;  %v13017_v40 = vld [vmem:[#allocation7 + $0x2] ss:$4 sm:$0xf] }
 0x1dd   :  { %11808 = vrcp.f32 %v2521_v60  ;;  %v11807_v0 = vpop.eup %11806  ;;  %v2534_v6 = vadd.f32 1.0, %v11805_v63  ;;  %v1572_v60 = vld [vmem:[%s1571_s16] ss:$8 sm:$0xf]  ;;  %v12080_v63 = vld [vmem:[#allocation14 + $0xa8] ss:$16 sps:$4 sm:$0xff]   ;;  %s13021_s16 = sadd.s32 %s10883_s15, %s1673_s21 }
 0x1de   :  { %11810 = vrcp.f32 %v2527_v62  ;;  %v12079_v62 = vld [vmem:[#allocation14 + $0xa0] ss:$16 sps:$4 sm:$0xff]   ;;  %s1692_s21 = sshra.s32 %s12996_s5, 3  ;;  %s1732_s15 = sand.u32 7, %s12963_s26 }
 0x1df   :  { %11812 = vrcp.f32 %v2534_v6  ;;  %v12082_v6 = vld [vmem:[#allocation14 + $0xcc] ss:$16 sps:$4 sm:$0xff]   ;;  %v12087_v49 = vld [vmem:[#allocation14 + $0xe0] ss:$16 sps:$4 sm:$0xff]   ;;  %s1677_s10 = scalar_lea.vmem [#allocation10], %s13021_s16  ;;  %s13137_s25 = sshll.u32 %s1692_s21, 5 }
 0x1e0   :  { %s1603_s21 = scalar_lea.vmem [#allocation11], %s12916_s7 }
 0x1e7   :  { %v11809_v1 = vpop.eup %11808 }
 0x1e8   :  { %v11811_v3 = vpop.eup %11810  ;;  %v2538_v4 = vmul.f32 %v11809_v1, %v11807_v0  ;;  %v533_v0 = vrot.slane %v12927_v50, %v12730_v46  ;;  %v537_v1 = vrot.slane %v12927_v50, %v12732_v47 }
 0x1e9   :  { %v2537_v7 = vmul.f32 0.0, %v11811_v3  ;;  %v11813_v9 = vpop.eup %11812  ;;  %v1582_v3 = vld [vmem:[%s1581_s24] ss:$8 sm:$0xf]  ;;  %s10886_s24 = sshll.u32 %s1708_s18, 5 }
 0x1ea   :  { %s13062_s17 = sadd.s32 %s10886_s24, %s1711_s8 }
 0x1eb   :  { %v12850_v8 = vadd.f32 %v2538_v4, %v2537_v7  ;;  %v12081_v4 = vld [vmem:[#allocation14 + $0xc4] ss:$16 sps:$4 sm:$0xff]   ;;  %v541_v7 = vrot.slane %v12927_v50, %v12739_v52 }
 0x1ed   :  { %11814 = vtanh.f32 %v12850_v8 }
 0x1f7   :  { %v11815_v10 = vpop.eup %11814 }
 0x1f8   :  { %v2541_v11 = vmul.f32 %v11815_v10, %v11813_v9  ;;  %v545_v9 = vrot.slane %v12927_v50, %v12743_v54  ;;  %v440_v10 = vrot.slane %v12930_v57, %v12730_v46  ;;  %v12088_v50 = vld [vmem:[#allocation14 + $0xe8] ss:$16 sps:$4 sm:$0xff]  }
 0x1fa   :  { %v12862_v12 = vpack.c.bf16 %v2541_v11, %v2541_v11  ;;  %v12957_v11 = vld [vmem:[%s15006_s3 + $0x1] ss:$8 sm:$0xf] }
 0x1fb   :  { %v471_v27 = vrot.slane %v12957_v11, %v12730_v46  ;;  %v479_v35 = vrot.slane %v12957_v11, %v12739_v52  ;;  %v483_v37 = vrot.slane %v12957_v11, %v12743_v54 }
 0x1fc   :  { %2789 = vmatmul.mubr.bf16.vlgmr.msra.gmra.mrb[4].mxu0 %v12862_v12  ;;  %2830 = vmatmul.mubr.bf16.vlgmr.msra.gmra.mrb[4].mxu1 %v12862_v12 }
 0x1fd   :  { %2843 = vmatpush1.bf16.msra.mxu0 %v12059_v13  ;;  %2884 = vmatpush1.bf16.msra.mxu1 %v12060_v14  ;;  %v12965_v13 = vadd.f32 %v423_v53, %v393_v45  ;;  %v12967_v14 = vadd.f32 %v424_v55, %v394_v48  ;;  %v1620_v45 = vld [vmem:[%s1619_s20] ss:$8 sm:$0xf] }
 0x1fe   :  { %2844 = vmatprep.subr.bf16.mxu0 %v12061_v15  ;;  %2885 = vmatprep.subr.bf16.mxu1 %v12062_v16  ;;  %v12969_v15 = vadd.f32 %v425_v56, %v395_v51  ;;  %v444_v16 = vrot.slane %v12930_v57, %v12732_v47  ;;  %v13043_v56 = vld [vmem:[%s15006_s3 + $0x2] ss:$8 sm:$0xf] }
 0x1ff   :  { %2874 = vmatprep.mubr.bf16.mxu0 %v15021_v2  ;;  %2915 = vmatprep.mubr.bf16.mxu1 %v15021_v2 }
 0x201   :  { %2845 = vmatpush1.bf16.msra.mxu0 %v12063_v17  ;;  %2886 = vmatpush1.bf16.msra.mxu1 %v12064_v19  ;;  %v12973_v17 = vld [vmem:[#allocation13] sm:$0xf]  ;;  %v12976_v19 = vadd.f32 %v426_v59, %v396_v58  ;;  %v597_v59 = vrot.slane %v13017_v40, %v12730_v46 }
 0x202   :  { %2846 = vmatprep.subr.bf16.mxu0 %v12065_v20  ;;  %2887 = vmatprep.subr.bf16.mxu1 %v12066_v21  ;;  %v527_v20 = vpop.permute.xlu1 %526  ;;  %v448_v21 = vrot.slane %v12930_v57, %v12739_v52  ;;  %v497_v38 = vrot.slane %v12973_v17, %v12730_v46  ;;  %v501_v39 = vrot.slane %v12973_v17, %v12732_v47  ;;  %v1630_v58 = vld [vmem:[%s1629_s30] ss:$8 sm:$0xf] }
 0x203   :  { %v12988_v26 = vmul.f32 %v533_v0, %v527_v20  ;;  %v12999_v31 = vmul.f32 %v537_v1, %v527_v20  ;;  %v13001_v32 = vmul.f32 %v541_v7, %v527_v20  ;;  %v13003_v34 = vmul.f32 %v545_v9, %v527_v20  ;;  %v12090_v0 = vld [vmem:[#allocation16 + $0xc] ss:$16 sps:$4 sm:$0xff]  }
 0x204   :  { %v609_v1 = vrot.slane %v13017_v40, %v12743_v54  ;;  %v628_v7 = vrot.slane %v13043_v56, %v12730_v46  ;;  %v632_v9 = vrot.slane %v13043_v56, %v12732_v47 }
 0x205   :  { %2847 = vmatpush1.bf16.msra.mxu0 %v12067_v61  ;;  %2888 = vmatpush1.bf16.msra.mxu1 %v12068_v18  ;;  %v452_v61 = vrot.slane %v12930_v57, %v12743_v54  ;;  %v1583_v18 = vadd.f32 %v1582_v3, %v1572_v60  ;;  %v601_v60 = vrot.slane %v13017_v40, %v12732_v47 }
 0x206   :  { %2848 = vmatprep.subr.bf16.mxu0 %v12069_v23  ;;  %2889 = vmatprep.subr.bf16.mxu1 %v12070_v24  ;;  %v1593_v23 = vld [vmem:[%s1592_s12] ss:$8 sm:$0xf]  ;;  %v12083_v24 = vld [vmem:[#allocation14 + $0xc0] ss:$16 sps:$4 sm:$0xff]   ;;  %s13005_s12 = sadd.s32 %s10882_s28, %s1663_s27  ;;  %s10887_s27 = sshll.u32 %s1718_s2, 5 }
 0x207   :  { %s1729_s28 = sshra.s32 %s12963_s26, 3  ;;  %s13082_s22 = sadd.s32 %s10887_s27, %s1721_s23 }
 0x208   :  { %s13098_s18 = sshll.u32 %s1729_s28, 5  ;;  %s1740_s2 = sshra.s32 %s13007_s29, 3 }
 0x209   :  { %2849 = vmatpush1.bf16.msra.mxu0 %v12071_v36  ;;  %2890 = vmatpush1.bf16.msra.mxu1 %v12072_v28  ;;  %v475_v36 = vrot.slane %v12957_v11, %v12732_v47  ;;  %v12994_v28 = vld [vmem:[#allocation7 + $0x1] ss:$4 sm:$0xf]  ;;  %s1667_s24 = scalar_lea.vmem [#allocation8], %s13005_s12  ;;  %s1715_s12 = scalar_lea.vmem [#allocation8], %s13062_s17 }
 0x20a   :  { %2850 = vmatprep.subr.bf16.mxu0 %v12073_v29  ;;  %2891 = vmatprep.subr.bf16.mxu1 %v12074_v30  ;;  %v12085_v29 = vld [vmem:[#allocation14 + $0xe4] ss:$16 sps:$4 sm:$0xff]   ;;  %v12086_v30 = vld [vmem:[#allocation14 + $0xec] ss:$16 sps:$4 sm:$0xff]   ;;  %v563_v48 = vrot.slane %v12994_v28, %v12730_v46  ;;  %v567_v51 = vrot.slane %v12994_v28, %v12732_v47  ;;  %v571_v53 = vrot.slane %v12994_v28, %v12739_v52  ;;  %s13143_s16 = sadd.s32 %s13098_s18, %s1732_s15  ;;  %s1725_s19 = scalar_lea.vmem [#allocation10], %s13082_s22 }
 0x20b   :  { %v575_v55 = vrot.slane %v12994_v28, %v12743_v54  ;;  %v12091_v28 = vld [vmem:[#allocation16] ss:$16 sps:$4 sm:$0xff]   ;;  %s13147_s30 = sshll.u32 %s1740_s2, 5  ;;  %s1688_s27 = scalar_lea.vmem %s15009_s6, %s13120_s11 }
 0x20c   :  { %s1736_s28 = scalar_lea.vmem %s15009_s6, %s13143_s16  ;;  %s13190_s22 = sadd.s32 %s13147_s30, %s1743_s4 }
 0x20d   :  { %2851 = vmatpush1.bf16.msra.mxu0 %v12075_v41  ;;  %2892 = vmatpush1.bf16.msra.mxu1 %v12076_v42  ;;  %v13019_v41 = vld [vmem:[#allocation13] sm:$0xf]  ;;  %v505_v42 = vrot.slane %v12973_v17, %v12739_v52  ;;  %s1651_s15 = scalar_lea.vmem [#allocation11], %s12961_s9  ;;  %s1747_s2 = scalar_lea.vmem [#allocation11], %s13190_s22 }
 0x20e   :  { %2852 = vmatprep.subr.bf16.mxu0 %v12077_v43  ;;  %2893 = vmatprep.subr.bf16.mxu1 %v12078_v44  ;;  %v509_v43 = vrot.slane %v12973_v17, %v12743_v54  ;;  %v13028_v44 = vadd.f32 %v1593_v23, %v1583_v18  ;;  %v654_v3 = vrot.slane %v13019_v41, %v12730_v46  ;;  %v434_v23 = vpop.permute.xlu0 %433  ;;  %v12099_v17 = vld [vmem:[#allocation16 + $0x40] ss:$16 sps:$4 sm:$0xff]   ;;  %s13439_s11 = sld [smem:[#allocation4 + $0x580]]  ;;  %s13457_s16 = sld [smem:[#allocation4 + $0x182]] }
 0x20f   :  { %v666_v20 = vrot.slane %v13019_v41, %v12743_v54  ;;  %v13074_v18 = vadd.f32 %v1630_v58, %v1620_v45  ;;  %v458_v45 = vmul.f32 %v444_v16, %v434_v23  ;;  %v12093_v58 = vld [vmem:[#allocation16 + $0x24] ss:$16 sps:$4 sm:$0xff]   ;;  %v12094_v16 = vld [vmem:[#allocation16 + $0x2c] ss:$16 sps:$4 sm:$0xff]  }
 0x211   :  { %2853 = vmatpush1.bf16.msra.mxu0 %v12079_v62  ;;  %2894 = vmatpush1.bf16.msra.mxu1 %v12080_v63  ;;  %v605_v62 = vrot.slane %v13017_v40, %v12739_v52  ;;  %v12089_v63 = vld [vmem:[#allocation16 + $0x4] ss:$16 sps:$4 sm:$0xff]   ;;  %v12098_v40 = vld [vmem:[#allocation16 + $0x4c] ss:$16 sps:$4 sm:$0xff]  }
 0x212   :  { %2854 = vmatprep.subr.bf16.mxu0 %v12081_v4  ;;  %2895 = vmatprep.subr.bf16.mxu1 %v12082_v6  ;;  %v658_v4 = vrot.slane %v13019_v41, %v12732_v47  ;;  %v662_v6 = vrot.slane %v13019_v41, %v12739_v52 }
 0x214   :  { %s1804_s17 = sshra.s32 %s13439_s11, 3  ;;  %s1777_s7 = sshra.s32 %s13457_s16, 3 }
 0x215   :  { %2855 = vmatpush1.bf16.msra.mxu0 %v12083_v24  ;;  %2896 = vmatpush1.bf16.msra.mxu1 %v12084_v25  ;;  %v557_v24 = vpop.permute.xlu1 %556  ;;  %v636_v25 = vrot.slane %v13043_v56, %v12739_v52  ;;  %s10892_s20 = sshll.u32 %s1777_s7, 5 }
 0x216   :  { %2856 = vmatprep.subr.bf16.mxu0 %v12085_v29  ;;  %2897 = vmatprep.subr.bf16.mxu1 %v12086_v30  ;;  %v12092_v29 = vld [vmem:[#allocation16 + $0x8] ss:$16 sps:$4 sm:$0xff]   ;;  %v457_v30 = vmul.f32 %v440_v10, %v434_v23  ;;  %v582_v10 = vmul.f32 %v571_v53, %v557_v24 }
 0x218   :  { %v461_v57 = vadd.f32 %v457_v30, %v12965_v13 }
 0x219   :  { %2857 = vmatpush1.bf16.msra.mxu0 %v12087_v49  ;;  %2898 = vmatpush1.bf16.msra.mxu1 %v12088_v50  ;;  %v459_v49 = vmul.f32 %v448_v21, %v434_v23  ;;  %v460_v50 = vmul.f32 %v452_v61, %v434_v23  ;;  %v462_v21 = vadd.f32 %v458_v45, %v12967_v14  ;;  %v12097_v45 = vld [vmem:[#allocation16 + $0x44] ss:$16 sps:$4 sm:$0xff]  }
 0x21a   :  { %2953 = vmatprep.subr.bf16.mxu0 %v12089_v63  ;;  %2994 = vmatprep.subr.bf16.mxu1 %v12090_v0  ;;  %v580_v63 = vmul.f32 %v563_v48, %v557_v24  ;;  %v581_v0 = vmul.f32 %v567_v51, %v557_v24  ;;  %v1641_v51 = vld [vmem:[%s1640_s14] ss:$8 sm:$0xf]  ;;  %v586_v14 = vadd.f32 %v582_v10, %v13001_v32  ;;  %s1695_s14 = sand.u32 7, %s12996_s5 }
 0x21b   :  { %v463_v61 = vadd.f32 %v459_v49, %v12969_v15  ;;  %v464_v48 = vadd.f32 %v460_v50, %v12976_v19  ;;  %v1668_v19 = vld [vmem:[%s1667_s24] ss:$8 sm:$0xf]  ;;  %v489_v32 = vadd.f32 %v475_v36, %v462_v21  ;;  %s13185_s0 = sadd.s32 %s13137_s25, %s1695_s14  ;;  %s13417_s24 = sld [smem:[#allocation4 + $0x180]] }
 0x21c   :  { %2875 = vmatmul.mubr.bf16.vlgmr.msra.gmra.mrb[8].mxu0 %v12862_v12  ;;  %2916 = vmatmul.mubr.bf16.vlgmr.msra.gmra.mrb[8].mxu1 %v12862_v12  ;;  %v640_v12 = vrot.slane %v13043_v56, %v12743_v54  ;;  %v584_v53 = vadd.f32 %v580_v63, %v12988_v26  ;;  %v585_v13 = vadd.f32 %v581_v0, %v12999_v31  ;;  %v12095_v26 = vld [vmem:[#allocation16 + $0x20] ss:$16 sps:$4 sm:$0xff]   ;;  %v1726_v36 = vld [vmem:[%s1725_s19] ss:$8 sm:$0xf]  ;;  %s1699_s18 = scalar_lea.vmem [#allocation11], %s13185_s0 }
 0x21d   :  { %2954 = vmatpush1.bf16.msra.mxu0 %v12091_v28  ;;  %2995 = vmatpush1.bf16.msra.mxu1 %v12092_v29  ;;  %v583_v28 = vmul.f32 %v575_v55, %v557_v24  ;;  %v1678_v55 = vld [vmem:[%s1677_s10] ss:$8 sm:$0xf]  ;;  %v488_v31 = vadd.f32 %v471_v27, %v461_v57  ;;  %v491_v23 = vadd.f32 %v483_v37, %v464_v48  ;;  %v591_v27 = vpop.permute.xlu0 %590  ;;  %v12096_v29 = vld [vmem:[#allocation16 + $0x28] ss:$16 sps:$4 sm:$0xff]   ;;  %s13425_s10 = sld [smem:[#allocation4 + $0x181]] }
 0x21e   :  { %2955 = vmatprep.subr.bf16.mxu0 %v12093_v58  ;;  %2996 = vmatprep.subr.bf16.mxu1 %v12094_v16  ;;  %v1716_v24 = vld [vmem:[%s1715_s12] ss:$8 sm:$0xf]  ;;  %v614_v11 = vmul.f32 %v597_v59, %v591_v27  ;;  %v616_v37 = vmul.f32 %v605_v62, %v591_v27  ;;  %v617_v30 = vmul.f32 %v609_v1, %v591_v27  ;;  %v12100_v63 = vld [vmem:[#allocation16 + $0x48] ss:$16 sps:$4 sm:$0xff]   ;;  %s13443_s14 = sld [smem:[#allocation4 + $0x581]] }
 0x21f   :  { %2985 = vmatprep.mubr.bf16.mxu0 %v15021_v2  ;;  %v587_v15 = vadd.f32 %v583_v28, %v13003_v34  ;;  %v490_v34 = vadd.f32 %v479_v35, %v463_v61  ;;  %v615_v35 = vmul.f32 %v601_v60, %v591_v27  ;;  %v514_v49 = vadd.f32 %v497_v38, %v488_v31  ;;  %v12101_v0 = vld [vmem:[#allocation16 + $0x64] ss:$16 sps:$4 sm:$0xff]   ;;  %v12102_v61 = vld [vmem:[#allocation16 + $0x6c] ss:$16 sps:$4 sm:$0xff]   ;;  %s13459_s19 = sld [smem:[#allocation4 + $0x582]] }
 0x220   :  { %v515_v59 = vadd.f32 %v501_v39, %v489_v32  ;;  %v517_v62 = vadd.f32 %v509_v43, %v491_v23  ;;  %v618_v38 = vadd.f32 %v614_v11, %v584_v53  ;;  %v1642_v43 = vadd.f32 %v1641_v51, %v13074_v18  ;;  %v1604_v18 = vld [vmem:[%s1603_s21] ss:$8 sm:$0xf]  ;;  %3026 = vmatprep.mubr.bf16.mxu1 %v15021_v2  ;;  %v12103_v51 = vld [vmem:[#allocation16 + $0x60] ss:$16 sps:$4 sm:$0xff]   ;;  %s1807_s21 = sand.u32 7, %s13439_s11 }
 0x221   :  { %2956 = vmatpush1.bf16.msra.mxu0 %v12095_v26  ;;  %2997 = vmatpush1.bf16.msra.mxu1 %v12096_v29  ;;  %v516_v60 = vadd.f32 %v505_v42, %v490_v34  ;;  %v619_v39 = vadd.f32 %v615_v35, %v585_v13  ;;  %v620_v42 = vadd.f32 %v616_v37, %v586_v14  ;;  %v1652_v10 = vld [vmem:[%s1651_s15] ss:$8 sm:$0xf]  ;;  %v12108_v32 = vld [vmem:[#allocation16 + $0x88] ss:$16 sps:$4 sm:$0xff]   ;;  %s1756_s25 = sshra.s32 %s13417_s24, 3 }
 0x222   :  { %2957 = vmatprep.subr.bf16.mxu0 %v12097_v45  ;;  %2998 = vmatprep.subr.bf16.mxu1 %v12098_v40  ;;  %v621_v1 = vadd.f32 %v617_v30, %v587_v15  ;;  %518 = vst [vmem:[#allocation2 + $0x20] sm:$0xff] %v514_v49  ;;  %519 = vst [vmem:[#allocation2 + $0x28] sm:$0xff] %v515_v59  ;;  %v1679_v50 = vadd.f32 %v1678_v55, %v1668_v19  ;;  %v1689_v48 = vld [vmem:[%s1688_s27] ss:$8 sm:$0xf]  ;;  %s1759_s4 = sand.u32 7, %s13417_s24 }
 0x223   :  { %520 = vst [vmem:[#allocation2 + $0x30] sm:$0xff] %v516_v60  ;;  %521 = vst [vmem:[#allocation2 + $0x38] sm:$0xff] %v517_v62  ;;  %v1727_v58 = vadd.f32 %v1726_v36, %v1716_v24  ;;  %v645_v28 = vadd.f32 %v628_v7, %v618_v38  ;;  %v646_v16 = vadd.f32 %v632_v9, %v619_v39  ;;  %v1737_v7 = vld [vmem:[%s1736_s28] ss:$8 sm:$0xf]  ;;  %s1766_s12 = sshra.s32 %s13425_s10, 3 }
 0x224   :  { %v647_v57 = vadd.f32 %v636_v25, %v620_v42  ;;  %v648_v21 = vadd.f32 %v640_v12, %v621_v1  ;;  %v1605_v53 = vadd.f32 %v1604_v18, %v13028_v44  ;;  %v1653_v13 = vadd.f32 %v1652_v10, %v1642_v43  ;;  %v12105_v14 = vld [vmem:[#allocation16 + $0x84] ss:$16 sps:$4 sm:$0xff]   ;;  %v12107_v55 = vld [vmem:[#allocation16 + $0x80] ss:$16 sps:$4 sm:$0xff]   ;;  %v12110_v27 = vld [vmem:[#allocation16 + $0xac] ss:$16 sps:$4 sm:$0xff]  }
 0x225   :  { %2958 = vmatpush1.bf16.msra.mxu0 %v12099_v17  ;;  %2999 = vmatpush1.bf16.msra.mxu1 %v12100_v63  ;;  %v671_v9 = vadd.f32 %v654_v3, %v645_v28  ;;  %v672_v56 = vadd.f32 %v658_v4, %v646_v16  ;;  %v12104_v3 = vld [vmem:[#allocation16 + $0x68] ss:$16 sps:$4 sm:$0xff]   ;;  %v1690_v4 = vadd.f32 %v1689_v48, %v1679_v50  ;;  %v1700_v41 = vld [vmem:[%s1699_s18] ss:$8 sm:$0xf]  ;;  %v12448_v43 = vmov 4  }
 0x226   :  { %2959 = vmatprep.subr.bf16.mxu0 %v12101_v0  ;;  %3000 = vmatprep.subr.bf16.mxu1 %v12102_v61  ;;  %v673_v25 = vadd.f32 %v662_v6, %v647_v57  ;;  %v674_v12 = vadd.f32 %v666_v20, %v648_v21  ;;  %v1738_v15 = vadd.f32 %v1737_v7, %v1727_v58  ;;  %v12106_v6 = vld [vmem:[#allocation16 + $0x8c] ss:$16 sps:$4 sm:$0xff]   ;;  %v12109_v34 = vld [vmem:[#allocation16 + $0xa4] ss:$16 sps:$4 sm:$0xff]   ;;  %v12111_v29 = vld [vmem:[#allocation16 + $0xa0] ss:$16 sps:$4 sm:$0xff]  }
 0x227   :  { %675 = vst [vmem:[#allocation2 + $0x40] sm:$0xff] %v671_v9  ;;  %676 = vst [vmem:[#allocation2 + $0x48] sm:$0xff] %v672_v56  ;;  %v1748_v20 = vld [vmem:[%s1747_s2] ss:$8 sm:$0xf]  ;;  %v1701_v23 = vadd.f32 %v1700_v41, %v1690_v4  ;;  %11151 = vset.pattern.permute.xlu0 %v12448_v43  ;;  %s10890_s30 = sshll.u32 %s1756_s25, 5 }
 0x228   :  { %677 = vst [vmem:[#allocation2 + $0x50] sm:$0xff] %v673_v25  ;;  %678 = vst [vmem:[#allocation2 + $0x58] sm:$0xff] %v674_v12  ;;  %v1749_v24 = vadd.f32 %v1748_v20, %v1738_v15  ;;  %v12112_v35 = vld [vmem:[#allocation16 + $0xa8] ss:$16 sps:$4 sm:$0xff]   ;;  %v12113_v37 = vld [vmem:[#allocation16 + $0xc4] ss:$16 sps:$4 sm:$0xff]   ;;  %s13474_s13 = sadd.s32 %s10890_s30, %s1759_s4 }
 0x229   :  { %2960 = vmatpush1.bf16.msra.mxu0 %v12103_v51  ;;  %3001 = vmatpush1.bf16.msra.mxu1 %v12104_v3  ;;  %v12114_v49 = vld [vmem:[#allocation16 + $0xcc] ss:$16 sps:$4 sm:$0xff]   ;;  %v12115_v59 = vld [vmem:[#allocation16 + $0xc0] ss:$16 sps:$4 sm:$0xff]   ;;  %v12116_v60 = vld [vmem:[#allocation16 + $0xc8] ss:$16 sps:$4 sm:$0xff]  }
 0x22a   :  { %2961 = vmatprep.subr.bf16.mxu0 %v12105_v14  ;;  %3002 = vmatprep.subr.bf16.mxu1 %v12106_v6  ;;  %v1607_v19 = vld [vmem:[#allocation2 + $0x20] ss:$8 sm:$0xf]  ;;  %v1655_v44 = vld [vmem:[#allocation2 + $0x21] ss:$8 sm:$0xf] }
 0x22b   :  { %v1608_v26 = vadd.f32 %v1607_v19, %v1605_v53  ;;  %v1656_v31 = vadd.f32 %v1655_v44, %v1653_v13  ;;  %v12117_v62 = vld [vmem:[#allocation16 + $0xe4] ss:$16 sps:$4 sm:$0xff]   ;;  %v12118_v40 = vld [vmem:[#allocation16 + $0xec] ss:$16 sps:$4 sm:$0xff]   ;;  %v12119_v38 = vld [vmem:[#allocation16 + $0xe0] ss:$16 sps:$4 sm:$0xff]  }
 0x22c   :  { %v12120_v39 = vld [vmem:[#allocation16 + $0xe8] ss:$16 sps:$4 sm:$0xff]   ;;  %v13240_v42 = vld [vmem:[#allocation17 + $0x4] ss:$16 sps:$4 sm:$0xff]   ;;  %v13242_v1 = vld [vmem:[#allocation17 + $0xc] ss:$16 sps:$4 sm:$0xff]  }
 0x22d   :  { %2962 = vmatpush1.bf16.msra.mxu0 %v12107_v55  ;;  %3003 = vmatpush1.bf16.msra.mxu1 %v12108_v32  ;;  %1609 = vst.msk [vmem:[#allocation2 + $0x20] ss:$8 sm:$0xf] %vm12837_vm0, %v1608_v26  ;;  %1657 = vst.msk [vmem:[#allocation2 + $0x21] ss:$8 sm:$0xf] %vm12837_vm0, %v1656_v31 }
 0x22e   :  { %2963 = vmatprep.subr.bf16.mxu0 %v12109_v34  ;;  %3004 = vmatprep.subr.bf16.mxu1 %v12110_v27  ;;  %v13249_v17 = vld [vmem:[%s15004_s1] sm:$0xff]  ;;  %v13267_v27 = vld [vmem:[#allocation17 + $0x24] ss:$16 sps:$4 sm:$0xff]   ;;  %s1769_s26 = sand.u32 7, %s13425_s10  ;;  %s10891_s23 = sshll.u32 %s1766_s12, 5 }
 0x22f   :  { %v1703_v36 = vld [vmem:[#allocation2 + $0x40] ss:$8 sm:$0xf]  ;;  %v1751_v11 = vld [vmem:[#allocation2 + $0x41] ss:$8 sm:$0xf]  ;;  %683 = vperm.xlu1 %11148, %v13249_v17   ;;  %747 = vperm.xlu0 %11151, %v13249_v17   ;;  %s13478_s0 = sadd.s32 %s10891_s23, %s1769_s26 }
 0x230   :  { %v1704_v30 = vadd.f32 %v1703_v36, %v1701_v23  ;;  %v1752_v45 = vadd.f32 %v1751_v11, %v1749_v24  ;;  %v13261_v34 = vld [vmem:[#allocation17] ss:$16 sps:$4 sm:$0xff]   ;;  %v13263_v23 = vld [vmem:[#allocation17 + $0x8] ss:$16 sps:$4 sm:$0xff]   ;;  %v13281_v11 = vld [vmem:[#allocation17 + $0x44] ss:$16 sps:$4 sm:$0xff]  }
 0x231   :  { %2964 = vmatpush1.bf16.msra.mxu0 %v12111_v29  ;;  %3005 = vmatpush1.bf16.msra.mxu1 %v12112_v35  ;;  %v13269_v29 = vld [vmem:[#allocation17 + $0x2c] ss:$16 sps:$4 sm:$0xff]   ;;  %v13277_v36 = vld [vmem:[#allocation17 + $0x28] ss:$16 sps:$4 sm:$0xff]   ;;  %s13471_s27 = sld [smem:[#allocation4 + $0x183]]  ;;  %s1814_s22 = sshra.s32 %s13443_s14, 3 }
 0x232   :  { %2965 = vmatprep.subr.bf16.mxu0 %v12113_v37  ;;  %3006 = vmatprep.subr.bf16.mxu1 %v12114_v49  ;;  %1705 = vst.msk [vmem:[#allocation2 + $0x40] ss:$8 sm:$0xf] %vm12837_vm0, %v1704_v30  ;;  %1753 = vst.msk [vmem:[#allocation2 + $0x41] ss:$8 sm:$0xf] %vm12837_vm0, %v1752_v45 }
 0x233   :  { %11150 = vset.pattern.permute.xlu1 %v12447_v33  ;;  %v13283_v35 = vld [vmem:[#allocation17 + $0x4c] ss:$16 sps:$4 sm:$0xff]   ;;  %v13289_v37 = vld [vmem:[#allocation17 + $0x40] ss:$16 sps:$4 sm:$0xff]   ;;  %v13291_v30 = vld [vmem:[#allocation17 + $0x48] ss:$16 sps:$4 sm:$0xff]  }
 0x234   :  { %713 = vperm.xlu1 %11150, %v13249_v17   ;;  %v2838_v50 = vld [vmem:[#allocation2 + $0x20] sm:$0xff]  ;;  %v2839_v18 = vld [vmem:[#allocation2 + $0x28] sm:$0xff]  ;;  %v2841_v9 = vld [vmem:[#allocation2 + $0x38] sm:$0xff]  ;;  %s13476_s28 = sld [smem:[#allocation4 + $0x583]]  ;;  %s10894_s15 = sshll.u32 %s1804_s17, 5 }
 0x235   :  { %2966 = vmatpush1.bf16.msra.mxu0 %v12115_v59  ;;  %3007 = vmatpush1.bf16.msra.mxu1 %v12116_v60  ;;  %v2840_v25 = vld [vmem:[#allocation2 + $0x30] sm:$0xff]  ;;  %v13295_v45 = vld [vmem:[#allocation17 + $0x64] ss:$16 sps:$4 sm:$0xff]   ;;  %v13303_v60 = vld [vmem:[#allocation17 + $0x68] ss:$16 sps:$4 sm:$0xff]   ;;  %s1817_s9 = sand.u32 7, %s13443_s14  ;;  %s13492_s29 = sadd.s32 %s10894_s15, %s1807_s21 }
 0x236   :  { %2967 = vmatprep.subr.bf16.mxu0 %v12117_v62  ;;  %3008 = vmatprep.subr.bf16.mxu1 %v12118_v40  ;;  %v13297_v49 = vld [vmem:[#allocation17 + $0x6c] ss:$16 sps:$4 sm:$0xff]   ;;  %v13301_v59 = vld [vmem:[#allocation17 + $0x60] ss:$16 sps:$4 sm:$0xff]   ;;  %v13307_v62 = vld [vmem:[#allocation17 + $0x84] ss:$16 sps:$4 sm:$0xff]  }
 0x237   :  { %v13309_v40 = vld [vmem:[#allocation17 + $0x8c] ss:$16 sps:$4 sm:$0xff]   ;;  %s10895_s5 = sshll.u32 %s1814_s22, 5  ;;  %s1780_s18 = sand.u32 7, %s13457_s16 }
 0x238   :  { %840 = vperm.xlu1 %11150, %v13249_v17   ;;  %s1825_s2 = sshra.s32 %s13459_s19, 3  ;;  %s13505_s8 = sadd.s32 %s10895_s5, %s1817_s9 }
 0x239   :  { %2968 = vmatpush1.bf16.msra.mxu0 %v12119_v38  ;;  %3009 = vmatpush1.bf16.msra.mxu1 %v12120_v39  ;;  %v13313_v38 = vld [vmem:[#allocation17 + $0x80] ss:$16 sps:$4 sm:$0xff]   ;;  %v13315_v39 = vld [vmem:[#allocation17 + $0x88] ss:$16 sps:$4 sm:$0xff]   ;;  %s1788_s24 = sshra.s32 %s13471_s27, 3  ;;  %s1828_s14 = sand.u32 7, %s13459_s19 }
 0x23a   :  { %3227 = vmatprep.subr.bf16.mxu0 %v13240_v42  ;;  %3268 = vmatprep.subr.bf16.mxu1 %v13242_v1  ;;  %15199 = vst [vmem:[#allocation33_spill] sm:$0xff] %v13313_v38  ;;  %15200 = vst [vmem:[#allocation34_spill] sm:$0xff] %v13315_v39  ;;  %s10896_s25 = sshll.u32 %s1825_s2, 5  ;;  %s1836_s12 = sshra.s32 %s13476_s28, 3 }
 0x23b   :  { %s1763_s4 = scalar_lea.vmem [#allocation8], %s13474_s13  ;;  %s1773_s30 = scalar_lea.vmem [#allocation10], %s13478_s0 }
 0x23c   :  { %11152 = vset.pattern.permute.xlu1 %v12448_v43  ;;  %v13319_v43 = vld [vmem:[#allocation17 + $0xa4] ss:$16 sps:$4 sm:$0xff]   ;;  %s13518_s19 = sadd.s32 %s10892_s20, %s1780_s18  ;;  %s1791_s26 = sand.u32 7, %s13471_s27 }
 0x23d   :  { %870 = vperm.xlu1 %11152, %v13249_v17   ;;  %15201 = vst [vmem:[#allocation35_spill] sm:$0xff] %v13319_v43  ;;  %s10893_s23 = sshll.u32 %s1788_s24, 5  ;;  %s1811_s17 = scalar_lea.vmem [#allocation8], %s13492_s29 }
 0x23e   :  { %s1831_s13 = sadd.s32 %s10896_s25, %s1828_s14  ;;  %s1821_s16 = scalar_lea.vmem [#allocation10], %s13505_s8 }
 0x23f   :  { %s1839_s27 = sand.u32 7, %s13476_s28  ;;  %s10897_s0 = sshll.u32 %s1836_s12, 5 }
 0x240   :  { %s1784_s15 = scalar_lea.vmem %s15009_s6, %s13518_s19  ;;  %s1832_s5 = scalar_lea.vmem %s15009_s6, %s1831_s13 }
 0x241   :  { %s1794_s28 = sadd.s32 %s10893_s23, %s1791_s26  ;;  %s1842_s29 = sadd.s32 %s10897_s0, %s1839_s27 }
 0x242   :  { %s1795_s18 = scalar_lea.vmem [#allocation11], %s1794_s28  ;;  %s1843_s2 = scalar_lea.vmem [#allocation11], %s1842_s29 }
 0x243   :  { %s13729_s20 = sld [smem:[#allocation4 + $0x200]]  ;;  %s13731_s8 = sld [smem:[#allocation4 + $0x201]] }
 0x244   :  { %s13737_s24 = sld [smem:[#allocation4 + $0x600]]  ;;  %s13743_s10 = sld [smem:[#allocation4 + $0x601]] }
 0x245   :  { %s13747_s25 = sld [smem:[#allocation4 + $0x202]]  ;;  %s13757_s23 = sld [smem:[#allocation4 + $0x203]] }
 0x246   :  { %s13751_s12 = sld [smem:[#allocation4 + $0x602]] }
 0x249   :  { %s1852_s11 = sshra.s32 %s13729_s20, 3  ;;  %s1862_s14 = sshra.s32 %s13731_s8, 3 }
 0x24a   :  { %s1865_s19 = sand.u32 7, %s13731_s8  ;;  %s10899_s26 = sshll.u32 %s1862_s14, 5 }
 0x24b   :  { %s13768_s27 = sadd.s32 %s10899_s26, %s1865_s19  ;;  %s1910_s0 = sshra.s32 %s13743_s10, 3 }
 0x24c   :  { %s1903_s22 = sand.u32 7, %s13737_s24  ;;  %s1913_s7 = sand.u32 7, %s13743_s10 }
 0x24d   :  { %s10903_s9 = sshll.u32 %s1910_s0, 5  ;;  %s1876_s28 = sand.u32 7, %s13747_s25 }
 0x24e   :  { %s1921_s29 = sshra.s32 %s13751_s12, 3  ;;  %s13795_s8 = sadd.s32 %s10903_s9, %s1913_s7 }
 0x24f   :  { %s1924_s10 = sand.u32 7, %s13751_s12  ;;  %s1887_s19 = sand.u32 7, %s13757_s23 }
 0x2ef   :  { %v2876_v58 = vpop.f32.mrb[8].mxu0  ;;  %v2917_v63 = vpop.f32.mrb[8].mxu1 }
 0x2f0   :  { %v2924_v0 = vadd.f32 %v2876_v58, %v2838_v50  ;;  %v2878_v10 = vpop.f32.mrb[9].mxu0  ;;  %v2919_v28 = vpop.f32.mrb[9].mxu1  ;;  %v2926_v51 = vadd.f32 %v2917_v63, %v2840_v25  ;;  %v13321_v50 = vld [vmem:[#allocation17 + $0xac] ss:$16 sps:$4 sm:$0xff]   ;;  %v13325_v58 = vld [vmem:[#allocation17 + $0xa0] ss:$16 sps:$4 sm:$0xff]  }
 0x2f1   :  { %v2925_v16 = vadd.f32 %v2878_v10, %v2839_v18  ;;  %v2880_v57 = vpop.f32.mrb[10].mxu0  ;;  %v2921_v21 = vpop.f32.mrb[10].mxu1  ;;  %v2927_v56 = vadd.f32 %v2919_v28, %v2841_v9  ;;  %15202 = vst [vmem:[#allocation36_spill] sm:$0xff] %v13321_v50  ;;  %15203 = vst [vmem:[#allocation37_spill] sm:$0xff] %v13325_v58  ;;  %v13327_v63 = vld [vmem:[#allocation17 + $0xa8] ss:$16 sps:$4 sm:$0xff]  }
 0x2f2   :  { %v10116_v61 = vmul.f32 -1.442695, %v2924_v0  ;;  %v2881_v48 = vpop.f32.mrb[11].mxu0  ;;  %v2922_v33 = vpop.f32.mrb[11].mxu1  ;;  %15204 = vst [vmem:[#allocation38_spill] sm:$0xff] %v13327_v63 }
 0x2f3   :  { %v10117_v7 = vmul.f32 -1.442695, %v2925_v16  ;;  %v10118_v12 = vmul.f32 -1.442695, %v2927_v56  ;;  %v13331_v0 = vld [vmem:[#allocation17 + $0xc4] ss:$16 sps:$4 sm:$0xff]  }
 0x2f4   :  { %11816 = vpow2.f32 %v10116_v61  ;;  %15205 = vst [vmem:[#allocation39_spill] sm:$0xff] %v13331_v0  ;;  %v13333_v18 = vld [vmem:[#allocation17 + $0xcc] ss:$16 sps:$4 sm:$0xff]   ;;  %v13337_v10 = vld [vmem:[#allocation17 + $0xc0] ss:$16 sps:$4 sm:$0xff]  }
 0x2f5   :  { %11818 = vpow2.f32 %v10117_v7  ;;  %15206 = vst [vmem:[#allocation40_spill] sm:$0xff] %v13333_v18  ;;  %15207 = vst [vmem:[#allocation41_spill] sm:$0xff] %v13337_v10  ;;  %v13339_v28 = vld [vmem:[#allocation17 + $0xc8] ss:$16 sps:$4 sm:$0xff]   ;;  %v13343_v16 = vld [vmem:[#allocation17 + $0xe4] ss:$16 sps:$4 sm:$0xff]  }
 0x2f6   :  { %11820 = vpow2.f32 %v10118_v12  ;;  %15208 = vst [vmem:[#allocation42_spill] sm:$0xff] %v13339_v28  ;;  %15209 = vst [vmem:[#allocation43_spill] sm:$0xff] %v13343_v16  ;;  %v13345_v57 = vld [vmem:[#allocation17 + $0xec] ss:$16 sps:$4 sm:$0xff]   ;;  %v13349_v21 = vld [vmem:[#allocation17 + $0xe0] ss:$16 sps:$4 sm:$0xff]  }
 0x2f7   :  { %11822 = vtanh.f32 %v2926_v51  ;;  %15210 = vst [vmem:[#allocation44_spill] sm:$0xff] %v13345_v57  ;;  %15211 = vst [vmem:[#allocation45_spill] sm:$0xff] %v13349_v21  ;;  %v13351_v61 = vld [vmem:[#allocation17 + $0xe8] ss:$16 sps:$4 sm:$0xff]   ;;  %v13355_v48 = vld [vmem:[#allocation14 + $0x4] ss:$16 sps:$4 sm:$0xff]  }
 0x2f8   :  { %15212 = vst [vmem:[#allocation46_spill] sm:$0xff] %v13351_v61  ;;  %15213 = vst [vmem:[#allocation47_spill] sm:$0xff] %v13355_v48  ;;  %v13357_v33 = vld [vmem:[#allocation14 + $0xc] ss:$16 sps:$4 sm:$0xff]   ;;  %v13361_v7 = vld [vmem:[#allocation14] ss:$16 sps:$4 sm:$0xff]  }
 0x2f9   :  { %15214 = vst [vmem:[#allocation48_spill] sm:$0xff] %v13357_v33  ;;  %15215 = vst [vmem:[#allocation49_spill] sm:$0xff] %v13361_v7  ;;  %v13363_v9 = vld [vmem:[#allocation14 + $0x8] ss:$16 sps:$4 sm:$0xff]   ;;  %v13367_v56 = vld [vmem:[#allocation14 + $0x24] ss:$16 sps:$4 sm:$0xff]  }
 0x2fa   :  { %15216 = vst [vmem:[#allocation50_spill] sm:$0xff] %v13363_v9  ;;  %15217 = vst [vmem:[#allocation51_spill] sm:$0xff] %v13367_v56  ;;  %v13369_v25 = vld [vmem:[#allocation14 + $0x2c] ss:$16 sps:$4 sm:$0xff]   ;;  %v13375_v12 = vld [vmem:[#allocation14 + $0x20] ss:$16 sps:$4 sm:$0xff]  }
 0x2fb   :  { %15218 = vst [vmem:[#allocation52_spill] sm:$0xff] %v13369_v25  ;;  %15219 = vst [vmem:[#allocation53_spill] sm:$0xff] %v13375_v12  ;;  %v13377_v51 = vld [vmem:[#allocation14 + $0x28] ss:$16 sps:$4 sm:$0xff]  }
 0x2fc   :  { %15220 = vst [vmem:[#allocation54_spill] sm:$0xff] %v13377_v51 }
 0x2fe   :  { %v11817_v53 = vpop.eup %11816 }
 0x2ff   :  { %v11819_v13 = vpop.eup %11818  ;;  %v2931_v3 = vadd.f32 1.0, %v11817_v53  ;;  %v13381_v53 = vld [vmem:[#allocation14 + $0x44] ss:$16 sps:$4 sm:$0xff]  }
 0x300   :  { %v2937_v14 = vadd.f32 1.0, %v11819_v13  ;;  %v11821_v4 = vpop.eup %11820  ;;  %15221 = vst [vmem:[#allocation55_spill] sm:$0xff] %v13381_v53  ;;  %v13383_v13 = vld [vmem:[#allocation14 + $0x4c] ss:$16 sps:$4 sm:$0xff]  }
 0x301   :  { %11824 = vrcp.f32 %v2931_v3  ;;  %v11823_v15 = vpop.eup %11822  ;;  %v2944_v19 = vadd.f32 1.0, %v11821_v4  ;;  %15222 = vst [vmem:[#allocation56_spill] sm:$0xff] %v13383_v13  ;;  %v13389_v3 = vld [vmem:[#allocation14 + $0x40] ss:$16 sps:$4 sm:$0xff]   ;;  %v13395_v4 = vld [vmem:[#allocation14 + $0x64] ss:$16 sps:$4 sm:$0xff]  }
 0x302   :  { %11826 = vrcp.f32 %v2937_v14  ;;  %15223 = vst [vmem:[#allocation57_spill] sm:$0xff] %v13389_v3  ;;  %v13391_v14 = vld [vmem:[#allocation14 + $0x48] ss:$16 sps:$4 sm:$0xff]   ;;  %15225 = vst [vmem:[#allocation59_spill] sm:$0xff] %v13395_v4 }
 0x303   :  { %11828 = vrcp.f32 %v2944_v19  ;;  %15224 = vst [vmem:[#allocation58_spill] sm:$0xff] %v13391_v14  ;;  %v13409_v19 = vld [vmem:[#allocation14 + $0x8c] ss:$16 sps:$4 sm:$0xff]  }
 0x304   :  { %15230 = vst [vmem:[#allocation64_spill] sm:$0xff] %v13409_v19 }
 0x30b   :  { %v11825_v6 = vpop.eup %11824 }
 0x30c   :  { %v11827_v41 = vpop.eup %11826  ;;  %v2948_v20 = vmul.f32 %v11825_v6, %v11823_v15  ;;  %v13397_v15 = vld [vmem:[#allocation14 + $0x6c] ss:$16 sps:$4 sm:$0xff]   ;;  %v13401_v6 = vld [vmem:[#allocation14 + $0x60] ss:$16 sps:$4 sm:$0xff]  }
 0x30d   :  { %v2947_v44 = vmul.f32 %v11827_v41, %v12850_v8  ;;  %v11829_v26 = vpop.eup %11828  ;;  %v13275_v8 = vld [vmem:[#allocation17 + $0x20] ss:$16 sps:$4 sm:$0xff]   ;;  %15226 = vst [vmem:[#allocation60_spill] sm:$0xff] %v13397_v15  ;;  %15227 = vst [vmem:[#allocation61_spill] sm:$0xff] %v13401_v6  ;;  %v13403_v41 = vld [vmem:[#allocation14 + $0x68] ss:$16 sps:$4 sm:$0xff]  }
 0x30e   :  { %15228 = vst [vmem:[#allocation62_spill] sm:$0xff] %v13403_v41 }
 0x30f   :  { %v13258_v55 = vadd.f32 %v2948_v20, %v2947_v44  ;;  %v13407_v20 = vld [vmem:[#allocation14 + $0x84] ss:$16 sps:$4 sm:$0xff]   ;;  %v13413_v44 = vld [vmem:[#allocation14 + $0x80] ss:$16 sps:$4 sm:$0xff]  }
 0x310   :  { %15229 = vst [vmem:[#allocation63_spill] sm:$0xff] %v13407_v20  ;;  %15231 = vst [vmem:[#allocation65_spill] sm:$0xff] %v13413_v44 }
 0x311   :  { %11830 = vtanh.f32 %v13258_v55 }
 0x31b   :  { %v11831_v31 = vpop.eup %11830 }
 0x31c   :  { %v2951_v32 = vmul.f32 %v11831_v31, %v11829_v26  ;;  %v13415_v26 = vld [vmem:[#allocation14 + $0x88] ss:$16 sps:$4 sm:$0xff]   ;;  %v13421_v31 = vld [vmem:[#allocation14 + $0xa4] ss:$16 sps:$4 sm:$0xff]  }
 0x31d   :  { %15232 = vst [vmem:[#allocation66_spill] sm:$0xff] %v13415_v26  ;;  %15233 = vst [vmem:[#allocation67_spill] sm:$0xff] %v13421_v31 }
 0x31e   :  { %v13265_v24 = vpack.c.bf16 %v2951_v32, %v2951_v32  ;;  %v13423_v32 = vld [vmem:[#allocation14 + $0xac] ss:$16 sps:$4 sm:$0xff]  }
 0x31f   :  { %15234 = vst [vmem:[#allocation68_spill] sm:$0xff] %v13423_v32 }
 0x320   :  { %2986 = vmatmul.mubr.bf16.vlgmr.msra.gmra.mrb[12].mxu0 %v13265_v24  ;;  %3027 = vmatmul.mubr.bf16.vlgmr.msra.gmra.mrb[12].mxu1 %v13265_v24 }
 0x321   :  { %3228 = vmatpush1.bf16.msra.mxu0 %v13261_v34  ;;  %3269 = vmatpush1.bf16.msra.mxu1 %v13263_v23 }
 0x322   :  { %3229 = vmatprep.subr.bf16.mxu0 %v13267_v27  ;;  %3270 = vmatprep.subr.bf16.mxu1 %v13269_v29 }
 0x323   :  { %3259 = vmatprep.mubr.bf16.mxu0 %v15021_v2  ;;  %3300 = vmatprep.mubr.bf16.mxu1 %v15021_v2 }
 0x325   :  { %3230 = vmatpush1.bf16.msra.mxu0 %v13275_v8  ;;  %3271 = vmatpush1.bf16.msra.mxu1 %v13277_v36 }
 0x326   :  { %3231 = vmatprep.subr.bf16.mxu0 %v13281_v11  ;;  %3272 = vmatprep.subr.bf16.mxu1 %v13283_v35 }
 0x329   :  { %3232 = vmatpush1.bf16.msra.mxu0 %v13289_v37  ;;  %3273 = vmatpush1.bf16.msra.mxu1 %v13291_v30 }
 0x32a   :  { %3233 = vmatprep.subr.bf16.mxu0 %v13295_v45  ;;  %3274 = vmatprep.subr.bf16.mxu1 %v13297_v49 }
 0x32d   :  { %3234 = vmatpush1.bf16.msra.mxu0 %v13301_v59  ;;  %3275 = vmatpush1.bf16.msra.mxu1 %v13303_v60 }
 0x32e   :  { %3235 = vmatprep.subr.bf16.mxu0 %v13307_v62  ;;  %3276 = vmatprep.subr.bf16.mxu1 %v13309_v40 }
 0x331   :  { %3236 = vmatpush1.bf16.msra.mxu0 %v13313_v38  ;;  %3277 = vmatpush1.bf16.msra.mxu1 %v13315_v39 }
 0x332   :  { %3237 = vmatprep.subr.bf16.mxu0 %v13319_v43  ;;  %3278 = vmatprep.subr.bf16.mxu1 %v13321_v50 }
 0x335   :  { %3238 = vmatpush1.bf16.msra.mxu0 %v13325_v58  ;;  %3279 = vmatpush1.bf16.msra.mxu1 %v13327_v63 }
 0x336   :  { %3239 = vmatprep.subr.bf16.mxu0 %v13331_v0  ;;  %3280 = vmatprep.subr.bf16.mxu1 %v13333_v18  ;;  %v1785_v18 = vld [vmem:[%s1784_s15] ss:$8 sm:$0xf]  ;;  %s1873_s15 = sshra.s32 %s13747_s25, 3  ;;  %s1917_s25 = scalar_lea.vmem [#allocation10], %s13795_s8 }
 0x337   :  { %v1833_v0 = vld [vmem:[%s1832_s5] ss:$8 sm:$0xf]  ;;  %s13980_s8 = sld [smem:[#allocation4 + $0x281]] }
 0x339   :  { %3240 = vmatpush1.bf16.msra.mxu0 %v13337_v10  ;;  %3281 = vmatpush1.bf16.msra.mxu1 %v13339_v28 }
 0x33a   :  { %3241 = vmatprep.subr.bf16.mxu0 %v13343_v16  ;;  %3282 = vmatprep.subr.bf16.mxu1 %v13345_v57 }
 0x33d   :  { %3242 = vmatpush1.bf16.msra.mxu0 %v13349_v21  ;;  %3283 = vmatpush1.bf16.msra.mxu1 %v13351_v61  ;;  %v1764_v61 = vld [vmem:[%s1763_s4] ss:$8 sm:$0xf]  ;;  %s1855_s4 = sand.u32 7, %s13729_s20  ;;  %s10900_s20 = sshll.u32 %s1873_s15, 5 }
 0x33e   :  { %3534 = vmatprep.subr.bf16.mxu0 %v13355_v48  ;;  %3575 = vmatprep.subr.bf16.mxu1 %v13357_v33  ;;  %v1774_v21 = vld [vmem:[%s1773_s30] ss:$8 sm:$0xf]  ;;  %s10898_s30 = sshll.u32 %s1852_s11, 5  ;;  %s10904_s11 = sshll.u32 %s1921_s29, 5 }
 0x33f   :  { %s13762_s13 = sadd.s32 %s10898_s30, %s1855_s4  ;;  %s1869_s4 = scalar_lea.vmem [#allocation10], %s13768_s27 }
 0x340   :  { %3260 = vmatmul.mubr.bf16.vlgmr.msra.gmra.mrb[4].mxu0 %v15021_v2  ;;  %3301 = vmatmul.mubr.bf16.vlgmr.msra.gmra.mrb[4].mxu1 %v15021_v2  ;;  %s1859_s12 = scalar_lea.vmem [#allocation8], %s13762_s13  ;;  %s13820_s30 = sadd.s32 %s10900_s20, %s1876_s28 }
 0x341   :  { %3535 = vmatpush1.bf16.msra.mxu0 %v13361_v7  ;;  %3576 = vmatpush1.bf16.msra.mxu1 %v13363_v9  ;;  %s13832_s13 = sadd.s32 %s10904_s11, %s1924_s10  ;;  %s13972_s20 = sld [smem:[#allocation4 + $0x280]] }
 0x342   :  { %3536 = vmatprep.subr.bf16.mxu0 %v13367_v56  ;;  %3577 = vmatprep.subr.bf16.mxu1 %v13369_v25  ;;  %v9853_v56 = vld [vmem:[%s15006_s3 + $0x3] ss:$8 sm:$0xf]  ;;  %s1928_s9 = scalar_lea.vmem %s15009_s6, %s13832_s13  ;;  %s13998_s10 = sld [smem:[#allocation4 + $0x681]] }
 0x343   :  { %3566 = vmatprep.mubr.bf16.mxu0 %v15021_v2  ;;  %3607 = vmatprep.mubr.bf16.mxu1 %v15021_v2  ;;  %v13431_v2 = vld [vmem:[#allocation14 + $0xa8] ss:$16 sps:$4 sm:$0xff]   ;;  %s14026_s13 = sld [smem:[#allocation4 + $0x283]] }
 0x344   :  { %15236 = vst [vmem:[#allocation70_spill] sm:$0xff] %v13431_v2 }
 0x345   :  { %3537 = vmatpush1.bf16.msra.mxu0 %v13375_v12  ;;  %3578 = vmatpush1.bf16.msra.mxu1 %v13377_v51 }
 0x346   :  { %3538 = vmatprep.subr.bf16.mxu0 %v13381_v53  ;;  %3579 = vmatprep.subr.bf16.mxu1 %v13383_v13  ;;  %v748_v53 = vpop.permute.xlu0 %747 }
 0x347   :  { %s1948_s11 = sshra.s32 %s13972_s20, 3 }
 0x349   :  { %3539 = vmatpush1.bf16.msra.mxu0 %v13389_v3  ;;  %3580 = vmatpush1.bf16.msra.mxu1 %v13391_v14 }
 0x34a   :  { %3540 = vmatprep.subr.bf16.mxu0 %v13395_v4  ;;  %3581 = vmatprep.subr.bf16.mxu1 %v13397_v15 }
 0x34d   :  { %3541 = vmatpush1.bf16.msra.mxu0 %v13401_v6  ;;  %3582 = vmatpush1.bf16.msra.mxu1 %v13403_v41  ;;  %v13441_v41 = vld [vmem:[#allocation14 + $0xc0] ss:$16 sps:$4 sm:$0xff]  }
 0x34e   :  { %3542 = vmatprep.subr.bf16.mxu0 %v13407_v20  ;;  %3583 = vmatprep.subr.bf16.mxu1 %v13409_v19  ;;  %v13435_v19 = vld [vmem:[#allocation14 + $0xc4] ss:$16 sps:$4 sm:$0xff]   ;;  %v13437_v20 = vld [vmem:[#allocation14 + $0xcc] ss:$16 sps:$4 sm:$0xff]   ;;  %15239 = vst [vmem:[#allocation73_spill] sm:$0xff] %v13441_v41 }
 0x34f   :  { %15237 = vst [vmem:[#allocation71_spill] sm:$0xff] %v13435_v19  ;;  %15238 = vst [vmem:[#allocation72_spill] sm:$0xff] %v13437_v20 }
 0x351   :  { %3543 = vmatpush1.bf16.msra.mxu0 %v13413_v44  ;;  %3584 = vmatpush1.bf16.msra.mxu1 %v13415_v26  ;;  %v13447_v26 = vld [vmem:[#allocation14 + $0xc8] ss:$16 sps:$4 sm:$0xff]  }
 0x352   :  { %3544 = vmatprep.subr.bf16.mxu0 %v13421_v31  ;;  %3585 = vmatprep.subr.bf16.mxu1 %v13423_v32  ;;  %15240 = vst [vmem:[#allocation74_spill] sm:$0xff] %v13447_v26  ;;  %v13449_v31 = vld [vmem:[#allocation14 + $0xe4] ss:$16 sps:$4 sm:$0xff]   ;;  %v13454_v32 = vld [vmem:[#allocation14 + $0xec] ss:$16 sps:$4 sm:$0xff]  }
 0x353   :  { %15241 = vst [vmem:[#allocation75_spill] sm:$0xff] %v13449_v31  ;;  %15242 = vst [vmem:[#allocation76_spill] sm:$0xff] %v13454_v32 }
 0x355   :  { %3545 = vmatpush1.bf16.msra.mxu0 %v13429_v5  ;;  %3586 = vmatpush1.bf16.msra.mxu1 %v13431_v2  ;;  %v13464_v2 = vld [vmem:[#allocation14 + $0xe0] ss:$16 sps:$4 sm:$0xff]   ;;  %v684_v5 = vpop.permute.xlu1 %683 }
 0x356   :  { %3546 = vmatprep.subr.bf16.mxu0 %v13435_v19  ;;  %3587 = vmatprep.subr.bf16.mxu1 %v13437_v20  ;;  %15243 = vst [vmem:[#allocation77_spill] sm:$0xff] %v13464_v2  ;;  %v13466_v19 = vld [vmem:[#allocation14 + $0xe8] ss:$16 sps:$4 sm:$0xff]  }
 0x357   :  { %15244 = vst [vmem:[#allocation78_spill] sm:$0xff] %v13466_v19 }
 0x359   :  { %3547 = vmatpush1.bf16.msra.mxu0 %v13441_v41  ;;  %3588 = vmatpush1.bf16.msra.mxu1 %v13447_v26  ;;  %v680_v26 = vld [vmem:[#allocation7] ss:$4 sm:$0xf]  ;;  %v711_v41 = vld [vmem:[#allocation7 + $0x1] ss:$4 sm:$0xf] }
 0x35a   :  { %3548 = vmatprep.subr.bf16.mxu0 %v13449_v31  ;;  %3589 = vmatprep.subr.bf16.mxu1 %v13454_v32  ;;  %v745_v31 = vld [vmem:[#allocation7 + $0x2] ss:$4 sm:$0xf]  ;;  %v690_v32 = vrot.slane %v680_v26, %v12730_v46  ;;  %v694_v20 = vrot.slane %v680_v26, %v12732_v47  ;;  %v720_v14 = vrot.slane %v711_v41, %v12730_v46 }
 0x35b   :  { %v754_v44 = vrot.slane %v745_v31, %v12730_v46  ;;  %v758_v6 = vrot.slane %v745_v31, %v12732_v47  ;;  %v762_v15 = vrot.slane %v745_v31, %v12739_v52  ;;  %v766_v4 = vrot.slane %v745_v31, %v12743_v54 }
 0x35c   :  { %v728_v3 = vrot.slane %v711_v41, %v12739_v52  ;;  %v732_v13 = vrot.slane %v711_v41, %v12743_v54  ;;  %v707_v31 = vmul.f32 %v690_v32, %v684_v5  ;;  %v708_v51 = vmul.f32 %v694_v20, %v684_v5 }
 0x35d   :  { %3549 = vmatpush1.bf16.msra.mxu0 %v13464_v2  ;;  %3590 = vmatpush1.bf16.msra.mxu1 %v13466_v19  ;;  %v698_v2 = vrot.slane %v680_v26, %v12739_v52  ;;  %v702_v19 = vrot.slane %v680_v26, %v12743_v54  ;;  %v724_v26 = vrot.slane %v711_v41, %v12732_v47  ;;  %v714_v41 = vpop.permute.xlu1 %713 }
 0x35e   :  { %v771_v9 = vmul.f32 %v754_v44, %v748_v53  ;;  %v772_v7 = vmul.f32 %v758_v6, %v748_v53  ;;  %v773_v33 = vmul.f32 %v762_v15, %v748_v53  ;;  %v774_v48 = vmul.f32 %v766_v4, %v748_v53 }
 0x35f   :  { %v709_v12 = vmul.f32 %v698_v2, %v684_v5  ;;  %v710_v25 = vmul.f32 %v702_v19, %v684_v5  ;;  %v737_v32 = vmul.f32 %v720_v14, %v714_v41  ;;  %v738_v2 = vmul.f32 %v724_v26, %v714_v41  ;;  %v806_v19 = vld [vmem:[#allocation13] sm:$0xf] }
 0x360   :  { %3567 = vmatmul.mubr.bf16.vlgmr.msra.gmra.mrb[16].mxu0 %v13265_v24  ;;  %3608 = vmatmul.mubr.bf16.vlgmr.msra.gmra.mrb[16].mxu1 %v13265_v24  ;;  %v15245_v24 = vmov 0   ;;  %v739_v20 = vmul.f32 %v728_v3, %v714_v41  ;;  %v740_v5 = vmul.f32 %v732_v13, %v714_v41  ;;  %v785_v15 = vrot.slane %v9853_v56, %v12730_v46  ;;  %v1812_v3 = vld [vmem:[%s1811_s17] ss:$8 sm:$0xf]  ;;  %s1900_s17 = sshra.s32 %s13737_s24, 3  ;;  %s1884_s24 = sshra.s32 %s13757_s23, 3 }
 0x361   :  { %3869 = vmatprep.mubr.bf16.mxu0 %v15245_v24  ;;  %3910 = vmatprep.mubr.bf16.mxu1 %v15245_v24  ;;  %v789_v53 = vrot.slane %v9853_v56, %v12732_v47  ;;  %v793_v14 = vrot.slane %v9853_v56, %v12739_v52  ;;  %v797_v13 = vrot.slane %v9853_v56, %v12743_v54  ;;  %v1822_v41 = vld [vmem:[%s1821_s16] ss:$8 sm:$0xf]  ;;  %s13764_s16 = sld [smem:[#allocation4 + $0x603]]  ;;  %s10902_s21 = sshll.u32 %s1900_s17, 5 }
 0x362   :  { %v741_v4 = vadd.f32 %v737_v32, %v707_v31  ;;  %v742_v6 = vadd.f32 %v738_v2, %v708_v51  ;;  %v743_v44 = vadd.f32 %v739_v20, %v709_v12  ;;  %v744_v26 = vadd.f32 %v740_v5, %v710_v25  ;;  %s13786_s5 = sadd.s32 %s10902_s21, %s1903_s22  ;;  %s13829_s26 = sshll.u32 %s1884_s24, 5 }
 0x363   :  { %v811_v57 = vrot.slane %v806_v19, %v12730_v46  ;;  %v815_v16 = vrot.slane %v806_v19, %v12732_v47  ;;  %v819_v56 = vrot.slane %v806_v19, %v12739_v52  ;;  %v823_v28 = vrot.slane %v806_v19, %v12743_v54  ;;  %s1907_s17 = scalar_lea.vmem [#allocation8], %s13786_s5  ;;  %s1880_s21 = scalar_lea.vmem %s15009_s6, %s13820_s30 }
 0x364   :  { %v775_v25 = vadd.f32 %v771_v9, %v741_v4  ;;  %v776_v12 = vadd.f32 %v772_v7, %v742_v6  ;;  %v777_v51 = vadd.f32 %v773_v33, %v743_v44  ;;  %v778_v31 = vadd.f32 %v774_v48, %v744_v26  ;;  %v13587_v4 = vld [vmem:[#allocation16 + $0x68] ss:$16 sps:$4 sm:$0xff]   ;;  %v13593_v6 = vld [vmem:[#allocation16 + $0x84] ss:$16 sps:$4 sm:$0xff]   ;;  %v13595_v44 = vld [vmem:[#allocation16 + $0x8c] ss:$16 sps:$4 sm:$0xff]   ;;  %s1890_s5 = sadd.s32 %s13829_s26, %s1887_s19 }
 0x365   :  { %v1775_v32 = vadd.f32 %v1774_v21, %v1764_v61  ;;  %v1823_v2 = vadd.f32 %v1822_v41, %v1812_v3  ;;  %v1796_v21 = vld [vmem:[%s1795_s18] ss:$8 sm:$0xf]  ;;  %v13585_v3 = vld [vmem:[#allocation16 + $0x60] ss:$16 sps:$4 sm:$0xff]   ;;  %s1891_s23 = scalar_lea.vmem [#allocation11], %s1890_s5 }
 0x366   :  { %v802_v20 = vadd.f32 %v785_v15, %v775_v25  ;;  %v803_v5 = vadd.f32 %v789_v53, %v776_v12  ;;  %v804_v10 = vadd.f32 %v793_v14, %v777_v51  ;;  %v805_v19 = vadd.f32 %v797_v13, %v778_v31  ;;  %v1844_v61 = vld [vmem:[%s1843_s2] ss:$8 sm:$0xf]  ;;  %v13597_v26 = vld [vmem:[#allocation16 + $0x80] ss:$16 sps:$4 sm:$0xff]   ;;  %s13994_s24 = sld [smem:[#allocation4 + $0x680]] }
 0x367   :  { %v1786_v39 = vadd.f32 %v1785_v18, %v1775_v32  ;;  %v1834_v38 = vadd.f32 %v1833_v0, %v1823_v2  ;;  %v13561_v0 = vld [vmem:[#allocation16 + $0x20] ss:$16 sps:$4 sm:$0xff]   ;;  %v13563_v18 = vld [vmem:[#allocation16 + $0x28] ss:$16 sps:$4 sm:$0xff]   ;;  %v13581_v14 = vld [vmem:[#allocation16 + $0x64] ss:$16 sps:$4 sm:$0xff]  }
 0x368   :  { %v828_v63 = vadd.f32 %v811_v57, %v802_v20  ;;  %v829_v58 = vadd.f32 %v815_v16, %v803_v5  ;;  %v830_v50 = vadd.f32 %v819_v56, %v804_v10  ;;  %v831_v43 = vadd.f32 %v823_v28, %v805_v19  ;;  %v13569_v10 = vld [vmem:[#allocation16 + $0x44] ss:$16 sps:$4 sm:$0xff]   ;;  %v13571_v28 = vld [vmem:[#allocation16 + $0x4c] ss:$16 sps:$4 sm:$0xff]   ;;  %v13573_v16 = vld [vmem:[#allocation16 + $0x40] ss:$16 sps:$4 sm:$0xff]  }
 0x369   :  { %v1797_v48 = vadd.f32 %v1796_v21, %v1786_v39  ;;  %v1845_v33 = vadd.f32 %v1844_v61, %v1834_v38  ;;  %v13557_v38 = vld [vmem:[#allocation16 + $0x24] ss:$16 sps:$4 sm:$0xff]   ;;  %v13559_v39 = vld [vmem:[#allocation16 + $0x2c] ss:$16 sps:$4 sm:$0xff]   ;;  %v13575_v57 = vld [vmem:[#allocation16 + $0x48] ss:$16 sps:$4 sm:$0xff]  }
 0x36a   :  { %832 = vst [vmem:[#allocation2 + $0x60] sm:$0xff] %v828_v63  ;;  %833 = vst [vmem:[#allocation2 + $0x68] sm:$0xff] %v829_v58  ;;  %v13545_v63 = vld [vmem:[#allocation16 + $0x4] ss:$16 sps:$4 sm:$0xff]   ;;  %v13551_v58 = vld [vmem:[#allocation16 + $0x8] ss:$16 sps:$4 sm:$0xff]  }
 0x36b   :  { %834 = vst [vmem:[#allocation2 + $0x70] sm:$0xff] %v830_v50  ;;  %835 = vst [vmem:[#allocation2 + $0x78] sm:$0xff] %v831_v43  ;;  %v13547_v50 = vld [vmem:[#allocation16 + $0xc] ss:$16 sps:$4 sm:$0xff]   ;;  %v13549_v43 = vld [vmem:[#allocation16] ss:$16 sps:$4 sm:$0xff]   ;;  %3837 = vmatprep.subr.bf16.mxu0 %v13545_v63 }
 0x36c   :  { %3878 = vmatprep.subr.bf16.mxu1 %v13547_v50  ;;  %3838 = vmatpush1.bf16.msra.mxu0 %v13549_v43  ;;  %v13583_v13 = vld [vmem:[#allocation16 + $0x6c] ss:$16 sps:$4 sm:$0xff]   ;;  %15246 = vst [vmem:[#allocation79_spill] sm:$0xff] %v13597_v26  ;;  %v13599_v41 = vld [vmem:[#allocation16 + $0x88] ss:$16 sps:$4 sm:$0xff]   ;;  %s1932_s14 = sshra.s32 %s13764_s16, 3 }
 0x36d   :  { %3879 = vmatpush1.bf16.msra.mxu1 %v13551_v58  ;;  %3839 = vmatprep.subr.bf16.mxu0 %v13557_v38  ;;  %15247 = vst [vmem:[#allocation80_spill] sm:$0xff] %v13599_v41  ;;  %v13603_v56 = vld [vmem:[#allocation16 + $0xa4] ss:$16 sps:$4 sm:$0xff]   ;;  %v13605_v25 = vld [vmem:[#allocation16 + $0xac] ss:$16 sps:$4 sm:$0xff]   ;;  %s1935_s27 = sand.u32 7, %s13764_s16 }
 0x36e   :  { %3880 = vmatprep.subr.bf16.mxu1 %v13559_v39  ;;  %15248 = vst [vmem:[#allocation81_spill] sm:$0xff] %v13603_v56  ;;  %15249 = vst [vmem:[#allocation82_spill] sm:$0xff] %v13605_v25  ;;  %v13609_v12 = vld [vmem:[#allocation16 + $0xa0] ss:$16 sps:$4 sm:$0xff]   ;;  %v13611_v51 = vld [vmem:[#allocation16 + $0xa8] ss:$16 sps:$4 sm:$0xff]  }
 0x36f   :  { %15250 = vst [vmem:[#allocation83_spill] sm:$0xff] %v13609_v12  ;;  %15251 = vst [vmem:[#allocation84_spill] sm:$0xff] %v13611_v51  ;;  %v13615_v31 = vld [vmem:[#allocation16 + $0xc4] ss:$16 sps:$4 sm:$0xff]   ;;  %v13617_v32 = vld [vmem:[#allocation16 + $0xcc] ss:$16 sps:$4 sm:$0xff]  }
 0x370   :  { %3840 = vmatpush1.bf16.msra.mxu0 %v13561_v0  ;;  %15252 = vst [vmem:[#allocation85_spill] sm:$0xff] %v13615_v31  ;;  %15253 = vst [vmem:[#allocation86_spill] sm:$0xff] %v13617_v32  ;;  %v13621_v2 = vld [vmem:[#allocation16 + $0xc0] ss:$16 sps:$4 sm:$0xff]   ;;  %v13623_v20 = vld [vmem:[#allocation16 + $0xc8] ss:$16 sps:$4 sm:$0xff]  }
 0x371   :  { %3881 = vmatpush1.bf16.msra.mxu1 %v13563_v18  ;;  %3841 = vmatprep.subr.bf16.mxu0 %v13569_v10  ;;  %15254 = vst [vmem:[#allocation87_spill] sm:$0xff] %v13621_v2  ;;  %15255 = vst [vmem:[#allocation88_spill] sm:$0xff] %v13623_v20  ;;  %v13627_v5 = vld [vmem:[#allocation16 + $0xe4] ss:$16 sps:$4 sm:$0xff]   ;;  %v13629_v19 = vld [vmem:[#allocation16 + $0xec] ss:$16 sps:$4 sm:$0xff]  }
 0x372   :  { %v1799_v7 = vld [vmem:[#allocation2 + $0x60] ss:$8 sm:$0xf]  ;;  %v1847_v9 = vld [vmem:[#allocation2 + $0x61] ss:$8 sm:$0xf]  ;;  %3882 = vmatprep.subr.bf16.mxu1 %v13571_v28 }
 0x373   :  { %v1800_v15 = vadd.f32 %v1799_v7, %v1797_v48  ;;  %v1848_v53 = vadd.f32 %v1847_v9, %v1845_v33  ;;  %15256 = vst [vmem:[#allocation89_spill] sm:$0xff] %v13627_v5  ;;  %15257 = vst [vmem:[#allocation90_spill] sm:$0xff] %v13629_v19  ;;  %v13633_v21 = vld [vmem:[#allocation16 + $0xe0] ss:$16 sps:$4 sm:$0xff]   ;;  %v13635_v61 = vld [vmem:[#allocation16 + $0xe8] ss:$16 sps:$4 sm:$0xff]  }
 0x374   :  { %3842 = vmatpush1.bf16.msra.mxu0 %v13573_v16  ;;  %15258 = vst [vmem:[#allocation91_spill] sm:$0xff] %v13633_v21  ;;  %15259 = vst [vmem:[#allocation92_spill] sm:$0xff] %v13635_v61  ;;  %v13643_v48 = vld [vmem:[#allocation19] sm:$0xf]  ;;  %s10905_s0 = sshll.u32 %s1932_s14, 5  ;;  %s1958_s14 = sshra.s32 %s13980_s8, 3 }
 0x375   :  { %1801 = vst.msk [vmem:[#allocation2 + $0x60] ss:$8 sm:$0xf] %vm12837_vm0, %v1800_v15  ;;  %1849 = vst.msk [vmem:[#allocation2 + $0x61] ss:$8 sm:$0xf] %vm12837_vm0, %v1848_v53  ;;  %3883 = vmatpush1.bf16.msra.mxu1 %v13575_v57  ;;  %3843 = vmatprep.subr.bf16.mxu0 %v13581_v14  ;;  %v13647_v33 = vrot.slane %v13643_v48, %v12730_v46  ;;  %v13651_v7 = vrot.slane %v13643_v48, %v12732_v47  ;;  %s1938_s28 = sadd.s32 %s10905_s0, %s1935_s27 }
 0x376   :  { %3884 = vmatprep.subr.bf16.mxu1 %v13583_v13  ;;  %s1939_s29 = scalar_lea.vmem [#allocation11], %s1938_s28  ;;  %s1951_s30 = sand.u32 7, %s13972_s20 }
 0x377   :  { %15260 = vst [vmem:[#allocation93_spill] sm:$0xff] %v13647_v33  ;;  %15261 = vst [vmem:[#allocation94_spill] sm:$0xff] %v13651_v7  ;;  %s10906_s19 = sshll.u32 %s1948_s11, 5  ;;  %s1961_s26 = sand.u32 7, %s13980_s8 }
 0x378   :  { %3844 = vmatpush1.bf16.msra.mxu0 %v13585_v3  ;;  %s14029_s27 = sadd.s32 %s10906_s19, %s1951_s30  ;;  %s14031_s0 = sld [smem:[#allocation4 + $0x683]] }
 0x379   :  { %3885 = vmatpush1.bf16.msra.mxu1 %v13587_v4  ;;  %3845 = vmatprep.subr.bf16.mxu0 %v13593_v6  ;;  %s2006_s22 = sshra.s32 %s13998_s10, 3  ;;  %s1980_s20 = sshra.s32 %s14026_s13, 3 }
 0x37a   :  { %3886 = vmatprep.subr.bf16.mxu1 %v13595_v44  ;;  %s10911_s5 = sshll.u32 %s2006_s22, 5  ;;  %s1955_s30 = scalar_lea.vmem [#allocation8], %s14029_s27 }
 0x37c   :  { %3846 = vmatpush1.bf16.msra.mxu0 %v13597_v26 }
 0x37d   :  { %3887 = vmatpush1.bf16.msra.mxu1 %v13599_v41  ;;  %3847 = vmatprep.subr.bf16.mxu0 %v13603_v56 }
 0x37e   :  { %3888 = vmatprep.subr.bf16.mxu1 %v13605_v25 }
 0x380   :  { %3848 = vmatpush1.bf16.msra.mxu0 %v13609_v12 }
 0x381   :  { %3889 = vmatpush1.bf16.msra.mxu1 %v13611_v51  ;;  %3849 = vmatprep.subr.bf16.mxu0 %v13615_v31  ;;  %v13659_v31 = vrot.slane %v13643_v48, %v12739_v52 }
 0x382   :  { %3890 = vmatprep.subr.bf16.mxu1 %v13617_v32 }
 0x383   :  { %15262 = vst [vmem:[#allocation95_spill] sm:$0xff] %v13659_v31 }
 0x384   :  { %3850 = vmatpush1.bf16.msra.mxu0 %v13621_v2 }
 0x385   :  { %3891 = vmatpush1.bf16.msra.mxu1 %v13623_v20  ;;  %3851 = vmatprep.subr.bf16.mxu0 %v13627_v5 }
 0x386   :  { %3892 = vmatprep.subr.bf16.mxu1 %v13629_v19 }
 0x388   :  { %3852 = vmatpush1.bf16.msra.mxu0 %v13633_v21 }
 0x389   :  { %3893 = vmatpush1.bf16.msra.mxu1 %v13635_v61  ;;  %4112 = vmatprep.subr.bf16.mxu0 %v13240_v42 }
 0x38a   :  { %4153 = vmatprep.subr.bf16.mxu1 %v13242_v1 }
 0x413   :  { %v3261_v9 = vpop.f32.mrb[4].mxu0  ;;  %v3302_v15 = vpop.f32.mrb[4].mxu1 }
 0x414   :  { %v11018_v53 = vadd.f32 %v3261_v9, %v13647_v33  ;;  %v3263_v21 = vpop.f32.mrb[5].mxu0  ;;  %v13654_v61 = vpop.f32.mrb[5].mxu1  ;;  %v11020_v51 = vadd.f32 %v3302_v15, %v13659_v31  ;;  %v3338_v15 = vld [vmem:[#allocation2 + $0x40] sm:$0xff] }
 0x415   :  { %v11019_v42 = vadd.f32 %v3263_v21, %v13651_v7  ;;  %v3265_v1 = vpop.f32.mrb[6].mxu0  ;;  %v3306_v19 = vpop.f32.mrb[6].mxu1  ;;  %v15087_v21 = vmov 5  }
 0x416   :  { %v10151_v5 = vmul.f32 -1.442695, %v11018_v53  ;;  %v3266_v20 = vpop.f32.mrb[7].mxu0  ;;  %v3307_v2 = vpop.f32.mrb[7].mxu1  ;;  %11153 = vset.pattern.permute.xlu0 %v15087_v21 }
 0x417   :  { %v10152_v32 = vmul.f32 -1.442695, %v11019_v42  ;;  %904 = vperm.xlu0 %11153, %v13249_v17  }
 0x418   :  { %11832 = vpow2.f32 %v10151_v5 }
 0x419   :  { %11834 = vpow2.f32 %v10152_v32 }
 0x41a   :  { %11836 = vtanh.f32 %v11020_v51  ;;  %v3339_v51 = vld [vmem:[#allocation2 + $0x48] sm:$0xff] }
 0x422   :  { %v11833_v9 = vpop.eup %11832 }
 0x423   :  { %v11835_v33 = vpop.eup %11834  ;;  %v3316_v12 = vadd.f32 1.0, %v11833_v9 }
 0x424   :  { %v3322_v22 = vadd.f32 1.0, %v11835_v33  ;;  %v11837_v2 = vpop.eup %11836 }
 0x425   :  { %11838 = vrcp.f32 %v3316_v12 }
 0x426   :  { %11840 = vrcp.f32 %v3322_v22 }
 0x42f   :  { %v11839_v32 = vpop.eup %11838 }
 0x430   :  { %v11841_v20 = vpop.eup %11840  ;;  %v3333_v5 = vmul.f32 %v11839_v32, %v11837_v2  ;;  %v3341_v2 = vld [vmem:[#allocation2 + $0x58] sm:$0xff] }
 0x431   :  { %v3332_v19 = vmul.f32 0.0, %v11841_v20  ;;  %v3340_v20 = vld [vmem:[#allocation2 + $0x50] sm:$0xff] }
 0x433   :  { %v13664_v53 = vadd.f32 %v3333_v5, %v3332_v19  ;;  %v3568_v42 = vpop.f32.mrb[16].mxu0  ;;  %v3609_v1 = vpop.f32.mrb[16].mxu1 }
 0x434   :  { %v3616_v9 = vadd.f32 %v3568_v42, %v3338_v15  ;;  %v3570_v33 = vpop.f32.mrb[17].mxu0  ;;  %v3611_v12 = vpop.f32.mrb[17].mxu1  ;;  %v3618_v19 = vadd.f32 %v3609_v1, %v3340_v20  ;;  %v15278_v20 = vld [vmem:[#allocation47_spill] sm:$0xff] }
 0x435   :  { %v3617_v31 = vadd.f32 %v3570_v33, %v3339_v51  ;;  %v3572_v7 = vpop.f32.mrb[18].mxu0  ;;  %v3613_v21 = vpop.f32.mrb[18].mxu1  ;;  %v3619_v32 = vadd.f32 %v3611_v12, %v3341_v2 }
 0x436   :  { %v10186_v22 = vmul.f32 -1.442695, %v3616_v9  ;;  %v3573_v25 = vpop.f32.mrb[19].mxu0  ;;  %v3614_v17 = vpop.f32.mrb[19].mxu1 }
 0x437   :  { %v10187_v56 = vmul.f32 -1.442695, %v3617_v31  ;;  %v10188_v5 = vmul.f32 -1.442695, %v3619_v32 }
 0x438   :  { %11842 = vpow2.f32 %v10186_v22 }
 0x439   :  { %11844 = vpow2.f32 %v10187_v56 }
 0x43a   :  { %11846 = vpow2.f32 %v10188_v5  ;;  %v15279_v5 = vld [vmem:[#allocation48_spill] sm:$0xff] }
 0x43b   :  { %11848 = vtanh.f32 %v3618_v19  ;;  %v15280_v19 = vld [vmem:[#allocation49_spill] sm:$0xff] }
 0x442   :  { %v11843_v41 = vpop.eup %11842 }
 0x443   :  { %v11845_v26 = vpop.eup %11844  ;;  %v3623_v15 = vadd.f32 1.0, %v11843_v41  ;;  %v13672_v41 = vrot.slane %v13643_v48, %v12743_v54  ;;  %v15276_v48 = vld [vmem:[#allocation46_spill] sm:$0xff] }
 0x444   :  { %v3629_v42 = vadd.f32 1.0, %v11845_v26  ;;  %v11847_v7 = vpop.eup %11846 }
 0x445   :  { %11850 = vrcp.f32 %v3623_v15  ;;  %v11849_v21 = vpop.eup %11848  ;;  %v3636_v51 = vadd.f32 1.0, %v11847_v7  ;;  %v11021_v26 = vadd.f32 %v13654_v61, %v13672_v41  ;;  %v15275_v61 = vld [vmem:[#allocation45_spill] sm:$0xff]  ;;  %v15281_v15 = vld [vmem:[#allocation50_spill] sm:$0xff]  ;;  %v15283_v7 = vld [vmem:[#allocation52_spill] sm:$0xff] }
 0x446   :  { %11852 = vrcp.f32 %v3629_v42  ;;  %v15282_v42 = vld [vmem:[#allocation51_spill] sm:$0xff] }
 0x447   :  { %11854 = vrcp.f32 %v3636_v51  ;;  %v10153_v12 = vmul.f32 -1.442695, %v11021_v26  ;;  %v15288_v51 = vld [vmem:[#allocation57_spill] sm:$0xff]  ;;  %v15290_v26 = vld [vmem:[#allocation59_spill] sm:$0xff] }
 0x44f   :  { %v11851_v25 = vpop.eup %11850 }
 0x450   :  { %v11853_v9 = vpop.eup %11852  ;;  %v3640_v31 = vmul.f32 %v11851_v25, %v11849_v21  ;;  %v15284_v21 = vld [vmem:[#allocation53_spill] sm:$0xff]  ;;  %v15285_v25 = vld [vmem:[#allocation54_spill] sm:$0xff] }
 0x451   :  { %v3639_v56 = vmul.f32 %v11853_v9, %v13258_v55  ;;  %v11855_v1 = vpop.eup %11854  ;;  %v15286_v9 = vld [vmem:[#allocation55_spill] sm:$0xff] }
 0x453   :  { %v13667_v33 = vadd.f32 %v3640_v31, %v3639_v56  ;;  %v15287_v31 = vld [vmem:[#allocation56_spill] sm:$0xff]  ;;  %v15289_v56 = vld [vmem:[#allocation58_spill] sm:$0xff] }
 0x455   :  { %11856 = vtanh.f32 %v13667_v33 }
 0x456   :  { %11858 = vpow2.f32 %v10153_v12  ;;  %v15292_v12 = vld [vmem:[#allocation61_spill] sm:$0xff] }
 0x457   :  { %11860 = vtanh.f32 %v13664_v53 }
 0x45f   :  { %v11857_v22 = vpop.eup %11856 }
 0x460   :  { %v3643_v17 = vmul.f32 %v11857_v22, %v11855_v1  ;;  %v11859_v55 = vpop.eup %11858  ;;  %v15291_v1 = vld [vmem:[#allocation60_spill] sm:$0xff]  ;;  %v15293_v22 = vld [vmem:[#allocation62_spill] sm:$0xff] }
 0x462   :  { %v13676_v2 = vpack.c.bf16 %v3643_v17, %v3643_v17  ;;  %v15294_v17 = vld [vmem:[#allocation63_spill] sm:$0xff] }
 0x464   :  { %3870 = vmatmul.mubr.bf16.vlgmr.msra.gmra.mrb[20].mxu0 %v13676_v2  ;;  %3911 = vmatmul.mubr.bf16.vlgmr.msra.gmra.mrb[20].mxu1 %v13676_v2 }
 0x465   :  { %4113 = vmatpush1.bf16.msra.mxu0 %v13261_v34  ;;  %4154 = vmatpush1.bf16.msra.mxu1 %v13263_v23  ;;  %v3329_v34 = vadd.f32 1.0, %v11859_v55  ;;  %v15263_v23 = vld [vmem:[#allocation33_spill] sm:$0xff]  ;;  %v15295_v55 = vld [vmem:[#allocation64_spill] sm:$0xff] }
 0x466   :  { %4114 = vmatprep.subr.bf16.mxu0 %v13267_v27  ;;  %4155 = vmatprep.subr.bf16.mxu1 %v13269_v29  ;;  %v15264_v27 = vld [vmem:[#allocation34_spill] sm:$0xff]  ;;  %v15265_v29 = vld [vmem:[#allocation35_spill] sm:$0xff] }
 0x467   :  { %4144 = vmatprep.mubr.bf16.mxu0 %v15245_v24  ;;  %4185 = vmatprep.mubr.bf16.mxu1 %v15245_v24  ;;  %11862 = vrcp.f32 %v3329_v34  ;;  %v15296_v34 = vld [vmem:[#allocation65_spill] sm:$0xff] }
 0x469   :  { %4115 = vmatpush1.bf16.msra.mxu0 %v13275_v8  ;;  %4156 = vmatpush1.bf16.msra.mxu1 %v13277_v36  ;;  %v15266_v8 = vld [vmem:[#allocation36_spill] sm:$0xff]  ;;  %v15267_v36 = vld [vmem:[#allocation37_spill] sm:$0xff] }
 0x46a   :  { %4116 = vmatprep.subr.bf16.mxu0 %v13281_v11  ;;  %4157 = vmatprep.subr.bf16.mxu1 %v13283_v35  ;;  %v15268_v11 = vld [vmem:[#allocation38_spill] sm:$0xff]  ;;  %v15269_v35 = vld [vmem:[#allocation39_spill] sm:$0xff] }
 0x46d   :  { %4117 = vmatpush1.bf16.msra.mxu0 %v13289_v37  ;;  %4158 = vmatpush1.bf16.msra.mxu1 %v13291_v30  ;;  %v15270_v37 = vld [vmem:[#allocation40_spill] sm:$0xff]  ;;  %v11861_v30 = vpop.eup %11860 }
 0x46e   :  { %4118 = vmatprep.subr.bf16.mxu0 %v13295_v45  ;;  %4159 = vmatprep.subr.bf16.mxu1 %v13297_v49  ;;  %v15271_v49 = vld [vmem:[#allocation41_spill] sm:$0xff] }
 0x471   :  { %4119 = vmatpush1.bf16.msra.mxu0 %v13301_v59  ;;  %4160 = vmatpush1.bf16.msra.mxu1 %v13303_v60  ;;  %v11863_v45 = vpop.eup %11862  ;;  %v15272_v59 = vld [vmem:[#allocation42_spill] sm:$0xff]  ;;  %v15273_v60 = vld [vmem:[#allocation43_spill] sm:$0xff] }
 0x472   :  { %4120 = vmatprep.subr.bf16.mxu0 %v13307_v62  ;;  %4161 = vmatprep.subr.bf16.mxu1 %v13309_v40  ;;  %v15274_v62 = vld [vmem:[#allocation44_spill] sm:$0xff]  ;;  %v3336_v40 = vmul.f32 %v11863_v45, %v11861_v30  ;;  %v15302_v30 = vld [vmem:[#allocation71_spill] sm:$0xff] }
 0x473   :  { %v15303_v45 = vld [vmem:[#allocation72_spill] sm:$0xff] }
 0x474   :  { %v13713_v32 = vpack.c.bf16 %v3336_v40, %v3336_v40 }
 0x475   :  { %4121 = vmatpush1.bf16.msra.mxu0 %v15263_v23  ;;  %4162 = vmatpush1.bf16.msra.mxu1 %v15264_v27  ;;  %v15297_v23 = vld [vmem:[#allocation66_spill] sm:$0xff]  ;;  %v15298_v27 = vld [vmem:[#allocation67_spill] sm:$0xff] }
 0x476   :  { %4122 = vmatprep.subr.bf16.mxu0 %v15265_v29  ;;  %4163 = vmatprep.subr.bf16.mxu1 %v15266_v8  ;;  %15277 = vst [vmem:[#allocation33_spill] sm:$0xff] %v13713_v32  ;;  %v15299_v29 = vld [vmem:[#allocation68_spill] sm:$0xff]  ;;  %v841_v8 = vpop.permute.xlu1 %840 }
 0x479   :  { %4123 = vmatpush1.bf16.msra.mxu0 %v15267_v36  ;;  %4164 = vmatpush1.bf16.msra.mxu1 %v15268_v11  ;;  %v837_v36 = vld [vmem:[#allocation7] ss:$4 sm:$0xf]  ;;  %v868_v11 = vld [vmem:[#allocation7 + $0x1] ss:$4 sm:$0xf] }
 0x47a   :  { %4124 = vmatprep.subr.bf16.mxu0 %v15269_v35  ;;  %4165 = vmatprep.subr.bf16.mxu1 %v15270_v37  ;;  %v15300_v35 = vld [vmem:[#allocation69_spill] sm:$0xff]  ;;  %v15301_v37 = vld [vmem:[#allocation70_spill] sm:$0xff]  ;;  %v855_v40 = vrot.slane %v837_v36, %v12739_v52 }
 0x47d   :  { %4125 = vmatpush1.bf16.msra.mxu0 %v15271_v49  ;;  %4166 = vmatpush1.bf16.msra.mxu1 %v15272_v59  ;;  %v847_v49 = vrot.slane %v837_v36, %v12730_v46  ;;  %v851_v59 = vrot.slane %v837_v36, %v12732_v47 }
 0x47e   :  { %4126 = vmatprep.subr.bf16.mxu0 %v15273_v60  ;;  %4167 = vmatprep.subr.bf16.mxu1 %v15274_v62  ;;  %v877_v60 = vrot.slane %v868_v11, %v12730_v46  ;;  %v881_v62 = vrot.slane %v868_v11, %v12732_v47 }
 0x481   :  { %4127 = vmatpush1.bf16.msra.mxu0 %v15275_v61  ;;  %4168 = vmatpush1.bf16.msra.mxu1 %v15276_v48  ;;  %v859_v61 = vrot.slane %v837_v36, %v12743_v54  ;;  %v885_v48 = vrot.slane %v868_v11, %v12739_v52 }
 0x482   :  { %4419 = vmatprep.subr.bf16.mxu0 %v15278_v20  ;;  %4460 = vmatprep.subr.bf16.mxu1 %v15279_v5  ;;  %v889_v20 = vrot.slane %v868_v11, %v12743_v54  ;;  %v871_v5 = vpop.permute.xlu1 %870 }
 0x484   :  { %4145 = vmatmul.mubr.bf16.vlgmr.msra.gmra.mrb[12].mxu0 %v13713_v32  ;;  %4186 = vmatmul.mubr.bf16.vlgmr.msra.gmra.mrb[12].mxu1 %v13713_v32  ;;  %v9855_v32 = vld [vmem:[%s15006_s3 + $0x5] ss:$8 sm:$0xf] }
 0x485   :  { %4420 = vmatpush1.bf16.msra.mxu0 %v15280_v19  ;;  %4461 = vmatpush1.bf16.msra.mxu1 %v15281_v15  ;;  %v15304_v19 = vld [vmem:[#allocation73_spill] sm:$0xff]  ;;  %v15305_v15 = vld [vmem:[#allocation74_spill] sm:$0xff] }
 0x486   :  { %4421 = vmatprep.subr.bf16.mxu0 %v15282_v42  ;;  %4462 = vmatprep.subr.bf16.mxu1 %v15283_v7  ;;  %v15306_v42 = vld [vmem:[#allocation75_spill] sm:$0xff]  ;;  %v15307_v7 = vld [vmem:[#allocation76_spill] sm:$0xff] }
 0x487   :  { %4451 = vmatprep.mubr.bf16.mxu0 %v15245_v24  ;;  %4492 = vmatprep.mubr.bf16.mxu1 %v15245_v24 }
 0x489   :  { %4422 = vmatpush1.bf16.msra.mxu0 %v15284_v21  ;;  %4463 = vmatpush1.bf16.msra.mxu1 %v15285_v25  ;;  %v902_v21 = vld [vmem:[#allocation7 + $0x2] ss:$4 sm:$0xf]  ;;  %v864_v25 = vmul.f32 %v847_v49, %v841_v8 }
 0x48a   :  { %4423 = vmatprep.subr.bf16.mxu0 %v15286_v9  ;;  %4464 = vmatprep.subr.bf16.mxu1 %v15287_v31  ;;  %v865_v9 = vmul.f32 %v851_v59, %v841_v8  ;;  %v894_v31 = vmul.f32 %v877_v60, %v871_v5  ;;  %v1908_v60 = vld [vmem:[%s1907_s17] ss:$8 sm:$0xf]  ;;  %s10907_s17 = sshll.u32 %s1958_s14, 5  ;;  %s2028_s14 = sshra.s32 %s14031_s0, 3 }
 0x48b   :  { %s14033_s16 = sadd.s32 %s10907_s17, %s1961_s26  ;;  %s1983_s26 = sand.u32 7, %s14026_s13 }
 0x48c   :  { %v898_v36 = vadd.f32 %v894_v31, %v864_v25  ;;  %s1965_s19 = scalar_lea.vmem [#allocation10], %s14033_s16  ;;  %s10909_s17 = sshll.u32 %s1980_s20, 5 }
 0x48d   :  { %4424 = vmatpush1.bf16.msra.mxu0 %v15288_v51  ;;  %4465 = vmatpush1.bf16.msra.mxu1 %v15289_v56  ;;  %v895_v51 = vmul.f32 %v881_v62, %v871_v5  ;;  %v866_v56 = vmul.f32 %v855_v40, %v841_v8  ;;  %v1918_v40 = vld [vmem:[%s1917_s25] ss:$8 sm:$0xf]  ;;  %s1996_s25 = sshra.s32 %s13994_s24, 3  ;;  %s2031_s13 = sand.u32 7, %s14031_s0 }
 0x48e   :  { %4425 = vmatprep.subr.bf16.mxu0 %v15290_v26  ;;  %4466 = vmatprep.subr.bf16.mxu1 %v15291_v1  ;;  %v867_v26 = vmul.f32 %v859_v61, %v841_v8  ;;  %v896_v1 = vmul.f32 %v885_v48, %v871_v5  ;;  %v13804_v8 = vld [vmem:[#allocation13] sm:$0xf]  ;;  %s10910_s15 = sshll.u32 %s1996_s25, 5  ;;  %s10913_s16 = sshll.u32 %s2028_s14, 5 }
 0x48f   :  { %v899_v11 = vadd.f32 %v895_v51, %v865_v9  ;;  %v968_v59 = vrot.slane %v13804_v8, %v12730_v46  ;;  %s1986_s0 = sadd.s32 %s10909_s17, %s1983_s26  ;;  %s14213_s20 = sld [smem:[#allocation4 + $0x302]] }
 0x490   :  { %s14230_s14 = sld [smem:[#allocation4 + $0x701]]  ;;  %s14236_s26 = sld [smem:[#allocation4 + $0x702]] }
 0x491   :  { %4426 = vmatpush1.bf16.msra.mxu0 %v15292_v12  ;;  %4467 = vmatpush1.bf16.msra.mxu1 %v15293_v22  ;;  %v897_v12 = vmul.f32 %v889_v20, %v871_v5  ;;  %v13793_v22 = vld [vmem:[%s15006_s3 + $0x4] ss:$8 sm:$0xf] }
 0x492   :  { %4427 = vmatprep.subr.bf16.mxu0 %v15294_v17  ;;  %4468 = vmatprep.subr.bf16.mxu1 %v15295_v55  ;;  %v15308_v17 = vld [vmem:[#allocation77_spill] sm:$0xff]  ;;  %v15309_v55 = vld [vmem:[#allocation78_spill] sm:$0xff]  ;;  %v950_v49 = vrot.slane %v13793_v22, %v12739_v52 }
 0x495   :  { %4428 = vmatpush1.bf16.msra.mxu0 %v15296_v34  ;;  %4469 = vmatpush1.bf16.msra.mxu1 %v15297_v23  ;;  %v911_v34 = vrot.slane %v902_v21, %v12730_v46  ;;  %v915_v23 = vrot.slane %v902_v21, %v12732_v47  ;;  %s2068_s22 = sand.u32 7, %s14213_s20 }
 0x496   :  { %4429 = vmatprep.subr.bf16.mxu0 %v15298_v27  ;;  %4470 = vmatprep.subr.bf16.mxu1 %v15299_v29  ;;  %v919_v27 = vrot.slane %v902_v21, %v12739_v52  ;;  %v923_v29 = vrot.slane %v902_v21, %v12743_v54  ;;  %v905_v62 = vpop.permute.xlu0 %904 }
 0x497   :  { %v928_v61 = vmul.f32 %v911_v34, %v905_v62  ;;  %v929_v48 = vmul.f32 %v915_v23, %v905_v62  ;;  %v15310_v23 = vld [vmem:[#allocation79_spill] sm:$0xff] }
 0x498   :  { %v930_v20 = vmul.f32 %v919_v27, %v905_v62  ;;  %v931_v5 = vmul.f32 %v923_v29, %v905_v62  ;;  %v15312_v29 = vld [vmem:[#allocation81_spill] sm:$0xff] }
 0x499   :  { %4430 = vmatpush1.bf16.msra.mxu0 %v15300_v35  ;;  %4471 = vmatpush1.bf16.msra.mxu1 %v15301_v37  ;;  %v942_v35 = vrot.slane %v13793_v22, %v12730_v46  ;;  %v900_v37 = vadd.f32 %v896_v1, %v866_v56  ;;  %v1881_v56 = vld [vmem:[%s1880_s21] ss:$8 sm:$0xf]  ;;  %s1999_s21 = sand.u32 7, %s13994_s24 }
 0x49a   :  { %4431 = vmatprep.subr.bf16.mxu0 %v15302_v30  ;;  %4472 = vmatprep.subr.bf16.mxu1 %v15303_v45  ;;  %v901_v30 = vadd.f32 %v897_v12, %v867_v26  ;;  %v946_v45 = vrot.slane %v13793_v22, %v12732_v47  ;;  %v1929_v26 = vld [vmem:[%s1928_s9] ss:$8 sm:$0xf]  ;;  %s2009_s9 = sand.u32 7, %s13998_s10  ;;  %s14047_s28 = sadd.s32 %s10910_s15, %s1999_s21 }
 0x49b   :  { %s14060_s2 = sadd.s32 %s10911_s5, %s2009_s9  ;;  %s2003_s25 = scalar_lea.vmem [#allocation8], %s14047_s28 }
 0x49c   :  { %s2034_s28 = sadd.s32 %s10913_s16, %s2031_s13  ;;  %s2065_s13 = sshra.s32 %s14213_s20, 3 }
 0x49d   :  { %4432 = vmatpush1.bf16.msra.mxu0 %v15304_v19  ;;  %4473 = vmatpush1.bf16.msra.mxu1 %v15305_v15  ;;  %v972_v19 = vrot.slane %v13804_v8, %v12732_v47  ;;  %v933_v15 = vadd.f32 %v929_v48, %v899_v11  ;;  %v15319_v11 = vld [vmem:[#allocation87_spill] sm:$0xff]  ;;  %v15326_v48 = vld [vmem:[#allocation94_spill] sm:$0xff] }
 0x49e   :  { %4433 = vmatprep.subr.bf16.mxu0 %v15306_v42  ;;  %4474 = vmatprep.subr.bf16.mxu1 %v15307_v7  ;;  %v934_v42 = vadd.f32 %v930_v20, %v900_v37  ;;  %v935_v7 = vadd.f32 %v931_v5, %v901_v30  ;;  %v15321_v37 = vld [vmem:[#allocation89_spill] sm:$0xff]  ;;  %v15322_v30 = vld [vmem:[#allocation90_spill] sm:$0xff] }
 0x49f   :  { %v960_v9 = vadd.f32 %v946_v45, %v933_v15  ;;  %v15323_v45 = vld [vmem:[#allocation91_spill] sm:$0xff] }
 0x4a0   :  { %v961_v31 = vadd.f32 %v950_v49, %v934_v42  ;;  %v13891_v49 = vld [vmem:[#allocation17 + $0xc] ss:$16 sps:$4 sm:$0xff]  }
 0x4a1   :  { %4434 = vmatpush1.bf16.msra.mxu0 %v15308_v17  ;;  %4475 = vmatpush1.bf16.msra.mxu1 %v15309_v55  ;;  %v986_v12 = vadd.f32 %v972_v19, %v960_v9  ;;  %v15327_v42 = vld [vmem:[#allocation95_spill] sm:$0xff] }
 0x4a2   :  { %4722 = vmatprep.subr.bf16.mxu0 %v13545_v63  ;;  %4763 = vmatprep.subr.bf16.mxu1 %v13547_v50  ;;  %v1860_v63 = vld [vmem:[%s1859_s12] ss:$8 sm:$0xf]  ;;  %s14012_s12 = sld [smem:[#allocation4 + $0x282]] }
 0x4a3   :  { %v1870_v50 = vld [vmem:[%s1869_s4] ss:$8 sm:$0xf]  ;;  %990 = vst [vmem:[#allocation2 + $0x88] sm:$0xff] %v986_v12  ;;  %s14014_s4 = sld [smem:[#allocation4 + $0x682]] }
 0x4a4   :  { %4452 = vmatmul.mubr.bf16.vlgmr.msra.gmra.mrb[24].mxu0 %v13676_v2  ;;  %4493 = vmatmul.mubr.bf16.vlgmr.msra.gmra.mrb[24].mxu1 %v13676_v2  ;;  %v954_v2 = vrot.slane %v13793_v22, %v12743_v54  ;;  %v1871_v21 = vadd.f32 %v1870_v50, %v1860_v63  ;;  %v15324_v63 = vld [vmem:[#allocation92_spill] sm:$0xff] }
 0x4a5   :  { %4723 = vmatpush1.bf16.msra.mxu0 %v13549_v43  ;;  %4764 = vmatpush1.bf16.msra.mxu1 %v13551_v58  ;;  %v976_v43 = vrot.slane %v13804_v8, %v12739_v52  ;;  %v980_v58 = vrot.slane %v13804_v8, %v12743_v54  ;;  %v15313_v8 = vld [vmem:[#allocation82_spill] sm:$0xff] }
 0x4a6   :  { %4724 = vmatprep.subr.bf16.mxu0 %v13557_v38  ;;  %4765 = vmatprep.subr.bf16.mxu1 %v13559_v39  ;;  %v932_v38 = vadd.f32 %v928_v61, %v898_v36  ;;  %v1919_v39 = vadd.f32 %v1918_v40, %v1908_v60  ;;  %v962_v51 = vadd.f32 %v954_v2, %v935_v7  ;;  %v15318_v36 = vld [vmem:[#allocation86_spill] sm:$0xff]  ;;  %v15325_v60 = vld [vmem:[#allocation93_spill] sm:$0xff] }
 0x4a7   :  { %4754 = vmatprep.mubr.bf16.mxu0 %v15245_v24  ;;  %4795 = vmatprep.mubr.bf16.mxu1 %v15245_v24  ;;  %v987_v22 = vadd.f32 %v976_v43, %v961_v31  ;;  %v13889_v50 = vld [vmem:[#allocation17 + $0x4] ss:$16 sps:$4 sm:$0xff]   ;;  %v993_v31 = vld [vmem:[%s15004_s1] sm:$0xff] }
 0x4a8   :  { %v959_v25 = vadd.f32 %v942_v35, %v932_v38  ;;  %v988_v17 = vadd.f32 %v980_v58, %v962_v51  ;;  %v15320_v35 = vld [vmem:[#allocation88_spill] sm:$0xff]  ;;  %997 = vperm.xlu1 %11152, %v993_v31   ;;  %v12450_v51 = vmov 6   ;;  %s1969_s7 = sshra.s32 %s14012_s12, 3 }
 0x4a9   :  { %4725 = vmatpush1.bf16.msra.mxu0 %v13561_v0  ;;  %4766 = vmatpush1.bf16.msra.mxu1 %v13563_v18  ;;  %v1882_v0 = vadd.f32 %v1881_v56, %v1871_v21  ;;  %v1930_v18 = vadd.f32 %v1929_v26, %v1919_v39  ;;  %991 = vst [vmem:[#allocation2 + $0x90] sm:$0xff] %v987_v22  ;;  %v15328_v56 = vmov 5   ;;  %v15329_v26 = vmov 7   ;;  %s10908_s18 = sshll.u32 %s1969_s7, 5  ;;  %s2020_s10 = sand.u32 7, %s14014_s4 }
 0x4aa   :  { %4726 = vmatprep.subr.bf16.mxu0 %v13569_v10  ;;  %4767 = vmatprep.subr.bf16.mxu1 %v13571_v28  ;;  %v985_v1 = vadd.f32 %v968_v59, %v959_v25  ;;  %992 = vst [vmem:[#allocation2 + $0x98] sm:$0xff] %v988_v17  ;;  %v1892_v10 = vld [vmem:[%s1891_s23] ss:$8 sm:$0xf]  ;;  %s1972_s23 = sand.u32 7, %s14012_s12  ;;  %s2013_s12 = scalar_lea.vmem [#allocation10], %s14060_s2 }
 0x4ab   :  { %v1940_v28 = vld [vmem:[%s1939_s29] ss:$8 sm:$0xf]  ;;  %11155 = vset.pattern.permute.xlu0 %v12450_v51  ;;  %s2017_s29 = sshra.s32 %s14014_s4, 3  ;;  %s14073_s4 = sadd.s32 %s10908_s18, %s1972_s23 }
 0x4ac   :  { %989 = vst [vmem:[#allocation2 + $0x80] sm:$0xff] %v985_v1  ;;  %1061 = vperm.xlu0 %11155, %v993_v31   ;;  %11154 = vset.pattern.permute.xlu1 %v15328_v56  ;;  %v11409_v56 = vld [vmem:[#allocation17 + $0x28] ss:$16 sps:$4 sm:$0xff]   ;;  %s10912_s11 = sshll.u32 %s2017_s29, 5  ;;  %s1976_s15 = scalar_lea.vmem %s15009_s6, %s14073_s4 }
 0x4ad   :  { %4727 = vmatpush1.bf16.msra.mxu0 %v13573_v16  ;;  %4768 = vmatpush1.bf16.msra.mxu1 %v13575_v57  ;;  %v1893_v16 = vadd.f32 %v1892_v10, %v1882_v0  ;;  %v1941_v57 = vadd.f32 %v1940_v28, %v1930_v18  ;;  %v4223_v10 = vld [vmem:[#allocation2 + $0x60] sm:$0xff]  ;;  %s2023_s27 = sadd.s32 %s10912_s11, %s2020_s10  ;;  %s1987_s23 = scalar_lea.vmem [#allocation11], %s1986_s0 }
 0x4ae   :  { %4728 = vmatprep.subr.bf16.mxu0 %v13581_v14  ;;  %4769 = vmatprep.subr.bf16.mxu1 %v13583_v13  ;;  %v15311_v14 = vld [vmem:[#allocation80_spill] sm:$0xff]  ;;  %s2024_s5 = scalar_lea.vmem %s15009_s6, %s2023_s27  ;;  %s2035_s29 = scalar_lea.vmem [#allocation11], %s2034_s28 }
 0x4af   :  { %1027 = vperm.xlu1 %11154, %v993_v31   ;;  %s14205_s18 = sld [smem:[#allocation4 + $0x300]]  ;;  %s14211_s2 = sld [smem:[#allocation4 + $0x301]] }
 0x4b0   :  { %11157 = vset.pattern.permute.xlu0 %v15329_v26  ;;  %s14224_s10 = sld [smem:[#allocation4 + $0x303]]  ;;  %s14228_s11 = sld [smem:[#allocation4 + $0x700]] }
 0x4b1   :  { %4729 = vmatpush1.bf16.msra.mxu0 %v13585_v3  ;;  %4770 = vmatpush1.bf16.msra.mxu1 %v13587_v4  ;;  %v15315_v4 = vld [vmem:[#allocation83_spill] sm:$0xff] }
 0x4b2   :  { %4730 = vmatprep.subr.bf16.mxu0 %v13593_v6  ;;  %4771 = vmatprep.subr.bf16.mxu1 %v13595_v44  ;;  %v15316_v6 = vld [vmem:[#allocation84_spill] sm:$0xff]  ;;  %v15317_v44 = vld [vmem:[#allocation85_spill] sm:$0xff] }
 0x4b3   :  { %v1895_v55 = vld [vmem:[#allocation2 + $0x80] ss:$8 sm:$0xf]  ;;  %v1943_v34 = vld [vmem:[#allocation2 + $0x81] ss:$8 sm:$0xf]  ;;  %1218 = vperm.xlu0 %11157, %v993_v31   ;;  %1154 = vperm.xlu1 %11154, %v993_v31  }
 0x4b4   :  { %v1896_v13 = vadd.f32 %v1895_v55, %v1893_v16  ;;  %v1944_v27 = vadd.f32 %v1943_v34, %v1941_v57  ;;  %v4224_v55 = vld [vmem:[#allocation2 + $0x68] sm:$0xff]  ;;  %v14691_v3 = vld [vmem:[#allocation16 + $0x2c] ss:$16 sps:$4 sm:$0xff]  }
 0x4b5   :  { %4731 = vmatpush1.bf16.msra.mxu0 %v15310_v23  ;;  %4772 = vmatpush1.bf16.msra.mxu1 %v15311_v14  ;;  %s2057_s27 = sand.u32 7, %s14211_s2 }
 0x4b6   :  { %4732 = vmatprep.subr.bf16.mxu0 %v15312_v29  ;;  %4773 = vmatprep.subr.bf16.mxu1 %v15313_v8  ;;  %1897 = vst.msk [vmem:[#allocation2 + $0x80] ss:$8 sm:$0xf] %vm12837_vm0, %v1896_v13  ;;  %1945 = vst.msk [vmem:[#allocation2 + $0x81] ss:$8 sm:$0xf] %vm12837_vm0, %v1944_v27 }
 0x4b7   :  { %11159 = vset.pattern.permute.xlu0 %v15245_v24  ;;  %11156 = vset.pattern.permute.xlu1 %v12450_v51  ;;  %v11411_v51 = vld [vmem:[#allocation17 + $0x2c] ss:$16 sps:$4 sm:$0xff]   ;;  %s2092_s8 = sshra.s32 %s14228_s11, 3  ;;  %s2095_s24 = sand.u32 7, %s14228_s11 }
 0x4b8   :  { %1184 = vperm.xlu1 %11156, %v993_v31   ;;  %v11408_v31 = vld [vmem:[#allocation17 + $0x24] ss:$16 sps:$4 sm:$0xff]  }
 0x4b9   :  { %4733 = vmatpush1.bf16.msra.mxu0 %v15315_v4  ;;  %4774 = vmatpush1.bf16.msra.mxu1 %v15316_v6 }
 0x4ba   :  { %4734 = vmatprep.subr.bf16.mxu0 %v15317_v44  ;;  %4775 = vmatprep.subr.bf16.mxu1 %v15318_v36  ;;  %v4225_v36 = vld [vmem:[#allocation2 + $0x70] sm:$0xff] }
 0x4bd   :  { %4735 = vmatpush1.bf16.msra.mxu0 %v15319_v11  ;;  %4776 = vmatpush1.bf16.msra.mxu1 %v15320_v35 }
 0x4be   :  { %4736 = vmatprep.subr.bf16.mxu0 %v15321_v37  ;;  %4777 = vmatprep.subr.bf16.mxu1 %v15322_v30 }
 0x4c1   :  { %4737 = vmatpush1.bf16.msra.mxu0 %v15323_v45  ;;  %4778 = vmatpush1.bf16.msra.mxu1 %v15324_v63 }
 0x4c2   :  { %4997 = vmatprep.subr.bf16.mxu0 %v13889_v50  ;;  %5038 = vmatprep.subr.bf16.mxu1 %v13891_v49 }
 0x557   :  { %v4146_v2 = vpop.f32.mrb[12].mxu0  ;;  %v4187_v59 = vpop.f32.mrb[12].mxu1 }
 0x558   :  { %v11022_v62 = vadd.f32 %v4146_v2, %v15325_v60  ;;  %v4148_v40 = vpop.f32.mrb[13].mxu0  ;;  %v13896_v61 = vpop.f32.mrb[13].mxu1  ;;  %v11024_v7 = vadd.f32 %v4187_v59, %v15327_v42 }
 0x559   :  { %v11023_v20 = vadd.f32 %v4148_v40, %v15326_v48  ;;  %v4150_v5 = vpop.f32.mrb[14].mxu0  ;;  %v4191_v19 = vpop.f32.mrb[14].mxu1 }
 0x55a   :  { %v10253_v43 = vmul.f32 -1.442695, %v11022_v62  ;;  %v4151_v58 = vpop.f32.mrb[15].mxu0  ;;  %v4192_v38 = vpop.f32.mrb[15].mxu1 }
 0x55b   :  { %v10254_v15 = vmul.f32 -1.442695, %v11023_v20  ;;  %v11025_v58 = vadd.f32 %v13896_v61, %v13672_v41  ;;  %v11414_v61 = vld [vmem:[#allocation17 + $0x44] ss:$16 sps:$4 sm:$0xff]  }
 0x55c   :  { %11864 = vpow2.f32 %v10253_v43 }
 0x55d   :  { %11866 = vpow2.f32 %v10254_v15  ;;  %v10255_v15 = vmul.f32 -1.442695, %v11025_v58  ;;  %v13930_v58 = vld [vmem:[#allocation14 + $0x20] ss:$16 sps:$4 sm:$0xff]  }
 0x55e   :  { %11868 = vtanh.f32 %v11024_v7 }
 0x566   :  { %v11865_v21 = vpop.eup %11864 }
 0x567   :  { %v11867_v39 = vpop.eup %11866  ;;  %v4201_v25 = vadd.f32 1.0, %v11865_v21 }
 0x568   :  { %v4207_v9 = vadd.f32 1.0, %v11867_v39  ;;  %v11869_v1 = vpop.eup %11868  ;;  %v11400_v39 = vld [vmem:[#allocation17] ss:$16 sps:$4 sm:$0xff]  }
 0x569   :  { %11870 = vrcp.f32 %v4201_v25  ;;  %v11403_v25 = vld [vmem:[#allocation17 + $0x8] ss:$16 sps:$4 sm:$0xff]  }
 0x56a   :  { %11872 = vrcp.f32 %v4207_v9 }
 0x573   :  { %v11871_v12 = vpop.eup %11870 }
 0x574   :  { %v11873_v22 = vpop.eup %11872  ;;  %v4218_v17 = vmul.f32 %v11871_v12, %v11869_v1  ;;  %v11417_v1 = vld [vmem:[#allocation17 + $0x4c] ss:$16 sps:$4 sm:$0xff]   ;;  %v11412_v12 = vld [vmem:[#allocation17 + $0x40] ss:$16 sps:$4 sm:$0xff]  }
 0x575   :  { %v4217_v0 = vmul.f32 %v11873_v22, %v13664_v53  ;;  %v4226_v53 = vld [vmem:[#allocation2 + $0x78] sm:$0xff] }
 0x576   :  { %v11415_v22 = vld [vmem:[#allocation17 + $0x48] ss:$16 sps:$4 sm:$0xff]  }
 0x577   :  { %v13907_v18 = vadd.f32 %v4218_v17, %v4217_v0  ;;  %v4453_v28 = vpop.f32.mrb[24].mxu0  ;;  %v4494_v16 = vpop.f32.mrb[24].mxu1  ;;  %v11420_v17 = vld [vmem:[#allocation17 + $0x64] ss:$16 sps:$4 sm:$0xff]   ;;  %v11423_v0 = vld [vmem:[#allocation17 + $0x6c] ss:$16 sps:$4 sm:$0xff]  }
 0x578   :  { %v4501_v57 = vadd.f32 %v4453_v28, %v4223_v10  ;;  %v4455_v34 = vpop.f32.mrb[25].mxu0  ;;  %v4496_v23 = vpop.f32.mrb[25].mxu1  ;;  %v4503_v35 = vadd.f32 %v4494_v16, %v4225_v36  ;;  %v11418_v28 = vld [vmem:[#allocation17 + $0x60] ss:$16 sps:$4 sm:$0xff]   ;;  %v11421_v16 = vld [vmem:[#allocation17 + $0x68] ss:$16 sps:$4 sm:$0xff]  }
 0x579   :  { %v4502_v14 = vadd.f32 %v4455_v34, %v4224_v55  ;;  %v4457_v13 = vpop.f32.mrb[26].mxu0  ;;  %v4498_v27 = vpop.f32.mrb[26].mxu1  ;;  %v4504_v44 = vadd.f32 %v4496_v23, %v4226_v53  ;;  %v11429_v55 = vld [vmem:[#allocation17 + $0x8c] ss:$16 sps:$4 sm:$0xff]   ;;  %v11424_v23 = vld [vmem:[#allocation17 + $0x80] ss:$16 sps:$4 sm:$0xff]  }
 0x57a   :  { %v10288_v29 = vmul.f32 -1.442695, %v4501_v57  ;;  %v4458_v8 = vpop.f32.mrb[27].mxu0  ;;  %v4499_v4 = vpop.f32.mrb[27].mxu1  ;;  %v11426_v57 = vld [vmem:[#allocation17 + $0x84] ss:$16 sps:$4 sm:$0xff]  }
 0x57b   :  { %v10289_v6 = vmul.f32 -1.442695, %v4502_v14  ;;  %v10290_v11 = vmul.f32 -1.442695, %v4504_v44  ;;  %v11427_v14 = vld [vmem:[#allocation17 + $0x88] ss:$16 sps:$4 sm:$0xff]  }
 0x57c   :  { %11874 = vpow2.f32 %v10288_v29  ;;  %v11432_v13 = vld [vmem:[#allocation17 + $0xa4] ss:$16 sps:$4 sm:$0xff]   ;;  %v11435_v27 = vld [vmem:[#allocation17 + $0xac] ss:$16 sps:$4 sm:$0xff]   ;;  %v11430_v29 = vld [vmem:[#allocation17 + $0xa0] ss:$16 sps:$4 sm:$0xff]  }
 0x57d   :  { %11876 = vpow2.f32 %v10289_v6  ;;  %v11433_v8 = vld [vmem:[#allocation17 + $0xa8] ss:$16 sps:$4 sm:$0xff]   ;;  %v11438_v4 = vld [vmem:[#allocation17 + $0xc4] ss:$16 sps:$4 sm:$0xff]   ;;  %v11441_v6 = vld [vmem:[#allocation17 + $0xcc] ss:$16 sps:$4 sm:$0xff]  }
 0x57e   :  { %11878 = vpow2.f32 %v10290_v11  ;;  %v11436_v53 = vld [vmem:[#allocation17 + $0xc0] ss:$16 sps:$4 sm:$0xff]   ;;  %v11439_v44 = vld [vmem:[#allocation17 + $0xc8] ss:$16 sps:$4 sm:$0xff]   ;;  %v11444_v36 = vld [vmem:[#allocation17 + $0xe4] ss:$16 sps:$4 sm:$0xff]  }
 0x57f   :  { %11880 = vtanh.f32 %v4503_v35  ;;  %v11447_v11 = vld [vmem:[#allocation17 + $0xec] ss:$16 sps:$4 sm:$0xff]  }
 0x586   :  { %v11875_v37 = vpop.eup %11874 }
 0x587   :  { %v11877_v30 = vpop.eup %11876  ;;  %v4508_v45 = vadd.f32 1.0, %v11875_v37 }
 0x588   :  { %v4514_v63 = vadd.f32 1.0, %v11877_v30  ;;  %v11879_v2 = vpop.eup %11878  ;;  %v11442_v30 = vld [vmem:[#allocation17 + $0xe0] ss:$16 sps:$4 sm:$0xff]  }
 0x589   :  { %11882 = vrcp.f32 %v4508_v45  ;;  %v11881_v59 = vpop.eup %11880  ;;  %v4521_v5 = vadd.f32 1.0, %v11879_v2  ;;  %v11445_v45 = vld [vmem:[#allocation17 + $0xe8] ss:$16 sps:$4 sm:$0xff]   ;;  %v11450_v2 = vld [vmem:[#allocation14 + $0x4] ss:$16 sps:$4 sm:$0xff]  }
 0x58a   :  { %11884 = vrcp.f32 %v4514_v63 }
 0x58b   :  { %11886 = vrcp.f32 %v4521_v5  ;;  %v13924_v5 = vld [vmem:[#allocation14 + $0x24] ss:$16 sps:$4 sm:$0xff]  }
 0x593   :  { %v11883_v62 = vpop.eup %11882 }
 0x594   :  { %v11885_v40 = vpop.eup %11884  ;;  %v4525_v20 = vmul.f32 %v11883_v62, %v11881_v59  ;;  %v11453_v59 = vld [vmem:[#allocation14 + $0xc] ss:$16 sps:$4 sm:$0xff]   ;;  %v11448_v62 = vld [vmem:[#allocation14] ss:$16 sps:$4 sm:$0xff]  }
 0x595   :  { %v4524_v19 = vmul.f32 %v11885_v40, %v13667_v33  ;;  %v11887_v38 = vpop.eup %11886  ;;  %v11406_v33 = vld [vmem:[#allocation17 + $0x20] ss:$16 sps:$4 sm:$0xff]   ;;  %v11451_v40 = vld [vmem:[#allocation14 + $0x8] ss:$16 sps:$4 sm:$0xff]  }
 0x597   :  { %v13910_v43 = vadd.f32 %v4525_v20, %v4524_v19  ;;  %v13926_v19 = vld [vmem:[#allocation14 + $0x2c] ss:$16 sps:$4 sm:$0xff]  }
 0x599   :  { %11888 = vtanh.f32 %v13910_v43 }
 0x59a   :  { %11890 = vpow2.f32 %v10255_v15  ;;  %v13936_v15 = vld [vmem:[#allocation14 + $0x44] ss:$16 sps:$4 sm:$0xff]  }
 0x59b   :  { %11892 = vtanh.f32 %v13907_v18 }
 0x5a3   :  { %v11889_v7 = vpop.eup %11888 }
 0x5a4   :  { %v4528_v21 = vmul.f32 %v11889_v7, %v11887_v38  ;;  %v11891_v10 = vpop.eup %11890  ;;  %v13932_v38 = vld [vmem:[#allocation14 + $0x28] ss:$16 sps:$4 sm:$0xff]   ;;  %v13938_v7 = vld [vmem:[#allocation14 + $0x4c] ss:$16 sps:$4 sm:$0xff]  }
 0x5a5   :  { %v4214_v34 = vadd.f32 1.0, %v11891_v10  ;;  %v11893_v35 = vpop.eup %11892  ;;  %v13986_v10 = vld [vmem:[#allocation14 + $0xa8] ss:$16 sps:$4 sm:$0xff]  }
 0x5a6   :  { %v13915_v9 = vpack.c.bf16 %v4528_v21, %v4528_v21  ;;  %v13944_v21 = vld [vmem:[#allocation14 + $0x40] ss:$16 sps:$4 sm:$0xff]   ;;  %15338 = vst [vmem:[#allocation42_spill] sm:$0xff] %v13986_v10 }
 0x5a7   :  { %11894 = vrcp.f32 %v4214_v34  ;;  %v14004_v34 = vld [vmem:[#allocation14 + $0xe4] ss:$16 sps:$4 sm:$0xff]  }
 0x5a8   :  { %4755 = vmatmul.mubr.bf16.vlgmr.msra.gmra.mrb[28].mxu0 %v13915_v9  ;;  %4796 = vmatmul.mubr.bf16.vlgmr.msra.gmra.mrb[28].mxu1 %v13915_v9  ;;  %15343 = vst [vmem:[#allocation47_spill] sm:$0xff] %v14004_v34 }
 0x5a9   :  { %4998 = vmatpush1.bf16.msra.mxu0 %v11400_v39  ;;  %5039 = vmatpush1.bf16.msra.mxu1 %v11403_v25  ;;  %v13946_v39 = vld [vmem:[#allocation14 + $0x48] ss:$16 sps:$4 sm:$0xff]   ;;  %v13950_v25 = vld [vmem:[#allocation14 + $0x64] ss:$16 sps:$4 sm:$0xff]  }
 0x5aa   :  { %4999 = vmatprep.subr.bf16.mxu0 %v11408_v31  ;;  %5040 = vmatprep.subr.bf16.mxu1 %v11411_v51  ;;  %v13952_v31 = vld [vmem:[#allocation14 + $0x6c] ss:$16 sps:$4 sm:$0xff]   ;;  %v13956_v51 = vld [vmem:[#allocation14 + $0x60] ss:$16 sps:$4 sm:$0xff]  }
 0x5ab   :  { %5029 = vmatprep.mubr.bf16.mxu0 %v15245_v24  ;;  %5070 = vmatprep.mubr.bf16.mxu1 %v15245_v24 }
 0x5ad   :  { %5000 = vmatpush1.bf16.msra.mxu0 %v11406_v33  ;;  %5041 = vmatpush1.bf16.msra.mxu1 %v11409_v56  ;;  %v13958_v33 = vld [vmem:[#allocation14 + $0x68] ss:$16 sps:$4 sm:$0xff]   ;;  %v13962_v56 = vld [vmem:[#allocation14 + $0x84] ss:$16 sps:$4 sm:$0xff]  }
 0x5ae   :  { %5001 = vmatprep.subr.bf16.mxu0 %v11414_v61  ;;  %5042 = vmatprep.subr.bf16.mxu1 %v11417_v1  ;;  %15331 = vst [vmem:[#allocation35_spill] sm:$0xff] %v13962_v56  ;;  %v13964_v61 = vld [vmem:[#allocation14 + $0x8c] ss:$16 sps:$4 sm:$0xff]   ;;  %v13968_v1 = vld [vmem:[#allocation14 + $0x80] ss:$16 sps:$4 sm:$0xff]  }
 0x5af   :  { %15332 = vst [vmem:[#allocation36_spill] sm:$0xff] %v13964_v61  ;;  %15333 = vst [vmem:[#allocation37_spill] sm:$0xff] %v13968_v1 }
 0x5b1   :  { %5002 = vmatpush1.bf16.msra.mxu0 %v11412_v12  ;;  %5043 = vmatpush1.bf16.msra.mxu1 %v11415_v22  ;;  %v11895_v37 = vpop.eup %11894  ;;  %v13970_v12 = vld [vmem:[#allocation14 + $0x88] ss:$16 sps:$4 sm:$0xff]   ;;  %v13976_v22 = vld [vmem:[#allocation14 + $0xa4] ss:$16 sps:$4 sm:$0xff]  }
 0x5b2   :  { %5003 = vmatprep.subr.bf16.mxu0 %v11420_v17  ;;  %5044 = vmatprep.subr.bf16.mxu1 %v11423_v0  ;;  %v4221_v63 = vmul.f32 %v11895_v37, %v11893_v35  ;;  %15334 = vst [vmem:[#allocation38_spill] sm:$0xff] %v13970_v12  ;;  %15335 = vst [vmem:[#allocation39_spill] sm:$0xff] %v13976_v22  ;;  %v13978_v17 = vld [vmem:[#allocation14 + $0xac] ss:$16 sps:$4 sm:$0xff]   ;;  %v13984_v0 = vld [vmem:[#allocation14 + $0xa0] ss:$16 sps:$4 sm:$0xff]  }
 0x5b3   :  { %15336 = vst [vmem:[#allocation40_spill] sm:$0xff] %v13978_v17  ;;  %15337 = vst [vmem:[#allocation41_spill] sm:$0xff] %v13984_v0 }
 0x5b4   :  { %v13922_v20 = vpack.c.bf16 %v4221_v63, %v4221_v63 }
 0x5b5   :  { %5004 = vmatpush1.bf16.msra.mxu0 %v11418_v28  ;;  %5045 = vmatpush1.bf16.msra.mxu1 %v11421_v16  ;;  %v13990_v28 = vld [vmem:[#allocation14 + $0xc4] ss:$16 sps:$4 sm:$0xff]   ;;  %v13992_v16 = vld [vmem:[#allocation14 + $0xcc] ss:$16 sps:$4 sm:$0xff]  }
 0x5b6   :  { %5005 = vmatprep.subr.bf16.mxu0 %v11426_v57  ;;  %5046 = vmatprep.subr.bf16.mxu1 %v11429_v55  ;;  %15330 = vst [vmem:[#allocation34_spill] sm:$0xff] %v13922_v20  ;;  %15339 = vst [vmem:[#allocation43_spill] sm:$0xff] %v13990_v28  ;;  %v13996_v57 = vld [vmem:[#allocation14 + $0xc0] ss:$16 sps:$4 sm:$0xff]   ;;  %v14002_v55 = vld [vmem:[#allocation14 + $0xc8] ss:$16 sps:$4 sm:$0xff]  }
 0x5b7   :  { %15340 = vst [vmem:[#allocation44_spill] sm:$0xff] %v13992_v16  ;;  %15341 = vst [vmem:[#allocation45_spill] sm:$0xff] %v13996_v57 }
 0x5b8   :  { %15342 = vst [vmem:[#allocation46_spill] sm:$0xff] %v14002_v55 }
 0x5b9   :  { %5006 = vmatpush1.bf16.msra.mxu0 %v11424_v23  ;;  %5047 = vmatpush1.bf16.msra.mxu1 %v11427_v14  ;;  %v14009_v23 = vld [vmem:[#allocation14 + $0xec] ss:$16 sps:$4 sm:$0xff]   ;;  %v14019_v14 = vld [vmem:[#allocation14 + $0xe0] ss:$16 sps:$4 sm:$0xff]  }
 0x5ba   :  { %5007 = vmatprep.subr.bf16.mxu0 %v11432_v13  ;;  %5048 = vmatprep.subr.bf16.mxu1 %v11435_v27  ;;  %15344 = vst [vmem:[#allocation48_spill] sm:$0xff] %v14009_v23  ;;  %15345 = vst [vmem:[#allocation49_spill] sm:$0xff] %v14019_v14  ;;  %v14021_v13 = vld [vmem:[#allocation14 + $0xe8] ss:$16 sps:$4 sm:$0xff]  }
 0x5bb   :  { %15346 = vst [vmem:[#allocation50_spill] sm:$0xff] %v14021_v13  ;;  %v994_v27 = vld [vmem:[#allocation7] ss:$4 sm:$0xf] }
 0x5bd   :  { %5008 = vmatpush1.bf16.msra.mxu0 %v11430_v29  ;;  %5049 = vmatpush1.bf16.msra.mxu1 %v11433_v8  ;;  %v1059_v29 = vld [vmem:[#allocation7 + $0x2] ss:$4 sm:$0xf]  ;;  %v1004_v8 = vrot.slane %v994_v27, %v12730_v46 }
 0x5be   :  { %5009 = vmatprep.subr.bf16.mxu0 %v11438_v4  ;;  %5050 = vmatprep.subr.bf16.mxu1 %v11441_v6  ;;  %v1025_v4 = vld [vmem:[#allocation7 + $0x1] ss:$4 sm:$0xf]  ;;  %v1008_v6 = vrot.slane %v994_v27, %v12732_v47  ;;  %v1072_v35 = vrot.slane %v1059_v29, %v12732_v47  ;;  %v1076_v37 = vrot.slane %v1059_v29, %v12739_v52 }
 0x5bf   :  { %v1042_v63 = vrot.slane %v1025_v4, %v12739_v52 }
 0x5c1   :  { %5010 = vmatpush1.bf16.msra.mxu0 %v11436_v53  ;;  %5051 = vmatpush1.bf16.msra.mxu1 %v11439_v44  ;;  %v1012_v53 = vrot.slane %v994_v27, %v12739_v52  ;;  %v1016_v44 = vrot.slane %v994_v27, %v12743_v54 }
 0x5c2   :  { %5011 = vmatprep.subr.bf16.mxu0 %v11444_v36  ;;  %5052 = vmatprep.subr.bf16.mxu1 %v11447_v11  ;;  %v998_v36 = vpop.permute.xlu1 %997  ;;  %v1068_v11 = vrot.slane %v1059_v29, %v12730_v46 }
 0x5c3   :  { %v1023_v27 = vmul.f32 %v1012_v53, %v998_v36 }
 0x5c5   :  { %5012 = vmatpush1.bf16.msra.mxu0 %v11442_v30  ;;  %5053 = vmatpush1.bf16.msra.mxu1 %v11445_v45  ;;  %v1080_v30 = vrot.slane %v1059_v29, %v12743_v54  ;;  %v1038_v45 = vrot.slane %v1025_v4, %v12732_v47  ;;  %v1024_v29 = vmul.f32 %v1016_v44, %v998_v36 }
 0x5c6   :  { %5304 = vmatprep.subr.bf16.mxu0 %v11450_v2  ;;  %5345 = vmatprep.subr.bf16.mxu1 %v11453_v59  ;;  %v1046_v2 = vrot.slane %v1025_v4, %v12743_v54  ;;  %v1062_v59 = vpop.permute.xlu0 %1061 }
 0x5c7   :  { %v1086_v26 = vmul.f32 %v1072_v35, %v1062_v59  ;;  %v1103_v35 = vrot.slane %v9855_v32, %v12732_v47 }
 0x5c8   :  { %5030 = vmatmul.mubr.bf16.vlgmr.msra.gmra.mrb[20].mxu0 %v13922_v20  ;;  %5071 = vmatmul.mubr.bf16.vlgmr.msra.gmra.mrb[20].mxu1 %v13922_v20  ;;  %v1085_v20 = vmul.f32 %v1068_v11, %v1062_v59  ;;  %v1099_v11 = vrot.slane %v9855_v32, %v12730_v46 }
 0x5c9   :  { %5305 = vmatpush1.bf16.msra.mxu0 %v11448_v62  ;;  %5346 = vmatpush1.bf16.msra.mxu1 %v11451_v40  ;;  %v1021_v62 = vmul.f32 %v1004_v8, %v998_v36  ;;  %v1022_v40 = vmul.f32 %v1008_v6, %v998_v36  ;;  %v1120_v36 = vld [vmem:[#allocation13] sm:$0xf] }
 0x5ca   :  { %5306 = vmatprep.subr.bf16.mxu0 %v13924_v5  ;;  %5347 = vmatprep.subr.bf16.mxu1 %v13926_v19 }
 0x5cb   :  { %5336 = vmatprep.mubr.bf16.mxu0 %v15245_v24  ;;  %5377 = vmatprep.mubr.bf16.mxu1 %v15245_v24 }
 0x5cd   :  { %5307 = vmatpush1.bf16.msra.mxu0 %v13930_v58  ;;  %5348 = vmatpush1.bf16.msra.mxu1 %v13932_v38 }
 0x5ce   :  { %5308 = vmatprep.subr.bf16.mxu0 %v13936_v15  ;;  %5349 = vmatprep.subr.bf16.mxu1 %v13938_v7 }
 0x5d1   :  { %5309 = vmatpush1.bf16.msra.mxu0 %v13944_v21  ;;  %5350 = vmatpush1.bf16.msra.mxu1 %v13946_v39 }
 0x5d2   :  { %5310 = vmatprep.subr.bf16.mxu0 %v13950_v25  ;;  %5351 = vmatprep.subr.bf16.mxu1 %v13952_v31 }
 0x5d5   :  { %5311 = vmatpush1.bf16.msra.mxu0 %v13956_v51  ;;  %5352 = vmatpush1.bf16.msra.mxu1 %v13958_v33 }
 0x5d6   :  { %5312 = vmatprep.subr.bf16.mxu0 %v13962_v56  ;;  %5353 = vmatprep.subr.bf16.mxu1 %v13964_v61 }
 0x5d9   :  { %5313 = vmatpush1.bf16.msra.mxu0 %v13968_v1  ;;  %5354 = vmatpush1.bf16.msra.mxu1 %v13970_v12 }
 0x5da   :  { %5314 = vmatprep.subr.bf16.mxu0 %v13976_v22  ;;  %5355 = vmatprep.subr.bf16.mxu1 %v13978_v17 }
 0x5dd   :  { %5315 = vmatpush1.bf16.msra.mxu0 %v13984_v0  ;;  %5356 = vmatpush1.bf16.msra.mxu1 %v13986_v10  ;;  %v1977_v10 = vld [vmem:[%s1976_s15] ss:$8 sm:$0xf]  ;;  %s10916_s15 = sshll.u32 %s2065_s13, 5  ;;  %s2116_s13 = sand.u32 7, %s14236_s26 }
 0x5de   :  { %5316 = vmatprep.subr.bf16.mxu0 %v13990_v28  ;;  %5357 = vmatprep.subr.bf16.mxu1 %v13992_v16  ;;  %v1137_v16 = vrot.slane %v1120_v36, %v12743_v54  ;;  %v2025_v0 = vld [vmem:[%s2024_s5] ss:$8 sm:$0xf]  ;;  %s2071_s9 = sadd.s32 %s10916_s15, %s2068_s22  ;;  %s2076_s5 = sshra.s32 %s14224_s10, 3 }
 0x5e1   :  { %5317 = vmatpush1.bf16.msra.mxu0 %v13996_v57  ;;  %5358 = vmatpush1.bf16.msra.mxu1 %v14002_v55  ;;  %v1125_v55 = vrot.slane %v1120_v36, %v12730_v46  ;;  %v1129_v57 = vrot.slane %v1120_v36, %v12732_v47 }
 0x5e2   :  { %5318 = vmatprep.subr.bf16.mxu0 %v14004_v34  ;;  %5359 = vmatprep.subr.bf16.mxu1 %v14009_v23  ;;  %v1956_v23 = vld [vmem:[%s1955_s30] ss:$8 sm:$0xf]  ;;  %s2044_s30 = sshra.s32 %s14205_s18, 3 }
 0x5e3   :  { %v1966_v34 = vld [vmem:[%s1965_s19] ss:$8 sm:$0xf]  ;;  %s2047_s19 = sand.u32 7, %s14205_s18  ;;  %s10914_s4 = sshll.u32 %s2044_s30, 5 }
 0x5e4   :  { %s2050_s17 = sadd.s32 %s10914_s4, %s2047_s19  ;;  %s10917_s18 = sshll.u32 %s2076_s5, 5 }
 0x5e5   :  { %5319 = vmatpush1.bf16.msra.mxu0 %v14019_v14  ;;  %5360 = vmatpush1.bf16.msra.mxu1 %v14021_v13  ;;  %v1087_v13 = vmul.f32 %v1076_v37, %v1062_v59  ;;  %v1088_v14 = vmul.f32 %v1080_v30, %v1062_v59  ;;  %v1107_v37 = vrot.slane %v9855_v32, %v12739_v52  ;;  %s2051_s21 = scalar_lea.vmem [#allocation8], %s2050_s17  ;;  %s2102_s30 = sshra.s32 %s14230_s14, 3 }
 0x5e6   :  { %v1111_v30 = vrot.slane %v9855_v32, %v12743_v54  ;;  %v1133_v32 = vrot.slane %v1120_v36, %v12739_v52  ;;  %s2105_s4 = sand.u32 7, %s14230_s14  ;;  %s10919_s11 = sshll.u32 %s2102_s30, 5 }
 0x5e7   :  { %s14591_s30 = sld [smem:[#allocation4 + $0x782]] }
 0x5e8   :  { %5337 = vmatmul.mubr.bf16.vlgmr.msra.gmra.mrb[32].mxu0 %v13915_v9  ;;  %5378 = vmatmul.mubr.bf16.vlgmr.msra.gmra.mrb[32].mxu1 %v13915_v9  ;;  %v1034_v9 = vrot.slane %v1025_v4, %v12730_v46  ;;  %v1028_v4 = vpop.permute.xlu1 %1027 }
 0x5e9   :  { %5639 = vmatprep.mubr.bf16.mxu0 %v15245_v24  ;;  %5680 = vmatprep.mubr.bf16.mxu1 %v15245_v24  ;;  %v1052_v6 = vmul.f32 %v1038_v45, %v1028_v4  ;;  %v1053_v53 = vmul.f32 %v1042_v63, %v1028_v4  ;;  %v1054_v44 = vmul.f32 %v1046_v2, %v1028_v4 }
 0x5ea   :  { %v1051_v8 = vmul.f32 %v1034_v9, %v1028_v4  ;;  %v2004_v9 = vld [vmem:[%s2003_s25] ss:$8 sm:$0xf]  ;;  %s2054_s25 = sshra.s32 %s14211_s2, 3  ;;  %s14266_s2 = sld [smem:[#allocation4 + $0x703]] }
 0x5eb   :  { %v1056_v63 = vadd.f32 %v1052_v6, %v1022_v40  ;;  %v1057_v2 = vadd.f32 %v1053_v53, %v1023_v27  ;;  %v1058_v59 = vadd.f32 %v1054_v44, %v1024_v29  ;;  %v2014_v4 = vld [vmem:[%s2013_s12] ss:$8 sm:$0xf]  ;;  %s10915_s12 = sshll.u32 %s2054_s25, 5 }
 0x5ec   :  { %v1055_v45 = vadd.f32 %v1051_v8, %v1021_v62  ;;  %v1967_v8 = vadd.f32 %v1966_v34, %v1956_v23  ;;  %v2015_v6 = vadd.f32 %v2014_v4, %v2004_v9  ;;  %v14140_v9 = vld [vmem:[#allocation16 + $0x60] ss:$16 sps:$4 sm:$0xff]   ;;  %v14154_v4 = vld [vmem:[#allocation16 + $0x88] ss:$16 sps:$4 sm:$0xff]   ;;  %s2060_s16 = sadd.s32 %s10915_s12, %s2057_s27  ;;  %s2108_s27 = sadd.s32 %s10919_s11, %s2105_s4 }
 0x5ed   :  { %v1090_v40 = vadd.f32 %v1086_v26, %v1056_v63  ;;  %v1091_v27 = vadd.f32 %v1087_v13, %v1057_v2  ;;  %v1092_v29 = vadd.f32 %v1088_v14, %v1058_v59  ;;  %v1988_v26 = vld [vmem:[%s1987_s23] ss:$8 sm:$0xf]  ;;  %v14152_v59 = vld [vmem:[#allocation16 + $0x80] ss:$16 sps:$4 sm:$0xff]   ;;  %15349 = vst [vmem:[#allocation53_spill] sm:$0xff] %v14154_v4  ;;  %s2072_s23 = scalar_lea.vmem %s15009_s6, %s2071_s9 }
 0x5ee   :  { %v1089_v62 = vadd.f32 %v1085_v20, %v1055_v45  ;;  %v1978_v61 = vadd.f32 %v1977_v10, %v1967_v8  ;;  %v2026_v56 = vadd.f32 %v2025_v0, %v2015_v6  ;;  %v2036_v20 = vld [vmem:[%s2035_s29] ss:$8 sm:$0xf]  ;;  %v14116_v0 = vld [vmem:[#allocation16 + $0x20] ss:$16 sps:$4 sm:$0xff]   ;;  %15348 = vst [vmem:[#allocation52_spill] sm:$0xff] %v14152_v59 }
 0x5ef   :  { %v1117_v44 = vadd.f32 %v1103_v35, %v1090_v40  ;;  %v1118_v28 = vadd.f32 %v1107_v37, %v1091_v27  ;;  %v1119_v36 = vadd.f32 %v1111_v30, %v1092_v29  ;;  %v14118_v10 = vld [vmem:[#allocation16 + $0x28] ss:$16 sps:$4 sm:$0xff]   ;;  %v14136_v37 = vld [vmem:[#allocation16 + $0x64] ss:$16 sps:$4 sm:$0xff]   ;;  %v14138_v30 = vld [vmem:[#allocation16 + $0x6c] ss:$16 sps:$4 sm:$0xff]  }
 0x5f0   :  { %v1116_v53 = vadd.f32 %v1099_v11, %v1089_v62  ;;  %v1989_v34 = vadd.f32 %v1988_v26, %v1978_v61  ;;  %v2037_v23 = vadd.f32 %v2036_v20, %v2026_v56  ;;  %v14112_v56 = vld [vmem:[#allocation16 + $0x24] ss:$16 sps:$4 sm:$0xff]   ;;  %v14114_v61 = vld [vmem:[#allocation16 + $0x2c] ss:$16 sps:$4 sm:$0xff]   ;;  %v14142_v45 = vld [vmem:[#allocation16 + $0x68] ss:$16 sps:$4 sm:$0xff]  }
 0x5f1   :  { %v1143_v22 = vadd.f32 %v1129_v57, %v1117_v44  ;;  %v1144_v12 = vadd.f32 %v1133_v32, %v1118_v28  ;;  %v1145_v1 = vadd.f32 %v1137_v16, %v1119_v36  ;;  %v14124_v28 = vld [vmem:[#allocation16 + $0x44] ss:$16 sps:$4 sm:$0xff]   ;;  %v14126_v16 = vld [vmem:[#allocation16 + $0x4c] ss:$16 sps:$4 sm:$0xff]   ;;  %v14128_v57 = vld [vmem:[#allocation16 + $0x40] ss:$16 sps:$4 sm:$0xff]  }
 0x5f2   :  { %v1142_v17 = vadd.f32 %v1125_v55, %v1116_v53  ;;  %v14130_v55 = vld [vmem:[#allocation16 + $0x48] ss:$16 sps:$4 sm:$0xff]   ;;  %v14148_v63 = vld [vmem:[#allocation16 + $0x84] ss:$16 sps:$4 sm:$0xff]   ;;  %v14150_v2 = vld [vmem:[#allocation16 + $0x8c] ss:$16 sps:$4 sm:$0xff]  }
 0x5f3   :  { %1147 = vst [vmem:[#allocation2 + $0xa8] sm:$0xff] %v1143_v22  ;;  %1148 = vst [vmem:[#allocation2 + $0xb0] sm:$0xff] %v1144_v12  ;;  %v14102_v12 = vld [vmem:[#allocation16 + $0xc] ss:$16 sps:$4 sm:$0xff]   ;;  %v14106_v22 = vld [vmem:[#allocation16 + $0x8] ss:$16 sps:$4 sm:$0xff]  }
 0x5f4   :  { %1146 = vst [vmem:[#allocation2 + $0xa0] sm:$0xff] %v1142_v17  ;;  %1149 = vst [vmem:[#allocation2 + $0xb8] sm:$0xff] %v1145_v1  ;;  %v14100_v17 = vld [vmem:[#allocation16 + $0x4] ss:$16 sps:$4 sm:$0xff]   ;;  %v14104_v1 = vld [vmem:[#allocation16] ss:$16 sps:$4 sm:$0xff]   ;;  %5648 = vmatprep.subr.bf16.mxu1 %v14102_v12 }
 0x5f5   :  { %5607 = vmatprep.subr.bf16.mxu0 %v14100_v17  ;;  %5649 = vmatpush1.bf16.msra.mxu1 %v14106_v22  ;;  %15347 = vst [vmem:[#allocation51_spill] sm:$0xff] %v14150_v2  ;;  %v14158_v32 = vld [vmem:[#allocation16 + $0xa4] ss:$16 sps:$4 sm:$0xff]   ;;  %v14160_v62 = vld [vmem:[#allocation16 + $0xac] ss:$16 sps:$4 sm:$0xff]   ;;  %s2061_s7 = scalar_lea.vmem [#allocation10], %s2060_s16 }
 0x5f6   :  { %5608 = vmatpush1.bf16.msra.mxu0 %v14104_v1  ;;  %5650 = vmatprep.subr.bf16.mxu1 %v14114_v61  ;;  %15350 = vst [vmem:[#allocation54_spill] sm:$0xff] %v14158_v32  ;;  %15351 = vst [vmem:[#allocation55_spill] sm:$0xff] %v14160_v62  ;;  %v14164_v40 = vld [vmem:[#allocation16 + $0xa0] ss:$16 sps:$4 sm:$0xff]   ;;  %v14166_v27 = vld [vmem:[#allocation16 + $0xa8] ss:$16 sps:$4 sm:$0xff]  }
 0x5f7   :  { %5609 = vmatprep.subr.bf16.mxu0 %v14112_v56  ;;  %15352 = vst [vmem:[#allocation56_spill] sm:$0xff] %v14164_v40  ;;  %15353 = vst [vmem:[#allocation57_spill] sm:$0xff] %v14166_v27  ;;  %v14170_v29 = vld [vmem:[#allocation16 + $0xc4] ss:$16 sps:$4 sm:$0xff]   ;;  %v14172_v8 = vld [vmem:[#allocation16 + $0xcc] ss:$16 sps:$4 sm:$0xff]  }
 0x5f8   :  { %15354 = vst [vmem:[#allocation58_spill] sm:$0xff] %v14170_v29  ;;  %15355 = vst [vmem:[#allocation59_spill] sm:$0xff] %v14172_v8  ;;  %v14176_v6 = vld [vmem:[#allocation16 + $0xc0] ss:$16 sps:$4 sm:$0xff]   ;;  %v14178_v53 = vld [vmem:[#allocation16 + $0xc8] ss:$16 sps:$4 sm:$0xff]  }
 0x5f9   :  { %5651 = vmatpush1.bf16.msra.mxu1 %v14118_v10  ;;  %15356 = vst [vmem:[#allocation60_spill] sm:$0xff] %v14176_v6  ;;  %15357 = vst [vmem:[#allocation61_spill] sm:$0xff] %v14178_v53  ;;  %v14182_v44 = vld [vmem:[#allocation16 + $0xe4] ss:$16 sps:$4 sm:$0xff]   ;;  %v14184_v36 = vld [vmem:[#allocation16 + $0xec] ss:$16 sps:$4 sm:$0xff]  }
 0x5fa   :  { %5610 = vmatpush1.bf16.msra.mxu0 %v14116_v0  ;;  %5652 = vmatprep.subr.bf16.mxu1 %v14126_v16  ;;  %15358 = vst [vmem:[#allocation62_spill] sm:$0xff] %v14182_v44  ;;  %15359 = vst [vmem:[#allocation63_spill] sm:$0xff] %v14184_v36  ;;  %v14188_v26 = vld [vmem:[#allocation16 + $0xe0] ss:$16 sps:$4 sm:$0xff]   ;;  %v14190_v20 = vld [vmem:[#allocation16 + $0xe8] ss:$16 sps:$4 sm:$0xff]  }
 0x5fb   :  { %v1991_v14 = vld [vmem:[#allocation2 + $0xa0] ss:$8 sm:$0xf]  ;;  %v2039_v13 = vld [vmem:[#allocation2 + $0xa1] ss:$8 sm:$0xf]  ;;  %5611 = vmatprep.subr.bf16.mxu0 %v14124_v28 }
 0x5fc   :  { %v1992_v11 = vadd.f32 %v1991_v14, %v1989_v34  ;;  %v2040_v35 = vadd.f32 %v2039_v13, %v2037_v23  ;;  %15360 = vst [vmem:[#allocation64_spill] sm:$0xff] %v14188_v26  ;;  %15361 = vst [vmem:[#allocation65_spill] sm:$0xff] %v14190_v20  ;;  %s2079_s29 = sand.u32 7, %s14224_s10  ;;  %s10918_s10 = sshll.u32 %s2092_s8, 5 }
 0x5fd   :  { %5653 = vmatpush1.bf16.msra.mxu1 %v14130_v55  ;;  %s2082_s20 = sadd.s32 %s10917_s18, %s2079_s29  ;;  %s2098_s19 = sadd.s32 %s10918_s10, %s2095_s24 }
 0x5fe   :  { %1993 = vst.msk [vmem:[#allocation2 + $0xa0] ss:$8 sm:$0xf] %vm12837_vm0, %v1992_v11  ;;  %2041 = vst.msk [vmem:[#allocation2 + $0xa1] ss:$8 sm:$0xf] %vm12837_vm0, %v2040_v35  ;;  %5612 = vmatpush1.bf16.msra.mxu0 %v14128_v57  ;;  %5654 = vmatprep.subr.bf16.mxu1 %v14138_v30 }
 0x5ff   :  { %5613 = vmatprep.subr.bf16.mxu0 %v14136_v37  ;;  %s2083_s17 = scalar_lea.vmem [#allocation11], %s2082_s20  ;;  %s2099_s25 = scalar_lea.vmem [#allocation8], %s2098_s19 }
 0x600   :  { %s2113_s12 = sshra.s32 %s14236_s26, 3  ;;  %s2109_s16 = scalar_lea.vmem [#allocation10], %s2108_s27 }
 0x601   :  { %5655 = vmatpush1.bf16.msra.mxu1 %v14142_v45  ;;  %s10920_s22 = sshll.u32 %s2113_s12, 5  ;;  %s2124_s14 = sshra.s32 %s14266_s2, 3 }
 0x602   :  { %5614 = vmatpush1.bf16.msra.mxu0 %v14140_v9  ;;  %5656 = vmatprep.subr.bf16.mxu1 %v14150_v2  ;;  %s2127_s15 = sand.u32 7, %s14266_s2  ;;  %s10921_s0 = sshll.u32 %s2124_s14, 5 }
 0x603   :  { %5615 = vmatprep.subr.bf16.mxu0 %v14148_v63  ;;  %s2130_s28 = sadd.s32 %s10921_s0, %s2127_s15  ;;  %s14557_s18 = sld [smem:[#allocation4 + $0x381]] }
 0x604   :  { %s2131_s26 = scalar_lea.vmem [#allocation11], %s2130_s28  ;;  %s14571_s2 = sld [smem:[#allocation4 + $0x780]] }
 0x605   :  { %5657 = vmatpush1.bf16.msra.mxu1 %v14154_v4  ;;  %s14575_s20 = sld [smem:[#allocation4 + $0x781]]  ;;  %s14589_s10 = sld [smem:[#allocation4 + $0x382]] }
 0x606   :  { %5616 = vmatpush1.bf16.msra.mxu0 %v14152_v59  ;;  %5658 = vmatprep.subr.bf16.mxu1 %v14160_v62  ;;  %s2209_s28 = sshra.s32 %s14591_s30, 3 }
 0x607   :  { %5617 = vmatprep.subr.bf16.mxu0 %v14158_v32  ;;  %v14234_v32 = vld [vmem:[#allocation13] sm:$0xf] }
 0x608   :  { %v1286_v4 = vrot.slane %v14234_v32, %v12732_v47 }
 0x609   :  { %5659 = vmatpush1.bf16.msra.mxu1 %v14166_v27  ;;  %v1155_v27 = vpop.permute.xlu1 %1154  ;;  %s2150_s24 = sshra.s32 %s14557_s18, 3 }
 0x60a   :  { %5618 = vmatpush1.bf16.msra.mxu0 %v14164_v40  ;;  %5660 = vmatprep.subr.bf16.mxu1 %v14172_v8  ;;  %s10923_s11 = sshll.u32 %s2150_s24, 5  ;;  %s2188_s27 = sshra.s32 %s14571_s2, 3 }
 0x60b   :  { %5619 = vmatprep.subr.bf16.mxu0 %v14170_v29  ;;  %s2191_s14 = sand.u32 7, %s14571_s2  ;;  %s2161_s15 = sshra.s32 %s14589_s10, 3 }
 0x60c   :  { %s2164_s0 = sand.u32 7, %s14589_s10  ;;  %s2212_s2 = sand.u32 7, %s14591_s30 }
 0x60d   :  { %5661 = vmatpush1.bf16.msra.mxu1 %v14178_v53 }
 0x60e   :  { %5620 = vmatpush1.bf16.msra.mxu0 %v14176_v6  ;;  %5662 = vmatprep.subr.bf16.mxu1 %v14184_v36 }
 0x60f   :  { %5621 = vmatprep.subr.bf16.mxu0 %v14182_v44 }
 0x611   :  { %5663 = vmatpush1.bf16.msra.mxu1 %v14190_v20 }
 0x612   :  { %5622 = vmatpush1.bf16.msra.mxu0 %v14188_v26  ;;  %5923 = vmatprep.subr.bf16.mxu1 %v13891_v49 }
 0x613   :  { %5882 = vmatprep.subr.bf16.mxu0 %v13889_v50 }
 0x69b   :  { %v5031_v34 = vpop.f32.mrb[20].mxu0  ;;  %v5072_v23 = vpop.f32.mrb[20].mxu1 }
 0x69c   :  { %v11026_v14 = vadd.f32 %v5031_v34, %v15325_v60  ;;  %v5033_v13 = vpop.f32.mrb[21].mxu0  ;;  %v14199_v11 = vpop.f32.mrb[21].mxu1  ;;  %v11028_v50 = vadd.f32 %v5072_v23, %v15327_v42  ;;  %v1151_v60 = vld [vmem:[#allocation7] ss:$4 sm:$0xf] }
 0x69d   :  { %v11027_v35 = vadd.f32 %v5033_v13, %v15326_v48  ;;  %v5035_v44 = vpop.f32.mrb[22].mxu0  ;;  %v5076_v53 = vpop.f32.mrb[22].mxu1  ;;  %v1161_v13 = vrot.slane %v1151_v60, %v12730_v46  ;;  %v14222_v48 = vld [vmem:[%s15006_s3 + $0x6] ss:$8 sm:$0xf] }
 0x69e   :  { %v10355_v36 = vmul.f32 -1.442695, %v11026_v14  ;;  %v5036_v6 = vpop.f32.mrb[23].mxu0  ;;  %v5077_v26 = vpop.f32.mrb[23].mxu1  ;;  %v1165_v53 = vrot.slane %v1151_v60, %v12732_v47 }
 0x69f   :  { %v10356_v8 = vmul.f32 -1.442695, %v11027_v35  ;;  %v1182_v44 = vld [vmem:[#allocation7 + $0x1] ss:$4 sm:$0xf]  ;;  %v1173_v6 = vrot.slane %v1151_v60, %v12743_v54  ;;  %v1178_v23 = vmul.f32 %v1161_v13, %v1155_v27 }
 0x6a0   :  { %11896 = vpow2.f32 %v10355_v36  ;;  %v1191_v36 = vrot.slane %v1182_v44, %v12730_v46  ;;  %v1216_v26 = vld [vmem:[#allocation7 + $0x2] ss:$4 sm:$0xf]  ;;  %v1195_v14 = vrot.slane %v1182_v44, %v12732_v47 }
 0x6a1   :  { %11898 = vpow2.f32 %v10356_v8  ;;  %v1169_v8 = vrot.slane %v1151_v60, %v12739_v52  ;;  %v1181_v35 = vmul.f32 %v1173_v6, %v1155_v27  ;;  %v1185_v60 = vpop.permute.xlu1 %1184  ;;  %v1225_v13 = vrot.slane %v1216_v26, %v12730_v46 }
 0x6a2   :  { %11900 = vtanh.f32 %v11028_v50  ;;  %v1199_v50 = vrot.slane %v1182_v44, %v12739_v52  ;;  %v1209_v42 = vmul.f32 %v1195_v14, %v1185_v60  ;;  %v1233_v6 = vrot.slane %v1216_v26, %v12739_v52 }
 0x6aa   :  { %v11897_v49 = vpop.eup %11896 }
 0x6ab   :  { %v11899_v20 = vpop.eup %11898  ;;  %v5086_v29 = vadd.f32 1.0, %v11897_v49  ;;  %v1203_v49 = vrot.slane %v1182_v44, %v12743_v54  ;;  %v1237_v44 = vrot.slane %v1216_v26, %v12743_v54 }
 0x6ac   :  { %v5092_v34 = vadd.f32 1.0, %v11899_v20  ;;  %v1179_v20 = vmul.f32 %v1165_v53, %v1155_v27  ;;  %v1229_v53 = vrot.slane %v1216_v26, %v12732_v47  ;;  %v1256_v26 = vrot.slane %v14222_v48, %v12730_v46 }
 0x6ad   :  { %11902 = vrcp.f32 %v5086_v29  ;;  %v1180_v29 = vmul.f32 %v1169_v8, %v1155_v27  ;;  %v1210_v27 = vmul.f32 %v1199_v50, %v1185_v60  ;;  %v1211_v8 = vmul.f32 %v1203_v49, %v1185_v60 }
 0x6ae   :  { %11904 = vrcp.f32 %v5092_v34  ;;  %v1208_v34 = vmul.f32 %v1191_v36, %v1185_v60  ;;  %v1219_v36 = vpop.permute.xlu0 %1218  ;;  %v1213_v40 = vadd.f32 %v1209_v42, %v1179_v20  ;;  %v1260_v49 = vrot.slane %v14222_v48, %v12732_v47  ;;  %v11901_v42 = vpop.eup %11900 }
 0x6af   :  { %v1214_v62 = vadd.f32 %v1210_v27, %v1180_v29  ;;  %v1215_v50 = vadd.f32 %v1211_v8, %v1181_v35  ;;  %v1264_v60 = vrot.slane %v14222_v48, %v12739_v52  ;;  %v1243_v20 = vmul.f32 %v1229_v53, %v1219_v36 }
 0x6b0   :  { %v1212_v14 = vadd.f32 %v1208_v34, %v1178_v23  ;;  %v1242_v23 = vmul.f32 %v1225_v13, %v1219_v36  ;;  %v1244_v29 = vmul.f32 %v1233_v6, %v1219_v36  ;;  %v1245_v34 = vmul.f32 %v1237_v44, %v1219_v36  ;;  %v2052_v36 = vld [vmem:[%s2051_s21] ss:$8 sm:$0xf]  ;;  %s2119_s21 = sadd.s32 %s10920_s22, %s2116_s13  ;;  %s14608_s13 = sld [smem:[#allocation4 + $0x783]] }
 0x6b1   :  { %v1268_v27 = vrot.slane %v14222_v48, %v12743_v54  ;;  %v1282_v8 = vrot.slane %v14234_v32, %v12730_v46  ;;  %v1247_v53 = vadd.f32 %v1243_v20, %v1213_v40  ;;  %v1290_v48 = vrot.slane %v14234_v32, %v12739_v52  ;;  %s2120_s5 = scalar_lea.vmem %s15009_s6, %s2119_s21  ;;  %s2198_s22 = sshra.s32 %s14575_s20, 3 }
 0x6b2   :  { %v1246_v13 = vadd.f32 %v1242_v23, %v1212_v14  ;;  %v1248_v6 = vadd.f32 %v1244_v29, %v1214_v62  ;;  %v1249_v47 = vadd.f32 %v1245_v34, %v1215_v50  ;;  %v1294_v46 = vrot.slane %v14234_v32, %v12743_v54  ;;  %v5109_v29 = vld [vmem:[#allocation2 + $0x88] sm:$0xff]  ;;  %s10926_s21 = sshll.u32 %s2188_s27, 5  ;;  %s10927_s9 = sshll.u32 %s2198_s22, 5 }
 0x6b3   :  { %v1274_v40 = vadd.f32 %v1260_v49, %v1247_v53 }
 0x6b4   :  { %v1273_v14 = vadd.f32 %v1256_v26, %v1246_v13  ;;  %v1275_v62 = vadd.f32 %v1264_v60, %v1248_v6  ;;  %v1276_v50 = vadd.f32 %v1268_v27, %v1249_v47  ;;  %v2073_v6 = vld [vmem:[%s2072_s23] ss:$8 sm:$0xf] }
 0x6b5   :  { %v1300_v49 = vadd.f32 %v1286_v4, %v1274_v40  ;;  %v2110_v40 = vld [vmem:[%s2109_s16] ss:$8 sm:$0xf] }
 0x6b7   :  { %v11903_v35 = vpop.eup %11902  ;;  %1304 = vst [vmem:[#allocation2 + $0xc8] sm:$0xff] %v1300_v49  ;;  %v2132_v49 = vld [vmem:[%s2131_s26] ss:$8 sm:$0xf]  ;;  %s10924_s26 = sshll.u32 %s2161_s15, 5 }
 0x6b8   :  { %v11905_v59 = vpop.eup %11904  ;;  %v5103_v2 = vmul.f32 %v11903_v35, %v11901_v42  ;;  %v2062_v42 = vld [vmem:[%s2061_s7] ss:$8 sm:$0xf]  ;;  %s2201_s7 = sand.u32 7, %s14575_s20  ;;  %s10928_s20 = sshll.u32 %s2209_s28, 5 }
 0x6b9   :  { %v5102_v44 = vmul.f32 %v11905_v59, %v13907_v18  ;;  %v5108_v18 = vld [vmem:[#allocation2 + $0x80] sm:$0xff]  ;;  %v2063_v26 = vadd.f32 %v2062_v42, %v2052_v36  ;;  %s14637_s23 = sadd.s32 %s10927_s9, %s2201_s7  ;;  %s14650_s30 = sadd.s32 %s10924_s26, %s2164_s0 }
 0x6ba   :  { %v2100_v42 = vld [vmem:[%s2099_s25] ss:$8 sm:$0xf]  ;;  %s14603_s25 = sld [smem:[#allocation4 + $0x383]]  ;;  %s2205_s10 = scalar_lea.vmem [#allocation10], %s14637_s23 }
 0x6bb   :  { %v14260_v23 = vadd.f32 %v5103_v2, %v5102_v44  ;;  %v5338_v59 = vpop.f32.mrb[32].mxu0  ;;  %v5379_v20 = vpop.f32.mrb[32].mxu1  ;;  %v1299_v2 = vadd.f32 %v1282_v8, %v1273_v14  ;;  %v2074_v4 = vadd.f32 %v2073_v6, %v2063_v26  ;;  %v5111_v8 = vld [vmem:[#allocation2 + $0x98] sm:$0xff]  ;;  %s2168_s22 = scalar_lea.vmem %s15009_s6, %s14650_s30  ;;  %s15520_s28 = sld [smem:[#allocation96_spill]] }
 0x6bc   :  { %v5386_v32 = vadd.f32 %v5338_v59, %v5108_v18  ;;  %v5340_v34 = vpop.f32.mrb[33].mxu0  ;;  %v5381_v35 = vpop.f32.mrb[33].mxu1  ;;  %v1301_v18 = vadd.f32 %v1290_v48, %v1275_v62  ;;  %v1302_v59 = vadd.f32 %v1294_v46, %v1276_v50  ;;  %v2084_v48 = vld [vmem:[%s2083_s17] ss:$8 sm:$0xf]  ;;  %v2111_v62 = vadd.f32 %v2110_v40, %v2100_v42  ;;  %s2153_s17 = sand.u32 7, %s14557_s18 }
 0x6bd   :  { %v5387_v60 = vadd.f32 %v5340_v34, %v5109_v29  ;;  %v5342_v13 = vpop.f32.mrb[34].mxu0  ;;  %v5383_v53 = vpop.f32.mrb[34].mxu1  ;;  %1303 = vst [vmem:[#allocation2 + $0xc0] sm:$0xff] %v1299_v2  ;;  %v5389_v46 = vadd.f32 %v5381_v35, %v5111_v8  ;;  %v2085_v14 = vadd.f32 %v2084_v48, %v2074_v4  ;;  %v5110_v50 = vld [vmem:[#allocation2 + $0x90] sm:$0xff]  ;;  %v11029_v42 = vadd.f32 %v14199_v11, %v13672_v41  ;;  %s14610_s16 = sadd.s32 %s10923_s11, %s2153_s17  ;;  %s2215_s11 = sadd.s32 %s10928_s20, %s2212_s2 }
 0x6be   :  { %v10390_v47 = vmul.f32 -1.442695, %v5386_v32  ;;  %v5343_v27 = vpop.f32.mrb[35].mxu0  ;;  %v5384_v44 = vpop.f32.mrb[35].mxu1  ;;  %1305 = vst [vmem:[#allocation2 + $0xd0] sm:$0xff] %v1301_v18  ;;  %1306 = vst [vmem:[#allocation2 + $0xd8] sm:$0xff] %v1302_v59  ;;  %v5388_v35 = vadd.f32 %v5379_v20, %v5110_v50  ;;  %s2216_s15 = scalar_lea.vmem %s15009_s6, %s2215_s11 }
 0x6bf   :  { %v10391_v36 = vmul.f32 -1.442695, %v5387_v60  ;;  %v10392_v32 = vmul.f32 -1.442695, %v5389_v46  ;;  %v10357_v40 = vmul.f32 -1.442695, %v11029_v42 }
 0x6c0   :  { %11906 = vpow2.f32 %v10390_v47  ;;  %v2121_v29 = vld [vmem:[%s2120_s5] ss:$8 sm:$0xf]  ;;  %v12125_v11 = vld [vmem:[#allocation17 + $0x20] ss:$16 sps:$4 sm:$0xff]   ;;  %s14624_s5 = sadd.s32 %s10926_s21, %s2191_s14  ;;  %s2172_s29 = sshra.s32 %s14603_s25, 3 }
 0x6c1   :  { %11908 = vpow2.f32 %v10391_v36  ;;  %v2122_v26 = vadd.f32 %v2121_v29, %v2111_v62  ;;  %v12122_v29 = vld [vmem:[#allocation17 + $0x8] ss:$16 sps:$4 sm:$0xff]   ;;  %v12141_v42 = vld [vmem:[#allocation17 + $0xa0] ss:$16 sps:$4 sm:$0xff]   ;;  %s2195_s17 = scalar_lea.vmem [#allocation8], %s14624_s5 }
 0x6c2   :  { %11910 = vpow2.f32 %v10392_v32 }
 0x6c3   :  { %v2133_v53 = vadd.f32 %v2132_v49, %v2122_v26  ;;  %11912 = vtanh.f32 %v5388_v35  ;;  %v12124_v35 = vld [vmem:[#allocation17 + $0x2c] ss:$16 sps:$4 sm:$0xff]   ;;  %v12126_v26 = vld [vmem:[#allocation17 + $0x28] ss:$16 sps:$4 sm:$0xff]  }
 0x6c4   :  { %v12128_v49 = vld [vmem:[#allocation17 + $0x4c] ss:$16 sps:$4 sm:$0xff]  }
 0x6c5   :  { %v2087_v34 = vld [vmem:[#allocation2 + $0xc0] ss:$8 sm:$0xf]  ;;  %v2135_v60 = vld [vmem:[#allocation2 + $0xc1] ss:$8 sm:$0xf] }
 0x6c6   :  { %v2088_v2 = vadd.f32 %v2087_v34, %v2085_v14  ;;  %v2136_v44 = vadd.f32 %v2135_v60, %v2133_v53  ;;  %v12123_v34 = vld [vmem:[#allocation17 + $0x24] ss:$16 sps:$4 sm:$0xff]   ;;  %v12130_v53 = vld [vmem:[#allocation17 + $0x48] ss:$16 sps:$4 sm:$0xff]  }
 0x6c8   :  { %2089 = vst.msk [vmem:[#allocation2 + $0xc0] ss:$8 sm:$0xf] %vm12837_vm0, %v2088_v2  ;;  %2137 = vst.msk [vmem:[#allocation2 + $0xc1] ss:$8 sm:$0xf] %vm12837_vm0, %v2136_v44 }
 0x6c9   :  { %v12127_v2 = vld [vmem:[#allocation17 + $0x44] ss:$16 sps:$4 sm:$0xff]   ;;  %v12133_v44 = vld [vmem:[#allocation17 + $0x60] ss:$16 sps:$4 sm:$0xff]  }
 0x6ca   :  { %v11907_v13 = vpop.eup %11906 }
 0x6cb   :  { %v11909_v6 = vpop.eup %11908  ;;  %v5393_v47 = vadd.f32 1.0, %v11907_v13  ;;  %v12129_v13 = vld [vmem:[#allocation17 + $0x40] ss:$16 sps:$4 sm:$0xff]  }
 0x6cc   :  { %v5399_v27 = vadd.f32 1.0, %v11909_v6  ;;  %v11911_v20 = vpop.eup %11910  ;;  %v12131_v6 = vld [vmem:[#allocation17 + $0x64] ss:$16 sps:$4 sm:$0xff]  }
 0x6cd   :  { %11914 = vrcp.f32 %v5393_v47  ;;  %v11913_v18 = vpop.eup %11912  ;;  %v5406_v8 = vadd.f32 1.0, %v11911_v20  ;;  %v12132_v47 = vld [vmem:[#allocation17 + $0x6c] ss:$16 sps:$4 sm:$0xff]   ;;  %v12134_v20 = vld [vmem:[#allocation17 + $0x68] ss:$16 sps:$4 sm:$0xff]  }
 0x6ce   :  { %11916 = vrcp.f32 %v5399_v27 }
 0x6cf   :  { %11918 = vrcp.f32 %v5406_v8  ;;  %v12139_v8 = vld [vmem:[#allocation17 + $0xa4] ss:$16 sps:$4 sm:$0xff]  }
 0x6d7   :  { %v11915_v59 = vpop.eup %11914 }
 0x6d8   :  { %v11917_v36 = vpop.eup %11916  ;;  %v5410_v4 = vmul.f32 %v11915_v59, %v11913_v18  ;;  %v12135_v18 = vld [vmem:[#allocation17 + $0x84] ss:$16 sps:$4 sm:$0xff]   ;;  %v12136_v59 = vld [vmem:[#allocation17 + $0x8c] ss:$16 sps:$4 sm:$0xff]  }
 0x6d9   :  { %v5409_v48 = vmul.f32 %v11917_v36, %v13910_v43  ;;  %v11919_v14 = vpop.eup %11918  ;;  %v12121_v43 = vld [vmem:[#allocation17] ss:$16 sps:$4 sm:$0xff]  }
 0x6da   :  { %v12137_v36 = vld [vmem:[#allocation17 + $0x80] ss:$16 sps:$4 sm:$0xff]  }
 0x6db   :  { %v14284_v46 = vadd.f32 %v5410_v4, %v5409_v48  ;;  %v12138_v4 = vld [vmem:[#allocation17 + $0x88] ss:$16 sps:$4 sm:$0xff]   ;;  %v12140_v48 = vld [vmem:[#allocation17 + $0xac] ss:$16 sps:$4 sm:$0xff]  }
 0x6dd   :  { %11920 = vtanh.f32 %v14284_v46 }
 0x6de   :  { %11922 = vpow2.f32 %v10357_v40  ;;  %v12143_v40 = vld [vmem:[#allocation17 + $0xc4] ss:$16 sps:$4 sm:$0xff]  }
 0x6df   :  { %11924 = vtanh.f32 %v14260_v23 }
 0x6e7   :  { %v11921_v62 = vpop.eup %11920 }
 0x6e8   :  { %v5413_v50 = vmul.f32 %v11921_v62, %v11919_v14  ;;  %v11923_v60 = vpop.eup %11922  ;;  %v12142_v14 = vld [vmem:[#allocation17 + $0xa8] ss:$16 sps:$4 sm:$0xff]   ;;  %v12144_v62 = vld [vmem:[#allocation17 + $0xcc] ss:$16 sps:$4 sm:$0xff]  }
 0x6e9   :  { %v5099_v27 = vadd.f32 1.0, %v11923_v60 }
 0x6ea   :  { %v14289_v32 = vpack.c.bf16 %v5413_v50, %v5413_v50  ;;  %v11925_v50 = vpop.eup %11924 }
 0x6eb   :  { %11926 = vrcp.f32 %v5099_v27  ;;  %v15375_v27 = vld [vmem:[#allocation47_spill] sm:$0xff] }
 0x6ec   :  { %5640 = vmatmul.mubr.bf16.vlgmr.msra.gmra.mrb[36].mxu0 %v14289_v32  ;;  %5681 = vmatmul.mubr.bf16.vlgmr.msra.gmra.mrb[36].mxu1 %v14289_v32 }
 0x6ed   :  { %5883 = vmatpush1.bf16.msra.mxu0 %v12121_v43  ;;  %5924 = vmatpush1.bf16.msra.mxu1 %v12122_v29  ;;  %v12145_v29 = vld [vmem:[#allocation17 + $0xc0] ss:$16 sps:$4 sm:$0xff]  }
 0x6ee   :  { %5884 = vmatprep.subr.bf16.mxu0 %v12123_v34  ;;  %5925 = vmatprep.subr.bf16.mxu1 %v12124_v35  ;;  %v12146_v34 = vld [vmem:[#allocation17 + $0xc8] ss:$16 sps:$4 sm:$0xff]   ;;  %v12147_v35 = vld [vmem:[#allocation17 + $0xe4] ss:$16 sps:$4 sm:$0xff]  }
 0x6ef   :  { %5914 = vmatprep.mubr.bf16.mxu0 %v15245_v24  ;;  %5955 = vmatprep.mubr.bf16.mxu1 %v15245_v24 }
 0x6f1   :  { %5885 = vmatpush1.bf16.msra.mxu0 %v12125_v11  ;;  %5926 = vmatpush1.bf16.msra.mxu1 %v12126_v26  ;;  %v12148_v11 = vld [vmem:[#allocation17 + $0xec] ss:$16 sps:$4 sm:$0xff]  }
 0x6f2   :  { %5886 = vmatprep.subr.bf16.mxu0 %v12127_v2  ;;  %5927 = vmatprep.subr.bf16.mxu1 %v12128_v49  ;;  %v12149_v2 = vld [vmem:[#allocation17 + $0xe0] ss:$16 sps:$4 sm:$0xff]   ;;  %v12150_v49 = vld [vmem:[#allocation17 + $0xe8] ss:$16 sps:$4 sm:$0xff]  }
 0x6f5   :  { %5887 = vmatpush1.bf16.msra.mxu0 %v12129_v13  ;;  %5928 = vmatpush1.bf16.msra.mxu1 %v12130_v53  ;;  %v11927_v43 = vpop.eup %11926  ;;  %v12151_v13 = vld [vmem:[#allocation14 + $0x4] ss:$16 sps:$4 sm:$0xff]   ;;  %v12152_v53 = vld [vmem:[#allocation14 + $0xc] ss:$16 sps:$4 sm:$0xff]  }
 0x6f6   :  { %5888 = vmatprep.subr.bf16.mxu0 %v12131_v6  ;;  %5929 = vmatprep.subr.bf16.mxu1 %v12132_v47  ;;  %v5106_v26 = vmul.f32 %v11927_v43, %v11925_v50  ;;  %v12153_v6 = vld [vmem:[#allocation14] ss:$16 sps:$4 sm:$0xff]   ;;  %v12154_v47 = vld [vmem:[#allocation14 + $0x8] ss:$16 sps:$4 sm:$0xff]  }
 0x6f8   :  { %v14296_v60 = vpack.c.bf16 %v5106_v26, %v5106_v26 }
 0x6f9   :  { %5889 = vmatpush1.bf16.msra.mxu0 %v12133_v44  ;;  %5930 = vmatpush1.bf16.msra.mxu1 %v12134_v20  ;;  %v15376_v44 = vld [vmem:[#allocation48_spill] sm:$0xff]  ;;  %v15377_v20 = vld [vmem:[#allocation49_spill] sm:$0xff] }
 0x6fa   :  { %5890 = vmatprep.subr.bf16.mxu0 %v12135_v18  ;;  %5931 = vmatprep.subr.bf16.mxu1 %v12136_v59  ;;  %15362 = vst [vmem:[#allocation66_spill] sm:$0xff] %v14296_v60  ;;  %v15378_v18 = vld [vmem:[#allocation50_spill] sm:$0xff] }
 0x6fd   :  { %5891 = vmatpush1.bf16.msra.mxu0 %v12137_v36  ;;  %5932 = vmatpush1.bf16.msra.mxu1 %v12138_v4  ;;  %v15394_v36 = vld [vmem:[#allocation93_spill] sm:$0xff] }
 0x6fe   :  { %5892 = vmatprep.subr.bf16.mxu0 %v12139_v8  ;;  %5933 = vmatprep.subr.bf16.mxu1 %v12140_v48 }
 0x701   :  { %5893 = vmatpush1.bf16.msra.mxu0 %v12141_v42  ;;  %5934 = vmatpush1.bf16.msra.mxu1 %v12142_v14  ;;  %v15395_v42 = vld [vmem:[#allocation94_spill] sm:$0xff] }
 0x702   :  { %5894 = vmatprep.subr.bf16.mxu0 %v12143_v40  ;;  %5935 = vmatprep.subr.bf16.mxu1 %v12144_v62 }
 0x705   :  { %5895 = vmatpush1.bf16.msra.mxu0 %v12145_v29  ;;  %5936 = vmatpush1.bf16.msra.mxu1 %v12146_v34 }
 0x706   :  { %5896 = vmatprep.subr.bf16.mxu0 %v12147_v35  ;;  %5937 = vmatprep.subr.bf16.mxu1 %v12148_v11  ;;  %v15396_v35 = vld [vmem:[#allocation95_spill] sm:$0xff] }
 0x709   :  { %5897 = vmatpush1.bf16.msra.mxu0 %v12149_v2  ;;  %5938 = vmatpush1.bf16.msra.mxu1 %v12150_v49 }
 0x70a   :  { %6189 = vmatprep.subr.bf16.mxu0 %v12151_v13  ;;  %6230 = vmatprep.subr.bf16.mxu1 %v12152_v53  ;;  %v1307_v53 = vld [vmem:[%s15004_s1] sm:$0xff]  ;;  %s14549_s1 = sld [smem:[#allocation4 + $0x380]] }
 0x70b   :  { %1311 = vperm.xlu1 %11156, %v1307_v53   ;;  %1375 = vperm.xlu0 %11159, %v1307_v53  }
 0x70c   :  { %5915 = vmatmul.mubr.bf16.vlgmr.msra.gmra.mrb[28].mxu0 %v14296_v60  ;;  %5956 = vmatmul.mubr.bf16.vlgmr.msra.gmra.mrb[28].mxu1 %v14296_v60  ;;  %v14547_v60 = vld [vmem:[#allocation14 + $0x88] ss:$16 sps:$4 sm:$0xff]  }
 0x70d   :  { %6190 = vmatpush1.bf16.msra.mxu0 %v12153_v6  ;;  %6231 = vmatpush1.bf16.msra.mxu1 %v12154_v47  ;;  %v15397_v6 = vmov 7  }
 0x70e   :  { %6191 = vmatprep.subr.bf16.mxu0 %v13924_v5  ;;  %6232 = vmatprep.subr.bf16.mxu1 %v13926_v19  ;;  %v15363_v5 = vld [vmem:[#allocation35_spill] sm:$0xff]  ;;  %v15364_v19 = vld [vmem:[#allocation36_spill] sm:$0xff] }
 0x70f   :  { %6221 = vmatprep.mubr.bf16.mxu0 %v15245_v24  ;;  %6262 = vmatprep.mubr.bf16.mxu1 %v15245_v24 }
 0x710   :  { %11158 = vset.pattern.permute.xlu1 %v15397_v6  ;;  %v14420_v6 = vld [vmem:[#allocation17 + $0x48] ss:$16 sps:$4 sm:$0xff]   ;;  %s2140_s8 = sshra.s32 %s14549_s1, 3  ;;  %s2143_s19 = sand.u32 7, %s14549_s1 }
 0x711   :  { %6192 = vmatpush1.bf16.msra.mxu0 %v13930_v58  ;;  %6233 = vmatpush1.bf16.msra.mxu1 %v13932_v38  ;;  %v15365_v58 = vld [vmem:[#allocation37_spill] sm:$0xff]  ;;  %v15366_v38 = vld [vmem:[#allocation38_spill] sm:$0xff]  ;;  %s10922_s4 = sshll.u32 %s2140_s8, 5  ;;  %s2220_s8 = sshra.s32 %s14608_s13, 3 }
 0x712   :  { %6193 = vmatprep.subr.bf16.mxu0 %v13936_v15  ;;  %6234 = vmatprep.subr.bf16.mxu1 %v13938_v7  ;;  %v15367_v15 = vld [vmem:[#allocation39_spill] sm:$0xff]  ;;  %v15368_v7 = vld [vmem:[#allocation40_spill] sm:$0xff]  ;;  %s14606_s12 = sadd.s32 %s10922_s4, %s2143_s19  ;;  %s2175_s19 = sand.u32 7, %s14603_s25 }
 0x713   :  { %1341 = vperm.xlu1 %11158, %v1307_v53   ;;  %v14418_v53 = vld [vmem:[#allocation17 + $0x40] ss:$16 sps:$4 sm:$0xff]   ;;  %s2147_s24 = scalar_lea.vmem [#allocation8], %s14606_s12  ;;  %s10925_s4 = sshll.u32 %s2172_s29, 5 }
 0x714   :  { %s2223_s25 = sand.u32 7, %s14608_s13  ;;  %s10929_s27 = sshll.u32 %s2220_s8, 5 }
 0x715   :  { %6194 = vmatpush1.bf16.msra.mxu0 %v13944_v21  ;;  %6235 = vmatpush1.bf16.msra.mxu1 %v13946_v39  ;;  %v15369_v21 = vld [vmem:[#allocation41_spill] sm:$0xff]  ;;  %v15370_v39 = vld [vmem:[#allocation42_spill] sm:$0xff]  ;;  %s2178_s13 = sadd.s32 %s10925_s4, %s2175_s19  ;;  %s2226_s7 = sadd.s32 %s10929_s27, %s2223_s25 }
 0x716   :  { %6195 = vmatprep.subr.bf16.mxu0 %v13950_v25  ;;  %6236 = vmatprep.subr.bf16.mxu1 %v13952_v31  ;;  %v15371_v25 = vld [vmem:[#allocation43_spill] sm:$0xff]  ;;  %v15372_v31 = vld [vmem:[#allocation44_spill] sm:$0xff]  ;;  %15432 = vst [vmem:[#allocation42_spill] sm:$0xff] %v14547_v60  ;;  %s2179_s6 = scalar_lea.vmem [#allocation11], %s2178_s13  ;;  %s2227_s9 = scalar_lea.vmem [#allocation11], %s2226_s7 }
 0x719   :  { %6196 = vmatpush1.bf16.msra.mxu0 %v13956_v51  ;;  %6237 = vmatpush1.bf16.msra.mxu1 %v13958_v33  ;;  %v15373_v51 = vld [vmem:[#allocation45_spill] sm:$0xff]  ;;  %v15374_v33 = vld [vmem:[#allocation46_spill] sm:$0xff] }
 0x71a   :  { %6197 = vmatprep.subr.bf16.mxu0 %v15363_v5  ;;  %6238 = vmatprep.subr.bf16.mxu1 %v15364_v19 }
 0x71d   :  { %6198 = vmatpush1.bf16.msra.mxu0 %v15365_v58  ;;  %6239 = vmatpush1.bf16.msra.mxu1 %v15366_v38 }
 0x71e   :  { %6199 = vmatprep.subr.bf16.mxu0 %v15367_v15  ;;  %6240 = vmatprep.subr.bf16.mxu1 %v15368_v7  ;;  %v5993_v7 = vld [vmem:[#allocation2 + $0xa0] sm:$0xff] }
 0x721   :  { %6200 = vmatpush1.bf16.msra.mxu0 %v15369_v21  ;;  %6241 = vmatpush1.bf16.msra.mxu1 %v15370_v39 }
 0x722   :  { %6201 = vmatprep.subr.bf16.mxu0 %v15371_v25  ;;  %6242 = vmatprep.subr.bf16.mxu1 %v15372_v31  ;;  %v5994_v31 = vld [vmem:[#allocation2 + $0xa8] sm:$0xff] }
 0x725   :  { %6202 = vmatpush1.bf16.msra.mxu0 %v15373_v51  ;;  %6243 = vmatpush1.bf16.msra.mxu1 %v15374_v33 }
 0x726   :  { %6203 = vmatprep.subr.bf16.mxu0 %v15375_v27  ;;  %6244 = vmatprep.subr.bf16.mxu1 %v15376_v44 }
 0x729   :  { %6204 = vmatpush1.bf16.msra.mxu0 %v15377_v20  ;;  %6245 = vmatpush1.bf16.msra.mxu1 %v15378_v18 }
 0x72a   :  { %6492 = vmatprep.subr.bf16.mxu0 %v14100_v17  ;;  %6533 = vmatprep.subr.bf16.mxu1 %v14102_v12  ;;  %v15379_v17 = vld [vmem:[#allocation51_spill] sm:$0xff]  ;;  %v15380_v12 = vld [vmem:[#allocation52_spill] sm:$0xff] }
 0x72c   :  { %6222 = vmatmul.mubr.bf16.vlgmr.msra.gmra.mrb[40].mxu0 %v14289_v32  ;;  %6263 = vmatmul.mubr.bf16.vlgmr.msra.gmra.mrb[40].mxu1 %v14289_v32 }
 0x72d   :  { %6493 = vmatpush1.bf16.msra.mxu0 %v14104_v1  ;;  %6534 = vmatpush1.bf16.msra.mxu1 %v14106_v22  ;;  %v15381_v1 = vld [vmem:[#allocation53_spill] sm:$0xff]  ;;  %v15382_v22 = vld [vmem:[#allocation54_spill] sm:$0xff] }
 0x72e   :  { %6494 = vmatprep.subr.bf16.mxu0 %v14112_v56  ;;  %6535 = vmatprep.subr.bf16.mxu1 %v14114_v61  ;;  %v15383_v56 = vld [vmem:[#allocation55_spill] sm:$0xff]  ;;  %v15384_v61 = vld [vmem:[#allocation56_spill] sm:$0xff] }
 0x72f   :  { %6524 = vmatprep.mubr.bf16.mxu0 %v15245_v24  ;;  %6565 = vmatprep.mubr.bf16.mxu1 %v15245_v24 }
 0x731   :  { %6495 = vmatpush1.bf16.msra.mxu0 %v14116_v0  ;;  %6536 = vmatpush1.bf16.msra.mxu1 %v14118_v10  ;;  %v15385_v0 = vld [vmem:[#allocation57_spill] sm:$0xff]  ;;  %v15386_v10 = vld [vmem:[#allocation58_spill] sm:$0xff] }
 0x732   :  { %6496 = vmatprep.subr.bf16.mxu0 %v14124_v28  ;;  %6537 = vmatprep.subr.bf16.mxu1 %v14126_v16  ;;  %v15387_v28 = vld [vmem:[#allocation59_spill] sm:$0xff]  ;;  %v15388_v16 = vld [vmem:[#allocation60_spill] sm:$0xff] }
 0x735   :  { %6497 = vmatpush1.bf16.msra.mxu0 %v14128_v57  ;;  %6538 = vmatpush1.bf16.msra.mxu1 %v14130_v55  ;;  %v15389_v57 = vld [vmem:[#allocation61_spill] sm:$0xff]  ;;  %v15390_v55 = vld [vmem:[#allocation62_spill] sm:$0xff] }
 0x736   :  { %6498 = vmatprep.subr.bf16.mxu0 %v14136_v37  ;;  %6539 = vmatprep.subr.bf16.mxu1 %v14138_v30  ;;  %v15391_v37 = vld [vmem:[#allocation63_spill] sm:$0xff]  ;;  %v15392_v30 = vld [vmem:[#allocation64_spill] sm:$0xff] }
 0x739   :  { %6499 = vmatpush1.bf16.msra.mxu0 %v14140_v9  ;;  %6540 = vmatpush1.bf16.msra.mxu1 %v14142_v45  ;;  %v15393_v9 = vld [vmem:[#allocation65_spill] sm:$0xff] }
 0x73a   :  { %6500 = vmatprep.subr.bf16.mxu0 %v14148_v63  ;;  %6541 = vmatprep.subr.bf16.mxu1 %v15379_v17  ;;  %v14366_v45 = vld [vmem:[#allocation17 + $0x4] ss:$16 sps:$4 sm:$0xff]   ;;  %v14368_v63 = vld [vmem:[#allocation17 + $0xc] ss:$16 sps:$4 sm:$0xff]  }
 0x73d   :  { %6501 = vmatpush1.bf16.msra.mxu0 %v15380_v12  ;;  %6542 = vmatpush1.bf16.msra.mxu1 %v15381_v1 }
 0x73e   :  { %6502 = vmatprep.subr.bf16.mxu0 %v15382_v22  ;;  %6543 = vmatprep.subr.bf16.mxu1 %v15383_v56  ;;  %v5996_v22 = vld [vmem:[#allocation2 + $0xb8] sm:$0xff]  ;;  %v5995_v56 = vld [vmem:[#allocation2 + $0xb0] sm:$0xff] }
 0x741   :  { %6503 = vmatpush1.bf16.msra.mxu0 %v15384_v61  ;;  %6544 = vmatpush1.bf16.msra.mxu1 %v15385_v0 }
 0x742   :  { %6504 = vmatprep.subr.bf16.mxu0 %v15386_v10  ;;  %6545 = vmatprep.subr.bf16.mxu1 %v15387_v28 }
 0x745   :  { %6505 = vmatpush1.bf16.msra.mxu0 %v15388_v16  ;;  %6546 = vmatpush1.bf16.msra.mxu1 %v15389_v57 }
 0x746   :  { %6506 = vmatprep.subr.bf16.mxu0 %v15390_v55  ;;  %6547 = vmatprep.subr.bf16.mxu1 %v15391_v37 }
 0x749   :  { %6507 = vmatpush1.bf16.msra.mxu0 %v15392_v30  ;;  %6548 = vmatpush1.bf16.msra.mxu1 %v15393_v9 }
 0x74a   :  { %6767 = vmatprep.subr.bf16.mxu0 %v14366_v45  ;;  %6808 = vmatprep.subr.bf16.mxu1 %v14368_v63 }
 0x7df   :  { %v5916_v32 = vpop.f32.mrb[28].mxu0  ;;  %v5957_v59 = vpop.f32.mrb[28].mxu1 }
 0x7e0   :  { %v11030_v4 = vadd.f32 %v5916_v32, %v15394_v36  ;;  %v5918_v8 = vpop.f32.mrb[29].mxu0  ;;  %v14373_v48 = vpop.f32.mrb[29].mxu1  ;;  %v11032_v11 = vadd.f32 %v5957_v59, %v15396_v35 }
 0x7e1   :  { %v11031_v14 = vadd.f32 %v5918_v8, %v15395_v42  ;;  %v5920_v40 = vpop.f32.mrb[30].mxu0  ;;  %v5961_v62 = vpop.f32.mrb[30].mxu1 }
 0x7e2   :  { %v10457_v50 = vmul.f32 -1.442695, %v11030_v4  ;;  %v5921_v43 = vpop.f32.mrb[31].mxu0  ;;  %v5962_v29 = vpop.f32.mrb[31].mxu1 }
 0x7e3   :  { %v10458_v34 = vmul.f32 -1.442695, %v11031_v14  ;;  %v11033_v14 = vadd.f32 %v14373_v48, %v13672_v41  ;;  %v14390_v29 = vld [vmem:[#allocation17] ss:$16 sps:$4 sm:$0xff]  }
 0x7e4   :  { %11928 = vpow2.f32 %v10457_v50  ;;  %v14404_v48 = vld [vmem:[#allocation17 + $0x20] ss:$16 sps:$4 sm:$0xff]  }
 0x7e5   :  { %11930 = vpow2.f32 %v10458_v34  ;;  %v10459_v62 = vmul.f32 -1.442695, %v11033_v14  ;;  %v14392_v34 = vld [vmem:[#allocation17 + $0x8] ss:$16 sps:$4 sm:$0xff]   ;;  %v14515_v14 = vld [vmem:[#allocation14 + $0x4c] ss:$16 sps:$4 sm:$0xff]  }
 0x7e6   :  { %11932 = vtanh.f32 %v11032_v11  ;;  %15422 = vst [vmem:[#allocation90_spill] sm:$0xff] %v14515_v14 }
 0x7ee   :  { %v11929_v26 = vpop.eup %11928 }
 0x7ef   :  { %v11931_v2 = vpop.eup %11930  ;;  %v5971_v49 = vadd.f32 1.0, %v11929_v26  ;;  %v14398_v26 = vld [vmem:[#allocation17 + $0x2c] ss:$16 sps:$4 sm:$0xff]  }
 0x7f0   :  { %v5977_v13 = vadd.f32 1.0, %v11931_v2  ;;  %v11933_v47 = vpop.eup %11932  ;;  %v14406_v2 = vld [vmem:[#allocation17 + $0x28] ss:$16 sps:$4 sm:$0xff]  }
 0x7f1   :  { %11934 = vrcp.f32 %v5971_v49  ;;  %v14410_v49 = vld [vmem:[#allocation17 + $0x44] ss:$16 sps:$4 sm:$0xff]  }
 0x7f2   :  { %11936 = vrcp.f32 %v5977_v13  ;;  %v14412_v13 = vld [vmem:[#allocation17 + $0x4c] ss:$16 sps:$4 sm:$0xff]  }
 0x7fb   :  { %v11935_v5 = vpop.eup %11934 }
 0x7fc   :  { %v11937_v19 = vpop.eup %11936  ;;  %v5988_v58 = vmul.f32 %v11935_v5, %v11933_v47  ;;  %v14424_v47 = vld [vmem:[#allocation17 + $0x64] ss:$16 sps:$4 sm:$0xff]   ;;  %v14426_v5 = vld [vmem:[#allocation17 + $0x6c] ss:$16 sps:$4 sm:$0xff]  }
 0x7fd   :  { %v5987_v38 = vmul.f32 %v11937_v19, %v14260_v23 }
 0x7ff   :  { %v14382_v15 = vadd.f32 %v5988_v58, %v5987_v38  ;;  %v6223_v21 = vpop.f32.mrb[40].mxu0  ;;  %v6264_v39 = vpop.f32.mrb[40].mxu1  ;;  %v14430_v58 = vld [vmem:[#allocation17 + $0x60] ss:$16 sps:$4 sm:$0xff]   ;;  %v14432_v38 = vld [vmem:[#allocation17 + $0x68] ss:$16 sps:$4 sm:$0xff]  }
 0x800   :  { %v6271_v25 = vadd.f32 %v6223_v21, %v5993_v7  ;;  %v6225_v51 = vpop.f32.mrb[41].mxu0  ;;  %v6266_v33 = vpop.f32.mrb[41].mxu1  ;;  %v6273_v0 = vadd.f32 %v6264_v39, %v5995_v56  ;;  %v14436_v7 = vld [vmem:[#allocation17 + $0x84] ss:$16 sps:$4 sm:$0xff]   ;;  %v14438_v21 = vld [vmem:[#allocation17 + $0x8c] ss:$16 sps:$4 sm:$0xff]  }
 0x801   :  { %v6272_v27 = vadd.f32 %v6225_v51, %v5994_v31  ;;  %v6227_v44 = vpop.f32.mrb[42].mxu0  ;;  %v6268_v20 = vpop.f32.mrb[42].mxu1  ;;  %v6274_v23 = vadd.f32 %v6266_v33, %v5996_v22  ;;  %v14444_v31 = vld [vmem:[#allocation17 + $0x88] ss:$16 sps:$4 sm:$0xff]   ;;  %v14449_v51 = vld [vmem:[#allocation17 + $0xa4] ss:$16 sps:$4 sm:$0xff]  }
 0x802   :  { %v10492_v18 = vmul.f32 -1.442695, %v6271_v25  ;;  %v6228_v17 = vpop.f32.mrb[43].mxu0  ;;  %v6269_v12 = vpop.f32.mrb[43].mxu1  ;;  %v14442_v25 = vld [vmem:[#allocation17 + $0x80] ss:$16 sps:$4 sm:$0xff]  }
 0x803   :  { %v10493_v1 = vmul.f32 -1.442695, %v6272_v27  ;;  %v10494_v61 = vmul.f32 -1.442695, %v6274_v23  ;;  %15398 = vst [vmem:[#allocation67_spill] sm:$0xff] %v14442_v25  ;;  %15399 = vst [vmem:[#allocation68_spill] sm:$0xff] %v14444_v31 }
 0x804   :  { %11938 = vpow2.f32 %v10492_v18  ;;  %15400 = vst [vmem:[#allocation69_spill] sm:$0xff] %v14449_v51  ;;  %v14451_v33 = vld [vmem:[#allocation17 + $0xac] ss:$16 sps:$4 sm:$0xff]   ;;  %v14455_v27 = vld [vmem:[#allocation17 + $0xa0] ss:$16 sps:$4 sm:$0xff]  }
 0x805   :  { %11940 = vpow2.f32 %v10493_v1  ;;  %15401 = vst [vmem:[#allocation70_spill] sm:$0xff] %v14451_v33  ;;  %15402 = vst [vmem:[#allocation71_spill] sm:$0xff] %v14455_v27  ;;  %v14457_v44 = vld [vmem:[#allocation17 + $0xa8] ss:$16 sps:$4 sm:$0xff]   ;;  %v14461_v20 = vld [vmem:[#allocation17 + $0xc4] ss:$16 sps:$4 sm:$0xff]  }
 0x806   :  { %11942 = vpow2.f32 %v10494_v61  ;;  %15403 = vst [vmem:[#allocation72_spill] sm:$0xff] %v14457_v44  ;;  %15404 = vst [vmem:[#allocation73_spill] sm:$0xff] %v14461_v20  ;;  %v14463_v18 = vld [vmem:[#allocation17 + $0xcc] ss:$16 sps:$4 sm:$0xff]   ;;  %v14467_v17 = vld [vmem:[#allocation17 + $0xc0] ss:$16 sps:$4 sm:$0xff]  }
 0x807   :  { %11944 = vtanh.f32 %v6273_v0  ;;  %15405 = vst [vmem:[#allocation74_spill] sm:$0xff] %v14463_v18  ;;  %15406 = vst [vmem:[#allocation75_spill] sm:$0xff] %v14467_v17  ;;  %v14469_v12 = vld [vmem:[#allocation17 + $0xc8] ss:$16 sps:$4 sm:$0xff]   ;;  %v14473_v1 = vld [vmem:[#allocation17 + $0xe4] ss:$16 sps:$4 sm:$0xff]  }
 0x808   :  { %15407 = vst [vmem:[#allocation76_spill] sm:$0xff] %v14469_v12  ;;  %15408 = vst [vmem:[#allocation77_spill] sm:$0xff] %v14473_v1  ;;  %v14475_v22 = vld [vmem:[#allocation17 + $0xec] ss:$16 sps:$4 sm:$0xff]   ;;  %v14479_v61 = vld [vmem:[#allocation17 + $0xe0] ss:$16 sps:$4 sm:$0xff]  }
 0x809   :  { %15409 = vst [vmem:[#allocation78_spill] sm:$0xff] %v14475_v22  ;;  %15410 = vst [vmem:[#allocation79_spill] sm:$0xff] %v14479_v61  ;;  %v14481_v0 = vld [vmem:[#allocation17 + $0xe8] ss:$16 sps:$4 sm:$0xff]  }
 0x80a   :  { %15411 = vst [vmem:[#allocation80_spill] sm:$0xff] %v14481_v0 }
 0x80e   :  { %v11939_v10 = vpop.eup %11938 }
 0x80f   :  { %v11941_v28 = vpop.eup %11940  ;;  %v6278_v16 = vadd.f32 1.0, %v11939_v10 }
 0x810   :  { %v6284_v57 = vadd.f32 1.0, %v11941_v28  ;;  %v11943_v55 = vpop.eup %11942  ;;  %v14485_v28 = vld [vmem:[#allocation14 + $0x4] ss:$16 sps:$4 sm:$0xff]  }
 0x811   :  { %11946 = vrcp.f32 %v6278_v16  ;;  %v11945_v37 = vpop.eup %11944  ;;  %v6291_v59 = vadd.f32 1.0, %v11943_v55  ;;  %15412 = vst [vmem:[#allocation81_spill] sm:$0xff] %v14485_v28  ;;  %v14487_v16 = vld [vmem:[#allocation14 + $0xc] ss:$16 sps:$4 sm:$0xff]   ;;  %v14493_v55 = vld [vmem:[#allocation14 + $0x8] ss:$16 sps:$4 sm:$0xff]  }
 0x812   :  { %11948 = vrcp.f32 %v6284_v57  ;;  %15413 = vst [vmem:[#allocation82_spill] sm:$0xff] %v14487_v16  ;;  %v14491_v57 = vld [vmem:[#allocation14] ss:$16 sps:$4 sm:$0xff]   ;;  %15415 = vst [vmem:[#allocation83_spill] sm:$0xff] %v14493_v55 }
 0x813   :  { %11950 = vrcp.f32 %v6291_v59  ;;  %15414 = vst [vmem:[#allocation32_spill] sm:$0xff] %v14491_v57  ;;  %v14509_v59 = vld [vmem:[#allocation14 + $0x28] ss:$16 sps:$4 sm:$0xff]  }
 0x814   :  { %15420 = vst [vmem:[#allocation88_spill] sm:$0xff] %v14509_v59 }
 0x81b   :  { %v11947_v30 = vpop.eup %11946 }
 0x81c   :  { %v11949_v9 = vpop.eup %11948  ;;  %v6295_v32 = vmul.f32 %v11947_v30, %v11945_v37  ;;  %v14499_v30 = vld [vmem:[#allocation14 + $0x24] ss:$16 sps:$4 sm:$0xff]  }
 0x81d   :  { %v6294_v4 = vmul.f32 %v11949_v9, %v14284_v46  ;;  %v11951_v40 = vpop.eup %11950  ;;  %v14396_v46 = vld [vmem:[#allocation17 + $0x24] ss:$16 sps:$4 sm:$0xff]   ;;  %15417 = vst [vmem:[#allocation85_spill] sm:$0xff] %v14499_v30  ;;  %v14501_v9 = vld [vmem:[#allocation14 + $0x2c] ss:$16 sps:$4 sm:$0xff]  }
 0x81e   :  { %15418 = vst [vmem:[#allocation86_spill] sm:$0xff] %v14501_v9 }
 0x81f   :  { %v14385_v8 = vadd.f32 %v6295_v32, %v6294_v4  ;;  %v14507_v32 = vld [vmem:[#allocation14 + $0x20] ss:$16 sps:$4 sm:$0xff]   ;;  %v14513_v4 = vld [vmem:[#allocation14 + $0x44] ss:$16 sps:$4 sm:$0xff]  }
 0x820   :  { %15419 = vst [vmem:[#allocation87_spill] sm:$0xff] %v14507_v32  ;;  %15421 = vst [vmem:[#allocation89_spill] sm:$0xff] %v14513_v4 }
 0x821   :  { %11952 = vtanh.f32 %v14385_v8 }
 0x822   :  { %11954 = vpow2.f32 %v10459_v62  ;;  %v14523_v62 = vld [vmem:[#allocation14 + $0x48] ss:$16 sps:$4 sm:$0xff]  }
 0x823   :  { %11956 = vtanh.f32 %v14382_v15  ;;  %15424 = vst [vmem:[#allocation92_spill] sm:$0xff] %v14523_v62 }
 0x82b   :  { %v11953_v50 = vpop.eup %11952 }
 0x82c   :  { %v6298_v43 = vmul.f32 %v11953_v50, %v11951_v40  ;;  %v11955_v19 = vpop.eup %11954  ;;  %v14521_v40 = vld [vmem:[#allocation14 + $0x40] ss:$16 sps:$4 sm:$0xff]   ;;  %v14527_v50 = vld [vmem:[#allocation14 + $0x64] ss:$16 sps:$4 sm:$0xff]  }
 0x82d   :  { %v5984_v39 = vadd.f32 1.0, %v11955_v19  ;;  %v11957_v23 = vpop.eup %11956  ;;  %15423 = vst [vmem:[#allocation91_spill] sm:$0xff] %v14521_v40  ;;  %15425 = vst [vmem:[#allocation35_spill] sm:$0xff] %v14527_v50  ;;  %v14533_v19 = vld [vmem:[#allocation14 + $0x60] ss:$16 sps:$4 sm:$0xff]  }
 0x82e   :  { %v14394_v11 = vpack.c.bf16 %v6298_v43, %v6298_v43  ;;  %v14529_v43 = vld [vmem:[#allocation14 + $0x6c] ss:$16 sps:$4 sm:$0xff]   ;;  %15427 = vst [vmem:[#allocation37_spill] sm:$0xff] %v14533_v19 }
 0x82f   :  { %11958 = vrcp.f32 %v5984_v39  ;;  %15426 = vst [vmem:[#allocation36_spill] sm:$0xff] %v14529_v43  ;;  %v14535_v39 = vld [vmem:[#allocation14 + $0x68] ss:$16 sps:$4 sm:$0xff]  }
 0x830   :  { %6525 = vmatmul.mubr.bf16.vlgmr.msra.gmra.mrb[44].mxu0 %v14394_v11  ;;  %6566 = vmatmul.mubr.bf16.vlgmr.msra.gmra.mrb[44].mxu1 %v14394_v11  ;;  %15428 = vst [vmem:[#allocation38_spill] sm:$0xff] %v14535_v39 }
 0x831   :  { %6768 = vmatpush1.bf16.msra.mxu0 %v14390_v29  ;;  %6809 = vmatpush1.bf16.msra.mxu1 %v14392_v34 }
 0x832   :  { %6769 = vmatprep.subr.bf16.mxu0 %v14396_v46  ;;  %6810 = vmatprep.subr.bf16.mxu1 %v14398_v26 }
 0x833   :  { %6799 = vmatprep.mubr.bf16.mxu0 %v15245_v24  ;;  %6840 = vmatprep.mubr.bf16.mxu1 %v15245_v24 }
 0x835   :  { %6770 = vmatpush1.bf16.msra.mxu0 %v14404_v48  ;;  %6811 = vmatpush1.bf16.msra.mxu1 %v14406_v2 }
 0x836   :  { %6771 = vmatprep.subr.bf16.mxu0 %v14410_v49  ;;  %6812 = vmatprep.subr.bf16.mxu1 %v14412_v13 }
 0x839   :  { %6772 = vmatpush1.bf16.msra.mxu0 %v14418_v53  ;;  %6813 = vmatpush1.bf16.msra.mxu1 %v14420_v6  ;;  %v11959_v56 = vpop.eup %11958 }
 0x83a   :  { %6773 = vmatprep.subr.bf16.mxu0 %v14424_v47  ;;  %6814 = vmatprep.subr.bf16.mxu1 %v14426_v5  ;;  %v5991_v10 = vmul.f32 %v11959_v56, %v11957_v23  ;;  %v14539_v23 = vld [vmem:[#allocation14 + $0x84] ss:$16 sps:$4 sm:$0xff]   ;;  %v14541_v56 = vld [vmem:[#allocation14 + $0x8c] ss:$16 sps:$4 sm:$0xff]  }
 0x83b   :  { %15429 = vst [vmem:[#allocation39_spill] sm:$0xff] %v14539_v23  ;;  %15430 = vst [vmem:[#allocation40_spill] sm:$0xff] %v14541_v56 }
 0x83c   :  { %v14495_v37 = vpack.c.bf16 %v5991_v10, %v5991_v10  ;;  %v14545_v10 = vld [vmem:[#allocation14 + $0x80] ss:$16 sps:$4 sm:$0xff]  }
 0x83d   :  { %6774 = vmatpush1.bf16.msra.mxu0 %v14430_v58  ;;  %6815 = vmatpush1.bf16.msra.mxu1 %v14432_v38  ;;  %15431 = vst [vmem:[#allocation41_spill] sm:$0xff] %v14545_v10 }
 0x83e   :  { %6775 = vmatprep.subr.bf16.mxu0 %v14436_v7  ;;  %6816 = vmatprep.subr.bf16.mxu1 %v14438_v21  ;;  %15416 = vst [vmem:[#allocation84_spill] sm:$0xff] %v14495_v37 }
 0x841   :  { %6776 = vmatpush1.bf16.msra.mxu0 %v14442_v25  ;;  %6817 = vmatpush1.bf16.msra.mxu1 %v14444_v31 }
 0x842   :  { %6777 = vmatprep.subr.bf16.mxu0 %v14449_v51  ;;  %6818 = vmatprep.subr.bf16.mxu1 %v14451_v33 }
 0x845   :  { %6778 = vmatpush1.bf16.msra.mxu0 %v14455_v27  ;;  %6819 = vmatpush1.bf16.msra.mxu1 %v14457_v44 }
 0x846   :  { %6779 = vmatprep.subr.bf16.mxu0 %v14461_v20  ;;  %6820 = vmatprep.subr.bf16.mxu1 %v14463_v18 }
 0x849   :  { %6780 = vmatpush1.bf16.msra.mxu0 %v14467_v17  ;;  %6821 = vmatpush1.bf16.msra.mxu1 %v14469_v12  ;;  %v2148_v12 = vld [vmem:[%s2147_s24] ss:$8 sm:$0xf] }
 0x84a   :  { %6781 = vmatprep.subr.bf16.mxu0 %v14473_v1  ;;  %6822 = vmatprep.subr.bf16.mxu1 %v14475_v22 }
 0x84d   :  { %6782 = vmatpush1.bf16.msra.mxu0 %v14479_v61  ;;  %6823 = vmatpush1.bf16.msra.mxu1 %v14481_v0 }
 0x84e   :  { %7074 = vmatprep.subr.bf16.mxu0 %v14485_v28  ;;  %7115 = vmatprep.subr.bf16.mxu1 %v14487_v16  ;;  %v9857_v28 = vld [vmem:[%s15006_s3 + $0x7] ss:$8 sm:$0xf]  ;;  %s2157_s3 = scalar_lea.vmem [#allocation10], %s14610_s16 }
 0x84f   :  { %v2158_v17 = vld [vmem:[%s2157_s3] ss:$8 sm:$0xf] }
 0x850   :  { %6800 = vmatmul.mubr.bf16.vlgmr.msra.gmra.mrb[36].mxu0 %v14495_v37  ;;  %6841 = vmatmul.mubr.bf16.vlgmr.msra.gmra.mrb[36].mxu1 %v14495_v37  ;;  %v14553_v37 = vld [vmem:[#allocation14 + $0xa4] ss:$16 sps:$4 sm:$0xff]  }
 0x851   :  { %7075 = vmatpush1.bf16.msra.mxu0 %v14491_v57  ;;  %7116 = vmatpush1.bf16.msra.mxu1 %v14493_v55  ;;  %15433 = vst [vmem:[#allocation43_spill] sm:$0xff] %v14553_v37 }
 0x852   :  { %7076 = vmatprep.subr.bf16.mxu0 %v14499_v30  ;;  %7117 = vmatprep.subr.bf16.mxu1 %v14501_v9  ;;  %v1376_v30 = vpop.permute.xlu0 %1375 }
 0x853   :  { %7106 = vmatprep.mubr.bf16.mxu0 %v15245_v24  ;;  %7147 = vmatprep.mubr.bf16.mxu1 %v15245_v24 }
 0x855   :  { %7077 = vmatpush1.bf16.msra.mxu0 %v14507_v32  ;;  %7118 = vmatpush1.bf16.msra.mxu1 %v14509_v59 }
 0x856   :  { %7078 = vmatprep.subr.bf16.mxu0 %v14513_v4  ;;  %7119 = vmatprep.subr.bf16.mxu1 %v14515_v14 }
 0x859   :  { %7079 = vmatpush1.bf16.msra.mxu0 %v14521_v40  ;;  %7120 = vmatpush1.bf16.msra.mxu1 %v14523_v62  ;;  %v1312_v62 = vpop.permute.xlu1 %1311 }
 0x85a   :  { %7080 = vmatprep.subr.bf16.mxu0 %v14527_v50  ;;  %7121 = vmatprep.subr.bf16.mxu1 %v14529_v43  ;;  %v14555_v43 = vld [vmem:[#allocation14 + $0xac] ss:$16 sps:$4 sm:$0xff]   ;;  %v14573_v50 = vld [vmem:[#allocation14 + $0xc0] ss:$16 sps:$4 sm:$0xff]  }
 0x85b   :  { %15434 = vst [vmem:[#allocation44_spill] sm:$0xff] %v14555_v43  ;;  %15439 = vst [vmem:[#allocation49_spill] sm:$0xff] %v14573_v50 }
 0x85d   :  { %7081 = vmatpush1.bf16.msra.mxu0 %v14533_v19  ;;  %7122 = vmatpush1.bf16.msra.mxu1 %v14535_v39  ;;  %v14561_v39 = vld [vmem:[#allocation14 + $0xa0] ss:$16 sps:$4 sm:$0xff]   ;;  %v14563_v19 = vld [vmem:[#allocation14 + $0xa8] ss:$16 sps:$4 sm:$0xff]  }
 0x85e   :  { %7082 = vmatprep.subr.bf16.mxu0 %v14539_v23  ;;  %7123 = vmatprep.subr.bf16.mxu1 %v14541_v56  ;;  %15435 = vst [vmem:[#allocation45_spill] sm:$0xff] %v14561_v39  ;;  %15436 = vst [vmem:[#allocation46_spill] sm:$0xff] %v14563_v19  ;;  %v14567_v56 = vld [vmem:[#allocation14 + $0xc4] ss:$16 sps:$4 sm:$0xff]   ;;  %v14569_v23 = vld [vmem:[#allocation14 + $0xcc] ss:$16 sps:$4 sm:$0xff]  }
 0x85f   :  { %15437 = vst [vmem:[#allocation47_spill] sm:$0xff] %v14567_v56  ;;  %15438 = vst [vmem:[#allocation48_spill] sm:$0xff] %v14569_v23 }
 0x861   :  { %7083 = vmatpush1.bf16.msra.mxu0 %v14545_v10  ;;  %7124 = vmatpush1.bf16.msra.mxu1 %v14547_v60  ;;  %v14579_v60 = vld [vmem:[#allocation14 + $0xc8] ss:$16 sps:$4 sm:$0xff]  }
 0x862   :  { %7084 = vmatprep.subr.bf16.mxu0 %v14553_v37  ;;  %7125 = vmatprep.subr.bf16.mxu1 %v14555_v43  ;;  %15440 = vst [vmem:[#allocation50_spill] sm:$0xff] %v14579_v60  ;;  %v14581_v37 = vld [vmem:[#allocation14 + $0xe4] ss:$16 sps:$4 sm:$0xff]   ;;  %v14586_v43 = vld [vmem:[#allocation14 + $0xec] ss:$16 sps:$4 sm:$0xff]  }
 0x863   :  { %15441 = vst [vmem:[#allocation51_spill] sm:$0xff] %v14581_v37  ;;  %15442 = vst [vmem:[#allocation52_spill] sm:$0xff] %v14586_v43 }
 0x865   :  { %7085 = vmatpush1.bf16.msra.mxu0 %v14561_v39  ;;  %7126 = vmatpush1.bf16.msra.mxu1 %v14563_v19  ;;  %v14596_v19 = vld [vmem:[#allocation14 + $0xe0] ss:$16 sps:$4 sm:$0xff]  }
 0x866   :  { %7086 = vmatprep.subr.bf16.mxu0 %v14567_v56  ;;  %7127 = vmatprep.subr.bf16.mxu1 %v14569_v23  ;;  %15443 = vst [vmem:[#allocation53_spill] sm:$0xff] %v14596_v19  ;;  %v14598_v56 = vld [vmem:[#allocation14 + $0xe8] ss:$16 sps:$4 sm:$0xff]   ;;  %v15446_v39 = vld [vmem:[#allocation31_spill] sm:$0xff] }
 0x867   :  { %15444 = vst [vmem:[#allocation54_spill] sm:$0xff] %v14598_v56  ;;  %v1339_v23 = vld [vmem:[#allocation7 + $0x1] ss:$4 sm:$0xf] }
 0x868   :  { %v1356_v32 = vrot.slane %v1339_v23, %v12739_v52  ;;  %v1360_v9 = vrot.slane %v1339_v23, %v12743_v54 }
 0x869   :  { %7087 = vmatpush1.bf16.msra.mxu0 %v14573_v50  ;;  %7128 = vmatpush1.bf16.msra.mxu1 %v14579_v60  ;;  %v1308_v60 = vld [vmem:[#allocation7] ss:$4 sm:$0xf] }
 0x86a   :  { %7088 = vmatprep.subr.bf16.mxu0 %v14581_v37  ;;  %7129 = vmatprep.subr.bf16.mxu1 %v14586_v43  ;;  %v1373_v37 = vld [vmem:[#allocation7 + $0x2] ss:$4 sm:$0xf]  ;;  %v15445_v43 = vld [vmem:[#allocation30_spill] sm:$0xff]  ;;  %v1322_v10 = vrot.slane %v1308_v60, %v15446_v39 }
 0x86b   :  { %v1318_v50 = vrot.slane %v1308_v60, %v15445_v43  ;;  %v1382_v40 = vrot.slane %v1373_v37, %v15445_v43  ;;  %v1386_v14 = vrot.slane %v1373_v37, %v15446_v39  ;;  %v1390_v4 = vrot.slane %v1373_v37, %v12739_v52 }
 0x86c   :  { %v1394_v59 = vrot.slane %v1373_v37, %v12743_v54  ;;  %v1336_v55 = vmul.f32 %v1322_v10, %v1312_v62 }
 0x86d   :  { %7089 = vmatpush1.bf16.msra.mxu0 %v14596_v19  ;;  %7130 = vmatpush1.bf16.msra.mxu1 %v14598_v56  ;;  %v1326_v19 = vrot.slane %v1308_v60, %v12739_v52  ;;  %v1330_v56 = vrot.slane %v1308_v60, %v12743_v54  ;;  %v1352_v60 = vrot.slane %v1339_v23, %v15446_v39 }
 0x86e   :  { %v1335_v37 = vmul.f32 %v1318_v50, %v1312_v62  ;;  %v1399_v0 = vmul.f32 %v1382_v40, %v1376_v30  ;;  %v1400_v61 = vmul.f32 %v1386_v14, %v1376_v30  ;;  %v1401_v22 = vmul.f32 %v1390_v4, %v1376_v30 }
 0x86f   :  { %v1337_v57 = vmul.f32 %v1326_v19, %v1312_v62  ;;  %v1338_v16 = vmul.f32 %v1330_v56, %v1312_v62  ;;  %v1402_v1 = vmul.f32 %v1394_v59, %v1376_v30  ;;  %v1434_v56 = vld [vmem:[#allocation13] sm:$0xf]  ;;  %v1413_v4 = vrot.slane %v9857_v28, %v15445_v43 }
 0x870   :  { %7107 = vmatmul.mubr.bf16.vlgmr.msra.gmra.mrb[48].mxu0 %v14394_v11  ;;  %7148 = vmatmul.mubr.bf16.vlgmr.msra.gmra.mrb[48].mxu1 %v14394_v11  ;;  %v1348_v11 = vrot.slane %v1339_v23, %v15445_v43  ;;  %v1342_v23 = vpop.permute.xlu1 %1341  ;;  %v1417_v30 = vrot.slane %v9857_v28, %v15446_v39  ;;  %v1421_v59 = vrot.slane %v9857_v28, %v12739_v52 }
 0x871   :  { %7409 = vmatprep.mubr.bf16.mxu0 %v15245_v24  ;;  %7450 = vmatprep.mubr.bf16.mxu1 %v15245_v24  ;;  %v1366_v19 = vmul.f32 %v1352_v60, %v1342_v23  ;;  %v1367_v10 = vmul.f32 %v1356_v32, %v1342_v23  ;;  %v1368_v62 = vmul.f32 %v1360_v9, %v1342_v23  ;;  %v2196_v32 = vld [vmem:[%s2195_s17] ss:$8 sm:$0xf] }
 0x872   :  { %v1365_v50 = vmul.f32 %v1348_v11, %v1342_v23  ;;  %v1425_v9 = vrot.slane %v9857_v28, %v12743_v54  ;;  %v2206_v23 = vld [vmem:[%s2205_s10] ss:$8 sm:$0xf]  ;;  %v1439_v18 = vrot.slane %v1434_v56, %v15445_v43  ;;  %v1443_v20 = vrot.slane %v1434_v56, %v15446_v39 }
 0x873   :  { %v1370_v40 = vadd.f32 %v1366_v19, %v1336_v55  ;;  %v1371_v11 = vadd.f32 %v1367_v10, %v1337_v57  ;;  %v1372_v60 = vadd.f32 %v1368_v62, %v1338_v16  ;;  %v1447_v28 = vrot.slane %v1434_v56, %v12739_v52  ;;  %v2169_v10 = vld [vmem:[%s2168_s22] ss:$8 sm:$0xf] }
 0x874   :  { %v1369_v14 = vadd.f32 %v1365_v50, %v1335_v37  ;;  %v1451_v44 = vrot.slane %v1434_v56, %v12743_v54  ;;  %v2159_v50 = vadd.f32 %v2158_v17, %v2148_v12  ;;  %v2207_v43 = vadd.f32 %v2206_v23, %v2196_v32  ;;  %v2217_v62 = vld [vmem:[%s2216_s15] ss:$8 sm:$0xf]  ;;  %v14707_v32 = vld [vmem:[#allocation16 + $0x48] ss:$16 sps:$4 sm:$0xff]  }
 0x875   :  { %v1404_v57 = vadd.f32 %v1400_v61, %v1370_v40  ;;  %v1405_v55 = vadd.f32 %v1401_v22, %v1371_v11  ;;  %v1406_v37 = vadd.f32 %v1402_v1, %v1372_v60  ;;  %v2180_v17 = vld [vmem:[%s2179_s6] ss:$8 sm:$0xf]  ;;  %v14717_v11 = vld [vmem:[#allocation16 + $0x60] ss:$16 sps:$4 sm:$0xff]  }
 0x876   :  { %v1403_v16 = vadd.f32 %v1399_v0, %v1369_v14  ;;  %v2170_v31 = vadd.f32 %v2169_v10, %v2159_v50  ;;  %v2218_v25 = vadd.f32 %v2217_v62, %v2207_v43  ;;  %v2228_v12 = vld [vmem:[%s2227_s9] ss:$8 sm:$0xf]  ;;  %v14719_v60 = vld [vmem:[#allocation16 + $0x68] ss:$16 sps:$4 sm:$0xff]  }
 0x877   :  { %v1431_v52 = vadd.f32 %v1417_v30, %v1404_v57  ;;  %v1432_v19 = vadd.f32 %v1421_v59, %v1405_v55  ;;  %v1433_v54 = vadd.f32 %v1425_v9, %v1406_v37  ;;  %v14703_v59 = vld [vmem:[#allocation16 + $0x4c] ss:$16 sps:$4 sm:$0xff]   ;;  %v14705_v9 = vld [vmem:[#allocation16 + $0x40] ss:$16 sps:$4 sm:$0xff]   ;;  %v14713_v14 = vld [vmem:[#allocation16 + $0x64] ss:$16 sps:$4 sm:$0xff]  }
 0x878   :  { %v1430_v39 = vadd.f32 %v1413_v4, %v1403_v16  ;;  %v2181_v1 = vadd.f32 %v2180_v17, %v2170_v31  ;;  %v2229_v22 = vadd.f32 %v2228_v12, %v2218_v25  ;;  %v14689_v25 = vld [vmem:[#allocation16 + $0x24] ss:$16 sps:$4 sm:$0xff]   ;;  %v14693_v31 = vld [vmem:[#allocation16 + $0x20] ss:$16 sps:$4 sm:$0xff]   ;;  %v14715_v40 = vld [vmem:[#allocation16 + $0x6c] ss:$16 sps:$4 sm:$0xff]  }
 0x879   :  { %v1457_v27 = vadd.f32 %v1443_v20, %v1431_v52  ;;  %v1458_v33 = vadd.f32 %v1447_v28, %v1432_v19  ;;  %v1459_v51 = vadd.f32 %v1451_v44, %v1433_v54  ;;  %v14677_v44 = vld [vmem:[#allocation16 + $0x4] ss:$16 sps:$4 sm:$0xff]   ;;  %v14695_v20 = vld [vmem:[#allocation16 + $0x28] ss:$16 sps:$4 sm:$0xff]   ;;  %v14727_v28 = vld [vmem:[#allocation16 + $0x8c] ss:$16 sps:$4 sm:$0xff]  }
 0x87a   :  { %v1456_v56 = vadd.f32 %v1439_v18, %v1430_v39  ;;  %7377 = vmatprep.subr.bf16.mxu0 %v14677_v44  ;;  %v14701_v18 = vld [vmem:[#allocation16 + $0x44] ss:$16 sps:$4 sm:$0xff]   ;;  %v14729_v16 = vld [vmem:[#allocation16 + $0x80] ss:$16 sps:$4 sm:$0xff]   ;;  %v14731_v57 = vld [vmem:[#allocation16 + $0x88] ss:$16 sps:$4 sm:$0xff]  }
 0x87b   :  { %1461 = vst [vmem:[#allocation2 + $0xe8] sm:$0xff] %v1457_v27  ;;  %1462 = vst [vmem:[#allocation2 + $0xf0] sm:$0xff] %v1458_v33  ;;  %v14679_v33 = vld [vmem:[#allocation16 + $0xc] ss:$16 sps:$4 sm:$0xff]   ;;  %v14683_v27 = vld [vmem:[#allocation16 + $0x8] ss:$16 sps:$4 sm:$0xff]  }
 0x87c   :  { %1460 = vst [vmem:[#allocation2 + $0xe0] sm:$0xff] %v1456_v56  ;;  %1463 = vst [vmem:[#allocation2 + $0xf8] sm:$0xff] %v1459_v51  ;;  %v14681_v51 = vld [vmem:[#allocation16] ss:$16 sps:$4 sm:$0xff]   ;;  %7418 = vmatprep.subr.bf16.mxu1 %v14679_v33  ;;  %v14725_v23 = vld [vmem:[#allocation16 + $0x84] ss:$16 sps:$4 sm:$0xff]  }
 0x87d   :  { %7378 = vmatpush1.bf16.msra.mxu0 %v14681_v51  ;;  %7419 = vmatpush1.bf16.msra.mxu1 %v14683_v27  ;;  %v14735_v55 = vld [vmem:[#allocation16 + $0xa4] ss:$16 sps:$4 sm:$0xff]   ;;  %v14737_v37 = vld [vmem:[#allocation16 + $0xac] ss:$16 sps:$4 sm:$0xff]   ;;  %v14741_v50 = vld [vmem:[#allocation16 + $0xa0] ss:$16 sps:$4 sm:$0xff]  }
 0x87e   :  { %7379 = vmatprep.subr.bf16.mxu0 %v14689_v25  ;;  %7420 = vmatprep.subr.bf16.mxu1 %v14691_v3  ;;  %15447 = vst [vmem:[#allocation55_spill] sm:$0xff] %v14741_v50  ;;  %v14743_v43 = vld [vmem:[#allocation16 + $0xa8] ss:$16 sps:$4 sm:$0xff]   ;;  %v14747_v39 = vld [vmem:[#allocation16 + $0xc4] ss:$16 sps:$4 sm:$0xff]  }
 0x87f   :  { %15448 = vst [vmem:[#allocation56_spill] sm:$0xff] %v14743_v43  ;;  %15449 = vst [vmem:[#allocation57_spill] sm:$0xff] %v14747_v39  ;;  %v14749_v52 = vld [vmem:[#allocation16 + $0xcc] ss:$16 sps:$4 sm:$0xff]   ;;  %v14753_v19 = vld [vmem:[#allocation16 + $0xc0] ss:$16 sps:$4 sm:$0xff]  }
 0x880   :  { %15450 = vst [vmem:[#allocation58_spill] sm:$0xff] %v14749_v52  ;;  %15451 = vst [vmem:[#allocation59_spill] sm:$0xff] %v14753_v19  ;;  %v14755_v54 = vld [vmem:[#allocation16 + $0xc8] ss:$16 sps:$4 sm:$0xff]   ;;  %v14759_v10 = vld [vmem:[#allocation16 + $0xe4] ss:$16 sps:$4 sm:$0xff]  }
 0x881   :  { %7380 = vmatpush1.bf16.msra.mxu0 %v14693_v31  ;;  %7421 = vmatpush1.bf16.msra.mxu1 %v14695_v20  ;;  %15452 = vst [vmem:[#allocation60_spill] sm:$0xff] %v14755_v54  ;;  %15453 = vst [vmem:[#allocation61_spill] sm:$0xff] %v14759_v10  ;;  %v14761_v62 = vld [vmem:[#allocation16 + $0xec] ss:$16 sps:$4 sm:$0xff]   ;;  %v14765_v56 = vld [vmem:[#allocation16 + $0xe0] ss:$16 sps:$4 sm:$0xff]  }
 0x882   :  { %7381 = vmatprep.subr.bf16.mxu0 %v14701_v18  ;;  %7422 = vmatprep.subr.bf16.mxu1 %v14703_v59  ;;  %15454 = vst [vmem:[#allocation62_spill] sm:$0xff] %v14761_v62  ;;  %15455 = vst [vmem:[#allocation63_spill] sm:$0xff] %v14765_v56  ;;  %v14767_v17 = vld [vmem:[#allocation16 + $0xe8] ss:$16 sps:$4 sm:$0xff]  }
 0x883   :  { %v2183_v61 = vld [vmem:[#allocation2 + $0xe0] ss:$8 sm:$0xf]  ;;  %v2231_v0 = vld [vmem:[#allocation2 + $0xe1] ss:$8 sm:$0xf] }
 0x884   :  { %v2184_v4 = vadd.f32 %v2183_v61, %v2181_v1  ;;  %v2232_v30 = vadd.f32 %v2231_v0, %v2229_v22  ;;  %15456 = vst [vmem:[#allocation64_spill] sm:$0xff] %v14767_v17 }
 0x885   :  { %7382 = vmatpush1.bf16.msra.mxu0 %v14705_v9  ;;  %7423 = vmatpush1.bf16.msra.mxu1 %v14707_v32 }
 0x886   :  { %2185 = vst.msk [vmem:[#allocation2 + $0xe0] ss:$8 sm:$0xf] %vm12837_vm0, %v2184_v4  ;;  %2233 = vst.msk [vmem:[#allocation2 + $0xe1] ss:$8 sm:$0xf] %vm12837_vm0, %v2232_v30  ;;  %7383 = vmatprep.subr.bf16.mxu0 %v14713_v14  ;;  %7424 = vmatprep.subr.bf16.mxu1 %v14715_v40 }
 0x889   :  { %7384 = vmatpush1.bf16.msra.mxu0 %v14717_v11  ;;  %7425 = vmatpush1.bf16.msra.mxu1 %v14719_v60 }
 0x88a   :  { %7385 = vmatprep.subr.bf16.mxu0 %v14725_v23  ;;  %7426 = vmatprep.subr.bf16.mxu1 %v14727_v28 }
 0x88d   :  { %7386 = vmatpush1.bf16.msra.mxu0 %v14729_v16  ;;  %7427 = vmatpush1.bf16.msra.mxu1 %v14731_v57 }
 0x88e   :  { %7387 = vmatprep.subr.bf16.mxu0 %v14735_v55  ;;  %7428 = vmatprep.subr.bf16.mxu1 %v14737_v37 }
 0x891   :  { %7388 = vmatpush1.bf16.msra.mxu0 %v14741_v50  ;;  %7429 = vmatpush1.bf16.msra.mxu1 %v14743_v43 }
 0x892   :  { %7389 = vmatprep.subr.bf16.mxu0 %v14747_v39  ;;  %7430 = vmatprep.subr.bf16.mxu1 %v14749_v52 }
 0x895   :  { %7390 = vmatpush1.bf16.msra.mxu0 %v14753_v19  ;;  %7431 = vmatpush1.bf16.msra.mxu1 %v14755_v54 }
 0x896   :  { %7391 = vmatprep.subr.bf16.mxu0 %v14759_v10  ;;  %7432 = vmatprep.subr.bf16.mxu1 %v14761_v62 }
 0x899   :  { %7392 = vmatpush1.bf16.msra.mxu0 %v14765_v56  ;;  %7433 = vmatpush1.bf16.msra.mxu1 %v14767_v17 }
 0x89a   :  { %7652 = vmatprep.subr.bf16.mxu0 %v14366_v45  ;;  %7693 = vmatprep.subr.bf16.mxu1 %v14368_v63 }
 0x923   :  { %v6801_v12 = vpop.f32.mrb[36].mxu0  ;;  %v6842_v1 = vpop.f32.mrb[36].mxu1 }
 0x924   :  { %v11034_v22 = vadd.f32 %v6801_v12, %v15394_v36  ;;  %v6803_v61 = vpop.f32.mrb[37].mxu0  ;;  %v14776_v0 = vpop.f32.mrb[37].mxu1  ;;  %v11036_v45 = vadd.f32 %v6842_v1, %v15396_v35  ;;  %v6879_v1 = vld [vmem:[#allocation2 + $0xc8] sm:$0xff] }
 0x925   :  { %v11035_v4 = vadd.f32 %v6803_v61, %v15395_v42  ;;  %v6805_v30 = vpop.f32.mrb[38].mxu0  ;;  %v6846_v10 = vpop.f32.mrb[38].mxu1 }
 0x926   :  { %v10559_v62 = vmul.f32 -1.442695, %v11034_v22  ;;  %v6806_v54 = vpop.f32.mrb[39].mxu0  ;;  %v6847_v56 = vpop.f32.mrb[39].mxu1 }
 0x927   :  { %v10560_v19 = vmul.f32 -1.442695, %v11035_v4  ;;  %v6878_v56 = vld [vmem:[#allocation2 + $0xc0] sm:$0xff] }
 0x928   :  { %11960 = vpow2.f32 %v10559_v62 }
 0x929   :  { %11962 = vpow2.f32 %v10560_v19 }
 0x92a   :  { %11964 = vtanh.f32 %v11036_v45 }
 0x932   :  { %v11961_v63 = vpop.eup %11960 }
 0x933   :  { %v11963_v17 = vpop.eup %11962  ;;  %v6856_v52 = vadd.f32 1.0, %v11961_v63 }
 0x934   :  { %v6862_v12 = vadd.f32 1.0, %v11963_v17  ;;  %v11965_v36 = vpop.eup %11964 }
 0x935   :  { %11966 = vrcp.f32 %v6856_v52 }
 0x936   :  { %11968 = vrcp.f32 %v6862_v12 }
 0x93f   :  { %v11967_v39 = vpop.eup %11966 }
 0x940   :  { %v11969_v61 = vpop.eup %11968  ;;  %v6873_v30 = vmul.f32 %v11967_v39, %v11965_v36  ;;  %v6881_v36 = vld [vmem:[#allocation2 + $0xd8] sm:$0xff]  ;;  %v6880_v39 = vld [vmem:[#allocation2 + $0xd0] sm:$0xff] }
 0x941   :  { %v6872_v10 = vmul.f32 %v11969_v61, %v14382_v15 }
 0x943   :  { %v14781_v54 = vadd.f32 %v6873_v30, %v6872_v10  ;;  %v7108_v62 = vpop.f32.mrb[48].mxu0  ;;  %v7149_v19 = vpop.f32.mrb[48].mxu1 }
 0x944   :  { %v7156_v22 = vadd.f32 %v7108_v62, %v6878_v56  ;;  %v7110_v4 = vpop.f32.mrb[49].mxu0  ;;  %v7151_v35 = vpop.f32.mrb[49].mxu1  ;;  %v7158_v30 = vadd.f32 %v7149_v19, %v6880_v39  ;;  %v11037_v19 = vadd.f32 %v14776_v0, %v13672_v41  ;;  %v15469_v0 = vld [vmem:[#allocation79_spill] sm:$0xff] }
 0x945   :  { %v7157_v63 = vadd.f32 %v7110_v4, %v6879_v1  ;;  %v7112_v45 = vpop.f32.mrb[50].mxu0  ;;  %v7153_v17 = vpop.f32.mrb[50].mxu1  ;;  %v7159_v15 = vadd.f32 %v7151_v35, %v6881_v36 }
 0x946   :  { %v10594_v52 = vmul.f32 -1.442695, %v7156_v22  ;;  %v7113_v12 = vpop.f32.mrb[51].mxu0  ;;  %v7154_v42 = vpop.f32.mrb[51].mxu1 }
 0x947   :  { %v10595_v43 = vmul.f32 -1.442695, %v7157_v63  ;;  %v10596_v61 = vmul.f32 -1.442695, %v7159_v15  ;;  %v15470_v15 = vld [vmem:[#allocation80_spill] sm:$0xff] }
 0x948   :  { %11970 = vpow2.f32 %v10594_v52 }
 0x949   :  { %11972 = vpow2.f32 %v10595_v43 }
 0x94a   :  { %11974 = vpow2.f32 %v10596_v61  ;;  %v15471_v61 = vld [vmem:[#allocation81_spill] sm:$0xff] }
 0x94b   :  { %11976 = vtanh.f32 %v7158_v30  ;;  %v15472_v30 = vld [vmem:[#allocation82_spill] sm:$0xff] }
 0x952   :  { %v11971_v10 = vpop.eup %11970 }
 0x953   :  { %v11973_v50 = vpop.eup %11972  ;;  %v7163_v56 = vadd.f32 1.0, %v11971_v10  ;;  %v15473_v10 = vld [vmem:[#allocation32_spill] sm:$0xff] }
 0x954   :  { %v7169_v62 = vadd.f32 1.0, %v11973_v50  ;;  %v11975_v1 = vpop.eup %11974  ;;  %v10561_v50 = vmul.f32 -1.442695, %v11037_v19  ;;  %v15483_v19 = vld [vmem:[#allocation35_spill] sm:$0xff] }
 0x955   :  { %11978 = vrcp.f32 %v7163_v56  ;;  %v11977_v22 = vpop.eup %11976  ;;  %v7176_v45 = vadd.f32 1.0, %v11975_v1  ;;  %v15474_v56 = vld [vmem:[#allocation83_spill] sm:$0xff]  ;;  %v15476_v1 = vld [vmem:[#allocation86_spill] sm:$0xff] }
 0x956   :  { %11980 = vrcp.f32 %v7169_v62  ;;  %v15475_v62 = vld [vmem:[#allocation85_spill] sm:$0xff] }
 0x957   :  { %11982 = vrcp.f32 %v7176_v45  ;;  %v15481_v45 = vld [vmem:[#allocation91_spill] sm:$0xff] }
 0x95f   :  { %v11979_v4 = vpop.eup %11978 }
 0x960   :  { %v11981_v42 = vpop.eup %11980  ;;  %v7180_v63 = vmul.f32 %v11979_v4, %v11977_v22  ;;  %v15477_v22 = vld [vmem:[#allocation87_spill] sm:$0xff]  ;;  %v15478_v4 = vld [vmem:[#allocation88_spill] sm:$0xff] }
 0x961   :  { %v7179_v43 = vmul.f32 %v11981_v42, %v14385_v8  ;;  %v11983_v17 = vpop.eup %11982  ;;  %v15479_v42 = vld [vmem:[#allocation89_spill] sm:$0xff] }
 0x963   :  { %v14784_v35 = vadd.f32 %v7180_v63, %v7179_v43  ;;  %v15480_v63 = vld [vmem:[#allocation90_spill] sm:$0xff]  ;;  %v15482_v43 = vld [vmem:[#allocation92_spill] sm:$0xff] }
 0x965   :  { %11984 = vtanh.f32 %v14784_v35 }
 0x966   :  { %11986 = vpow2.f32 %v10561_v50  ;;  %v15485_v50 = vld [vmem:[#allocation37_spill] sm:$0xff] }
 0x967   :  { %11988 = vtanh.f32 %v14781_v54 }
 0x96f   :  { %v11985_v52 = vpop.eup %11984 }
 0x970   :  { %v7183_v12 = vmul.f32 %v11985_v52, %v11983_v17  ;;  %v11987_v8 = vpop.eup %11986  ;;  %v15484_v17 = vld [vmem:[#allocation36_spill] sm:$0xff]  ;;  %v15486_v52 = vld [vmem:[#allocation38_spill] sm:$0xff] }
 0x972   :  { %v14789_v36 = vpack.c.bf16 %v7183_v12, %v7183_v12  ;;  %v15487_v12 = vld [vmem:[#allocation39_spill] sm:$0xff] }
 0x974   :  { %7410 = vmatmul.mubr.bf16.vlgmr.msra.gmra.mrb[52].mxu0 %v14789_v36  ;;  %7451 = vmatmul.mubr.bf16.vlgmr.msra.gmra.mrb[52].mxu1 %v14789_v36 }
 0x975   :  { %7653 = vmatpush1.bf16.msra.mxu0 %v14390_v29  ;;  %7694 = vmatpush1.bf16.msra.mxu1 %v14392_v34  ;;  %v6869_v29 = vadd.f32 1.0, %v11987_v8  ;;  %v15457_v34 = vld [vmem:[#allocation67_spill] sm:$0xff]  ;;  %v15488_v8 = vld [vmem:[#allocation40_spill] sm:$0xff] }
 0x976   :  { %7654 = vmatprep.subr.bf16.mxu0 %v14396_v46  ;;  %7695 = vmatprep.subr.bf16.mxu1 %v14398_v26  ;;  %v15458_v46 = vld [vmem:[#allocation68_spill] sm:$0xff]  ;;  %v15459_v26 = vld [vmem:[#allocation69_spill] sm:$0xff] }
 0x977   :  { %7684 = vmatprep.mubr.bf16.mxu0 %v15245_v24  ;;  %7725 = vmatprep.mubr.bf16.mxu1 %v15245_v24  ;;  %11990 = vrcp.f32 %v6869_v29  ;;  %v15489_v29 = vld [vmem:[#allocation41_spill] sm:$0xff] }
 0x979   :  { %7655 = vmatpush1.bf16.msra.mxu0 %v14404_v48  ;;  %7696 = vmatpush1.bf16.msra.mxu1 %v14406_v2  ;;  %v15460_v48 = vld [vmem:[#allocation70_spill] sm:$0xff]  ;;  %v15461_v2 = vld [vmem:[#allocation71_spill] sm:$0xff] }
 0x97a   :  { %7656 = vmatprep.subr.bf16.mxu0 %v14410_v49  ;;  %7697 = vmatprep.subr.bf16.mxu1 %v14412_v13  ;;  %v15462_v49 = vld [vmem:[#allocation72_spill] sm:$0xff]  ;;  %v15463_v13 = vld [vmem:[#allocation73_spill] sm:$0xff] }
 0x97d   :  { %7657 = vmatpush1.bf16.msra.mxu0 %v14418_v53  ;;  %7698 = vmatpush1.bf16.msra.mxu1 %v14420_v6  ;;  %v15464_v53 = vld [vmem:[#allocation74_spill] sm:$0xff]  ;;  %v11989_v6 = vpop.eup %11988 }
 0x97e   :  { %7658 = vmatprep.subr.bf16.mxu0 %v14424_v47  ;;  %7699 = vmatprep.subr.bf16.mxu1 %v14426_v5  ;;  %v15465_v5 = vld [vmem:[#allocation75_spill] sm:$0xff] }
 0x981   :  { %7659 = vmatpush1.bf16.msra.mxu0 %v14430_v58  ;;  %7700 = vmatpush1.bf16.msra.mxu1 %v14432_v38  ;;  %v11991_v47 = vpop.eup %11990  ;;  %v15466_v58 = vld [vmem:[#allocation76_spill] sm:$0xff]  ;;  %v15467_v38 = vld [vmem:[#allocation77_spill] sm:$0xff] }
 0x982   :  { %7660 = vmatprep.subr.bf16.mxu0 %v14436_v7  ;;  %7701 = vmatprep.subr.bf16.mxu1 %v14438_v21  ;;  %v15468_v7 = vld [vmem:[#allocation78_spill] sm:$0xff]  ;;  %v6876_v21 = vmul.f32 %v11991_v47, %v11989_v6  ;;  %v15499_v47 = vld [vmem:[#allocation51_spill] sm:$0xff] }
 0x983   :  { %v15498_v6 = vld [vmem:[#allocation50_spill] sm:$0xff] }
 0x984   :  { %v14826_v39 = vpack.c.bf16 %v6876_v21, %v6876_v21 }
 0x985   :  { %7661 = vmatpush1.bf16.msra.mxu0 %v15457_v34  ;;  %7702 = vmatpush1.bf16.msra.mxu1 %v15458_v46  ;;  %v15490_v34 = vld [vmem:[#allocation42_spill] sm:$0xff]  ;;  %v15491_v46 = vld [vmem:[#allocation43_spill] sm:$0xff] }
 0x986   :  { %7662 = vmatprep.subr.bf16.mxu0 %v15459_v26  ;;  %7703 = vmatprep.subr.bf16.mxu1 %v15460_v48  ;;  %v15492_v26 = vld [vmem:[#allocation44_spill] sm:$0xff]  ;;  %v15493_v48 = vld [vmem:[#allocation45_spill] sm:$0xff] }
 0x989   :  { %7663 = vmatpush1.bf16.msra.mxu0 %v15461_v2  ;;  %7704 = vmatpush1.bf16.msra.mxu1 %v15462_v49  ;;  %v15494_v2 = vld [vmem:[#allocation46_spill] sm:$0xff]  ;;  %v15495_v49 = vld [vmem:[#allocation47_spill] sm:$0xff] }
 0x98a   :  { %7664 = vmatprep.subr.bf16.mxu0 %v15463_v13  ;;  %7705 = vmatprep.subr.bf16.mxu1 %v15464_v53  ;;  %v15496_v13 = vld [vmem:[#allocation48_spill] sm:$0xff]  ;;  %v15497_v53 = vld [vmem:[#allocation49_spill] sm:$0xff] }
 0x98d   :  { %7665 = vmatpush1.bf16.msra.mxu0 %v15465_v5  ;;  %7706 = vmatpush1.bf16.msra.mxu1 %v15466_v58  ;;  %v15500_v5 = vld [vmem:[#allocation52_spill] sm:$0xff]  ;;  %v15501_v58 = vld [vmem:[#allocation53_spill] sm:$0xff] }
 0x98e   :  { %7666 = vmatprep.subr.bf16.mxu0 %v15467_v38  ;;  %7707 = vmatprep.subr.bf16.mxu1 %v15468_v7  ;;  %v15502_v38 = vld [vmem:[#allocation54_spill] sm:$0xff] }
 0x991   :  { %7667 = vmatpush1.bf16.msra.mxu0 %v15469_v0  ;;  %7708 = vmatpush1.bf16.msra.mxu1 %v15470_v15  ;;  %v15515_v15 = vld [vmem:[#allocation95_spill] sm:$0xff] }
 0x992   :  { %7959 = vmatprep.subr.bf16.mxu0 %v15471_v61  ;;  %8000 = vmatprep.subr.bf16.mxu1 %v15472_v30 }
 0x994   :  { %7685 = vmatmul.mubr.bf16.vlgmr.msra.gmra.mrb[44].mxu0 %v14826_v39  ;;  %7726 = vmatmul.mubr.bf16.vlgmr.msra.gmra.mrb[44].mxu1 %v14826_v39 }
 0x995   :  { %7960 = vmatpush1.bf16.msra.mxu0 %v15473_v10  ;;  %8001 = vmatpush1.bf16.msra.mxu1 %v15474_v56 }
 0x996   :  { %7961 = vmatprep.subr.bf16.mxu0 %v15475_v62  ;;  %8002 = vmatprep.subr.bf16.mxu1 %v15476_v1 }
 0x997   :  { %7991 = vmatprep.mubr.bf16.mxu0 %v15245_v24  ;;  %8032 = vmatprep.mubr.bf16.mxu1 %v15245_v24 }
 0x999   :  { %7962 = vmatpush1.bf16.msra.mxu0 %v15477_v22  ;;  %8003 = vmatpush1.bf16.msra.mxu1 %v15478_v4 }
 0x99a   :  { %7963 = vmatprep.subr.bf16.mxu0 %v15479_v42  ;;  %8004 = vmatprep.subr.bf16.mxu1 %v15480_v63 }
 0x99d   :  { %7964 = vmatpush1.bf16.msra.mxu0 %v15481_v45  ;;  %8005 = vmatpush1.bf16.msra.mxu1 %v15482_v43  ;;  %v7763_v43 = vld [vmem:[#allocation2 + $0xe0] sm:$0xff] }
 0x99e   :  { %7965 = vmatprep.subr.bf16.mxu0 %v15483_v19  ;;  %8006 = vmatprep.subr.bf16.mxu1 %v15484_v17 }
 0x9a1   :  { %7966 = vmatpush1.bf16.msra.mxu0 %v15485_v50  ;;  %8007 = vmatpush1.bf16.msra.mxu1 %v15486_v52  ;;  %v7764_v52 = vld [vmem:[#allocation2 + $0xe8] sm:$0xff] }
 0x9a2   :  { %7967 = vmatprep.subr.bf16.mxu0 %v15487_v12  ;;  %8008 = vmatprep.subr.bf16.mxu1 %v15488_v8 }
 0x9a5   :  { %7968 = vmatpush1.bf16.msra.mxu0 %v15489_v29  ;;  %8009 = vmatpush1.bf16.msra.mxu1 %v15490_v34 }
 0x9a6   :  { %7969 = vmatprep.subr.bf16.mxu0 %v15491_v46  ;;  %8010 = vmatprep.subr.bf16.mxu1 %v15492_v26 }
 0x9a9   :  { %7970 = vmatpush1.bf16.msra.mxu0 %v15493_v48  ;;  %8011 = vmatpush1.bf16.msra.mxu1 %v15494_v2 }
 0x9aa   :  { %7971 = vmatprep.subr.bf16.mxu0 %v15495_v49  ;;  %8012 = vmatprep.subr.bf16.mxu1 %v15496_v13  ;;  %v7766_v13 = vld [vmem:[#allocation2 + $0xf8] sm:$0xff] }
 0x9ad   :  { %7972 = vmatpush1.bf16.msra.mxu0 %v15497_v53  ;;  %8013 = vmatpush1.bf16.msra.mxu1 %v15498_v6  ;;  %v7765_v53 = vld [vmem:[#allocation2 + $0xf0] sm:$0xff] }
 0x9ae   :  { %7973 = vmatprep.subr.bf16.mxu0 %v15499_v47  ;;  %8014 = vmatprep.subr.bf16.mxu1 %v15500_v5 }
 0x9b1   :  { %7974 = vmatpush1.bf16.msra.mxu0 %v15501_v58  ;;  %8015 = vmatpush1.bf16.msra.mxu1 %v15502_v38 }
 0x9b2   :  { %8262 = vmatprep.subr.bf16.mxu0 %v14677_v44  ;;  %8303 = vmatprep.subr.bf16.mxu1 %v14679_v33  ;;  %v15503_v44 = vld [vmem:[#allocation55_spill] sm:$0xff]  ;;  %v15504_v33 = vld [vmem:[#allocation56_spill] sm:$0xff] }
 0x9b4   :  { %7992 = vmatmul.mubr.bf16.vlgmr.msra.gmra.mrb[56].mxu0 %v14789_v36  ;;  %8033 = vmatmul.mubr.bf16.vlgmr.msra.gmra.mrb[56].mxu1 %v14789_v36 }
 0x9b5   :  { %8263 = vmatpush1.bf16.msra.mxu0 %v14681_v51  ;;  %8304 = vmatpush1.bf16.msra.mxu1 %v14683_v27  ;;  %v15505_v51 = vld [vmem:[#allocation57_spill] sm:$0xff]  ;;  %v15506_v27 = vld [vmem:[#allocation58_spill] sm:$0xff] }
 0x9b6   :  { %8264 = vmatprep.subr.bf16.mxu0 %v14689_v25  ;;  %8305 = vmatprep.subr.bf16.mxu1 %v14691_v3  ;;  %v15507_v25 = vld [vmem:[#allocation59_spill] sm:$0xff]  ;;  %v15508_v3 = vld [vmem:[#allocation60_spill] sm:$0xff] }
 0x9b7   :  { %8294 = vmatprep.mubr.bf16.mxu0 %v15245_v24  ;;  %8335 = vmatprep.mubr.bf16.mxu1 %v15245_v24 }
 0x9b9   :  { %8265 = vmatpush1.bf16.msra.mxu0 %v14693_v31  ;;  %8306 = vmatpush1.bf16.msra.mxu1 %v14695_v20  ;;  %v15509_v31 = vld [vmem:[#allocation61_spill] sm:$0xff]  ;;  %v15510_v20 = vld [vmem:[#allocation62_spill] sm:$0xff] }
 0x9ba   :  { %8266 = vmatprep.subr.bf16.mxu0 %v14701_v18  ;;  %8307 = vmatprep.subr.bf16.mxu1 %v14703_v59  ;;  %v15511_v18 = vld [vmem:[#allocation63_spill] sm:$0xff]  ;;  %v15512_v59 = vld [vmem:[#allocation64_spill] sm:$0xff] }
 0x9bd   :  { %8267 = vmatpush1.bf16.msra.mxu0 %v14705_v9  ;;  %8308 = vmatpush1.bf16.msra.mxu1 %v14707_v32  ;;  %v14900_v9 = vld [vmem:[#allocation17 + $0x4] ss:$16 sps:$4 sm:$0xff]   ;;  %v14902_v32 = vld [vmem:[#allocation17 + $0xc] ss:$16 sps:$4 sm:$0xff]  }
 0x9be   :  { %8268 = vmatprep.subr.bf16.mxu0 %v14713_v14  ;;  %8309 = vmatprep.subr.bf16.mxu1 %v14715_v40 }
 0x9c1   :  { %8269 = vmatpush1.bf16.msra.mxu0 %v14717_v11  ;;  %8310 = vmatpush1.bf16.msra.mxu1 %v14719_v60  ;;  %v15513_v11 = vld [vmem:[#allocation93_spill] sm:$0xff] }
 0x9c2   :  { %8270 = vmatprep.subr.bf16.mxu0 %v14725_v23  ;;  %8311 = vmatprep.subr.bf16.mxu1 %v14727_v28 }
 0x9c5   :  { %8271 = vmatpush1.bf16.msra.mxu0 %v14729_v16  ;;  %8312 = vmatpush1.bf16.msra.mxu1 %v14731_v57  ;;  %v15514_v16 = vld [vmem:[#allocation94_spill] sm:$0xff] }
 0x9c6   :  { %8272 = vmatprep.subr.bf16.mxu0 %v14735_v55  ;;  %8313 = vmatprep.subr.bf16.mxu1 %v14737_v37 }
 0x9c9   :  { %8273 = vmatpush1.bf16.msra.mxu0 %v15503_v44  ;;  %8314 = vmatpush1.bf16.msra.mxu1 %v15504_v33 }
 0x9ca   :  { %8274 = vmatprep.subr.bf16.mxu0 %v15505_v51  ;;  %8315 = vmatprep.subr.bf16.mxu1 %v15506_v27 }
 0x9cd   :  { %8275 = vmatpush1.bf16.msra.mxu0 %v15507_v25  ;;  %8316 = vmatpush1.bf16.msra.mxu1 %v15508_v3 }
 0x9ce   :  { %8276 = vmatprep.subr.bf16.mxu0 %v15509_v31  ;;  %8317 = vmatprep.subr.bf16.mxu1 %v15510_v20 }
 0x9d1   :  { %8277 = vmatpush1.bf16.msra.mxu0 %v15511_v18  ;;  %8318 = vmatpush1.bf16.msra.mxu1 %v15512_v59 }
 0x9d2   :  { %8537 = vmatprep.subr.bf16.mxu0 %v14900_v9  ;;  %8578 = vmatprep.subr.bf16.mxu1 %v14902_v32 }
 0xa67   :  { %v7686_v14 = vpop.f32.mrb[44].mxu0  ;;  %v7727_v40 = vpop.f32.mrb[44].mxu1 }
 0xa68   :  { %v11038_v60 = vadd.f32 %v7686_v14, %v15513_v11  ;;  %v7688_v23 = vpop.f32.mrb[45].mxu0  ;;  %v14907_v28 = vpop.f32.mrb[45].mxu1  ;;  %v11040_v61 = vadd.f32 %v7727_v40, %v15515_v15 }
 0xa69   :  { %v11039_v57 = vadd.f32 %v7688_v23, %v15514_v16  ;;  %v7690_v55 = vpop.f32.mrb[46].mxu0  ;;  %v7731_v37 = vpop.f32.mrb[46].mxu1  ;;  %v11041_v59 = vadd.f32 %v14907_v28, %v13672_v41  ;;  %v14929_v28 = vld [vmem:[#allocation17 + $0x28] ss:$16 sps:$4 sm:$0xff]  }
 0xa6a   :  { %v10661_v36 = vmul.f32 -1.442695, %v11038_v60  ;;  %v7691_v7 = vpop.f32.mrb[47].mxu0  ;;  %v7732_v21 = vpop.f32.mrb[47].mxu1  ;;  %v14919_v55 = vld [vmem:[#allocation17 + $0x8] ss:$16 sps:$4 sm:$0xff]  }
 0xa6b   :  { %v10662_v0 = vmul.f32 -1.442695, %v11039_v57  ;;  %v10663_v40 = vmul.f32 -1.442695, %v11041_v59  ;;  %v14917_v57 = vld [vmem:[#allocation17] ss:$16 sps:$4 sm:$0xff]  }
 0xa6c   :  { %11992 = vpow2.f32 %v10661_v36  ;;  %v14921_v36 = vld [vmem:[#allocation17 + $0x24] ss:$16 sps:$4 sm:$0xff]   ;;  %v14923_v7 = vld [vmem:[#allocation17 + $0x2c] ss:$16 sps:$4 sm:$0xff]  }
 0xa6d   :  { %11994 = vpow2.f32 %v10662_v0  ;;  %v14933_v21 = vld [vmem:[#allocation17 + $0x44] ss:$16 sps:$4 sm:$0xff]   ;;  %v14935_v0 = vld [vmem:[#allocation17 + $0x4c] ss:$16 sps:$4 sm:$0xff]  }
 0xa6e   :  { %11996 = vtanh.f32 %v11040_v61  ;;  %v14941_v61 = vld [vmem:[#allocation17 + $0x40] ss:$16 sps:$4 sm:$0xff]  }
 0xa76   :  { %v11993_v30 = vpop.eup %11992 }
 0xa77   :  { %v11995_v10 = vpop.eup %11994  ;;  %v7741_v56 = vadd.f32 1.0, %v11993_v30  ;;  %v14943_v30 = vld [vmem:[#allocation17 + $0x48] ss:$16 sps:$4 sm:$0xff]  }
 0xa78   :  { %v7747_v62 = vadd.f32 1.0, %v11995_v10  ;;  %v11997_v1 = vpop.eup %11996  ;;  %v14947_v10 = vld [vmem:[#allocation17 + $0x64] ss:$16 sps:$4 sm:$0xff]  }
 0xa79   :  { %11998 = vrcp.f32 %v7741_v56  ;;  %v14949_v56 = vld [vmem:[#allocation17 + $0x6c] ss:$16 sps:$4 sm:$0xff]  }
 0xa7a   :  { %12000 = vrcp.f32 %v7747_v62 }
 0xa83   :  { %v11999_v22 = vpop.eup %11998 }
 0xa84   :  { %v12001_v4 = vpop.eup %12000  ;;  %v7758_v42 = vmul.f32 %v11999_v22, %v11997_v1  ;;  %v11706_v1 = vld [vmem:[#allocation17 + $0x60] ss:$16 sps:$4 sm:$0xff]   ;;  %v11709_v22 = vld [vmem:[#allocation17 + $0x68] ss:$16 sps:$4 sm:$0xff]  }
 0xa85   :  { %v7757_v63 = vmul.f32 %v12001_v4, %v14781_v54  ;;  %v11714_v4 = vld [vmem:[#allocation17 + $0x84] ss:$16 sps:$4 sm:$0xff]  }
 0xa87   :  { %v14912_v45 = vadd.f32 %v7758_v42, %v7757_v63  ;;  %v7993_v19 = vpop.f32.mrb[56].mxu0  ;;  %v8034_v17 = vpop.f32.mrb[56].mxu1  ;;  %v11717_v42 = vld [vmem:[#allocation17 + $0x8c] ss:$16 sps:$4 sm:$0xff]  }
 0xa88   :  { %v8041_v50 = vadd.f32 %v7993_v19, %v7763_v43  ;;  %v7995_v12 = vpop.f32.mrb[57].mxu0  ;;  %v8036_v8 = vpop.f32.mrb[57].mxu1  ;;  %v8043_v47 = vadd.f32 %v8034_v17, %v7765_v53  ;;  %v11712_v43 = vld [vmem:[#allocation17 + $0x80] ss:$16 sps:$4 sm:$0xff]   ;;  %v11715_v19 = vld [vmem:[#allocation17 + $0x88] ss:$16 sps:$4 sm:$0xff]  }
 0xa89   :  { %v8042_v29 = vadd.f32 %v7995_v12, %v7764_v52  ;;  %v7997_v34 = vpop.f32.mrb[58].mxu0  ;;  %v8038_v46 = vpop.f32.mrb[58].mxu1  ;;  %v8044_v54 = vadd.f32 %v8036_v8, %v7766_v13  ;;  %v11720_v17 = vld [vmem:[#allocation17 + $0xa4] ss:$16 sps:$4 sm:$0xff]   ;;  %v11718_v52 = vld [vmem:[#allocation17 + $0xa0] ss:$16 sps:$4 sm:$0xff]  }
 0xa8a   :  { %v10696_v26 = vmul.f32 -1.442695, %v8041_v50  ;;  %v7998_v48 = vpop.f32.mrb[59].mxu0  ;;  %v8039_v2 = vpop.f32.mrb[59].mxu1  ;;  %v11723_v50 = vld [vmem:[#allocation17 + $0xac] ss:$16 sps:$4 sm:$0xff]  }
 0xa8b   :  { %v10697_v49 = vmul.f32 -1.442695, %v8042_v29  ;;  %v10698_v6 = vmul.f32 -1.442695, %v8044_v54  ;;  %v11721_v12 = vld [vmem:[#allocation17 + $0xa8] ss:$16 sps:$4 sm:$0xff]  }
 0xa8c   :  { %12002 = vpow2.f32 %v10696_v26  ;;  %v11726_v8 = vld [vmem:[#allocation17 + $0xc4] ss:$16 sps:$4 sm:$0xff]   ;;  %v11729_v29 = vld [vmem:[#allocation17 + $0xcc] ss:$16 sps:$4 sm:$0xff]   ;;  %v11724_v34 = vld [vmem:[#allocation17 + $0xc0] ss:$16 sps:$4 sm:$0xff]  }
 0xa8d   :  { %12004 = vpow2.f32 %v10697_v49  ;;  %v11727_v46 = vld [vmem:[#allocation17 + $0xc8] ss:$16 sps:$4 sm:$0xff]   ;;  %v11732_v26 = vld [vmem:[#allocation17 + $0xe4] ss:$16 sps:$4 sm:$0xff]   ;;  %v11735_v48 = vld [vmem:[#allocation17 + $0xec] ss:$16 sps:$4 sm:$0xff]  }
 0xa8e   :  { %12006 = vpow2.f32 %v10698_v6  ;;  %v11730_v13 = vld [vmem:[#allocation17 + $0xe0] ss:$16 sps:$4 sm:$0xff]   ;;  %v11733_v54 = vld [vmem:[#allocation17 + $0xe8] ss:$16 sps:$4 sm:$0xff]  }
 0xa8f   :  { %12008 = vtanh.f32 %v8043_v47 }
 0xa96   :  { %v12003_v5 = vpop.eup %12002 }
 0xa97   :  { %v12005_v58 = vpop.eup %12004  ;;  %v8048_v38 = vadd.f32 1.0, %v12003_v5 }
 0xa98   :  { %v8054_v44 = vadd.f32 1.0, %v12005_v58  ;;  %v12007_v33 = vpop.eup %12006 }
 0xa99   :  { %12010 = vrcp.f32 %v8048_v38  ;;  %v12009_v51 = vpop.eup %12008  ;;  %v8061_v31 = vadd.f32 1.0, %v12007_v33 }
 0xa9a   :  { %12012 = vrcp.f32 %v8054_v44 }
 0xa9b   :  { %12014 = vrcp.f32 %v8061_v31 }
 0xaa3   :  { %v12011_v27 = vpop.eup %12010 }
 0xaa4   :  { %v12013_v25 = vpop.eup %12012  ;;  %v8065_v3 = vmul.f32 %v12011_v27, %v12009_v51 }
 0xaa5   :  { %v8064_v20 = vmul.f32 %v12013_v25, %v14784_v35  ;;  %v12015_v14 = vpop.eup %12014  ;;  %v14927_v35 = vld [vmem:[#allocation17 + $0x20] ss:$16 sps:$4 sm:$0xff]  }
 0xaa7   :  { %v8066_v18 = vadd.f32 %v8065_v3, %v8064_v20 }
 0xaa9   :  { %12016 = vtanh.f32 %v8066_v18 }
 0xaaa   :  { %12018 = vpow2.f32 %v10663_v40 }
 0xaab   :  { %12020 = vtanh.f32 %v14912_v45 }
 0xab3   :  { %v12017_v60 = vpop.eup %12016 }
 0xab4   :  { %v8068_v23 = vmul.f32 %v12017_v60, %v12015_v14  ;;  %v12019_v62 = vpop.eup %12018 }
 0xab5   :  { %v7754_v63 = vadd.f32 1.0, %v12019_v62  ;;  %v12021_v2 = vpop.eup %12020 }
 0xab6   :  { %v8069_v37 = vpack.c.bf16 %v8068_v23, %v8068_v23 }
 0xab7   :  { %12022 = vrcp.f32 %v7754_v63  ;;  %v15517_v63 = vld [vmem:[#allocation84_spill] sm:$0xff] }
 0xab8   :  { %8295 = vmatmul.mubr.bf16.vlgmr.msra.gmra.mrb[60].mxu0 %v8069_v37  ;;  %8336 = vmatmul.mubr.bf16.vlgmr.msra.gmra.mrb[60].mxu1 %v8069_v37 }
 0xab9   :  { %8538 = vmatpush1.bf16.msra.mxu0 %v14917_v57  ;;  %8579 = vmatpush1.bf16.msra.mxu1 %v14919_v55 }
 0xaba   :  { %8539 = vmatprep.subr.bf16.mxu0 %v14921_v36  ;;  %8580 = vmatprep.subr.bf16.mxu1 %v14923_v7 }
 0xabb   :  { %8569 = vmatprep.mubr.bf16.mxu0 %v15245_v24  ;;  %8610 = vmatprep.mubr.bf16.mxu1 %v15245_v24 }
 0xabd   :  { %8540 = vmatpush1.bf16.msra.mxu0 %v14927_v35  ;;  %8581 = vmatpush1.bf16.msra.mxu1 %v14929_v28 }
 0xabe   :  { %8541 = vmatprep.subr.bf16.mxu0 %v14933_v21  ;;  %8582 = vmatprep.subr.bf16.mxu1 %v14935_v0 }
 0xac1   :  { %8542 = vmatpush1.bf16.msra.mxu0 %v14941_v61  ;;  %8583 = vmatpush1.bf16.msra.mxu1 %v14943_v30  ;;  %v12023_v49 = vpop.eup %12022 }
 0xac2   :  { %8543 = vmatprep.subr.bf16.mxu0 %v14947_v10  ;;  %8584 = vmatprep.subr.bf16.mxu1 %v14949_v56  ;;  %v7761_v53 = vmul.f32 %v12023_v49, %v12021_v2  ;;  %v11756_v2 = vld [vmem:[#allocation20 + $0x68] sm:$0xff]  }
 0xac3   :  { %v11757_v49 = vld [vmem:[#allocation20 + $0xe8] sm:$0xff]  }
 0xac4   :  { %v14956_v6 = vpack.c.bf16 %v7761_v53, %v7761_v53  ;;  %v11760_v53 = vld [vmem:[#allocation20 + $0x70] sm:$0xff]  }
 0xac5   :  { %8544 = vmatpush1.bf16.msra.mxu0 %v11706_v1  ;;  %8585 = vmatpush1.bf16.msra.mxu1 %v11709_v22 }
 0xac6   :  { %8545 = vmatprep.subr.bf16.mxu0 %v11714_v4  ;;  %8586 = vmatprep.subr.bf16.mxu1 %v11717_v42 }
 0xac9   :  { %8546 = vmatpush1.bf16.msra.mxu0 %v11712_v43  ;;  %8587 = vmatpush1.bf16.msra.mxu1 %v11715_v19 }
 0xaca   :  { %8547 = vmatprep.subr.bf16.mxu0 %v11720_v17  ;;  %8588 = vmatprep.subr.bf16.mxu1 %v11723_v50 }
 0xacd   :  { %8548 = vmatpush1.bf16.msra.mxu0 %v11718_v52  ;;  %8589 = vmatpush1.bf16.msra.mxu1 %v11721_v12 }
 0xace   :  { %8549 = vmatprep.subr.bf16.mxu0 %v11726_v8  ;;  %8590 = vmatprep.subr.bf16.mxu1 %v11729_v29 }
 0xad1   :  { %8550 = vmatpush1.bf16.msra.mxu0 %v11724_v34  ;;  %8591 = vmatpush1.bf16.msra.mxu1 %v11727_v46 }
 0xad2   :  { %8551 = vmatprep.subr.bf16.mxu0 %v11732_v26  ;;  %8592 = vmatprep.subr.bf16.mxu1 %v11735_v48 }
 0xad5   :  { %8552 = vmatpush1.bf16.msra.mxu0 %v11730_v13  ;;  %8593 = vmatpush1.bf16.msra.mxu1 %v11733_v54 }
 0xad6   :  { %8841 = vmatprep.subr.bf16.mxu0 %v14900_v9  ;;  %8882 = vmatprep.subr.bf16.mxu1 %v14902_v32  ;;  %v11737_v9 = vld [vmem:[#allocation20 + $0xc0] sm:$0xff]  }
 0xad8   :  { %8570 = vmatmul.mubr.bf16.vlgmr.msra.gmra.mrb[52].mxu0 %v14956_v6  ;;  %8611 = vmatmul.mubr.bf16.vlgmr.msra.gmra.mrb[52].mxu1 %v14956_v6 }
 0xad9   :  { %8842 = vmatpush1.bf16.msra.mxu0 %v14917_v57  ;;  %8883 = vmatpush1.bf16.msra.mxu1 %v14919_v55 }
 0xada   :  { %8843 = vmatprep.subr.bf16.mxu0 %v14921_v36  ;;  %8884 = vmatprep.subr.bf16.mxu1 %v14923_v7 }
 0xadb   :  { %8873 = vmatprep.mubr.bf16.mxu0 %v15245_v24  ;;  %8914 = vmatprep.mubr.bf16.mxu1 %v15245_v24  ;;  %v11736_v24 = vld [vmem:[#allocation20 + $0x40] sm:$0xff]  }
 0xadd   :  { %8844 = vmatpush1.bf16.msra.mxu0 %v14927_v35  ;;  %8885 = vmatpush1.bf16.msra.mxu1 %v14929_v28 }
 0xade   :  { %8845 = vmatprep.subr.bf16.mxu0 %v14933_v21  ;;  %8886 = vmatprep.subr.bf16.mxu1 %v14935_v0 }
 0xae1   :  { %8846 = vmatpush1.bf16.msra.mxu0 %v14941_v61  ;;  %8887 = vmatpush1.bf16.msra.mxu1 %v14943_v30 }
 0xae2   :  { %8847 = vmatprep.subr.bf16.mxu0 %v14947_v10  ;;  %8888 = vmatprep.subr.bf16.mxu1 %v14949_v56  ;;  %v11738_v10 = vld [vmem:[#allocation20] sm:$0xff]  }
 0xae3   :  { %v11739_v56 = vld [vmem:[#allocation20 + $0x80] sm:$0xff]  }
 0xae5   :  { %8848 = vmatpush1.bf16.msra.mxu0 %v11706_v1  ;;  %8889 = vmatpush1.bf16.msra.mxu1 %v11709_v22  ;;  %v11740_v1 = vld [vmem:[#allocation20 + $0x48] sm:$0xff]  }
 0xae6   :  { %8849 = vmatprep.subr.bf16.mxu0 %v11714_v4  ;;  %8890 = vmatprep.subr.bf16.mxu1 %v11717_v42  ;;  %v11741_v22 = vld [vmem:[#allocation20 + $0xc8] sm:$0xff]  }
 0xae7   :  { %v11743_v4 = vld [vmem:[#allocation20 + $0x88] sm:$0xff]  }
 0xae8   :  { %v15516_v42 = vld [vmem:[#allocation34_spill] sm:$0xff] }
 0xae9   :  { %8850 = vmatpush1.bf16.msra.mxu0 %v11712_v43  ;;  %8891 = vmatpush1.bf16.msra.mxu1 %v11715_v19  ;;  %v11744_v43 = vld [vmem:[#allocation20 + $0x50] sm:$0xff]  }
 0xaea   :  { %8851 = vmatprep.subr.bf16.mxu0 %v11720_v17  ;;  %8892 = vmatprep.subr.bf16.mxu1 %v11723_v50  ;;  %v11745_v19 = vld [vmem:[#allocation20 + $0xd0] sm:$0xff]  }
 0xaeb   :  { %v11746_v17 = vld [vmem:[#allocation20 + $0x10] sm:$0xff]  }
 0xaec   :  { %v11747_v50 = vld [vmem:[#allocation20 + $0x90] sm:$0xff]  }
 0xaed   :  { %8852 = vmatpush1.bf16.msra.mxu0 %v11718_v52  ;;  %8893 = vmatpush1.bf16.msra.mxu1 %v11721_v12  ;;  %v11748_v52 = vld [vmem:[#allocation20 + $0x58] sm:$0xff]  }
 0xaee   :  { %8853 = vmatprep.subr.bf16.mxu0 %v11726_v8  ;;  %8894 = vmatprep.subr.bf16.mxu1 %v11729_v29  ;;  %v11749_v12 = vld [vmem:[#allocation20 + $0xd8] sm:$0xff]  }
 0xaef   :  { %v11750_v8 = vld [vmem:[#allocation20 + $0x18] sm:$0xff]  }
 0xaf0   :  { %v11751_v29 = vld [vmem:[#allocation20 + $0x98] sm:$0xff]  }
 0xaf1   :  { %8854 = vmatpush1.bf16.msra.mxu0 %v11724_v34  ;;  %8895 = vmatpush1.bf16.msra.mxu1 %v11727_v46  ;;  %v11752_v34 = vld [vmem:[#allocation20 + $0x60] sm:$0xff]  }
 0xaf2   :  { %8855 = vmatprep.subr.bf16.mxu0 %v11732_v26  ;;  %8896 = vmatprep.subr.bf16.mxu1 %v11735_v48  ;;  %v11753_v46 = vld [vmem:[#allocation20 + $0xe0] sm:$0xff]  }
 0xaf3   :  { %v11754_v26 = vld [vmem:[#allocation20 + $0x20] sm:$0xff]  }
 0xaf4   :  { %v11755_v48 = vld [vmem:[#allocation20 + $0xa0] sm:$0xff]  }
 0xaf5   :  { %8856 = vmatpush1.bf16.msra.mxu0 %v11730_v13  ;;  %8897 = vmatpush1.bf16.msra.mxu1 %v11733_v54  ;;  %v11758_v13 = vld [vmem:[#allocation20 + $0x28] sm:$0xff]  }
 0xaf6   :  { %10930 = vmatprep.subr.bf16.mxu0 %v11736_v24  ;;  %10952 = vmatprep.subr.bf16.mxu1 %v11737_v9  ;;  %v11759_v54 = vld [vmem:[#allocation20 + $0xa8] sm:$0xff]   ;;  %v11761_v24 = vld [vmem:[#allocation20 + $0xf0] sm:$0xff]  }
 0xaf7   :  { %v11762_v9 = vld [vmem:[#allocation20 + $0x30] sm:$0xff]  }
 0xbab   :  { %v8571_v32 = vpop.f32.mrb[52].mxu0  ;;  %v8612_v47 = vpop.f32.mrb[52].mxu1 }
 0xbac   :  { %v11042_v5 = vadd.f32 %v8571_v32, %v15513_v11  ;;  %v8573_v58 = vpop.f32.mrb[53].mxu0  ;;  %v8614_v38 = vpop.f32.mrb[53].mxu1  ;;  %v11044_v59 = vadd.f32 %v8612_v47, %v15515_v15  ;;  %v11763_v32 = vld [vmem:[#allocation20 + $0xb0] sm:$0xff]   ;;  %v11764_v47 = vld [vmem:[#allocation20 + $0x78] sm:$0xff]  }
 0xbad   :  { %v11043_v44 = vadd.f32 %v8573_v58, %v15514_v16  ;;  %v8575_v33 = vpop.f32.mrb[54].mxu0  ;;  %v8616_v51 = vpop.f32.mrb[54].mxu1  ;;  %v11045_v20 = vadd.f32 %v8614_v38, %v13672_v41  ;;  %v11766_v58 = vld [vmem:[#allocation20 + $0x38] sm:$0xff]  }
 0xbae   :  { %v10763_v27 = vmul.f32 -1.442695, %v11042_v5  ;;  %v8576_v25 = vpop.f32.mrb[55].mxu0  ;;  %v8617_v3 = vpop.f32.mrb[55].mxu1  ;;  %v11765_v5 = vld [vmem:[#allocation20 + $0xf8] sm:$0xff]   ;;  %v11769_v33 = vld [vmem:[#allocation20 + $0x100] sm:$0xff]  }
 0xbaf   :  { %v10764_v31 = vmul.f32 -1.442695, %v11043_v44  ;;  %v10765_v18 = vmul.f32 -1.442695, %v11045_v20  ;;  %v11767_v38 = vld [vmem:[#allocation20 + $0xb8] sm:$0xff]   ;;  %v11768_v44 = vld [vmem:[#allocation20 + $0x140] sm:$0xff]  }
 0xbb0   :  { %12024 = vpow2.f32 %v10763_v27  ;;  %v11770_v51 = vld [vmem:[#allocation20 + $0x148] sm:$0xff]   ;;  %v15518_v27 = vld [vmem:[#allocation33_spill] sm:$0xff]  ;;  %v11773_v20 = vld [vmem:[#allocation20 + $0x110] sm:$0xff]  }
 0xbb1   :  { %12026 = vpow2.f32 %v10764_v31  ;;  %v15519_v25 = vld [vmem:[#allocation66_spill] sm:$0xff]  ;;  %v11772_v31 = vld [vmem:[#allocation20 + $0x150] sm:$0xff]  }
 0xbb2   :  { %12028 = vpow2.f32 %v10765_v18  ;;  %v11771_v3 = vld [vmem:[#allocation20 + $0x108] sm:$0xff]   ;;  %v11774_v18 = vld [vmem:[#allocation20 + $0x158] sm:$0xff]  }
 0xbb3   :  { %12030 = vtanh.f32 %v11044_v59  ;;  %v11775_v59 = vld [vmem:[#allocation20 + $0x118] sm:$0xff]  }
 0xbba   :  { %v12025_v14 = vpop.eup %12024 }
 0xbbb   :  { %v12027_v40 = vpop.eup %12026  ;;  %v8626_v60 = vadd.f32 1.0, %v12025_v14  ;;  %v11776_v14 = vld [vmem:[#allocation20 + $0x160] sm:$0xff]  }
 0xbbc   :  { %v8632_v23 = vadd.f32 1.0, %v12027_v40  ;;  %v12029_v57 = vpop.eup %12028  ;;  %v11777_v40 = vld [vmem:[#allocation20 + $0x120] sm:$0xff]  }
 0xbbd   :  { %12032 = vrcp.f32 %v8626_v60  ;;  %v12031_v55 = vpop.eup %12030  ;;  %v8639_v35 = vadd.f32 1.0, %v12029_v57  ;;  %v11778_v60 = vld [vmem:[#allocation20 + $0x168] sm:$0xff]   ;;  %v11780_v57 = vld [vmem:[#allocation20 + $0x170] sm:$0xff]  }
 0xbbe   :  { %12034 = vrcp.f32 %v8632_v23  ;;  %v11779_v23 = vld [vmem:[#allocation20 + $0x128] sm:$0xff]  }
 0xbbf   :  { %12036 = vrcp.f32 %v8639_v35  ;;  %v11786_v35 = vld [vmem:[#allocation20 + $0x1c8] sm:$0xff]  }
 0xbc7   :  { %v12033_v37 = vpop.eup %12032 }
 0xbc8   :  { %v12035_v36 = vpop.eup %12034  ;;  %v8643_v7 = vmul.f32 %v12033_v37, %v12031_v55  ;;  %v11782_v55 = vld [vmem:[#allocation20 + $0x178] sm:$0xff]  }
 0xbc9   :  { %v8642_v28 = vmul.f32 %v12035_v36, %v14912_v45  ;;  %v12037_v0 = vpop.eup %12036  ;;  %v11742_v45 = vld [vmem:[#allocation20 + $0x8] sm:$0xff]   ;;  %v11783_v37 = vld [vmem:[#allocation20 + $0x138] sm:$0xff]   ;;  %v11784_v36 = vld [vmem:[#allocation20 + $0x1c0] sm:$0xff]  }
 0xbcb   :  { %v14981_v21 = vadd.f32 %v8643_v7, %v8642_v28  ;;  %v11785_v7 = vld [vmem:[#allocation20 + $0x180] sm:$0xff]   ;;  %v11787_v28 = vld [vmem:[#allocation20 + $0x188] sm:$0xff]  }
 0xbcd   :  { %12038 = vtanh.f32 %v14981_v21 }
 0xbd7   :  { %v12039_v61 = vpop.eup %12038 }
 0xbd8   :  { %v8646_v30 = vmul.f32 %v12039_v61, %v12037_v0  ;;  %v11788_v0 = vld [vmem:[#allocation20 + $0x1d0] sm:$0xff]  }
 0xbd9   :  { %v11789_v61 = vld [vmem:[#allocation20 + $0x190] sm:$0xff]  }
 0xbda   :  { %v14984_v62 = vpack.c.bf16 %v8646_v30, %v8646_v30  ;;  %v11790_v30 = vld [vmem:[#allocation20 + $0x1d8] sm:$0xff]  }
 0xbdc   :  { %8874 = vmatmul.mubr.bf16.vlgmr.msra.gmra.mrb[60].mxu0 %v14984_v62  ;;  %8915 = vmatmul.mubr.bf16.vlgmr.msra.gmra.mrb[60].mxu1 %v14984_v62 }
 0xbdd   :  { %10931 = vmatpush3.bf16.msra.mxu0 %v11738_v10  ;;  %10953 = vmatpush3.bf16.msra.mxu1 %v11739_v56  ;;  %v11791_v10 = vld [vmem:[#allocation20 + $0x198] sm:$0xff]   ;;  %v11792_v56 = vld [vmem:[#allocation20 + $0x1e0] sm:$0xff]  }
 0xbde   :  { %9519 = vmatprep.mubr.bf16.mxu0 %v15516_v42  ;;  %9559 = vmatprep.mubr.bf16.mxu1 %v15517_v63  ;;  %v11798_v42 = vld [vmem:[#allocation20 + $0x1f8] sm:$0xff]  }
 0xbdf   :  { %10932 = vmatprep.subr.bf16.mxu0 %v11740_v1  ;;  %10954 = vmatprep.subr.bf16.mxu1 %v11741_v22  ;;  %v11793_v1 = vld [vmem:[#allocation20 + $0x1a0] sm:$0xff]   ;;  %v11795_v22 = vld [vmem:[#allocation20 + $0x1a8] sm:$0xff]   ;;  %v11799_v63 = vld [vmem:[#allocation20 + $0x1b8] sm:$0xff]  }
 0xbe1   :  { %10933 = vmatpush3.bf16.msra.mxu0 %v11742_v45  ;;  %10955 = vmatpush3.bf16.msra.mxu1 %v11743_v4  ;;  %v11796_v45 = vld [vmem:[#allocation20 + $0x1f0] sm:$0xff]  }
 0xbe2   :  { %10934 = vmatprep.subr.bf16.mxu0 %v11744_v43  ;;  %10956 = vmatprep.subr.bf16.mxu1 %v11745_v19  ;;  %v11797_v4 = vld [vmem:[#allocation20 + $0x1b0] sm:$0xff]  }
 0xbe5   :  { %10935 = vmatpush3.bf16.msra.mxu0 %v11746_v17  ;;  %10957 = vmatpush3.bf16.msra.mxu1 %v11747_v50 }
 0xbe6   :  { %10936 = vmatprep.subr.bf16.mxu0 %v11748_v52  ;;  %10958 = vmatprep.subr.bf16.mxu1 %v11749_v12 }
 0xbe9   :  { %10937 = vmatpush3.bf16.msra.mxu0 %v11750_v8  ;;  %10959 = vmatpush3.bf16.msra.mxu1 %v11751_v29 }
 0xbea   :  { %10938 = vmatprep.subr.bf16.mxu0 %v11752_v34  ;;  %10960 = vmatprep.subr.bf16.mxu1 %v11753_v46 }
 0xbed   :  { %10939 = vmatpush3.bf16.msra.mxu0 %v11754_v26  ;;  %10961 = vmatpush3.bf16.msra.mxu1 %v11755_v48 }
 0xbee   :  { %10940 = vmatprep.subr.bf16.mxu0 %v11756_v2  ;;  %10962 = vmatprep.subr.bf16.mxu1 %v11757_v49 }
 0xbf1   :  { %10941 = vmatpush3.bf16.msra.mxu0 %v11758_v13  ;;  %10963 = vmatpush3.bf16.msra.mxu1 %v11759_v54 }
 0xbf2   :  { %10942 = vmatprep.subr.bf16.mxu0 %v11760_v53  ;;  %10964 = vmatprep.subr.bf16.mxu1 %v11761_v24 }
 0xbf5   :  { %10943 = vmatpush3.bf16.msra.mxu0 %v11762_v9  ;;  %10965 = vmatpush3.bf16.msra.mxu1 %v11763_v32 }
 0xbf6   :  { %10944 = vmatprep.subr.bf16.mxu0 %v11764_v47  ;;  %10966 = vmatprep.subr.bf16.mxu1 %v11765_v5 }
 0xbf9   :  { %10945 = vmatpush3.bf16.msra.mxu0 %v11766_v58  ;;  %10967 = vmatpush3.bf16.msra.mxu1 %v11767_v38 }
 0xbfa   :  { %10974 = vmatprep.subr.bf16.mxu0 %v11768_v44  ;;  %10996 = vmatprep.subr.bf16.mxu1 %v11784_v36 }
 0xbfc   :  { %9520 = vmatmul.mubr.bf16.vlgmr.msra.gmra.mrb[64].mxu0 %v15518_v27  ;;  %9560 = vmatmul.mubr.bf16.vlgmr.msra.gmra.mrb[64].mxu1 %v15519_v25 }
 0xbfd   :  { %10975 = vmatpush3.bf16.msra.mxu0 %v11769_v33  ;;  %9599 = vmatprep.mubr.bf16.mxu0 %v14956_v6  ;;  %v11781_v6 = vld [vmem:[#allocation20 + $0x130] sm:$0xff]  }
 0xbfe   :  { %10976 = vmatprep.subr.bf16.mxu0 %v11770_v51  ;;  %10997 = vmatpush3.bf16.msra.mxu1 %v11785_v7 }
 0xbff   :  { %10998 = vmatprep.subr.bf16.mxu1 %v11786_v35 }
 0xc01   :  { %10977 = vmatpush3.bf16.msra.mxu0 %v11771_v3 }
 0xc02   :  { %10978 = vmatprep.subr.bf16.mxu0 %v11772_v31  ;;  %10999 = vmatpush3.bf16.msra.mxu1 %v11787_v28 }
 0xc03   :  { %11000 = vmatprep.subr.bf16.mxu1 %v11788_v0 }
 0xc05   :  { %10979 = vmatpush3.bf16.msra.mxu0 %v11773_v20 }
 0xc06   :  { %10980 = vmatprep.subr.bf16.mxu0 %v11774_v18  ;;  %11001 = vmatpush3.bf16.msra.mxu1 %v11789_v61 }
 0xc07   :  { %11002 = vmatprep.subr.bf16.mxu1 %v11790_v30 }
 0xc09   :  { %10981 = vmatpush3.bf16.msra.mxu0 %v11775_v59 }
 0xc0a   :  { %10982 = vmatprep.subr.bf16.mxu0 %v11776_v14  ;;  %11003 = vmatpush3.bf16.msra.mxu1 %v11791_v10 }
 0xc0b   :  { %11004 = vmatprep.subr.bf16.mxu1 %v11792_v56 }
 0xc0d   :  { %10983 = vmatpush3.bf16.msra.mxu0 %v11777_v40 }
 0xc0e   :  { %10984 = vmatprep.subr.bf16.mxu0 %v11778_v60  ;;  %11005 = vmatpush3.bf16.msra.mxu1 %v11793_v1 }
 0xc11   :  { %10985 = vmatpush3.bf16.msra.mxu0 %v11779_v23 }
 0xc12   :  { %10986 = vmatprep.subr.bf16.mxu0 %v11780_v57 }
 0xc15   :  { %10987 = vmatpush3.bf16.msra.mxu0 %v11781_v6 }
 0xc16   :  { %10988 = vmatprep.subr.bf16.mxu0 %v11782_v55 }
 0xc19   :  { %10989 = vmatpush3.bf16.msra.mxu0 %v11783_v37 }
 0xc1c   :  { %9600 = vmatmul.mubr.bf16.vlgmr.msra.gmra.mrb[68].mxu0 %v14826_v39  ;;  %v11794_v39 = vld [vmem:[#allocation20 + $0x1e8] sm:$0xff]  }
 0xc1d   :  { %11006 = vmatprep.subr.bf16.mxu1 %v11794_v39 }
 0xc1e   :  { %11007 = vmatpush3.bf16.msra.mxu1 %v11795_v22 }
 0xc1f   :  { %11008 = vmatprep.subr.bf16.mxu1 %v11796_v45 }
 0xc22   :  { %11009 = vmatpush3.bf16.msra.mxu1 %v11797_v4 }
 0xc23   :  { %11010 = vmatprep.subr.bf16.mxu1 %v11798_v42 }
 0xc26   :  { %11011 = vmatpush3.bf16.msra.mxu1 %v11799_v63 }
 0xcaf   :  { %v8875_v43 = vpop.f32.mrb[60].mxu0  ;;  %v8916_v19 = vpop.f32.mrb[60].mxu1 }
 0xcb0   :  { %v11046_v17 = vadd.f32 %v8875_v43, %v15513_v11  ;;  %v8877_v50 = vpop.f32.mrb[61].mxu0  ;;  %v8918_v52 = vpop.f32.mrb[61].mxu1  ;;  %v11048_v13 = vadd.f32 %v8916_v19, %v15515_v15  ;;  %v10801_v15 = vld [vmem:[#allocation22] ss:$0 sm:$0xff] }
 0xcb1   :  { %v11047_v12 = vadd.f32 %v8877_v50, %v15514_v16  ;;  %v8879_v8 = vpop.f32.mrb[62].mxu0  ;;  %v8920_v29 = vpop.f32.mrb[62].mxu1  ;;  %v11049_v2 = vadd.f32 %v8918_v52, %v13672_v41 }
 0xcb2   :  { %v10798_v34 = vmul.f32 -1.442695, %v11046_v17  ;;  %v8880_v46 = vpop.f32.mrb[63].mxu0  ;;  %v8921_v26 = vpop.f32.mrb[63].mxu1 }
 0xcb3   :  { %v10799_v48 = vmul.f32 -1.442695, %v11047_v12  ;;  %v10800_v49 = vmul.f32 -1.442695, %v11049_v2 }
 0xcb4   :  { %12040 = vpow2.f32 %v10798_v34 }
 0xcb5   :  { %12042 = vpow2.f32 %v10799_v48 }
 0xcb6   :  { %12044 = vpow2.f32 %v10800_v49 }
 0xcb7   :  { %12046 = vtanh.f32 %v11048_v13 }
 0xcbe   :  { %v12041_v54 = vpop.eup %12040 }
 0xcbf   :  { %v12043_v53 = vpop.eup %12042  ;;  %v8930_v11 = vadd.f32 1.0, %v12041_v54 }
 0xcc0   :  { %v8936_v24 = vadd.f32 1.0, %v12043_v53  ;;  %v12045_v16 = vpop.eup %12044 }
 0xcc1   :  { %12048 = vrcp.f32 %v8930_v11  ;;  %v12047_v9 = vpop.eup %12046  ;;  %v8943_v58 = vadd.f32 1.0, %v12045_v16 }
 0xcc2   :  { %12050 = vrcp.f32 %v8936_v24 }
 0xcc3   :  { %12052 = vrcp.f32 %v8943_v58 }
 0xccb   :  { %v12049_v32 = vpop.eup %12048 }
 0xccc   :  { %v12051_v47 = vpop.eup %12050  ;;  %v8947_v5 = vmul.f32 %v12049_v32, %v12047_v9 }
 0xccd   :  { %v8946_v38 = vmul.f32 %v12051_v47, %v14981_v21  ;;  %v12053_v60 = vpop.eup %12052 }
 0xccf   :  { %v10946_v41 = vpop.f32.mrb[64].mxu0  ;;  %v10968_v44 = vpop.f32.mrb[64].mxu1  ;;  %v8948_v33 = vadd.f32 %v8947_v5, %v8946_v38 }
 0xcd0   :  { %v10947_v51 = vpop.f32.mrb[65].mxu0  ;;  %v10969_v27 = vpop.f32.mrb[65].mxu1 }
 0xcd1   :  { %v10948_v25 = vadd.f32 %v10947_v51, %v10946_v41  ;;  %v10970_v3 = vadd.f32 %v10969_v27, %v10968_v44  ;;  %v10949_v31 = vpop.f32.mrb[66].mxu0  ;;  %v10971_v20 = vpop.f32.mrb[66].mxu1  ;;  %12054 = vtanh.f32 %v8948_v33 }
 0xcd2   :  { %v10950_v18 = vpop.f32.mrb[67].mxu0  ;;  %v10972_v59 = vpop.f32.mrb[67].mxu1 }
 0xcd3   :  { %v9522_v14 = vadd.f32 %v10948_v25, %v10801_v15 }
 0xcd5   :  { %v9562_v40 = vadd.f32 %v10970_v3, %v9522_v14 }
 0xcdb   :  { %v12055_v23 = vpop.eup %12054 }
 0xcdc   :  { %v8950_v57 = vmul.f32 %v12055_v23, %v12053_v60 }
 0xcde   :  { %v8967_v21 = vpack.c.bf16 %v8950_v57, %v8950_v57 }
 0xce0   :  { %9639 = vmatprep.mubr.bf16.mxu1 %v8967_v21 }
 0xce1   :  { %9640 = vmatmul.mubr.bf16.vlgmr.msra.gmra.mrb[68].mxu1 %v14984_v62 }
 0xcef   :  { %v10990_v6 = vpop.f32.mrb[68].mxu0 }
 0xcf0   :  { %v10991_v55 = vpop.f32.mrb[69].mxu0 }
 0xcf1   :  { %v10992_v37 = vadd.f32 %v10991_v55, %v10990_v6  ;;  %v10993_v36 = vpop.f32.mrb[70].mxu0 }
 0xcf2   :  { %v10994_v7 = vpop.f32.mrb[71].mxu0 }
 0xcf3   :  { %v9602_v35 = vadd.f32 %v10992_v37, %v9562_v40 }
 0xdb4   :  { %v11012_v28 = vpop.f32.mrb[68].mxu1 }
 0xdb5   :  { %v11013_v0 = vpop.f32.mrb[69].mxu1 }
 0xdb6   :  { %v11014_v61 = vadd.f32 %v11013_v0, %v11012_v28  ;;  %v11015_v30 = vpop.f32.mrb[70].mxu1 }
 0xdb7   :  { %v11016_v10 = vpop.f32.mrb[71].mxu1 }
 0xdb8   :  { %v9642_v56 = vadd.f32 %v11014_v61, %v9602_v35 }
 0xdba   :  { %9647 = vst [vmem:[%s15520_s28] sm:$0xff] %v9642_v56 }
 0xdbb   :  { %9652 = vsyncpa [#allocation5], 1 }
 0xdbc   :  { %9653 = vsyncpa [#allocation9], 1 }
 0xdbd   :  { %9654 = vsyncpa [#allocation12], 1 }
 0xdbe   :  { %9655 = vsyncpa [#allocation15], 1 }
 0xdbf   :  { %9656 = vsyncpa [#allocation18], 1 }
 0xdc0   :  { %9657 = vsyncpa [#allocation21], 1 }
 0xdc1   :  { %9658 = vsyncpa [#allocation6], 1 }

</bundles_post_ra>
